<compile_context>
chip_gen: v5e
topology: v5e:2x2
jax: 0.10.0
libtpu: 0.0.40
codegen_flags: <defaults>
</compile_context>

<pallas_src>
import functools

import jax
import jax.numpy as jnp
from jax.experimental import pallas as pl
from jax.experimental.pallas import tpu as pltpu

BN_EPS = 1e-5
_MXU_DTYPE = jnp.bfloat16   # MXU operand dtype; accumulation stays f32.
_WPAD = 8                   # one full sublane tile of zero padding per side of W


def _vmem_spec():
    return pl.BlockSpec(memory_space=pltpu.MemorySpace.VMEM)


def _conv3x3_bn_relu(src_ref, w_ref, g_ref, b_ref):
    """conv3x3(pad=1, no bias) + BatchNorm2d(batch stats) + ReLU on a padded scratch.

    src_ref: (N, H+2, W+2*_WPAD, Cin) VMEM scratch, zeros everywhere except the
             valid data stored at [:, 1:H+1, _WPAD:_WPAD+W, :].
    w_ref:   (3, 3, Cin, Cout);  g_ref / b_ref: (1, Cout).
    Returns the (N*H*W, Cout) activation as an f32 value (kept in VMEM/vregs).
    """
    n, hp2, wp, cin = src_ref.shape
    h, w = hp2 - 2, wp - 2 * _WPAD
    cout = w_ref.shape[-1]
    m = n * h * w

    acc = jnp.zeros((m, cout), jnp.float32)
    for ky in range(3):
        for kx in range(3):
            # Shifted 3x3-tap window; boundary zeros come from the scratch padding.
            patch = src_ref[:, ky:ky + h, _WPAD - 1 + kx:_WPAD - 1 + kx + w, :]
            patch = patch.reshape(m, cin)
            acc = acc + jnp.dot(patch.astype(_MXU_DTYPE),
                                w_ref[ky, kx].astype(_MXU_DTYPE),
                                preferred_element_type=jnp.float32)

    # BatchNorm2d, training mode: biased variance over (N, H, W), single pass.
    inv_m = 1.0 / float(m)
    mean = jnp.sum(acc, axis=0, keepdims=True) * inv_m
    ex2 = jnp.sum(acc * acc, axis=0, keepdims=True) * inv_m
    var = jnp.maximum(ex2 - mean * mean, 0.0)          # clamp tiny negative rounding
    scale = g_ref[...] * jax.lax.rsqrt(var + BN_EPS)
    shift = b_ref[...] - mean * scale
    return jnp.maximum(acc * scale + shift, 0.0)       # ReLU


def _double_conv_kernel(x_ref, w1_ref, g1_ref, b1_ref, w2_ref, g2_ref, b2_ref,
                        out_ref, xp_ref, hp_ref):
    n, height, width, _ = x_ref.shape
    cmid = w1_ref.shape[-1]
    cout = out_ref.shape[-1]

    # Stage 1: zero-pad the input into VMEM scratch (tile-aligned interior store).
    xp_ref[...] = jnp.zeros(xp_ref.shape, xp_ref.dtype)
    xp_ref[:, 1:height + 1, _WPAD:_WPAD + width, :] = x_ref[...]
    h1 = _conv3x3_bn_relu(xp_ref, w1_ref, g1_ref, b1_ref)

    # Stage 2: the intermediate never leaves VMEM -- re-pad it into the 2nd scratch.
    hp_ref[...] = jnp.zeros(hp_ref.shape, hp_ref.dtype)
    hp_ref[:, 1:height + 1, _WPAD:_WPAD + width, :] = h1.reshape(
        n, height, width, cmid)
    h2 = _conv3x3_bn_relu(hp_ref, w2_ref, g2_ref, b2_ref)

    out_ref[...] = h2.reshape(n, height, width, cout)


def double_conv(x_nchw, params):
    """Forward pass of DoubleConv. Accepts / returns NCHW like PyTorch."""
    x = jnp.transpose(x_nchw, (0, 2, 3, 1)).astype(jnp.float32)      # NCHW -> NHWC
    n, h, w, cin = x.shape
    cmid = params["w1"].shape[-1]
    cout = params["w2"].shape[-1]

    flops = 2 * n * h * w * 9 * (cin * cmid + cmid * cout)
    bytes_accessed = 4 * (x.size + params["w1"].size + params["w2"].size
                          + 2 * (cmid + cout) + n * h * w * cout)

    out = pl.pallas_call(
        _double_conv_kernel,
        out_shape=jax.ShapeDtypeStruct((n, h, w, cout), jnp.float32),
        in_specs=[_vmem_spec()] * 7,
        out_specs=_vmem_spec(),
        scratch_shapes=[
            pltpu.VMEM((n, h + 2, w + 2 * _WPAD, cin), jnp.float32),   # padded input
            pltpu.VMEM((n, h + 2, w + 2 * _WPAD, cmid), jnp.float32),  # padded mid act
        ],
        cost_estimate=pl.CostEstimate(flops=flops, transcendentals=0,
                                      bytes_accessed=bytes_accessed),
    )(x, params["w1"], params["g1"], params["b1"],
      params["w2"], params["g2"], params["b2"])
    return jnp.transpose(out, (0, 3, 1, 2))                          # NHWC -> NCHW


# ------------------------------ parameters ------------------------------------
def init_double_conv_params(key, in_channels, out_channels):
    kw1, kw2, kg1, kb1, kg2, kb2 = jax.random.split(key, 6)

    def conv_w(k, cin, cout):
        return jax.random.normal(k, (3, 3, cin, cout), jnp.float32) / jnp.sqrt(9.0 * cin)

    return {
        "w1": conv_w(kw1, in_channels, out_channels),
        "g1": 0.5 + jax.random.uniform(kg1, (1, out_channels), jnp.float32),
        "b1": 0.1 * jax.random.normal(kb1, (1, out_channels), jnp.float32),
        "w2": conv_w(kw2, out_channels, out_channels),
        "g2": 0.5 + jax.random.uniform(kg2, (1, out_channels), jnp.float32),
        "b2": 0.1 * jax.random.normal(kb2, (1, out_channels), jnp.float32),
    }


# ------------------------- pure-JAX reference (f32) ----------------------------
def reference_double_conv(x_nchw, params):
    x = jnp.transpose(x_nchw, (0, 2, 3, 1)).astype(jnp.float32)

    def cbr(y, wt, g, b):
        y = jax.lax.conv_general_dilated(
            y, wt, window_strides=(1, 1), padding="SAME",
            dimension_numbers=("NHWC", "HWIO", "NHWC"))
        mean = jnp.mean(y, axis=(0, 1, 2), keepdims=True)
        var = jnp.mean(jnp.square(y - mean), axis=(0, 1, 2), keepdims=True)
        yhat = (y - mean) * jax.lax.rsqrt(var + BN_EPS)
        return jnp.maximum(yhat * g.reshape(1, 1, 1, -1) + b.reshape(1, 1, 1, -1), 0.0)

    y = cbr(x, params["w1"], params["g1"], params["b1"])
    y = cbr(y, params["w2"], params["g2"], params["b2"])
    return jnp.transpose(y, (0, 3, 1, 2))


if __name__ == "__main__":
    key = jax.random.PRNGKey(0)
    kx, kp = jax.random.split(key)
    # Small shapes consistent with the module: batch=2, in_channels=4, 16x16
    # spatial, out_channels=32. Input is NCHW like PyTorch.
    x = jax.random.normal(kx, (2, 4, 16, 16), jnp.float32)
    params = init_double_conv_params(kp, in_channels=4, out_channels=32)

    fwd = jax.jit(functools.partial(double_conv, params=params))
    out = jax.block_until_ready(fwd(x))

    assert out.shape == (2, 32, 16, 16), out.shape
    assert bool(jnp.all(jnp.isfinite(out)))

    ref = reference_double_conv(x, params)
    # bf16 MXU operands with f32 accumulation -> small deviation from the f32 ref.
    assert bool(jnp.allclose(out, ref, rtol=5e-2, atol=5e-2)), \
        float(jnp.max(jnp.abs(out - ref)))
    print("KERNEL_OK")
</pallas_src>

<mosaic_0001>
module attributes {stable_mosaic.version = 11 : i64} {
  func.func @_double_conv_kernel(%arg0: memref<2x16x16x4xf32, #tpu.memory_space<vmem>>, %arg1: memref<3x3x4x32xf32, #tpu.memory_space<vmem>>, %arg2: memref<1x32xf32, #tpu.memory_space<vmem>>, %arg3: memref<1x32xf32, #tpu.memory_space<vmem>>, %arg4: memref<3x3x32x32xf32, #tpu.memory_space<vmem>>, %arg5: memref<1x32xf32, #tpu.memory_space<vmem>>, %arg6: memref<1x32xf32, #tpu.memory_space<vmem>>, %arg7: memref<2x16x16x32xf32, #tpu.memory_space<vmem>>, %arg8: memref<2x18x32x4xf32, #tpu.memory_space<vmem>>, %arg9: memref<2x18x32x32xf32, #tpu.memory_space<vmem>>) attributes {dimension_semantics = [], scalar_prefetch = 0 : i64, scratch_operands = 2 : i64, tpu.core_type = #tpu.core_type<tc>} {
    %cst = arith.constant 0.000000e+00 : f32
    %0 = vector.broadcast %cst : f32 to vector<2x18x32x4xf32>
    %c0 = arith.constant 0 : index
    %c0_0 = arith.constant 0 : index
    %c0_1 = arith.constant 0 : index
    %c0_2 = arith.constant 0 : index
    %1 = vector.load %arg8[%c0, %c0_0, %c0_1, %c0_2] : memref<2x18x32x4xf32, #tpu.memory_space<vmem>>, vector<2x18x32x4xf32>
    tpu.vector_store %arg8[%c0, %c0_0, %c0_1, %c0_2], %0 {strides = array<i32>} : memref<2x18x32x4xf32, #tpu.memory_space<vmem>>, vector<2x18x32x4xf32>,
    %c0_3 = arith.constant 0 : index
    %c0_4 = arith.constant 0 : index
    %c0_5 = arith.constant 0 : index
    %c0_6 = arith.constant 0 : index
    %2 = vector.load %arg0[%c0_3, %c0_4, %c0_5, %c0_6] : memref<2x16x16x4xf32, #tpu.memory_space<vmem>>, vector<2x16x16x4xf32>
    %c0_7 = arith.constant 0 : index
    %c1 = arith.constant 1 : index
    %c8 = arith.constant 8 : index
    %c0_8 = arith.constant 0 : index
    %3 = vector.load %arg8[%c0_7, %c1, %c8, %c0_8] : memref<2x18x32x4xf32, #tpu.memory_space<vmem>>, vector<2x16x16x4xf32>
    tpu.vector_store %arg8[%c0_7, %c1, %c8, %c0_8], %2 {strides = array<i32>} : memref<2x18x32x4xf32, #tpu.memory_space<vmem>>, vector<2x16x16x4xf32>,
    %cst_9 = arith.constant 0.000000e+00 : f32
    %4 = vector.broadcast %cst_9 : f32 to vector<512x32xf32>
    %c0_10 = arith.constant 0 : index
    %c0_11 = arith.constant 0 : index
    %c7 = arith.constant 7 : index
    %c0_12 = arith.constant 0 : index
    %5 = vector.load %arg8[%c0_10, %c0_11, %c7, %c0_12] : memref<2x18x32x4xf32, #tpu.memory_space<vmem>>, vector<2x16x16x4xf32>
    %6 = vector.shape_cast %5 : vector<2x16x16x4xf32> to vector<512x4xf32>
    %7 = arith.truncf %6 : vector<512x4xf32> to vector<512x4xbf16>
    %c0_13 = arith.constant 0 : index
    %c0_14 = arith.constant 0 : index
    %c0_15 = arith.constant 0 : index
    %c0_16 = arith.constant 0 : index
    %8 = vector.load %arg1[%c0_13, %c0_14, %c0_15, %c0_16] : memref<3x3x4x32xf32, #tpu.memory_space<vmem>>, vector<1x1x4x32xf32>
    %9 = vector.shape_cast %8 : vector<1x1x4x32xf32> to vector<4x32xf32>
    %10 = arith.truncf %9 : vector<4x32xf32> to vector<4x32xbf16>
    %cst_17 = arith.constant dense<0.000000e+00> : vector<512x32xf32>
    %11 = tpu.matmul %7, %10, %cst_17 {dimension_numbers = #tpu.dot_dimension_numbers<[1], [0], [0], [1], [0, 0, 1, 1], [], []>} : vector<512x4xbf16>, vector<4x32xbf16>, vector<512x32xf32> -> vector<512x32xf32>
    %12 = arith.addf %4, %11 : vector<512x32xf32>
    %c0_18 = arith.constant 0 : index
    %c0_19 = arith.constant 0 : index
    %c8_20 = arith.constant 8 : index
    %c0_21 = arith.constant 0 : index
    %13 = vector.load %arg8[%c0_18, %c0_19, %c8_20, %c0_21] : memref<2x18x32x4xf32, #tpu.memory_space<vmem>>, vector<2x16x16x4xf32>
    %14 = vector.shape_cast %13 : vector<2x16x16x4xf32> to vector<512x4xf32>
    %15 = arith.truncf %14 : vector<512x4xf32> to vector<512x4xbf16>
    %c0_22 = arith.constant 0 : index
    %c1_23 = arith.constant 1 : index
    %c0_24 = arith.constant 0 : index
    %c0_25 = arith.constant 0 : index
    %16 = vector.load %arg1[%c0_22, %c1_23, %c0_24, %c0_25] : memref<3x3x4x32xf32, #tpu.memory_space<vmem>>, vector<1x1x4x32xf32>
    %17 = vector.shape_cast %16 : vector<1x1x4x32xf32> to vector<4x32xf32>
    %18 = arith.truncf %17 : vector<4x32xf32> to vector<4x32xbf16>
    %cst_26 = arith.constant dense<0.000000e+00> : vector<512x32xf32>
    %19 = tpu.matmul %15, %18, %cst_26 {dimension_numbers = #tpu.dot_dimension_numbers<[1], [0], [0], [1], [0, 0, 1, 1], [], []>} : vector<512x4xbf16>, vector<4x32xbf16>, vector<512x32xf32> -> vector<512x32xf32>
    %20 = arith.addf %12, %19 : vector<512x32xf32>
    %c0_27 = arith.constant 0 : index
    %c0_28 = arith.constant 0 : index
    %c9 = arith.constant 9 : index
    %c0_29 = arith.constant 0 : index
    %21 = vector.load %arg8[%c0_27, %c0_28, %c9, %c0_29] : memref<2x18x32x4xf32, #tpu.memory_space<vmem>>, vector<2x16x16x4xf32>
    %22 = vector.shape_cast %21 : vector<2x16x16x4xf32> to vector<512x4xf32>
    %23 = arith.truncf %22 : vector<512x4xf32> to vector<512x4xbf16>
    %c0_30 = arith.constant 0 : index
    %c2 = arith.constant 2 : index
    %c0_31 = arith.constant 0 : index
    %c0_32 = arith.constant 0 : index
    %24 = vector.load %arg1[%c0_30, %c2, %c0_31, %c0_32] : memref<3x3x4x32xf32, #tpu.memory_space<vmem>>, vector<1x1x4x32xf32>
    %25 = vector.shape_cast %24 : vector<1x1x4x32xf32> to vector<4x32xf32>
    %26 = arith.truncf %25 : vector<4x32xf32> to vector<4x32xbf16>
    %cst_33 = arith.constant dense<0.000000e+00> : vector<512x32xf32>
    %27 = tpu.matmul %23, %26, %cst_33 {dimension_numbers = #tpu.dot_dimension_numbers<[1], [0], [0], [1], [0, 0, 1, 1], [], []>} : vector<512x4xbf16>, vector<4x32xbf16>, vector<512x32xf32> -> vector<512x32xf32>
    %28 = arith.addf %20, %27 : vector<512x32xf32>
    %c0_34 = arith.constant 0 : index
    %c1_35 = arith.constant 1 : index
    %c7_36 = arith.constant 7 : index
    %c0_37 = arith.constant 0 : index
    %29 = vector.load %arg8[%c0_34, %c1_35, %c7_36, %c0_37] : memref<2x18x32x4xf32, #tpu.memory_space<vmem>>, vector<2x16x16x4xf32>
    %30 = vector.shape_cast %29 : vector<2x16x16x4xf32> to vector<512x4xf32>
    %31 = arith.truncf %30 : vector<512x4xf32> to vector<512x4xbf16>
    %c1_38 = arith.constant 1 : index
    %c0_39 = arith.constant 0 : index
    %c0_40 = arith.constant 0 : index
    %c0_41 = arith.constant 0 : index
    %32 = vector.load %arg1[%c1_38, %c0_39, %c0_40, %c0_41] : memref<3x3x4x32xf32, #tpu.memory_space<vmem>>, vector<1x1x4x32xf32>
    %33 = vector.shape_cast %32 : vector<1x1x4x32xf32> to vector<4x32xf32>
    %34 = arith.truncf %33 : vector<4x32xf32> to vector<4x32xbf16>
    %cst_42 = arith.constant dense<0.000000e+00> : vector<512x32xf32>
    %35 = tpu.matmul %31, %34, %cst_42 {dimension_numbers = #tpu.dot_dimension_numbers<[1], [0], [0], [1], [0, 0, 1, 1], [], []>} : vector<512x4xbf16>, vector<4x32xbf16>, vector<512x32xf32> -> vector<512x32xf32>
    %36 = arith.addf %28, %35 : vector<512x32xf32>
    %c0_43 = arith.constant 0 : index
    %c1_44 = arith.constant 1 : index
    %c8_45 = arith.constant 8 : index
    %c0_46 = arith.constant 0 : index
    %37 = vector.load %arg8[%c0_43, %c1_44, %c8_45, %c0_46] : memref<2x18x32x4xf32, #tpu.memory_space<vmem>>, vector<2x16x16x4xf32>
    %38 = vector.shape_cast %37 : vector<2x16x16x4xf32> to vector<512x4xf32>
    %39 = arith.truncf %38 : vector<512x4xf32> to vector<512x4xbf16>
    %c1_47 = arith.constant 1 : index
    %c1_48 = arith.constant 1 : index
    %c0_49 = arith.constant 0 : index
    %c0_50 = arith.constant 0 : index
    %40 = vector.load %arg1[%c1_47, %c1_48, %c0_49, %c0_50] : memref<3x3x4x32xf32, #tpu.memory_space<vmem>>, vector<1x1x4x32xf32>
    %41 = vector.shape_cast %40 : vector<1x1x4x32xf32> to vector<4x32xf32>
    %42 = arith.truncf %41 : vector<4x32xf32> to vector<4x32xbf16>
    %cst_51 = arith.constant dense<0.000000e+00> : vector<512x32xf32>
    %43 = tpu.matmul %39, %42, %cst_51 {dimension_numbers = #tpu.dot_dimension_numbers<[1], [0], [0], [1], [0, 0, 1, 1], [], []>} : vector<512x4xbf16>, vector<4x32xbf16>, vector<512x32xf32> -> vector<512x32xf32>
    %44 = arith.addf %36, %43 : vector<512x32xf32>
    %c0_52 = arith.constant 0 : index
    %c1_53 = arith.constant 1 : index
    %c9_54 = arith.constant 9 : index
    %c0_55 = arith.constant 0 : index
    %45 = vector.load %arg8[%c0_52, %c1_53, %c9_54, %c0_55] : memref<2x18x32x4xf32, #tpu.memory_space<vmem>>, vector<2x16x16x4xf32>
    %46 = vector.shape_cast %45 : vector<2x16x16x4xf32> to vector<512x4xf32>
    %47 = arith.truncf %46 : vector<512x4xf32> to vector<512x4xbf16>
    %c1_56 = arith.constant 1 : index
    %c2_57 = arith.constant 2 : index
    %c0_58 = arith.constant 0 : index
    %c0_59 = arith.constant 0 : index
    %48 = vector.load %arg1[%c1_56, %c2_57, %c0_58, %c0_59] : memref<3x3x4x32xf32, #tpu.memory_space<vmem>>, vector<1x1x4x32xf32>
    %49 = vector.shape_cast %48 : vector<1x1x4x32xf32> to vector<4x32xf32>
    %50 = arith.truncf %49 : vector<4x32xf32> to vector<4x32xbf16>
    %cst_60 = arith.constant dense<0.000000e+00> : vector<512x32xf32>
    %51 = tpu.matmul %47, %50, %cst_60 {dimension_numbers = #tpu.dot_dimension_numbers<[1], [0], [0], [1], [0, 0, 1, 1], [], []>} : vector<512x4xbf16>, vector<4x32xbf16>, vector<512x32xf32> -> vector<512x32xf32>
    %52 = arith.addf %44, %51 : vector<512x32xf32>
    %c0_61 = arith.constant 0 : index
    %c2_62 = arith.constant 2 : index
    %c7_63 = arith.constant 7 : index
    %c0_64 = arith.constant 0 : index
    %53 = vector.load %arg8[%c0_61, %c2_62, %c7_63, %c0_64] : memref<2x18x32x4xf32, #tpu.memory_space<vmem>>, vector<2x16x16x4xf32>
    %54 = vector.shape_cast %53 : vector<2x16x16x4xf32> to vector<512x4xf32>
    %55 = arith.truncf %54 : vector<512x4xf32> to vector<512x4xbf16>
    %c2_65 = arith.constant 2 : index
    %c0_66 = arith.constant 0 : index
    %c0_67 = arith.constant 0 : index
    %c0_68 = arith.constant 0 : index
    %56 = vector.load %arg1[%c2_65, %c0_66, %c0_67, %c0_68] : memref<3x3x4x32xf32, #tpu.memory_space<vmem>>, vector<1x1x4x32xf32>
    %57 = vector.shape_cast %56 : vector<1x1x4x32xf32> to vector<4x32xf32>
    %58 = arith.truncf %57 : vector<4x32xf32> to vector<4x32xbf16>
    %cst_69 = arith.constant dense<0.000000e+00> : vector<512x32xf32>
    %59 = tpu.matmul %55, %58, %cst_69 {dimension_numbers = #tpu.dot_dimension_numbers<[1], [0], [0], [1], [0, 0, 1, 1], [], []>} : vector<512x4xbf16>, vector<4x32xbf16>, vector<512x32xf32> -> vector<512x32xf32>
    %60 = arith.addf %52, %59 : vector<512x32xf32>
    %c0_70 = arith.constant 0 : index
    %c2_71 = arith.constant 2 : index
    %c8_72 = arith.constant 8 : index
    %c0_73 = arith.constant 0 : index
    %61 = vector.load %arg8[%c0_70, %c2_71, %c8_72, %c0_73] : memref<2x18x32x4xf32, #tpu.memory_space<vmem>>, vector<2x16x16x4xf32>
    %62 = vector.shape_cast %61 : vector<2x16x16x4xf32> to vector<512x4xf32>
    %63 = arith.truncf %62 : vector<512x4xf32> to vector<512x4xbf16>
    %c2_74 = arith.constant 2 : index
    %c1_75 = arith.constant 1 : index
    %c0_76 = arith.constant 0 : index
    %c0_77 = arith.constant 0 : index
    %64 = vector.load %arg1[%c2_74, %c1_75, %c0_76, %c0_77] : memref<3x3x4x32xf32, #tpu.memory_space<vmem>>, vector<1x1x4x32xf32>
    %65 = vector.shape_cast %64 : vector<1x1x4x32xf32> to vector<4x32xf32>
    %66 = arith.truncf %65 : vector<4x32xf32> to vector<4x32xbf16>
    %cst_78 = arith.constant dense<0.000000e+00> : vector<512x32xf32>
    %67 = tpu.matmul %63, %66, %cst_78 {dimension_numbers = #tpu.dot_dimension_numbers<[1], [0], [0], [1], [0, 0, 1, 1], [], []>} : vector<512x4xbf16>, vector<4x32xbf16>, vector<512x32xf32> -> vector<512x32xf32>
    %68 = arith.addf %60, %67 : vector<512x32xf32>
    %c0_79 = arith.constant 0 : index
    %c2_80 = arith.constant 2 : index
    %c9_81 = arith.constant 9 : index
    %c0_82 = arith.constant 0 : index
    %69 = vector.load %arg8[%c0_79, %c2_80, %c9_81, %c0_82] : memref<2x18x32x4xf32, #tpu.memory_space<vmem>>, vector<2x16x16x4xf32>
    %70 = vector.shape_cast %69 : vector<2x16x16x4xf32> to vector<512x4xf32>
    %71 = arith.truncf %70 : vector<512x4xf32> to vector<512x4xbf16>
    %c2_83 = arith.constant 2 : index
    %c2_84 = arith.constant 2 : index
    %c0_85 = arith.constant 0 : index
    %c0_86 = arith.constant 0 : index
    %72 = vector.load %arg1[%c2_83, %c2_84, %c0_85, %c0_86] : memref<3x3x4x32xf32, #tpu.memory_space<vmem>>, vector<1x1x4x32xf32>
    %73 = vector.shape_cast %72 : vector<1x1x4x32xf32> to vector<4x32xf32>
    %74 = arith.truncf %73 : vector<4x32xf32> to vector<4x32xbf16>
    %cst_87 = arith.constant dense<0.000000e+00> : vector<512x32xf32>
    %75 = tpu.matmul %71, %74, %cst_87 {dimension_numbers = #tpu.dot_dimension_numbers<[1], [0], [0], [1], [0, 0, 1, 1], [], []>} : vector<512x4xbf16>, vector<4x32xbf16>, vector<512x32xf32> -> vector<512x32xf32>
    %76 = arith.addf %68, %75 : vector<512x32xf32>
    %cst_88 = arith.constant dense<0.000000e+00> : vector<32xf32>
    %77 = vector.multi_reduction <add>, %76, %cst_88 [0] : vector<512x32xf32> to vector<32xf32>
    %78 = vector.shape_cast %77 : vector<32xf32> to vector<1x32xf32>
    %cst_89 = arith.constant 0.001953125 : f32
    %79 = vector.broadcast %cst_89 : f32 to vector<1x32xf32>
    %80 = arith.mulf %78, %79 : vector<1x32xf32>
    %81 = arith.mulf %76, %76 : vector<512x32xf32>
    %cst_90 = arith.constant dense<0.000000e+00> : vector<32xf32>
    %82 = vector.multi_reduction <add>, %81, %cst_90 [0] : vector<512x32xf32> to vector<32xf32>
    %83 = vector.shape_cast %82 : vector<32xf32> to vector<1x32xf32>
    %cst_91 = arith.constant 0.001953125 : f32
    %84 = vector.broadcast %cst_91 : f32 to vector<1x32xf32>
    %85 = arith.mulf %83, %84 : vector<1x32xf32>
    %86 = arith.mulf %80, %80 : vector<1x32xf32>
    %87 = arith.subf %85, %86 : vector<1x32xf32>
    %cst_92 = arith.constant 0.000000e+00 : f32
    %88 = vector.broadcast %cst_92 : f32 to vector<1x32xf32>
    %89 = arith.maximumf %87, %88 : vector<1x32xf32>
    %c0_93 = arith.constant 0 : index
    %c0_94 = arith.constant 0 : index
    %90 = vector.load %arg2[%c0_93, %c0_94] : memref<1x32xf32, #tpu.memory_space<vmem>>, vector<1x32xf32>
    %cst_95 = arith.constant 9.99999974E-6 : f32
    %91 = vector.broadcast %cst_95 : f32 to vector<1x32xf32>
    %92 = arith.addf %89, %91 : vector<1x32xf32>
    %93 = math.rsqrt %92 : vector<1x32xf32>
    %94 = arith.mulf %90, %93 : vector<1x32xf32>
    %c0_96 = arith.constant 0 : index
    %c0_97 = arith.constant 0 : index
    %95 = vector.load %arg3[%c0_96, %c0_97] : memref<1x32xf32, #tpu.memory_space<vmem>>, vector<1x32xf32>
    %96 = arith.mulf %80, %94 : vector<1x32xf32>
    %97 = arith.subf %95, %96 : vector<1x32xf32>
    %98 = vector.broadcast %94 : vector<1x32xf32> to vector<512x32xf32>
    %99 = arith.mulf %76, %98 : vector<512x32xf32>
    %100 = vector.broadcast %97 : vector<1x32xf32> to vector<512x32xf32>
    %101 = arith.addf %99, %100 : vector<512x32xf32>
    %cst_98 = arith.constant 0.000000e+00 : f32
    %102 = vector.broadcast %cst_98 : f32 to vector<512x32xf32>
    %103 = arith.maximumf %101, %102 : vector<512x32xf32>
    %cst_99 = arith.constant 0.000000e+00 : f32
    %104 = vector.broadcast %cst_99 : f32 to vector<2x18x32x32xf32>
    %c0_100 = arith.constant 0 : index
    %c0_101 = arith.constant 0 : index
    %c0_102 = arith.constant 0 : index
    %c0_103 = arith.constant 0 : index
    %105 = vector.load %arg9[%c0_100, %c0_101, %c0_102, %c0_103] : memref<2x18x32x32xf32, #tpu.memory_space<vmem>>, vector<2x18x32x32xf32>
    tpu.vector_store %arg9[%c0_100, %c0_101, %c0_102, %c0_103], %104 {strides = array<i32>} : memref<2x18x32x32xf32, #tpu.memory_space<vmem>>, vector<2x18x32x32xf32>,
    %106 = vector.shape_cast %103 : vector<512x32xf32> to vector<2x16x16x32xf32>
    %c0_104 = arith.constant 0 : index
    %c1_105 = arith.constant 1 : index
    %c8_106 = arith.constant 8 : index
    %c0_107 = arith.constant 0 : index
    %107 = vector.load %arg9[%c0_104, %c1_105, %c8_106, %c0_107] : memref<2x18x32x32xf32, #tpu.memory_space<vmem>>, vector<2x16x16x32xf32>
    tpu.vector_store %arg9[%c0_104, %c1_105, %c8_106, %c0_107], %106 {strides = array<i32>} : memref<2x18x32x32xf32, #tpu.memory_space<vmem>>, vector<2x16x16x32xf32>,
    %cst_108 = arith.constant 0.000000e+00 : f32
    %108 = vector.broadcast %cst_108 : f32 to vector<512x32xf32>
    %c0_109 = arith.constant 0 : index
    %c0_110 = arith.constant 0 : index
    %c7_111 = arith.constant 7 : index
    %c0_112 = arith.constant 0 : index
    %109 = vector.load %arg9[%c0_109, %c0_110, %c7_111, %c0_112] : memref<2x18x32x32xf32, #tpu.memory_space<vmem>>, vector<2x16x16x32xf32>
    %110 = vector.shape_cast %109 : vector<2x16x16x32xf32> to vector<512x32xf32>
    %111 = arith.truncf %110 : vector<512x32xf32> to vector<512x32xbf16>
    %c0_113 = arith.constant 0 : index
    %c0_114 = arith.constant 0 : index
    %c0_115 = arith.constant 0 : index
    %c0_116 = arith.constant 0 : index
    %112 = vector.load %arg4[%c0_113, %c0_114, %c0_115, %c0_116] : memref<3x3x32x32xf32, #tpu.memory_space<vmem>>, vector<1x1x32x32xf32>
    %113 = vector.shape_cast %112 : vector<1x1x32x32xf32> to vector<32x32xf32>
    %114 = arith.truncf %113 : vector<32x32xf32> to vector<32x32xbf16>
    %cst_117 = arith.constant dense<0.000000e+00> : vector<512x32xf32>
    %115 = tpu.matmul %111, %114, %cst_117 {dimension_numbers = #tpu.dot_dimension_numbers<[1], [0], [0], [1], [0, 0, 1, 1], [], []>} : vector<512x32xbf16>, vector<32x32xbf16>, vector<512x32xf32> -> vector<512x32xf32>
    %116 = arith.addf %108, %115 : vector<512x32xf32>
    %c0_118 = arith.constant 0 : index
    %c0_119 = arith.constant 0 : index
    %c8_120 = arith.constant 8 : index
    %c0_121 = arith.constant 0 : index
    %117 = vector.load %arg9[%c0_118, %c0_119, %c8_120, %c0_121] : memref<2x18x32x32xf32, #tpu.memory_space<vmem>>, vector<2x16x16x32xf32>
    %118 = vector.shape_cast %117 : vector<2x16x16x32xf32> to vector<512x32xf32>
    %119 = arith.truncf %118 : vector<512x32xf32> to vector<512x32xbf16>
    %c0_122 = arith.constant 0 : index
    %c1_123 = arith.constant 1 : index
    %c0_124 = arith.constant 0 : index
    %c0_125 = arith.constant 0 : index
    %120 = vector.load %arg4[%c0_122, %c1_123, %c0_124, %c0_125] : memref<3x3x32x32xf32, #tpu.memory_space<vmem>>, vector<1x1x32x32xf32>
    %121 = vector.shape_cast %120 : vector<1x1x32x32xf32> to vector<32x32xf32>
    %122 = arith.truncf %121 : vector<32x32xf32> to vector<32x32xbf16>
    %cst_126 = arith.constant dense<0.000000e+00> : vector<512x32xf32>
    %123 = tpu.matmul %119, %122, %cst_126 {dimension_numbers = #tpu.dot_dimension_numbers<[1], [0], [0], [1], [0, 0, 1, 1], [], []>} : vector<512x32xbf16>, vector<32x32xbf16>, vector<512x32xf32> -> vector<512x32xf32>
    %124 = arith.addf %116, %123 : vector<512x32xf32>
    %c0_127 = arith.constant 0 : index
    %c0_128 = arith.constant 0 : index
    %c9_129 = arith.constant 9 : index
    %c0_130 = arith.constant 0 : index
    %125 = vector.load %arg9[%c0_127, %c0_128, %c9_129, %c0_130] : memref<2x18x32x32xf32, #tpu.memory_space<vmem>>, vector<2x16x16x32xf32>
    %126 = vector.shape_cast %125 : vector<2x16x16x32xf32> to vector<512x32xf32>
    %127 = arith.truncf %126 : vector<512x32xf32> to vector<512x32xbf16>
    %c0_131 = arith.constant 0 : index
    %c2_132 = arith.constant 2 : index
    %c0_133 = arith.constant 0 : index
    %c0_134 = arith.constant 0 : index
    %128 = vector.load %arg4[%c0_131, %c2_132, %c0_133, %c0_134] : memref<3x3x32x32xf32, #tpu.memory_space<vmem>>, vector<1x1x32x32xf32>
    %129 = vector.shape_cast %128 : vector<1x1x32x32xf32> to vector<32x32xf32>
    %130 = arith.truncf %129 : vector<32x32xf32> to vector<32x32xbf16>
    %cst_135 = arith.constant dense<0.000000e+00> : vector<512x32xf32>
    %131 = tpu.matmul %127, %130, %cst_135 {dimension_numbers = #tpu.dot_dimension_numbers<[1], [0], [0], [1], [0, 0, 1, 1], [], []>} : vector<512x32xbf16>, vector<32x32xbf16>, vector<512x32xf32> -> vector<512x32xf32>
    %132 = arith.addf %124, %131 : vector<512x32xf32>
    %c0_136 = arith.constant 0 : index
    %c1_137 = arith.constant 1 : index
    %c7_138 = arith.constant 7 : index
    %c0_139 = arith.constant 0 : index
    %133 = vector.load %arg9[%c0_136, %c1_137, %c7_138, %c0_139] : memref<2x18x32x32xf32, #tpu.memory_space<vmem>>, vector<2x16x16x32xf32>
    %134 = vector.shape_cast %133 : vector<2x16x16x32xf32> to vector<512x32xf32>
    %135 = arith.truncf %134 : vector<512x32xf32> to vector<512x32xbf16>
    %c1_140 = arith.constant 1 : index
    %c0_141 = arith.constant 0 : index
    %c0_142 = arith.constant 0 : index
    %c0_143 = arith.constant 0 : index
    %136 = vector.load %arg4[%c1_140, %c0_141, %c0_142, %c0_143] : memref<3x3x32x32xf32, #tpu.memory_space<vmem>>, vector<1x1x32x32xf32>
    %137 = vector.shape_cast %136 : vector<1x1x32x32xf32> to vector<32x32xf32>
    %138 = arith.truncf %137 : vector<32x32xf32> to vector<32x32xbf16>
    %cst_144 = arith.constant dense<0.000000e+00> : vector<512x32xf32>
    %139 = tpu.matmul %135, %138, %cst_144 {dimension_numbers = #tpu.dot_dimension_numbers<[1], [0], [0], [1], [0, 0, 1, 1], [], []>} : vector<512x32xbf16>, vector<32x32xbf16>, vector<512x32xf32> -> vector<512x32xf32>
    %140 = arith.addf %132, %139 : vector<512x32xf32>
    %c0_145 = arith.constant 0 : index
    %c1_146 = arith.constant 1 : index
    %c8_147 = arith.constant 8 : index
    %c0_148 = arith.constant 0 : index
    %141 = vector.load %arg9[%c0_145, %c1_146, %c8_147, %c0_148] : memref<2x18x32x32xf32, #tpu.memory_space<vmem>>, vector<2x16x16x32xf32>
    %142 = vector.shape_cast %141 : vector<2x16x16x32xf32> to vector<512x32xf32>
    %143 = arith.truncf %142 : vector<512x32xf32> to vector<512x32xbf16>
    %c1_149 = arith.constant 1 : index
    %c1_150 = arith.constant 1 : index
    %c0_151 = arith.constant 0 : index
    %c0_152 = arith.constant 0 : index
    %144 = vector.load %arg4[%c1_149, %c1_150, %c0_151, %c0_152] : memref<3x3x32x32xf32, #tpu.memory_space<vmem>>, vector<1x1x32x32xf32>
    %145 = vector.shape_cast %144 : vector<1x1x32x32xf32> to vector<32x32xf32>
    %146 = arith.truncf %145 : vector<32x32xf32> to vector<32x32xbf16>
    %cst_153 = arith.constant dense<0.000000e+00> : vector<512x32xf32>
    %147 = tpu.matmul %143, %146, %cst_153 {dimension_numbers = #tpu.dot_dimension_numbers<[1], [0], [0], [1], [0, 0, 1, 1], [], []>} : vector<512x32xbf16>, vector<32x32xbf16>, vector<512x32xf32> -> vector<512x32xf32>
    %148 = arith.addf %140, %147 : vector<512x32xf32>
    %c0_154 = arith.constant 0 : index
    %c1_155 = arith.constant 1 : index
    %c9_156 = arith.constant 9 : index
    %c0_157 = arith.constant 0 : index
    %149 = vector.load %arg9[%c0_154, %c1_155, %c9_156, %c0_157] : memref<2x18x32x32xf32, #tpu.memory_space<vmem>>, vector<2x16x16x32xf32>
    %150 = vector.shape_cast %149 : vector<2x16x16x32xf32> to vector<512x32xf32>
    %151 = arith.truncf %150 : vector<512x32xf32> to vector<512x32xbf16>
    %c1_158 = arith.constant 1 : index
    %c2_159 = arith.constant 2 : index
    %c0_160 = arith.constant 0 : index
    %c0_161 = arith.constant 0 : index
    %152 = vector.load %arg4[%c1_158, %c2_159, %c0_160, %c0_161] : memref<3x3x32x32xf32, #tpu.memory_space<vmem>>, vector<1x1x32x32xf32>
    %153 = vector.shape_cast %152 : vector<1x1x32x32xf32> to vector<32x32xf32>
    %154 = arith.truncf %153 : vector<32x32xf32> to vector<32x32xbf16>
    %cst_162 = arith.constant dense<0.000000e+00> : vector<512x32xf32>
    %155 = tpu.matmul %151, %154, %cst_162 {dimension_numbers = #tpu.dot_dimension_numbers<[1], [0], [0], [1], [0, 0, 1, 1], [], []>} : vector<512x32xbf16>, vector<32x32xbf16>, vector<512x32xf32> -> vector<512x32xf32>
    %156 = arith.addf %148, %155 : vector<512x32xf32>
    %c0_163 = arith.constant 0 : index
    %c2_164 = arith.constant 2 : index
    %c7_165 = arith.constant 7 : index
    %c0_166 = arith.constant 0 : index
    %157 = vector.load %arg9[%c0_163, %c2_164, %c7_165, %c0_166] : memref<2x18x32x32xf32, #tpu.memory_space<vmem>>, vector<2x16x16x32xf32>
    %158 = vector.shape_cast %157 : vector<2x16x16x32xf32> to vector<512x32xf32>
    %159 = arith.truncf %158 : vector<512x32xf32> to vector<512x32xbf16>
    %c2_167 = arith.constant 2 : index
    %c0_168 = arith.constant 0 : index
    %c0_169 = arith.constant 0 : index
    %c0_170 = arith.constant 0 : index
    %160 = vector.load %arg4[%c2_167, %c0_168, %c0_169, %c0_170] : memref<3x3x32x32xf32, #tpu.memory_space<vmem>>, vector<1x1x32x32xf32>
    %161 = vector.shape_cast %160 : vector<1x1x32x32xf32> to vector<32x32xf32>
    %162 = arith.truncf %161 : vector<32x32xf32> to vector<32x32xbf16>
    %cst_171 = arith.constant dense<0.000000e+00> : vector<512x32xf32>
    %163 = tpu.matmul %159, %162, %cst_171 {dimension_numbers = #tpu.dot_dimension_numbers<[1], [0], [0], [1], [0, 0, 1, 1], [], []>} : vector<512x32xbf16>, vector<32x32xbf16>, vector<512x32xf32> -> vector<512x32xf32>
    %164 = arith.addf %156, %163 : vector<512x32xf32>
    %c0_172 = arith.constant 0 : index
    %c2_173 = arith.constant 2 : index
    %c8_174 = arith.constant 8 : index
    %c0_175 = arith.constant 0 : index
    %165 = vector.load %arg9[%c0_172, %c2_173, %c8_174, %c0_175] : memref<2x18x32x32xf32, #tpu.memory_space<vmem>>, vector<2x16x16x32xf32>
    %166 = vector.shape_cast %165 : vector<2x16x16x32xf32> to vector<512x32xf32>
    %167 = arith.truncf %166 : vector<512x32xf32> to vector<512x32xbf16>
    %c2_176 = arith.constant 2 : index
    %c1_177 = arith.constant 1 : index
    %c0_178 = arith.constant 0 : index
    %c0_179 = arith.constant 0 : index
    %168 = vector.load %arg4[%c2_176, %c1_177, %c0_178, %c0_179] : memref<3x3x32x32xf32, #tpu.memory_space<vmem>>, vector<1x1x32x32xf32>
    %169 = vector.shape_cast %168 : vector<1x1x32x32xf32> to vector<32x32xf32>
    %170 = arith.truncf %169 : vector<32x32xf32> to vector<32x32xbf16>
    %cst_180 = arith.constant dense<0.000000e+00> : vector<512x32xf32>
    %171 = tpu.matmul %167, %170, %cst_180 {dimension_numbers = #tpu.dot_dimension_numbers<[1], [0], [0], [1], [0, 0, 1, 1], [], []>} : vector<512x32xbf16>, vector<32x32xbf16>, vector<512x32xf32> -> vector<512x32xf32>
    %172 = arith.addf %164, %171 : vector<512x32xf32>
    %c0_181 = arith.constant 0 : index
    %c2_182 = arith.constant 2 : index
    %c9_183 = arith.constant 9 : index
    %c0_184 = arith.constant 0 : index
    %173 = vector.load %arg9[%c0_181, %c2_182, %c9_183, %c0_184] : memref<2x18x32x32xf32, #tpu.memory_space<vmem>>, vector<2x16x16x32xf32>
    %174 = vector.shape_cast %173 : vector<2x16x16x32xf32> to vector<512x32xf32>
    %175 = arith.truncf %174 : vector<512x32xf32> to vector<512x32xbf16>
    %c2_185 = arith.constant 2 : index
    %c2_186 = arith.constant 2 : index
    %c0_187 = arith.constant 0 : index
    %c0_188 = arith.constant 0 : index
    %176 = vector.load %arg4[%c2_185, %c2_186, %c0_187, %c0_188] : memref<3x3x32x32xf32, #tpu.memory_space<vmem>>, vector<1x1x32x32xf32>
    %177 = vector.shape_cast %176 : vector<1x1x32x32xf32> to vector<32x32xf32>
    %178 = arith.truncf %177 : vector<32x32xf32> to vector<32x32xbf16>
    %cst_189 = arith.constant dense<0.000000e+00> : vector<512x32xf32>
    %179 = tpu.matmul %175, %178, %cst_189 {dimension_numbers = #tpu.dot_dimension_numbers<[1], [0], [0], [1], [0, 0, 1, 1], [], []>} : vector<512x32xbf16>, vector<32x32xbf16>, vector<512x32xf32> -> vector<512x32xf32>
    %180 = arith.addf %172, %179 : vector<512x32xf32>
    %cst_190 = arith.constant dense<0.000000e+00> : vector<32xf32>
    %181 = vector.multi_reduction <add>, %180, %cst_190 [0] : vector<512x32xf32> to vector<32xf32>
    %182 = vector.shape_cast %181 : vector<32xf32> to vector<1x32xf32>
    %cst_191 = arith.constant 0.001953125 : f32
    %183 = vector.broadcast %cst_191 : f32 to vector<1x32xf32>
    %184 = arith.mulf %182, %183 : vector<1x32xf32>
    %185 = arith.mulf %180, %180 : vector<512x32xf32>
    %cst_192 = arith.constant dense<0.000000e+00> : vector<32xf32>
    %186 = vector.multi_reduction <add>, %185, %cst_192 [0] : vector<512x32xf32> to vector<32xf32>
    %187 = vector.shape_cast %186 : vector<32xf32> to vector<1x32xf32>
    %cst_193 = arith.constant 0.001953125 : f32
    %188 = vector.broadcast %cst_193 : f32 to vector<1x32xf32>
    %189 = arith.mulf %187, %188 : vector<1x32xf32>
    %190 = arith.mulf %184, %184 : vector<1x32xf32>
    %191 = arith.subf %189, %190 : vector<1x32xf32>
    %cst_194 = arith.constant 0.000000e+00 : f32
    %192 = vector.broadcast %cst_194 : f32 to vector<1x32xf32>
    %193 = arith.maximumf %191, %192 : vector<1x32xf32>
    %c0_195 = arith.constant 0 : index
    %c0_196 = arith.constant 0 : index
    %194 = vector.load %arg5[%c0_195, %c0_196] : memref<1x32xf32, #tpu.memory_space<vmem>>, vector<1x32xf32>
    %cst_197 = arith.constant 9.99999974E-6 : f32
    %195 = vector.broadcast %cst_197 : f32 to vector<1x32xf32>
    %196 = arith.addf %193, %195 : vector<1x32xf32>
    %197 = math.rsqrt %196 : vector<1x32xf32>
    %198 = arith.mulf %194, %197 : vector<1x32xf32>
    %c0_198 = arith.constant 0 : index
    %c0_199 = arith.constant 0 : index
    %199 = vector.load %arg6[%c0_198, %c0_199] : memref<1x32xf32, #tpu.memory_space<vmem>>, vector<1x32xf32>
    %200 = arith.mulf %184, %198 : vector<1x32xf32>
    %201 = arith.subf %199, %200 : vector<1x32xf32>
    %202 = vector.broadcast %198 : vector<1x32xf32> to vector<512x32xf32>
    %203 = arith.mulf %180, %202 : vector<512x32xf32>
    %204 = vector.broadcast %201 : vector<1x32xf32> to vector<512x32xf32>
    %205 = arith.addf %203, %204 : vector<512x32xf32>
    %cst_200 = arith.constant 0.000000e+00 : f32
    %206 = vector.broadcast %cst_200 : f32 to vector<512x32xf32>
    %207 = arith.maximumf %205, %206 : vector<512x32xf32>
    %208 = vector.shape_cast %207 : vector<512x32xf32> to vector<2x16x16x32xf32>
    %c0_201 = arith.constant 0 : index
    %c0_202 = arith.constant 0 : index
    %c0_203 = arith.constant 0 : index
    %c0_204 = arith.constant 0 : index
    %209 = vector.load %arg7[%c0_201, %c0_202, %c0_203, %c0_204] : memref<2x16x16x32xf32, #tpu.memory_space<vmem>>, vector<2x16x16x32xf32>
    tpu.vector_store %arg7[%c0_201, %c0_202, %c0_203, %c0_204], %208 {strides = array<i32>} : memref<2x16x16x32xf32, #tpu.memory_space<vmem>>, vector<2x16x16x32xf32>,
    return
  }
}

</mosaic_0001>

<bundles_post_ra>
// kernel: double_conv.1
= control target key start
LH: loop header
LB: loop body
LE: loop exit
PB: predicated region body
PF: predicated region fallthrough
CT: control target
= control target key end

     0   :  { %vm595_vm0 = vcmask 1041408   ;;  %vm28_vm1 = vcmask 31744   ;;  %s14191_s0 = inlined_call_operand.vmem [shape: f32[2,16,16,4], index: 0, kind: input, shape index: {}]   ;;  %s14192_s1 = inlined_call_operand.vmem [shape: f32[3,3,4,32], index: 1, kind: input, shape index: {}]   ;;  %s14193_s2 = inlined_call_operand.vmem [shape: f32[1,32], index: 2, kind: input, shape index: {}]   ;;  %s14194_s3 = inlined_call_operand.vmem [shape: f32[1,32], index: 3, kind: input, shape index: {}]   ;;  %s14195_s4 = inlined_call_operand.vmem [shape: f32[3,3,32,32], index: 4, kind: input, shape index: {}]   ;;  %s14196_s5 = inlined_call_operand.vmem [shape: f32[1,32], index: 5, kind: input, shape index: {}]   ;;  %s14197_s6 = inlined_call_operand.vmem [shape: f32[1,32], index: 6, kind: input, shape index: {}]   ;;  %s14198_s7 = inlined_call_operand.hbm [shape: f32[2,16,16,32], index: 7, kind: output, shape index: {}]  }
   0x1   :  { %v9204_v0 = vld [vmem:[%s14192_s1 + $0x4] sm:$0xf]  ;;  %v398_v1 = vld [vmem:[%s14192_s1] sm:$0xf] }
   0x2   :  { %v498_v2 = vpack.c.bf16 %v9204_v0, %v9204_v0  ;;  %v399_v3 = vpack.c.bf16 %v398_v1, %v398_v1 }
   0x3   :  { %12 = vsyncpa [#allocation5], 0  ;;  %v14199_v4 = vmov 0.0   ;;  %v9269_v19 = vld [vmem:[%s14192_s1 + $0x8] sm:$0xf]  ;;  %v205_v28 = vld [vmem:[%s14191_s0 + $0x100] sm:$0xff] }
   0x4   :  { %102 = vst.msk [vmem:[#allocation2 + $0x248] sm:$0xff] %vm28_vm1, %v14199_v4  ;;  %v597_v5 = vsel %vm595_vm0, %v498_v2, 0  ;;  %v865_v6 = vsel %vm595_vm0, %v399_v3, 0  ;;  %v9302_v20 = vld [vmem:[%s14192_s1 + $0xc] sm:$0xf]  ;;  %v1134_v21 = vpack.c.bf16 %v9269_v19, %v9269_v19  ;;  %v173_v30 = vld [vmem:[%s14191_s0] sm:$0xff] }
   0x5   :  { %103 = vst.msk [vmem:[#allocation2 + $0x250] sm:$0xff] %vm28_vm1, %v14199_v4  ;;  %9820 = vmatpush.bf16.msra.mxu2 %v597_v5  ;;  %9821 = vmatpush.bf16.msra.mxu3 %v865_v6  ;;  %v1565_v22 = vpack.c.bf16 %v9302_v20, %v9302_v20  ;;  %v9335_v23 = vld [vmem:[%s14192_s1 + $0x10] sm:$0xf]  ;;  %v206_v29 = vld [vmem:[%s14191_s0 + $0x108] sm:$0xff]  ;;  %v208_v33 = vld [vmem:[%s14191_s0 + $0x118] sm:$0xff]  ;;  %vm4054_vm2 = vcmask 261120  }
   0x6   :  { %29 = vst.msk [vmem:[#allocation2] sm:$0xff] %vm28_vm1, %v14199_v4  ;;  %606 = vmatpush.bf16.msra.mxu0 %v597_v5  ;;  %874 = vmatpush.bf16.msra.mxu1 %v865_v6  ;;  %v1996_v24 = vpack.c.bf16 %v9335_v23, %v9335_v23  ;;  %v1232_v25 = vsel %vm595_vm0, %v1134_v21, 0  ;;  %v174_v31 = vld [vmem:[%s14191_s0 + $0x8] sm:$0xff]  ;;  %v207_v32 = vld [vmem:[%s14191_s0 + $0x110] sm:$0xff]  ;;  %v176_v35 = vld [vmem:[%s14191_s0 + $0x18] sm:$0xff]  ;;  %s9858_s8 = smov 128  }
   0x7   :  { %30 = vst.msk [vmem:[#allocation2 + $0x8] sm:$0xff] %vm28_vm1, %v14199_v4  ;;  %v1663_v26 = vsel %vm595_vm0, %v1565_v22, 0  ;;  %v175_v34 = vld [vmem:[%s14191_s0 + $0x10] sm:$0xff]  ;;  %v209_v36 = vld [vmem:[%s14191_s0 + $0x120] sm:$0xff]  ;;  %v210_v37 = vld [vmem:[%s14191_s0 + $0x128] sm:$0xff] }
   0x8   :  { %31 = vst.msk [vmem:[#allocation2 + $0x10] sm:$0xff] %vm28_vm1, %v14199_v4  ;;  %v2094_v27 = vsel %vm595_vm0, %v1996_v24, 0  ;;  %v177_v40 = vld [vmem:[%s14191_s0 + $0x20] sm:$0xff]  ;;  %v178_v43 = vld [vmem:[%s14191_s0 + $0x28] sm:$0xff]  ;;  %v211_v52 = vld [vmem:[%s14191_s0 + $0x130] sm:$0xff] }
   0x9   :  { %32 = vst.msk [vmem:[#allocation2 + $0x18] sm:$0xff] %vm28_vm1, %v14199_v4  ;;  %1241 = vmatpush.bf16.msrb.mxu2 %v1232_v25  ;;  %1672 = vmatpush.bf16.msrb.mxu3 %v1663_v26  ;;  %v212_v53 = vld [vmem:[%s14191_s0 + $0x138] sm:$0xff]  ;;  %v179_v54 = vld [vmem:[%s14191_s0 + $0x30] sm:$0xff]  ;;  %v213_v5 = vld [vmem:[%s14191_s0 + $0x140] sm:$0xff] }
   0xa   :  { %33 = vst.msk [vmem:[#allocation2 + $0x20] sm:$0xff] %vm28_vm1, %v14199_v4  ;;  %2103 = vmatpush.bf16.msrb.mxu0 %v2094_v27  ;;  %v180_v56 = vld [vmem:[%s14191_s0 + $0x38] sm:$0xff]  ;;  %v214_v6 = vld [vmem:[%s14191_s0 + $0x148] sm:$0xff]  ;;  %v215_v21 = vld [vmem:[%s14191_s0 + $0x150] sm:$0xff] }
   0xb   :  { %v432_v7 = vld [vmem:[#allocation2 + $0x248] sm:$0xff]  ;;  %34 = vst.msk [vmem:[#allocation2 + $0x28] sm:$0xff] %vm28_vm1, %v14199_v4  ;;  %v216_v22 = vld [vmem:[%s14191_s0 + $0x158] sm:$0xff]  ;;  %v183_v23 = vld [vmem:[%s14191_s0 + $0x50] sm:$0xff] }
   0xc   :  { %v433_v8 = vld [vmem:[#allocation2 + $0x250] sm:$0xff]  ;;  %35 = vst.msk [vmem:[#allocation2 + $0x30] sm:$0xff] %vm28_vm1, %v14199_v4  ;;  %v184_v24 = vld [vmem:[%s14191_s0 + $0x58] sm:$0xff] }
   0xd   :  { %v480_v9 = vpack.c.bf16 %v433_v8, %v432_v7  ;;  %36 = vst.msk [vmem:[#allocation2 + $0x38] sm:$0xff] %vm28_vm1, %v14199_v4  ;;  %v335_v16 = vld [vmem:[#allocation2 + $0x24f] sm:$0xff]  ;;  %v181_v7 = vld [vmem:[%s14191_s0 + $0x40] sm:$0xff] }
   0xe   :  { %37 = vst.msk [vmem:[#allocation2 + $0x40] sm:$0xff] %vm28_vm1, %v14199_v4  ;;  %v400_v10 = vld [vmem:[#allocation2 + $0x8] sm:$0xff] }
   0xf   :  { %9221 = vmatmul.msk.bf16.vlgmr.msra.gmra.mxu2 %vm28_vm1, %v480_v9  ;;  %38 = vst.msk [vmem:[#allocation2 + $0x48] sm:$0xff] %vm28_vm1, %v14199_v4  ;;  %v401_v11 = vld [vmem:[#allocation2 + $0x10] sm:$0xff]  ;;  %v302_v12 = vld [vmem:[#allocation2 + $0x7] sm:$0xff] }
  0x10   :  { %39 = vst.msk [vmem:[#allocation2 + $0x50] sm:$0xff] %vm28_vm1, %v14199_v4  ;;  %v464_v13 = vpack.c.bf16 %v401_v11, %v400_v10  ;;  %v303_v14 = vld [vmem:[#allocation2 + $0xf] sm:$0xff] }
  0x11   :  { %40 = vst.msk [vmem:[#allocation2 + $0x58] sm:$0xff] %vm28_vm1, %v14199_v4  ;;  %v366_v15 = vpack.c.bf16 %v303_v14, %v302_v12  ;;  %v182_v8 = vld [vmem:[%s14191_s0 + $0x48] sm:$0xff] }
  0x12   :  { %41 = vst.msk [vmem:[#allocation2 + $0x60] sm:$0xff] %vm28_vm1, %v14199_v4  ;;  %9205 = vmatmul.msk.bf16.vlgmr.msra.gmra.mxu0 %vm28_vm1, %v464_v13 }
  0x13   :  { %42 = vst.msk [vmem:[#allocation2 + $0x68] sm:$0xff] %vm28_vm1, %v14199_v4  ;;  %9237 = vmatmul.msk.bf16.vlgmr.msra.gmra.mxu1 %vm28_vm1, %v366_v15 }
  0x14   :  { %43 = vst.msk [vmem:[#allocation2 + $0x70] sm:$0xff] %vm28_vm1, %v14199_v4 }
  0x15   :  { %44 = vst.msk [vmem:[#allocation2 + $0x78] sm:$0xff] %vm28_vm1, %v14199_v4 }
  0x16   :  { %45 = vst.msk [vmem:[#allocation2 + $0x80] sm:$0xff] %vm28_vm1, %v14199_v4 }
  0x17   :  { %46 = vst.msk [vmem:[#allocation2 + $0x88] sm:$0xff] %vm28_vm1, %v14199_v4 }
  0x18   :  { %47 = vst.msk [vmem:[#allocation2 + $0x90] sm:$0xff] %vm28_vm1, %v14199_v4 }
  0x19   :  { %48 = vst.msk [vmem:[#allocation2 + $0x98] sm:$0xff] %vm28_vm1, %v14199_v4 }
  0x1a   :  { %49 = vst.msk [vmem:[#allocation2 + $0xa0] sm:$0xff] %vm28_vm1, %v14199_v4 }
  0x1b   :  { %50 = vst.msk [vmem:[#allocation2 + $0xa8] sm:$0xff] %vm28_vm1, %v14199_v4 }
  0x1c   :  { %51 = vst.msk [vmem:[#allocation2 + $0xb0] sm:$0xff] %vm28_vm1, %v14199_v4 }
  0x1d   :  { %52 = vst.msk [vmem:[#allocation2 + $0xb8] sm:$0xff] %vm28_vm1, %v14199_v4 }
  0x1e   :  { %53 = vst.msk [vmem:[#allocation2 + $0xc0] sm:$0xff] %vm28_vm1, %v14199_v4 }
  0x1f   :  { %54 = vst.msk [vmem:[#allocation2 + $0xc8] sm:$0xff] %vm28_vm1, %v14199_v4 }
  0x20   :  { %55 = vst.msk [vmem:[#allocation2 + $0xd0] sm:$0xff] %vm28_vm1, %v14199_v4 }
  0x21   :  { %56 = vst.msk [vmem:[#allocation2 + $0xd8] sm:$0xff] %vm28_vm1, %v14199_v4 }
  0x22   :  { %57 = vst.msk [vmem:[#allocation2 + $0xe0] sm:$0xff] %vm28_vm1, %v14199_v4 }
  0x23   :  { %58 = vst.msk [vmem:[#allocation2 + $0xe8] sm:$0xff] %vm28_vm1, %v14199_v4 }
  0x24   :  { %59 = vst.msk [vmem:[#allocation2 + $0xf0] sm:$0xff] %vm28_vm1, %v14199_v4 }
  0x25   :  { %60 = vst.msk [vmem:[#allocation2 + $0xf8] sm:$0xff] %vm28_vm1, %v14199_v4 }
  0x26   :  { %61 = vst.msk [vmem:[#allocation2 + $0x100] sm:$0xff] %vm28_vm1, %v14199_v4 }
  0x27   :  { %62 = vst.msk [vmem:[#allocation2 + $0x108] sm:$0xff] %vm28_vm1, %v14199_v4 }
  0x28   :  { %63 = vst.msk [vmem:[#allocation2 + $0x110] sm:$0xff] %vm28_vm1, %v14199_v4 }
  0x29   :  { %64 = vst.msk [vmem:[#allocation2 + $0x118] sm:$0xff] %vm28_vm1, %v14199_v4 }
  0x2a   :  { %65 = vst.msk [vmem:[#allocation2 + $0x120] sm:$0xff] %vm28_vm1, %v14199_v4 }
  0x2b   :  { %66 = vst.msk [vmem:[#allocation2 + $0x128] sm:$0xff] %vm28_vm1, %v14199_v4 }
  0x2c   :  { %67 = vst.msk [vmem:[#allocation2 + $0x130] sm:$0xff] %vm28_vm1, %v14199_v4 }
  0x2d   :  { %68 = vst.msk [vmem:[#allocation2 + $0x138] sm:$0xff] %vm28_vm1, %v14199_v4 }
  0x2e   :  { %69 = vst.msk [vmem:[#allocation2 + $0x140] sm:$0xff] %vm28_vm1, %v14199_v4 }
  0x2f   :  { %70 = vst.msk [vmem:[#allocation2 + $0x148] sm:$0xff] %vm28_vm1, %v14199_v4 }
  0x30   :  { %71 = vst.msk [vmem:[#allocation2 + $0x150] sm:$0xff] %vm28_vm1, %v14199_v4 }
  0x31   :  { %72 = vst.msk [vmem:[#allocation2 + $0x158] sm:$0xff] %vm28_vm1, %v14199_v4 }
  0x32   :  { %73 = vst.msk [vmem:[#allocation2 + $0x160] sm:$0xff] %vm28_vm1, %v14199_v4 }
  0x33   :  { %74 = vst.msk [vmem:[#allocation2 + $0x168] sm:$0xff] %vm28_vm1, %v14199_v4 }
  0x34   :  { %75 = vst.msk [vmem:[#allocation2 + $0x170] sm:$0xff] %vm28_vm1, %v14199_v4 }
  0x35   :  { %76 = vst.msk [vmem:[#allocation2 + $0x178] sm:$0xff] %vm28_vm1, %v14199_v4 }
  0x36   :  { %77 = vst.msk [vmem:[#allocation2 + $0x180] sm:$0xff] %vm28_vm1, %v14199_v4 }
  0x37   :  { %78 = vst.msk [vmem:[#allocation2 + $0x188] sm:$0xff] %vm28_vm1, %v14199_v4 }
  0x38   :  { %79 = vst.msk [vmem:[#allocation2 + $0x190] sm:$0xff] %vm28_vm1, %v14199_v4 }
  0x39   :  { %80 = vst.msk [vmem:[#allocation2 + $0x198] sm:$0xff] %vm28_vm1, %v14199_v4 }
  0x3a   :  { %81 = vst.msk [vmem:[#allocation2 + $0x1a0] sm:$0xff] %vm28_vm1, %v14199_v4 }
  0x3b   :  { %82 = vst.msk [vmem:[#allocation2 + $0x1a8] sm:$0xff] %vm28_vm1, %v14199_v4 }
  0x3c   :  { %83 = vst.msk [vmem:[#allocation2 + $0x1b0] sm:$0xff] %vm28_vm1, %v14199_v4 }
  0x3d   :  { %84 = vst.msk [vmem:[#allocation2 + $0x1b8] sm:$0xff] %vm28_vm1, %v14199_v4 }
  0x3e   :  { %85 = vst.msk [vmem:[#allocation2 + $0x1c0] sm:$0xff] %vm28_vm1, %v14199_v4 }
  0x3f   :  { %86 = vst.msk [vmem:[#allocation2 + $0x1c8] sm:$0xff] %vm28_vm1, %v14199_v4 }
  0x40   :  { %87 = vst.msk [vmem:[#allocation2 + $0x1d0] sm:$0xff] %vm28_vm1, %v14199_v4 }
  0x41   :  { %88 = vst.msk [vmem:[#allocation2 + $0x1d8] sm:$0xff] %vm28_vm1, %v14199_v4 }
  0x42   :  { %89 = vst.msk [vmem:[#allocation2 + $0x1e0] sm:$0xff] %vm28_vm1, %v14199_v4 }
  0x43   :  { %90 = vst.msk [vmem:[#allocation2 + $0x1e8] sm:$0xff] %vm28_vm1, %v14199_v4 }
  0x44   :  { %91 = vst.msk [vmem:[#allocation2 + $0x1f0] sm:$0xff] %vm28_vm1, %v14199_v4 }
  0x45   :  { %92 = vst.msk [vmem:[#allocation2 + $0x1f8] sm:$0xff] %vm28_vm1, %v14199_v4 }
  0x46   :  { %93 = vst.msk [vmem:[#allocation2 + $0x200] sm:$0xff] %vm28_vm1, %v14199_v4 }
  0x47   :  { %94 = vst.msk [vmem:[#allocation2 + $0x208] sm:$0xff] %vm28_vm1, %v14199_v4 }
  0x48   :  { %95 = vst.msk [vmem:[#allocation2 + $0x210] sm:$0xff] %vm28_vm1, %v14199_v4 }
  0x49   :  { %96 = vst.msk [vmem:[#allocation2 + $0x218] sm:$0xff] %vm28_vm1, %v14199_v4 }
  0x4a   :  { %97 = vst.msk [vmem:[#allocation2 + $0x220] sm:$0xff] %vm28_vm1, %v14199_v4 }
  0x4b   :  { %98 = vst.msk [vmem:[#allocation2 + $0x228] sm:$0xff] %vm28_vm1, %v14199_v4 }
  0x4c   :  { %99 = vst.msk [vmem:[#allocation2 + $0x230] sm:$0xff] %vm28_vm1, %v14199_v4 }
  0x4d   :  { %100 = vst.msk [vmem:[#allocation2 + $0x238] sm:$0xff] %vm28_vm1, %v14199_v4 }
  0x4e   :  { %101 = vst.msk [vmem:[#allocation2 + $0x240] sm:$0xff] %vm28_vm1, %v14199_v4 }
  0x4f   :  { %104 = vst.msk [vmem:[#allocation2 + $0x258] sm:$0xff] %vm28_vm1, %v14199_v4 }
  0x50   :  { %105 = vst.msk [vmem:[#allocation2 + $0x260] sm:$0xff] %vm28_vm1, %v14199_v4 }
  0x51   :  { %106 = vst.msk [vmem:[#allocation2 + $0x268] sm:$0xff] %vm28_vm1, %v14199_v4 }
  0x52   :  { %107 = vst.msk [vmem:[#allocation2 + $0x270] sm:$0xff] %vm28_vm1, %v14199_v4 }
  0x53   :  { %108 = vst.msk [vmem:[#allocation2 + $0x278] sm:$0xff] %vm28_vm1, %v14199_v4 }
  0x54   :  { %109 = vst.msk [vmem:[#allocation2 + $0x280] sm:$0xff] %vm28_vm1, %v14199_v4 }
  0x55   :  { %110 = vst.msk [vmem:[#allocation2 + $0x288] sm:$0xff] %vm28_vm1, %v14199_v4  ;;  %v334_v17 = vld [vmem:[#allocation2 + $0x247] sm:$0xff] }
  0x56   :  { %111 = vst.msk [vmem:[#allocation2 + $0x290] sm:$0xff] %vm28_vm1, %v14199_v4  ;;  %v382_v18 = vpack.c.bf16 %v335_v16, %v334_v17 }
  0x57   :  { %112 = vst.msk [vmem:[#allocation2 + $0x298] sm:$0xff] %vm28_vm1, %v14199_v4 }
  0x58   :  { %113 = vst.msk [vmem:[#allocation2 + $0x2a0] sm:$0xff] %vm28_vm1, %v14199_v4  ;;  %9253 = vmatmul.msk.bf16.vlgmr.msra.gmra.mxu3 %vm28_vm1, %v382_v18 }
  0x59   :  { %114 = vst.msk [vmem:[#allocation2 + $0x2a8] sm:$0xff] %vm28_vm1, %v14199_v4 }
  0x5a   :  { %115 = vst.msk [vmem:[#allocation2 + $0x2b0] sm:$0xff] %vm28_vm1, %v14199_v4 }
  0x5b   :  { %116 = vst.msk [vmem:[#allocation2 + $0x2b8] sm:$0xff] %vm28_vm1, %v14199_v4 }
  0x5c   :  { %117 = vst.msk [vmem:[#allocation2 + $0x2c0] sm:$0xff] %vm28_vm1, %v14199_v4 }
  0x5d   :  { %118 = vst.msk [vmem:[#allocation2 + $0x2c8] sm:$0xff] %vm28_vm1, %v14199_v4 }
  0x5e   :  { %119 = vst.msk [vmem:[#allocation2 + $0x2d0] sm:$0xff] %vm28_vm1, %v14199_v4 }
  0x5f   :  { %120 = vst.msk [vmem:[#allocation2 + $0x2d8] sm:$0xff] %vm28_vm1, %v14199_v4 }
  0x60   :  { %121 = vst.msk [vmem:[#allocation2 + $0x2e0] sm:$0xff] %vm28_vm1, %v14199_v4 }
  0x61   :  { %122 = vst.msk [vmem:[#allocation2 + $0x2e8] sm:$0xff] %vm28_vm1, %v14199_v4 }
  0x62   :  { %123 = vst.msk [vmem:[#allocation2 + $0x2f0] sm:$0xff] %vm28_vm1, %v14199_v4 }
  0x63   :  { %124 = vst.msk [vmem:[#allocation2 + $0x2f8] sm:$0xff] %vm28_vm1, %v14199_v4 }
  0x64   :  { %125 = vst.msk [vmem:[#allocation2 + $0x300] sm:$0xff] %vm28_vm1, %v14199_v4 }
  0x65   :  { %126 = vst.msk [vmem:[#allocation2 + $0x308] sm:$0xff] %vm28_vm1, %v14199_v4 }
  0x66   :  { %127 = vst.msk [vmem:[#allocation2 + $0x310] sm:$0xff] %vm28_vm1, %v14199_v4 }
  0x67   :  { %128 = vst.msk [vmem:[#allocation2 + $0x318] sm:$0xff] %vm28_vm1, %v14199_v4 }
  0x68   :  { %129 = vst.msk [vmem:[#allocation2 + $0x320] sm:$0xff] %vm28_vm1, %v14199_v4 }
  0x69   :  { %130 = vst.msk [vmem:[#allocation2 + $0x328] sm:$0xff] %vm28_vm1, %v14199_v4 }
  0x6a   :  { %131 = vst.msk [vmem:[#allocation2 + $0x330] sm:$0xff] %vm28_vm1, %v14199_v4 }
  0x6b   :  { %132 = vst.msk [vmem:[#allocation2 + $0x338] sm:$0xff] %vm28_vm1, %v14199_v4 }
  0x6c   :  { %133 = vst.msk [vmem:[#allocation2 + $0x340] sm:$0xff] %vm28_vm1, %v14199_v4 }
  0x6d   :  { %134 = vst.msk [vmem:[#allocation2 + $0x348] sm:$0xff] %vm28_vm1, %v14199_v4 }
  0x6e   :  { %135 = vst.msk [vmem:[#allocation2 + $0x350] sm:$0xff] %vm28_vm1, %v14199_v4 }
  0x6f   :  { %136 = vst.msk [vmem:[#allocation2 + $0x358] sm:$0xff] %vm28_vm1, %v14199_v4 }
  0x70   :  { %137 = vst.msk [vmem:[#allocation2 + $0x360] sm:$0xff] %vm28_vm1, %v14199_v4 }
  0x71   :  { %138 = vst.msk [vmem:[#allocation2 + $0x368] sm:$0xff] %vm28_vm1, %v14199_v4 }
  0x72   :  { %139 = vst.msk [vmem:[#allocation2 + $0x370] sm:$0xff] %vm28_vm1, %v14199_v4 }
  0x73   :  { %140 = vst.msk [vmem:[#allocation2 + $0x378] sm:$0xff] %vm28_vm1, %v14199_v4 }
  0x74   :  { %141 = vst.msk [vmem:[#allocation2 + $0x380] sm:$0xff] %vm28_vm1, %v14199_v4 }
  0x75   :  { %142 = vst.msk [vmem:[#allocation2 + $0x388] sm:$0xff] %vm28_vm1, %v14199_v4 }
  0x76   :  { %143 = vst.msk [vmem:[#allocation2 + $0x390] sm:$0xff] %vm28_vm1, %v14199_v4 }
  0x77   :  { %144 = vst.msk [vmem:[#allocation2 + $0x398] sm:$0xff] %vm28_vm1, %v14199_v4 }
  0x78   :  { %145 = vst.msk [vmem:[#allocation2 + $0x3a0] sm:$0xff] %vm28_vm1, %v14199_v4 }
  0x79   :  { %146 = vst.msk [vmem:[#allocation2 + $0x3a8] sm:$0xff] %vm28_vm1, %v14199_v4 }
  0x7a   :  { %147 = vst.msk [vmem:[#allocation2 + $0x3b0] sm:$0xff] %vm28_vm1, %v14199_v4 }
  0x7b   :  { %148 = vst.msk [vmem:[#allocation2 + $0x3b8] sm:$0xff] %vm28_vm1, %v14199_v4 }
  0x7c   :  { %149 = vst.msk [vmem:[#allocation2 + $0x3c0] sm:$0xff] %vm28_vm1, %v14199_v4 }
  0x7d   :  { %150 = vst.msk [vmem:[#allocation2 + $0x3c8] sm:$0xff] %vm28_vm1, %v14199_v4 }
  0x7e   :  { %151 = vst.msk [vmem:[#allocation2 + $0x3d0] sm:$0xff] %vm28_vm1, %v14199_v4 }
  0x7f   :  { %152 = vst.msk [vmem:[#allocation2 + $0x3d8] sm:$0xff] %vm28_vm1, %v14199_v4 }
  0x80   :  { %153 = vst.msk [vmem:[#allocation2 + $0x3e0] sm:$0xff] %vm28_vm1, %v14199_v4 }
  0x81   :  { %154 = vst.msk [vmem:[#allocation2 + $0x3e8] sm:$0xff] %vm28_vm1, %v14199_v4 }
  0x82   :  { %155 = vst.msk [vmem:[#allocation2 + $0x3f0] sm:$0xff] %vm28_vm1, %v14199_v4 }
  0x83   :  { %156 = vst.msk [vmem:[#allocation2 + $0x3f8] sm:$0xff] %vm28_vm1, %v14199_v4 }
  0x84   :  { %157 = vst.msk [vmem:[#allocation2 + $0x400] sm:$0xff] %vm28_vm1, %v14199_v4 }
  0x85   :  { %158 = vst.msk [vmem:[#allocation2 + $0x408] sm:$0xff] %vm28_vm1, %v14199_v4 }
  0x86   :  { %159 = vst.msk [vmem:[#allocation2 + $0x410] sm:$0xff] %vm28_vm1, %v14199_v4 }
  0x87   :  { %160 = vst.msk [vmem:[#allocation2 + $0x418] sm:$0xff] %vm28_vm1, %v14199_v4 }
  0x88   :  { %161 = vst.msk [vmem:[#allocation2 + $0x420] sm:$0xff] %vm28_vm1, %v14199_v4 }
  0x89   :  { %162 = vst.msk [vmem:[#allocation2 + $0x428] sm:$0xff] %vm28_vm1, %v14199_v4 }
  0x8a   :  { %163 = vst.msk [vmem:[#allocation2 + $0x430] sm:$0xff] %vm28_vm1, %v14199_v4 }
  0x8b   :  { %164 = vst.msk [vmem:[#allocation2 + $0x438] sm:$0xff] %vm28_vm1, %v14199_v4 }
  0x8c   :  { %165 = vst.msk [vmem:[#allocation2 + $0x440] sm:$0xff] %vm28_vm1, %v14199_v4 }
  0x8d   :  { %166 = vst.msk [vmem:[#allocation2 + $0x448] sm:$0xff] %vm28_vm1, %v14199_v4 }
  0x8e   :  { %167 = vst.msk [vmem:[#allocation2 + $0x450] sm:$0xff] %vm28_vm1, %v14199_v4 }
  0x8f   :  { %168 = vst.msk [vmem:[#allocation2 + $0x458] sm:$0xff] %vm28_vm1, %v14199_v4 }
  0x90   :  { %169 = vst.msk [vmem:[#allocation2 + $0x460] sm:$0xff] %vm28_vm1, %v14199_v4 }
  0x91   :  { %170 = vst.msk [vmem:[#allocation2 + $0x468] sm:$0xff] %vm28_vm1, %v14199_v4 }
  0x92   :  { %171 = vst.msk [vmem:[#allocation2 + $0x470] sm:$0xff] %vm28_vm1, %v14199_v4 }
  0x93   :  { %172 = vst.msk [vmem:[#allocation2 + $0x478] sm:$0xff] %vm28_vm1, %v14199_v4 }
  0x94   :  { %270 = vst.msk [vmem:[#allocation2 + $0x268] sm:$0xff] %vm28_vm1, %v205_v28 }
  0x95   :  { %271 = vst.msk [vmem:[#allocation2 + $0x270] sm:$0xff] %vm28_vm1, %v206_v29 }
  0x96   :  { %238 = vst.msk [vmem:[#allocation2 + $0x28] sm:$0xff] %vm28_vm1, %v173_v30 }
  0x97   :  { %239 = vst.msk [vmem:[#allocation2 + $0x30] sm:$0xff] %vm28_vm1, %v174_v31 }
  0x98   :  { %272 = vst.msk [vmem:[#allocation2 + $0x288] sm:$0xff] %vm28_vm1, %v207_v32 }
  0x99   :  { %273 = vst.msk [vmem:[#allocation2 + $0x290] sm:$0xff] %vm28_vm1, %v208_v33 }
  0x9a   :  { %240 = vst.msk [vmem:[#allocation2 + $0x48] sm:$0xff] %vm28_vm1, %v175_v34 }
  0x9b   :  { %v434_v38 = vld [vmem:[#allocation2 + $0x268] sm:$0xff]  ;;  %241 = vst.msk [vmem:[#allocation2 + $0x50] sm:$0xff] %vm28_vm1, %v176_v35 }
  0x9c   :  { %v336_v39 = vld [vmem:[#allocation2 + $0x267] sm:$0xff]  ;;  %v435_v41 = vld [vmem:[#allocation2 + $0x270] sm:$0xff]  ;;  %274 = vst.msk [vmem:[#allocation2 + $0x2a8] sm:$0xff] %vm28_vm1, %v209_v36 }
  0x9d   :  { %v337_v42 = vld [vmem:[#allocation2 + $0x26f] sm:$0xff]  ;;  %v481_v44 = vpack.c.bf16 %v435_v41, %v434_v38  ;;  %v304_v47 = vld [vmem:[#allocation2 + $0x27] sm:$0xff]  ;;  %275 = vst.msk [vmem:[#allocation2 + $0x2b0] sm:$0xff] %vm28_vm1, %v210_v37 }
  0x9e   :  { %v383_v45 = vpack.c.bf16 %v337_v42, %v336_v39  ;;  %v402_v46 = vld [vmem:[#allocation2 + $0x28] sm:$0xff]  ;;  %v403_v48 = vld [vmem:[#allocation2 + $0x30] sm:$0xff]  ;;  %242 = vst.msk [vmem:[#allocation2 + $0x68] sm:$0xff] %vm28_vm1, %v177_v40  ;;  %v217_v37 = vld [vmem:[%s14191_s0 + $0x160] sm:$0xff] }
  0x9f   :  { %v305_v49 = vld [vmem:[#allocation2 + $0x2f] sm:$0xff]  ;;  %9222 = vmatmul.msk.bf16.gmra.mxu2 %vm28_vm1, %v481_v44  ;;  %v10261_v50 = vpack.c.bf16 %v403_v48, %v402_v46  ;;  %243 = vst.msk [vmem:[#allocation2 + $0x70] sm:$0xff] %vm28_vm1, %v178_v43  ;;  %v338_v58 = vld [vmem:[#allocation2 + $0x287] sm:$0xff] }
  0xa0   :  { %9254 = vmatmul.msk.bf16.gmra.mxu3 %vm28_vm1, %v383_v45  ;;  %v10263_v51 = vpack.c.bf16 %v305_v49, %v304_v47  ;;  %276 = vst.msk [vmem:[#allocation2 + $0x2c8] sm:$0xff] %vm28_vm1, %v211_v52  ;;  %v436_v55 = vld [vmem:[#allocation2 + $0x288] sm:$0xff]  ;;  %v437_v57 = vld [vmem:[#allocation2 + $0x290] sm:$0xff]  ;;  %v185_v39 = vld [vmem:[%s14191_s0 + $0x60] sm:$0xff] }
  0xa1   :  { %9206 = vmatmul.msk.bf16.gmra.mxu0 %vm28_vm1, %v10261_v50  ;;  %277 = vst.msk [vmem:[#allocation2 + $0x2d0] sm:$0xff] %vm28_vm1, %v212_v53  ;;  %v339_v59 = vld [vmem:[#allocation2 + $0x28f] sm:$0xff]  ;;  %v306_v62 = vld [vmem:[#allocation2 + $0x47] sm:$0xff]  ;;  %v482_v0 = vpack.c.bf16 %v437_v57, %v436_v55  ;;  %v608_v55 = vpop.f32.mrf.mxu0 }
  0xa2   :  { %9238 = vmatmul.msk.bf16.gmra.mxu1 %vm28_vm1, %v10263_v51  ;;  %244 = vst.msk [vmem:[#allocation2 + $0x88] sm:$0xff] %vm28_vm1, %v179_v54  ;;  %v404_v60 = vld [vmem:[#allocation2 + $0x48] sm:$0xff]  ;;  %v405_v61 = vld [vmem:[#allocation2 + $0x50] sm:$0xff]  ;;  %v384_v1 = vpack.c.bf16 %v339_v59, %v338_v58  ;;  %v220_v58 = vld [vmem:[%s14191_s0 + $0x178] sm:$0xff] }
  0xa3   :  { %245 = vst.msk [vmem:[#allocation2 + $0x90] sm:$0xff] %vm28_vm1, %v180_v56  ;;  %v307_v63 = vld [vmem:[#allocation2 + $0x4f] sm:$0xff]  ;;  %v10286_v2 = vpack.c.bf16 %v405_v61, %v404_v60  ;;  %v340_v11 = vld [vmem:[#allocation2 + $0x2a7] sm:$0xff]  ;;  %v876_v56 = vpop.f32.mrf.mxu1  ;;  %v188_v61 = vld [vmem:[%s14191_s0 + $0x78] sm:$0xff] }
  0xa4   :  { %v10288_v3 = vpack.c.bf16 %v307_v63, %v306_v62  ;;  %278 = vst.msk [vmem:[#allocation2 + $0x2e8] sm:$0xff] %vm28_vm1, %v213_v5  ;;  %v438_v9 = vld [vmem:[#allocation2 + $0x2a8] sm:$0xff]  ;;  %v439_v10 = vld [vmem:[#allocation2 + $0x2b0] sm:$0xff]  ;;  %v10380_v59 = vadd.f32 %v876_v56, %v608_v55 }
  0xa5   :  { %279 = vst.msk [vmem:[#allocation2 + $0x2f0] sm:$0xff] %vm28_vm1, %v214_v6  ;;  %v341_v12 = vld [vmem:[#allocation2 + $0x2af] sm:$0xff]  ;;  %v308_v15 = vld [vmem:[#allocation2 + $0x67] sm:$0xff]  ;;  %v483_v17 = vpack.c.bf16 %v439_v10, %v438_v9 }
  0xa6   :  { %246 = vst.msk [vmem:[#allocation2 + $0xa8] sm:$0xff] %vm28_vm1, %v181_v7  ;;  %v406_v13 = vld [vmem:[#allocation2 + $0x68] sm:$0xff]  ;;  %v407_v14 = vld [vmem:[#allocation2 + $0x70] sm:$0xff]  ;;  %v385_v18 = vpack.c.bf16 %v341_v12, %v340_v11 }
  0xa7   :  { %247 = vst.msk [vmem:[#allocation2 + $0xb0] sm:$0xff] %vm28_vm1, %v182_v8  ;;  %v309_v16 = vld [vmem:[#allocation2 + $0x6f] sm:$0xff]  ;;  %v10312_v19 = vpack.c.bf16 %v407_v14, %v406_v13  ;;  %v342_v27 = vld [vmem:[#allocation2 + $0x2c7] sm:$0xff]  ;;  %v688_v13 = vpop.f32.mrf.mxu2 }
  0xa8   :  { %v10314_v20 = vpack.c.bf16 %v309_v16, %v308_v15  ;;  %280 = vst.msk [vmem:[#allocation2 + $0x308] sm:$0xff] %vm28_vm1, %v215_v21  ;;  %v440_v25 = vld [vmem:[#allocation2 + $0x2c8] sm:$0xff]  ;;  %v441_v26 = vld [vmem:[#allocation2 + $0x2d0] sm:$0xff]  ;;  %v221_v16 = vld [vmem:[%s14191_s0 + $0x180] sm:$0xff] }
  0xa9   :  { %281 = vst.msk [vmem:[#allocation2 + $0x310] sm:$0xff] %vm28_vm1, %v216_v22  ;;  %v343_v28 = vld [vmem:[#allocation2 + $0x2cf] sm:$0xff]  ;;  %v310_v31 = vld [vmem:[#allocation2 + $0x87] sm:$0xff]  ;;  %v484_v33 = vpack.c.bf16 %v441_v26, %v440_v25  ;;  %v10456_v56 = vpop.f32.mrf.mxu0 }
  0xaa   :  { %248 = vst.msk [vmem:[#allocation2 + $0xc8] sm:$0xff] %vm28_vm1, %v183_v23  ;;  %v408_v29 = vld [vmem:[#allocation2 + $0x88] sm:$0xff]  ;;  %v409_v30 = vld [vmem:[#allocation2 + $0x90] sm:$0xff]  ;;  %v386_v34 = vpack.c.bf16 %v343_v28, %v342_v27 }
  0xab   :  { %249 = vst.msk [vmem:[#allocation2 + $0xd0] sm:$0xff] %vm28_vm1, %v184_v24  ;;  %v311_v32 = vld [vmem:[#allocation2 + $0x8f] sm:$0xff]  ;;  %v10338_v35 = vpack.c.bf16 %v409_v30, %v408_v29  ;;  %v344_v43 = vld [vmem:[#allocation2 + $0x2e7] sm:$0xff] }
  0xac   :  { %v10340_v36 = vpack.c.bf16 %v311_v32, %v310_v31  ;;  %v218_v38 = vld [vmem:[%s14191_s0 + $0x168] sm:$0xff]  ;;  %282 = vst.msk [vmem:[#allocation2 + $0x328] sm:$0xff] %vm28_vm1, %v217_v37  ;;  %v443_v42 = vld [vmem:[#allocation2 + $0x2f0] sm:$0xff]  ;;  %v224_v37 = vld [vmem:[%s14191_s0 + $0x198] sm:$0xff] }
  0xad   :  { %283 = vst.msk [vmem:[#allocation2 + $0x330] sm:$0xff] %vm28_vm1, %v218_v38  ;;  %v186_v40 = vld [vmem:[%s14191_s0 + $0x68] sm:$0xff]  ;;  %v219_v57 = vld [vmem:[%s14191_s0 + $0x170] sm:$0xff] }
  0xae   :  { %v442_v41 = vld [vmem:[#allocation2 + $0x2e8] sm:$0xff]  ;;  %250 = vst.msk [vmem:[#allocation2 + $0xe8] sm:$0xff] %vm28_vm1, %v185_v39  ;;  %v411_v46 = vld [vmem:[#allocation2 + $0xb0] sm:$0xff]  ;;  %v192_v39 = vld [vmem:[%s14191_s0 + $0x98] sm:$0xff] }
  0xaf   :  { %9223 = vmatmul.msk.bf16.gmra.mxu2 %vm28_vm1, %v482_v0  ;;  %v345_v44 = vld [vmem:[#allocation2 + $0x2ef] sm:$0xff]  ;;  %251 = vst.msk [vmem:[#allocation2 + $0xf0] sm:$0xff] %vm28_vm1, %v186_v40  ;;  %v312_v47 = vld [vmem:[#allocation2 + $0xa7] sm:$0xff]  ;;  %v485_v49 = vpack.c.bf16 %v443_v42, %v442_v41 }
  0xb0   :  { %9255 = vmatmul.msk.bf16.gmra.mxu3 %vm28_vm1, %v384_v1  ;;  %v410_v45 = vld [vmem:[#allocation2 + $0xa8] sm:$0xff]  ;;  %v387_v52 = vpack.c.bf16 %v345_v44, %v344_v43  ;;  %284 = vst.msk [vmem:[#allocation2 + $0x348] sm:$0xff] %vm28_vm1, %v219_v57  ;;  %v187_v60 = vld [vmem:[%s14191_s0 + $0x70] sm:$0xff]  ;;  %v10458_v57 = vpop.f32.mrf.mxu1 }
  0xb1   :  { %9207 = vmatmul.msk.bf16.gmra.mxu0 %vm28_vm1, %v10286_v2  ;;  %v313_v48 = vld [vmem:[#allocation2 + $0xaf] sm:$0xff]  ;;  %v10364_v53 = vpack.c.bf16 %v411_v46, %v410_v45  ;;  %285 = vst.msk [vmem:[#allocation2 + $0x350] sm:$0xff] %vm28_vm1, %v220_v58  ;;  %v346_v0 = vld [vmem:[#allocation2 + $0x307] sm:$0xff] }
  0xb2   :  { %9239 = vmatmul.msk.bf16.gmra.mxu1 %vm28_vm1, %v10288_v3  ;;  %v10366_v54 = vpack.c.bf16 %v313_v48, %v312_v47  ;;  %v444_v62 = vld [vmem:[#allocation2 + $0x308] sm:$0xff]  ;;  %252 = vst.msk [vmem:[#allocation2 + $0x108] sm:$0xff] %vm28_vm1, %v187_v60  ;;  %v445_v63 = vld [vmem:[#allocation2 + $0x310] sm:$0xff]  ;;  %v225_v58 = vld [vmem:[%s14191_s0 + $0x1a0] sm:$0xff] }
  0xb3   :  { %v347_v1 = vld [vmem:[#allocation2 + $0x30f] sm:$0xff]  ;;  %253 = vst.msk [vmem:[#allocation2 + $0x110] sm:$0xff] %vm28_vm1, %v188_v61  ;;  %v314_v7 = vld [vmem:[#allocation2 + $0xc7] sm:$0xff]  ;;  %v486_v9 = vpack.c.bf16 %v445_v63, %v444_v62 }
  0xb4   :  { %v412_v5 = vld [vmem:[#allocation2 + $0xc8] sm:$0xff]  ;;  %v413_v6 = vld [vmem:[#allocation2 + $0xd0] sm:$0xff]  ;;  %v388_v10 = vpack.c.bf16 %v347_v1, %v346_v0  ;;  %286 = vst.msk [vmem:[#allocation2 + $0x368] sm:$0xff] %vm28_vm1, %v221_v16  ;;  %v193_v61 = vld [vmem:[%s14191_s0 + $0xa0] sm:$0xff]  ;;  %v10475_v0 = vpop.f32.mrf.mxu2 }
  0xb5   :  { %v315_v8 = vld [vmem:[#allocation2 + $0xcf] sm:$0xff]  ;;  %v10392_v11 = vpack.c.bf16 %v413_v6, %v412_v5  ;;  %v348_v24 = vld [vmem:[#allocation2 + $0x327] sm:$0xff]  ;;  %289 = vst.msk [vmem:[#allocation2 + $0x390] sm:$0xff] %vm28_vm1, %v224_v37 }
  0xb6   :  { %v10394_v12 = vpack.c.bf16 %v315_v8, %v314_v7  ;;  %v190_v21 = vld [vmem:[%s14191_s0 + $0x88] sm:$0xff]  ;;  %v447_v23 = vld [vmem:[#allocation2 + $0x330] sm:$0xff]  ;;  %257 = vst.msk [vmem:[#allocation2 + $0x150] sm:$0xff] %vm28_vm1, %v192_v39 }
  0xb7   :  { %v446_v22 = vld [vmem:[#allocation2 + $0x328] sm:$0xff]  ;;  %255 = vst.msk [vmem:[#allocation2 + $0x130] sm:$0xff] %vm28_vm1, %v190_v21  ;;  %v415_v27 = vld [vmem:[#allocation2 + $0xf0] sm:$0xff] }
  0xb8   :  { %v349_v25 = vld [vmem:[#allocation2 + $0x32f] sm:$0xff]  ;;  %v316_v28 = vld [vmem:[#allocation2 + $0xe7] sm:$0xff]  ;;  %v487_v30 = vpack.c.bf16 %v447_v23, %v446_v22  ;;  %290 = vst.msk [vmem:[#allocation2 + $0x3a8] sm:$0xff] %vm28_vm1, %v225_v58 }
  0xb9   :  { %v414_v26 = vld [vmem:[#allocation2 + $0xe8] sm:$0xff]  ;;  %v389_v31 = vpack.c.bf16 %v349_v25, %v348_v24  ;;  %v191_v38 = vld [vmem:[%s14191_s0 + $0x90] sm:$0xff]  ;;  %258 = vst.msk [vmem:[#allocation2 + $0x168] sm:$0xff] %vm28_vm1, %v193_v61 }
  0xba   :  { %v317_v29 = vld [vmem:[#allocation2 + $0xef] sm:$0xff]  ;;  %v10420_v32 = vpack.c.bf16 %v415_v27, %v414_v26  ;;  %256 = vst.msk [vmem:[#allocation2 + $0x148] sm:$0xff] %vm28_vm1, %v191_v38  ;;  %v350_v42 = vld [vmem:[#allocation2 + $0x347] sm:$0xff] }
  0xbb   :  { %v448_v40 = vld [vmem:[#allocation2 + $0x348] sm:$0xff]  ;;  %v449_v41 = vld [vmem:[#allocation2 + $0x350] sm:$0xff]  ;;  %14289 = vst [vmem:[#allocation8_spill] sm:$0xff] %v10475_v0 }
  0xbc   :  { %v351_v43 = vld [vmem:[#allocation2 + $0x34f] sm:$0xff]  ;;  %v318_v46 = vld [vmem:[#allocation2 + $0x107] sm:$0xff]  ;;  %v488_v48 = vpack.c.bf16 %v449_v41, %v448_v40 }
  0xbd   :  { %v416_v44 = vld [vmem:[#allocation2 + $0x108] sm:$0xff]  ;;  %v417_v45 = vld [vmem:[#allocation2 + $0x110] sm:$0xff] }
  0xbe   :  { %v319_v47 = vld [vmem:[#allocation2 + $0x10f] sm:$0xff]  ;;  %v352_v6 = vld [vmem:[#allocation2 + $0x367] sm:$0xff] }
  0xbf   :  { %9224 = vmatmul.msk.bf16.gmra.mxu2 %vm28_vm1, %v483_v17  ;;  %v222_v17 = vld [vmem:[%s14191_s0 + $0x188] sm:$0xff]  ;;  %v10448_v55 = vpack.c.bf16 %v319_v47, %v318_v46  ;;  %v227_v27 = vld [vmem:[%s14191_s0 + $0x1b0] sm:$0xff] }
  0xc0   :  { %9256 = vmatmul.msk.bf16.gmra.mxu3 %vm28_vm1, %v385_v18  ;;  %287 = vst.msk [vmem:[#allocation2 + $0x370] sm:$0xff] %vm28_vm1, %v222_v17  ;;  %v189_v18 = vld [vmem:[%s14191_s0 + $0x80] sm:$0xff]  ;;  %v226_v60 = vld [vmem:[%s14191_s0 + $0x1a8] sm:$0xff]  ;;  %v453_v39 = vld [vmem:[#allocation2 + $0x390] sm:$0xff] }
  0xc1   :  { %9208 = vmatmul.msk.bf16.gmra.mxu0 %vm28_vm1, %v10312_v19  ;;  %254 = vst.msk [vmem:[#allocation2 + $0x128] sm:$0xff] %vm28_vm1, %v189_v18  ;;  %v194_v62 = vld [vmem:[%s14191_s0 + $0xa8] sm:$0xff] }
  0xc2   :  { %9240 = vmatmul.msk.bf16.gmra.mxu1 %vm28_vm1, %v10314_v20  ;;  %291 = vst.msk [vmem:[#allocation2 + $0x3b0] sm:$0xff] %vm28_vm1, %v226_v60  ;;  %v450_v63 = vld [vmem:[#allocation2 + $0x368] sm:$0xff] }
  0xc3   :  { %259 = vst.msk [vmem:[#allocation2 + $0x170] sm:$0xff] %vm28_vm1, %v194_v62  ;;  %v322_v46 = vld [vmem:[#allocation2 + $0x147] sm:$0xff]  ;;  %v323_v47 = vld [vmem:[#allocation2 + $0x14f] sm:$0xff] }
  0xc4   :  { %292 = vst.msk [vmem:[#allocation2 + $0x3c8] sm:$0xff] %vm28_vm1, %v227_v27  ;;  %v10516_v61 = vpack.c.bf16 %v323_v47, %v322_v46  ;;  %v356_v27 = vld [vmem:[#allocation2 + $0x3a7] sm:$0xff] }
  0xc7   :  { %v451_v5 = vld [vmem:[#allocation2 + $0x370] sm:$0xff] }
  0xc8   :  { %v353_v7 = vld [vmem:[#allocation2 + $0x36f] sm:$0xff] }
  0xc9   :  { %v418_v8 = vld [vmem:[#allocation2 + $0x128] sm:$0xff]  ;;  %v391_v16 = vpack.c.bf16 %v353_v7, %v352_v6 }
  0xcf   :  { %9225 = vmatmul.msk.bf16.gmra.mxu2 %vm28_vm1, %v484_v33  ;;  %v10422_v33 = vpack.c.bf16 %v317_v29, %v316_v28  ;;  %v228_v28 = vld [vmem:[%s14191_s0 + $0x1b8] sm:$0xff] }
  0xd0   :  { %9257 = vmatmul.msk.bf16.gmra.mxu3 %vm28_vm1, %v386_v34  ;;  %v223_v34 = vld [vmem:[%s14191_s0 + $0x190] sm:$0xff]  ;;  %293 = vst.msk [vmem:[#allocation2 + $0x3d0] sm:$0xff] %vm28_vm1, %v228_v28 }
  0xd1   :  { %9209 = vmatmul.msk.bf16.gmra.mxu0 %vm28_vm1, %v10338_v35  ;;  %288 = vst.msk [vmem:[#allocation2 + $0x388] sm:$0xff] %vm28_vm1, %v223_v34  ;;  %v196_v34 = vld [vmem:[%s14191_s0 + $0xb8] sm:$0xff]  ;;  %v357_v28 = vld [vmem:[#allocation2 + $0x3af] sm:$0xff] }
  0xd2   :  { %9241 = vmatmul.msk.bf16.gmra.mxu1 %vm28_vm1, %v10340_v36  ;;  %261 = vst.msk [vmem:[#allocation2 + $0x190] sm:$0xff] %vm28_vm1, %v196_v34  ;;  %v423_v34 = vld [vmem:[#allocation2 + $0x170] sm:$0xff] }
  0xd8   :  { %v452_v38 = vld [vmem:[#allocation2 + $0x388] sm:$0xff] }
  0xd9   :  { %v354_v40 = vld [vmem:[#allocation2 + $0x387] sm:$0xff]  ;;  %v355_v41 = vld [vmem:[#allocation2 + $0x38f] sm:$0xff] }
  0xda   :  { %v392_v58 = vpack.c.bf16 %v355_v41, %v354_v40 }
  0xdb   :  { %v956_v14 = vpop.f32.mrf.mxu3 }
  0xdc   :  { %v10402_v15 = vadd.f32 %v956_v14, %v688_v13  ;;  %v321_v13 = vld [vmem:[#allocation2 + $0x12f] sm:$0xff]  ;;  %v489_v14 = vpack.c.bf16 %v451_v5, %v450_v63 }
  0xde   :  { %14288 = vst [vmem:[#allocation7_spill] sm:$0xff] %v10402_v15 }
  0xdf   :  { %9226 = vmatmul.msk.bf16.gmra.mxu2 %vm28_vm1, %v485_v49  ;;  %v390_v49 = vpack.c.bf16 %v351_v43, %v350_v42  ;;  %v420_v42 = vld [vmem:[#allocation2 + $0x148] sm:$0xff] }
  0xe0   :  { %9258 = vmatmul.msk.bf16.gmra.mxu3 %vm28_vm1, %v387_v52  ;;  %v10446_v52 = vpack.c.bf16 %v417_v45, %v416_v44  ;;  %v421_v45 = vld [vmem:[#allocation2 + $0x150] sm:$0xff] }
  0xe1   :  { %9210 = vmatmul.msk.bf16.gmra.mxu0 %vm28_vm1, %v10364_v53  ;;  %v10514_v60 = vpack.c.bf16 %v421_v45, %v420_v42  ;;  %v393_v42 = vpack.c.bf16 %v357_v28, %v356_v27 }
  0xe2   :  { %9242 = vmatmul.msk.bf16.gmra.mxu1 %vm28_vm1, %v10366_v54 }
  0xe3   :  { %v10477_v1 = vpop.f32.mrf.mxu3 }
  0xe4   :  { %14290 = vst [vmem:[#allocation9_spill] sm:$0xff] %v10477_v1 }
  0xef   :  { %9227 = vmatmul.msk.bf16.gmra.mxu2 %vm28_vm1, %v486_v9  ;;  %v419_v9 = vld [vmem:[#allocation2 + $0x130] sm:$0xff] }
  0xf0   :  { %9259 = vmatmul.msk.bf16.gmra.mxu3 %vm28_vm1, %v388_v10  ;;  %v320_v10 = vld [vmem:[#allocation2 + $0x127] sm:$0xff]  ;;  %v10480_v17 = vpack.c.bf16 %v419_v9, %v418_v8 }
  0xf1   :  { %9211 = vmatmul.msk.bf16.gmra.mxu0 %vm28_vm1, %v10392_v11  ;;  %v10482_v18 = vpack.c.bf16 %v321_v13, %v320_v10  ;;  %v229_v9 = vld [vmem:[%s14191_s0 + $0x1c0] sm:$0xff]  ;;  %v230_v10 = vld [vmem:[%s14191_s0 + $0x1c8] sm:$0xff] }
  0xf2   :  { %9243 = vmatmul.msk.bf16.gmra.mxu1 %vm28_vm1, %v10394_v12  ;;  %294 = vst.msk [vmem:[#allocation2 + $0x3e8] sm:$0xff] %vm28_vm1, %v229_v9 }
  0xf3   :  { %295 = vst.msk [vmem:[#allocation2 + $0x3f0] sm:$0xff] %vm28_vm1, %v230_v10  ;;  %v199_v10 = vld [vmem:[%s14191_s0 + $0xd0] sm:$0xff] }
  0xf4   :  { %264 = vst.msk [vmem:[#allocation2 + $0x1c8] sm:$0xff] %vm28_vm1, %v199_v10  ;;  %v234_v10 = vld [vmem:[%s14191_s0 + $0x1e8] sm:$0xff] }
  0xf5   :  { %299 = vst.msk [vmem:[#allocation2 + $0x430] sm:$0xff] %vm28_vm1, %v234_v10 }
  0xff   :  { %9228 = vmatmul.msk.bf16.gmra.mxu2 %vm28_vm1, %v487_v30 }
 0x100   :  { %9260 = vmatmul.msk.bf16.gmra.mxu3 %vm28_vm1, %v389_v31  ;;  %v195_v31 = vld [vmem:[%s14191_s0 + $0xb0] sm:$0xff] }
 0x101   :  { %9212 = vmatmul.msk.bf16.gmra.mxu0 %vm28_vm1, %v10420_v32  ;;  %260 = vst.msk [vmem:[#allocation2 + $0x188] sm:$0xff] %vm28_vm1, %v195_v31 }
 0x102   :  { %9244 = vmatmul.msk.bf16.gmra.mxu1 %vm28_vm1, %v10422_v33 }
 0x108   :  { %v424_v27 = vld [vmem:[#allocation2 + $0x188] sm:$0xff] }
 0x10f   :  { %9229 = vmatmul.msk.bf16.gmra.mxu2 %vm28_vm1, %v488_v48 }
 0x110   :  { %9261 = vmatmul.msk.bf16.gmra.mxu3 %vm28_vm1, %v390_v49  ;;  %v490_v49 = vpack.c.bf16 %v453_v39, %v452_v38  ;;  %v324_v38 = vld [vmem:[#allocation2 + $0x167] sm:$0xff]  ;;  %v325_v39 = vld [vmem:[#allocation2 + $0x16f] sm:$0xff] }
 0x111   :  { %9213 = vmatmul.msk.bf16.gmra.mxu0 %vm28_vm1, %v10446_v52 }
 0x112   :  { %9245 = vmatmul.msk.bf16.gmra.mxu1 %vm28_vm1, %v10448_v55 }
 0x11e   :  { %v613_v21 = vpop.f32.mrf.mxu0 }
 0x11f   :  { %v881_v22 = vpop.f32.mrf.mxu1  ;;  %9230 = vmatmul.msk.bf16.gmra.mxu2 %vm28_vm1, %v489_v14 }
 0x120   :  { %v10484_v23 = vadd.f32 %v881_v22, %v613_v21  ;;  %9262 = vmatmul.msk.bf16.gmra.mxu3 %vm28_vm1, %v391_v16  ;;  %v197_v16 = vld [vmem:[%s14191_s0 + $0xc0] sm:$0xff]  ;;  %v198_v21 = vld [vmem:[%s14191_s0 + $0xc8] sm:$0xff] }
 0x121   :  { %9214 = vmatmul.msk.bf16.gmra.mxu0 %vm28_vm1, %v10480_v17  ;;  %262 = vst.msk [vmem:[#allocation2 + $0x1a8] sm:$0xff] %vm28_vm1, %v197_v16  ;;  %v456_v16 = vld [vmem:[#allocation2 + $0x3c8] sm:$0xff] }
 0x122   :  { %9246 = vmatmul.msk.bf16.gmra.mxu1 %vm28_vm1, %v10482_v18  ;;  %v693_v24 = vpop.f32.mrf.mxu2  ;;  %263 = vst.msk [vmem:[#allocation2 + $0x1b0] sm:$0xff] %vm28_vm1, %v198_v21  ;;  %v457_v21 = vld [vmem:[#allocation2 + $0x3d0] sm:$0xff] }
 0x123   :  { %v961_v25 = vpop.f32.mrf.mxu3 }
 0x124   :  { %v10492_v26 = vadd.f32 %v961_v25, %v693_v24  ;;  %v454_v24 = vld [vmem:[#allocation2 + $0x3a8] sm:$0xff]  ;;  %v455_v25 = vld [vmem:[#allocation2 + $0x3b0] sm:$0xff] }
 0x125   :  { %v491_v41 = vpack.c.bf16 %v455_v25, %v454_v24  ;;  %v358_v24 = vld [vmem:[#allocation2 + $0x3c7] sm:$0xff]  ;;  %v359_v25 = vld [vmem:[#allocation2 + $0x3cf] sm:$0xff] }
 0x126   :  { %14291 = vst [vmem:[#allocation10_spill] sm:$0xff] %v10492_v26  ;;  %v615_v29 = vpop.f32.mrf.mxu0 }
 0x127   :  { %v883_v30 = vpop.f32.mrf.mxu1 }
 0x128   :  { %v10508_v37 = vadd.f32 %v883_v30, %v615_v29  ;;  %v422_v29 = vld [vmem:[#allocation2 + $0x168] sm:$0xff] }
 0x12a   :  { %v695_v43 = vpop.f32.mrf.mxu2 }
 0x12b   :  { %v963_v44 = vpop.f32.mrf.mxu3 }
 0x12c   :  { %v10512_v48 = vadd.f32 %v963_v44, %v695_v43  ;;  %v10548_v43 = vpack.c.bf16 %v423_v34, %v422_v29  ;;  %v10550_v44 = vpack.c.bf16 %v325_v39, %v324_v38  ;;  %v327_v34 = vld [vmem:[#allocation2 + $0x18f] sm:$0xff]  ;;  %v492_v39 = vpack.c.bf16 %v457_v21, %v456_v16  ;;  %v201_v21 = vld [vmem:[%s14191_s0 + $0xe0] sm:$0xff] }
 0x12d   :  { %266 = vst.msk [vmem:[#allocation2 + $0x1e8] sm:$0xff] %vm28_vm1, %v201_v21 }
 0x12e   :  { %14292 = vst [vmem:[#allocation11_spill] sm:$0xff] %v10512_v48  ;;  %v618_v62 = vpop.f32.mrf.mxu0 }
 0x12f   :  { %v886_v63 = vpop.f32.mrf.mxu1  ;;  %9231 = vmatmul.msk.bf16.gmra.mxu2 %vm28_vm1, %v490_v49 }
 0x130   :  { %v10518_v5 = vadd.f32 %v886_v63, %v618_v62  ;;  %9263 = vmatmul.msk.bf16.gmra.mxu3 %vm28_vm1, %v392_v58  ;;  %v231_v63 = vld [vmem:[%s14191_s0 + $0x1d0] sm:$0xff] }
 0x131   :  { %9215 = vmatmul.msk.bf16.gmra.mxu0 %vm28_vm1, %v10514_v60  ;;  %296 = vst.msk [vmem:[#allocation2 + $0x408] sm:$0xff] %vm28_vm1, %v231_v63 }
 0x132   :  { %9247 = vmatmul.msk.bf16.gmra.mxu1 %vm28_vm1, %v10516_v61  ;;  %v698_v6 = vpop.f32.mrf.mxu2 }
 0x133   :  { %v966_v7 = vpop.f32.mrf.mxu3 }
 0x134   :  { %v10526_v8 = vadd.f32 %v966_v7, %v698_v6  ;;  %v232_v6 = vld [vmem:[%s14191_s0 + $0x1d8] sm:$0xff] }
 0x135   :  { %297 = vst.msk [vmem:[#allocation2 + $0x410] sm:$0xff] %vm28_vm1, %v232_v6 }
 0x136   :  { %14293 = vst [vmem:[#allocation12_spill] sm:$0xff] %v10526_v8  ;;  %v620_v13 = vpop.f32.mrf.mxu0 }
 0x137   :  { %v888_v14 = vpop.f32.mrf.mxu1 }
 0x138   :  { %v10542_v22 = vadd.f32 %v888_v14, %v620_v13  ;;  %v200_v13 = vld [vmem:[%s14191_s0 + $0xd8] sm:$0xff] }
 0x139   :  { %265 = vst.msk [vmem:[#allocation2 + $0x1d0] sm:$0xff] %vm28_vm1, %v200_v13 }
 0x13a   :  { %v700_v30 = vpop.f32.mrf.mxu2 }
 0x13b   :  { %v968_v31 = vpop.f32.mrf.mxu3 }
 0x13c   :  { %v10546_v40 = vadd.f32 %v968_v31, %v700_v30  ;;  %v425_v30 = vld [vmem:[#allocation2 + $0x190] sm:$0xff]  ;;  %v326_v31 = vld [vmem:[#allocation2 + $0x187] sm:$0xff] }
 0x13e   :  { %14294 = vst [vmem:[#allocation13_spill] sm:$0xff] %v10546_v40  ;;  %v623_v45 = vpop.f32.mrf.mxu0  ;;  %v9401_v40 = vld [vmem:[%s14192_s1 + $0x18] sm:$0xf] }
 0x13f   :  { %v891_v46 = vpop.f32.mrf.mxu1  ;;  %9232 = vmatmul.msk.bf16.gmra.mxu2 %vm28_vm1, %v491_v41  ;;  %v394_v41 = vpack.c.bf16 %v359_v25, %v358_v24  ;;  %v202_v24 = vld [vmem:[%s14191_s0 + $0xe8] sm:$0xff] }
 0x140   :  { %v10552_v47 = vadd.f32 %v891_v46, %v623_v45  ;;  %9264 = vmatmul.msk.bf16.gmra.mxu3 %vm28_vm1, %v393_v42  ;;  %v10582_v42 = vpack.c.bf16 %v425_v30, %v424_v27  ;;  %v10584_v45 = vpack.c.bf16 %v327_v34, %v326_v31  ;;  %v458_v27 = vld [vmem:[#allocation2 + $0x3e8] sm:$0xff]  ;;  %267 = vst.msk [vmem:[#allocation2 + $0x1f0] sm:$0xff] %vm28_vm1, %v202_v24 }
 0x141   :  { %9216 = vmatmul.msk.bf16.gmra.mxu0 %vm28_vm1, %v10548_v43  ;;  %v361_v30 = vld [vmem:[#allocation2 + $0x3ef] sm:$0xff] }
 0x142   :  { %9248 = vmatmul.msk.bf16.gmra.mxu1 %vm28_vm1, %v10550_v44  ;;  %v703_v49 = vpop.f32.mrf.mxu2  ;;  %v426_v31 = vld [vmem:[#allocation2 + $0x1a8] sm:$0xff] }
 0x143   :  { %v971_v58 = vpop.f32.mrf.mxu3 }
 0x144   :  { %v10560_v62 = vadd.f32 %v971_v58, %v703_v49 }
 0x146   :  { %14295 = vst [vmem:[#allocation14_spill] sm:$0xff] %v10560_v62  ;;  %v625_v7 = vpop.f32.mrf.mxu0 }
 0x147   :  { %v893_v9 = vpop.f32.mrf.mxu1  ;;  %v333_v8 = vld [vmem:[#allocation2 + $0x1ef] sm:$0xff] }
 0x148   :  { %v10576_v14 = vadd.f32 %v893_v9, %v625_v7  ;;  %v233_v9 = vld [vmem:[%s14191_s0 + $0x1e0] sm:$0xff] }
 0x149   :  { %298 = vst.msk [vmem:[#allocation2 + $0x428] sm:$0xff] %vm28_vm1, %v233_v9 }
 0x14a   :  { %v705_v28 = vpop.f32.mrf.mxu2 }
 0x14b   :  { %v973_v29 = vpop.f32.mrf.mxu3 }
 0x14c   :  { %v10580_v38 = vadd.f32 %v973_v29, %v705_v28  ;;  %v459_v28 = vld [vmem:[#allocation2 + $0x3f0] sm:$0xff]  ;;  %v360_v29 = vld [vmem:[#allocation2 + $0x3e7] sm:$0xff] }
 0x14d   :  { %v395_v9 = vpack.c.bf16 %v361_v30, %v360_v29 }
 0x14e   :  { %14296 = vst [vmem:[#allocation15_spill] sm:$0xff] %v10580_v38  ;;  %v628_v46 = vpop.f32.mrf.mxu0 }
 0x14f   :  { %v896_v49 = vpop.f32.mrf.mxu1  ;;  %9233 = vmatmul.msk.bf16.gmra.mxu2 %vm28_vm1, %v492_v39 }
 0x150   :  { %v10586_v58 = vadd.f32 %v896_v49, %v628_v46  ;;  %9265 = vmatmul.msk.bf16.gmra.mxu3 %vm28_vm1, %v394_v41  ;;  %v427_v41 = vld [vmem:[#allocation2 + $0x1b0] sm:$0xff]  ;;  %v328_v46 = vld [vmem:[#allocation2 + $0x1a7] sm:$0xff] }
 0x151   :  { %9217 = vmatmul.msk.bf16.gmra.mxu0 %vm28_vm1, %v10582_v42  ;;  %v329_v49 = vld [vmem:[#allocation2 + $0x1af] sm:$0xff]  ;;  %v10616_v10 = vpack.c.bf16 %v427_v41, %v426_v31  ;;  %v362_v41 = vld [vmem:[#allocation2 + $0x407] sm:$0xff] }
 0x152   :  { %9249 = vmatmul.msk.bf16.gmra.mxu1 %vm28_vm1, %v10584_v45  ;;  %v708_v63 = vpop.f32.mrf.mxu2 }
 0x153   :  { %v976_v6 = vpop.f32.mrf.mxu3 }
 0x154   :  { %v10594_v7 = vadd.f32 %v976_v6, %v708_v63  ;;  %v493_v6 = vpack.c.bf16 %v459_v28, %v458_v27 }
 0x156   :  { %14297 = vst [vmem:[#allocation16_spill] sm:$0xff] %v10594_v7  ;;  %v630_v13 = vpop.f32.mrf.mxu0 }
 0x157   :  { %v898_v16 = vpop.f32.mrf.mxu1 }
 0x158   :  { %v10610_v25 = vadd.f32 %v898_v16, %v630_v13  ;;  %v10618_v13 = vpack.c.bf16 %v329_v49, %v328_v46  ;;  %v363_v46 = vld [vmem:[#allocation2 + $0x40f] sm:$0xff] }
 0x159   :  { %v428_v49 = vld [vmem:[#allocation2 + $0x1c8] sm:$0xff]  ;;  %v396_v62 = vpack.c.bf16 %v363_v46, %v362_v41  ;;  %v9368_v46 = vld [vmem:[%s14192_s1 + $0x14] sm:$0xf] }
 0x15a   :  { %v710_v34 = vpop.f32.mrf.mxu2 }
 0x15b   :  { %v978_v39 = vpop.f32.mrf.mxu3 }
 0x15c   :  { %v10614_v63 = vadd.f32 %v978_v39, %v710_v34  ;;  %v460_v34 = vld [vmem:[#allocation2 + $0x408] sm:$0xff]  ;;  %v461_v39 = vld [vmem:[#allocation2 + $0x410] sm:$0xff] }
 0x15d   :  { %v494_v38 = vpack.c.bf16 %v461_v39, %v460_v34 }
 0x15e   :  { %14298 = vst [vmem:[#allocation17_spill] sm:$0xff] %v10614_v63  ;;  %v633_v16 = vpop.f32.mrf.mxu0  ;;  %v331_v63 = vld [vmem:[#allocation2 + $0x1cf] sm:$0xff] }
 0x15f   :  { %v901_v21 = vpop.f32.mrf.mxu1  ;;  %9234 = vmatmul.msk.bf16.gmra.mxu2 %vm28_vm1, %v493_v6 }
 0x160   :  { %v10620_v4 = vadd.f32 %v901_v21, %v633_v16  ;;  %9266 = vmatmul.msk.bf16.gmra.mxu3 %vm28_vm1, %v395_v9  ;;  %v429_v16 = vld [vmem:[#allocation2 + $0x1d0] sm:$0xff]  ;;  %v330_v21 = vld [vmem:[#allocation2 + $0x1c7] sm:$0xff] }
 0x161   :  { %9218 = vmatmul.msk.bf16.gmra.mxu0 %vm28_vm1, %v10616_v10 }
 0x162   :  { %9250 = vmatmul.msk.bf16.gmra.mxu1 %vm28_vm1, %v10618_v13  ;;  %v713_v24 = vpop.f32.mrf.mxu2 }
 0x163   :  { %v981_v27 = vpop.f32.mrf.mxu3 }
 0x164   :  { %v10628_v28 = vadd.f32 %v981_v27, %v713_v24  ;;  %v10634_v24 = vpack.c.bf16 %v429_v16, %v428_v49  ;;  %v10636_v27 = vpack.c.bf16 %v331_v63, %v330_v21  ;;  %v9434_v63 = vld [vmem:[%s14192_s1 + $0x1c] sm:$0xf]  ;;  %v2427_v49 = vpack.c.bf16 %v9368_v46, %v9368_v46  ;;  %v431_v46 = vld [vmem:[#allocation2 + $0x1f0] sm:$0xff] }
 0x166   :  { %14299 = vst [vmem:[#allocation18_spill] sm:$0xff] %v10628_v28  ;;  %v635_v29 = vpop.f32.mrf.mxu0 }
 0x167   :  { %v903_v30 = vpop.f32.mrf.mxu1 }
 0x168   :  { %v10630_v31 = vadd.f32 %v903_v30, %v635_v29 }
 0x16a   :  { %v715_v6 = vpop.f32.mrf.mxu2 }
 0x16b   :  { %v983_v9 = vpop.f32.mrf.mxu3 }
 0x16c   :  { %v10632_v7 = vadd.f32 %v983_v9, %v715_v6  ;;  %v2859_v6 = vpack.c.bf16 %v9401_v40, %v9401_v40 }
 0x16e   :  { %14300 = vst [vmem:[#allocation19_spill] sm:$0xff] %v10632_v7  ;;  %v638_v29 = vpop.f32.mrf.mxu0  ;;  %v332_v7 = vld [vmem:[#allocation2 + $0x1e7] sm:$0xff] }
 0x16f   :  { %v906_v30 = vpop.f32.mrf.mxu1  ;;  %9235 = vmatmul.msk.bf16.gmra.mxu2 %vm28_vm1, %v494_v38  ;;  %v2957_v38 = vsel %vm595_vm0, %v2859_v6, 0  ;;  %v9467_v6 = vld [vmem:[%s14192_s1 + $0x20] sm:$0xf]  ;;  %v10670_v1 = vpack.c.bf16 %v333_v8, %v332_v7 }
 0x170   :  { %v10638_v28 = vadd.f32 %v906_v30, %v638_v29  ;;  %9267 = vmatmul.msk.bf16.gmra.mxu3 %vm28_vm1, %v396_v62  ;;  %v3290_v62 = vpack.c.bf16 %v9434_v63, %v9434_v63  ;;  %2966 = vmatpush.bf16.msra.mxu2 %v2957_v38  ;;  %v462_v29 = vld [vmem:[#allocation2 + $0x428] sm:$0xff]  ;;  %v2525_v30 = vsel %vm595_vm0, %v2427_v49, 0  ;;  %v463_v63 = vld [vmem:[#allocation2 + $0x430] sm:$0xff]  ;;  %v3721_v38 = vpack.c.bf16 %v9467_v6, %v9467_v6 }
 0x171   :  { %9219 = vmatmul.msk.bf16.gmra.mxu0 %vm28_vm1, %v10634_v24  ;;  %2534 = vmatpush.bf16.msrb.mxu1 %v2525_v30  ;;  %v495_v49 = vpack.c.bf16 %v463_v63, %v462_v29 }
 0x172   :  { %9251 = vmatmul.msk.bf16.gmra.mxu1 %vm28_vm1, %v10636_v27  ;;  %v718_v34 = vpop.f32.mrf.mxu2  ;;  %v3388_v40 = vsel %vm595_vm0, %v3290_v62, 0  ;;  %v430_v62 = vld [vmem:[#allocation2 + $0x1e8] sm:$0xff] }
 0x173   :  { %v986_v39 = vpop.f32.mrf.mxu3  ;;  %3397 = vmatpush.bf16.msra.mxu3 %v3388_v40  ;;  %v10668_v26 = vpack.c.bf16 %v431_v46, %v430_v62 }
 0x174   :  { %v10653_v41 = vadd.f32 %v986_v39, %v718_v34  ;;  %v364_v34 = vld [vmem:[#allocation2 + $0x427] sm:$0xff]  ;;  %v365_v39 = vld [vmem:[#allocation2 + $0x42f] sm:$0xff] }
 0x175   :  { %v397_v48 = vpack.c.bf16 %v365_v39, %v364_v34  ;;  %v1037_v39 = vld [vmem:[#allocation2 + $0x11] sm:$0xff] }
 0x176   :  { %14301 = vst [vmem:[#allocation20_spill] sm:$0xff] %v10653_v41  ;;  %v640_v9 = vpop.f32.mrf.mxu0 }
 0x177   :  { %v908_v16 = vpop.f32.mrf.mxu1 }
 0x178   :  { %v10659_v21 = vadd.f32 %v908_v16, %v640_v9  ;;  %v3819_v9 = vsel %vm595_vm0, %v3721_v38, 0 }
 0x179   :  { %3828 = vmatpush.bf16.msra.mxu0 %v3819_v9 }
 0x17a   :  { %v720_v41 = vpop.f32.mrf.mxu2 }
 0x17b   :  { %v988_v40 = vpop.f32.mrf.mxu3 }
 0x17c   :  { %v10666_v16 = vadd.f32 %v988_v40, %v720_v41  ;;  %v2329_v40 = vld [vmem:[#allocation2 + $0x29] sm:$0xff] }
 0x17e   :  { %14302 = vst [vmem:[#allocation21_spill] sm:$0xff] %v10666_v16  ;;  %v643_v0 = vpop.f32.mrf.mxu0 }
 0x17f   :  { %v911_v30 = vpop.f32.mrf.mxu1  ;;  %9236 = vmatmul.msk.bf16.gmra.mxu2 %vm28_vm1, %v495_v49 }
 0x180   :  { %v10672_v6 = vadd.f32 %v911_v30, %v643_v0  ;;  %9268 = vmatmul.msk.bf16.gmra.mxu3 %vm28_vm1, %v397_v48  ;;  %v1036_v0 = vld [vmem:[#allocation2 + $0x9] sm:$0xff]  ;;  %v2330_v48 = vld [vmem:[#allocation2 + $0x31] sm:$0xff] }
 0x181   :  { %9220 = vmatmul.msk.bf16.gmra.mxu0 %vm28_vm1, %v10668_v26  ;;  %v1100_v9 = vpack.c.bf16 %v1037_v39, %v1036_v0  ;;  %v2393_v49 = vpack.c.bf16 %v2330_v48, %v2329_v40  ;;  %v2332_v40 = vld [vmem:[#allocation2 + $0x51] sm:$0xff] }
 0x182   :  { %9252 = vmatmul.msk.bf16.gmra.mxu1 %vm28_vm1, %v10670_v1  ;;  %v723_v41 = vpop.f32.mrf.mxu2 }
 0x183   :  { %v991_v29 = vpop.f32.mrf.mxu3 }
 0x184   :  { %v10680_v63 = vadd.f32 %v991_v29, %v723_v41 }
 0x186   :  { %14303 = vst [vmem:[#allocation22_spill] sm:$0xff] %v10680_v63  ;;  %v645_v8 = vpop.f32.mrf.mxu0 }
 0x187   :  { %v913_v7 = vpop.f32.mrf.mxu1 }
 0x188   :  { %v10682_v34 = vadd.f32 %v913_v7, %v645_v8 }
 0x18a   :  { %v725_v38 = vpop.f32.mrf.mxu2 }
 0x18b   :  { %v993_v62 = vpop.f32.mrf.mxu3 }
 0x18c   :  { %v10684_v46 = vadd.f32 %v993_v62, %v725_v38  ;;  %v2331_v62 = vld [vmem:[#allocation2 + $0x49] sm:$0xff] }
 0x18e   :  { %14304 = vst [vmem:[#allocation23_spill] sm:$0xff] %v10684_v46  ;;  %v648_v30 = vpop.f32.mrf.mxu0 }
 0x18f   :  { %v916_v16 = vpop.f32.mrf.mxu1  ;;  %9270 = vmatmul.msk.bf16.vlgmr.msrb.gmra.mxu2 %vm28_vm1, %v1100_v9 }
 0x190   :  { %v10686_v15 = vadd.f32 %v916_v16, %v648_v30  ;;  %9303 = vmatmul.msk.bf16.vlgmr.msrb.gmra.mxu3 %vm28_vm1, %v10263_v51  ;;  %v2394_v51 = vpack.c.bf16 %v2332_v40, %v2331_v62 }
 0x191   :  { %9336 = vmatmul.msk.bf16.vlgmr.msrb.gmra.mxu0 %vm28_vm1, %v10261_v50 }
 0x192   :  { %9369 = vmatmul.msk.bf16.vlgmr.msrb.gmra.mxu1 %vm28_vm1, %v2393_v49  ;;  %v728_v41 = vpop.f32.mrf.mxu2 }
 0x193   :  { %v996_v29 = vpop.f32.mrf.mxu3 }
 0x194   :  { %v10694_v8 = vadd.f32 %v996_v29, %v728_v41 }
 0x196   :  { %14305 = vst [vmem:[#allocation24_spill] sm:$0xff] %v10694_v8  ;;  %v650_v7 = vpop.f32.mrf.mxu0 }
 0x197   :  { %v918_v0 = vpop.f32.mrf.mxu1 }
 0x198   :  { %v10696_v39 = vadd.f32 %v918_v0, %v650_v7 }
 0x19a   :  { %v730_v16 = vpop.f32.mrf.mxu2 }
 0x19b   :  { %v998_v38 = vpop.f32.mrf.mxu3 }
 0x19c   :  { %v10698_v48 = vadd.f32 %v998_v38, %v730_v16 }
 0x19e   :  { %14306 = vst [vmem:[#allocation25_spill] sm:$0xff] %v10698_v48  ;;  %v653_v9 = vpop.f32.mrf.mxu0 }
 0x19f   :  { %v921_v30 = vpop.f32.mrf.mxu1  ;;  %9271 = vmatmul.msk.bf16.gmra.mxu2 %vm28_vm1, %v2393_v49  ;;  %v2334_v49 = vld [vmem:[#allocation2 + $0x71] sm:$0xff] }
 0x1a0   :  { %v10700_v50 = vadd.f32 %v921_v30, %v653_v9  ;;  %9304 = vmatmul.msk.bf16.gmra.mxu3 %vm28_vm1, %v10288_v3  ;;  %v2333_v9 = vld [vmem:[#allocation2 + $0x69] sm:$0xff] }
 0x1a1   :  { %9337 = vmatmul.msk.bf16.gmra.mxu0 %vm28_vm1, %v10286_v2  ;;  %v2395_v3 = vpack.c.bf16 %v2334_v49, %v2333_v9  ;;  %v2335_v9 = vld [vmem:[#allocation2 + $0x89] sm:$0xff] }
 0x1a2   :  { %9370 = vmatmul.msk.bf16.gmra.mxu1 %vm28_vm1, %v2394_v51  ;;  %v733_v41 = vpop.f32.mrf.mxu2 }
 0x1a3   :  { %v1001_v29 = vpop.f32.mrf.mxu3 }
 0x1a4   :  { %v10708_v7 = vadd.f32 %v1001_v29, %v733_v41 }
 0x1a6   :  { %14307 = vst [vmem:[#allocation26_spill] sm:$0xff] %v10708_v7  ;;  %v655_v0 = vpop.f32.mrf.mxu0 }
 0x1a7   :  { %v923_v16 = vpop.f32.mrf.mxu1 }
 0x1a8   :  { %v10710_v38 = vadd.f32 %v923_v16, %v655_v0 }
 0x1aa   :  { %v735_v62 = vpop.f32.mrf.mxu2 }
 0x1ab   :  { %v1003_v40 = vpop.f32.mrf.mxu3 }
 0x1ac   :  { %v10712_v30 = vadd.f32 %v1003_v40, %v735_v62 }
 0x1ae   :  { %14308 = vst [vmem:[#allocation27_spill] sm:$0xff] %v10712_v30  ;;  %v658_v48 = vpop.f32.mrf.mxu0 }
 0x1af   :  { %v926_v8 = vpop.f32.mrf.mxu1  ;;  %9272 = vmatmul.msk.bf16.gmra.mxu2 %vm28_vm1, %v2394_v51  ;;  %v2336_v51 = vld [vmem:[#allocation2 + $0x91] sm:$0xff] }
 0x1b0   :  { %v10714_v2 = vadd.f32 %v926_v8, %v658_v48  ;;  %9305 = vmatmul.msk.bf16.gmra.mxu3 %vm28_vm1, %v10314_v20  ;;  %v2396_v20 = vpack.c.bf16 %v2336_v51, %v2335_v9  ;;  %v2337_v9 = vld [vmem:[#allocation2 + $0xa9] sm:$0xff] }
 0x1b1   :  { %9338 = vmatmul.msk.bf16.gmra.mxu0 %vm28_vm1, %v10312_v19 }
 0x1b2   :  { %9371 = vmatmul.msk.bf16.gmra.mxu1 %vm28_vm1, %v2395_v3  ;;  %v738_v41 = vpop.f32.mrf.mxu2 }
 0x1b3   :  { %v1006_v29 = vpop.f32.mrf.mxu3 }
 0x1b4   :  { %v10722_v0 = vadd.f32 %v1006_v29, %v738_v41 }
 0x1b6   :  { %14309 = vst [vmem:[#allocation28_spill] sm:$0xff] %v10722_v0  ;;  %v660_v16 = vpop.f32.mrf.mxu0 }
 0x1b7   :  { %v928_v62 = vpop.f32.mrf.mxu1 }
 0x1b8   :  { %v10724_v40 = vadd.f32 %v928_v62, %v660_v16 }
 0x1ba   :  { %v740_v8 = vpop.f32.mrf.mxu2 }
 0x1bb   :  { %v1008_v48 = vpop.f32.mrf.mxu3 }
 0x1bc   :  { %v10726_v49 = vadd.f32 %v1008_v48, %v740_v8 }
 0x1be   :  { %14310 = vst [vmem:[#allocation29_spill] sm:$0xff] %v10726_v49  ;;  %v663_v30 = vpop.f32.mrf.mxu0 }
 0x1bf   :  { %v931_v7 = vpop.f32.mrf.mxu1  ;;  %9273 = vmatmul.msk.bf16.gmra.mxu2 %vm28_vm1, %v2395_v3  ;;  %v2338_v3 = vld [vmem:[#allocation2 + $0xb1] sm:$0xff] }
 0x1c0   :  { %v10728_v19 = vadd.f32 %v931_v7, %v663_v30  ;;  %9306 = vmatmul.msk.bf16.gmra.mxu3 %vm28_vm1, %v10340_v36  ;;  %v2397_v36 = vpack.c.bf16 %v2338_v3, %v2337_v9  ;;  %v2339_v9 = vld [vmem:[#allocation2 + $0xc9] sm:$0xff] }
 0x1c1   :  { %9339 = vmatmul.msk.bf16.gmra.mxu0 %vm28_vm1, %v10338_v35 }
 0x1c2   :  { %9372 = vmatmul.msk.bf16.gmra.mxu1 %vm28_vm1, %v2396_v20  ;;  %v743_v41 = vpop.f32.mrf.mxu2 }
 0x1c3   :  { %v1011_v29 = vpop.f32.mrf.mxu3 }
 0x1c4   :  { %v10736_v16 = vadd.f32 %v1011_v29, %v743_v41 }
 0x1c6   :  { %14311 = vst [vmem:[#allocation30_spill] sm:$0xff] %v10736_v16  ;;  %v665_v62 = vpop.f32.mrf.mxu0 }
 0x1c7   :  { %v933_v8 = vpop.f32.mrf.mxu1 }
 0x1c8   :  { %v10738_v48 = vadd.f32 %v933_v8, %v665_v62 }
 0x1ca   :  { %v745_v7 = vpop.f32.mrf.mxu2 }
 0x1cb   :  { %v1013_v30 = vpop.f32.mrf.mxu3 }
 0x1cc   :  { %v10740_v51 = vadd.f32 %v1013_v30, %v745_v7 }
 0x1ce   :  { %14312 = vst [vmem:[#allocation31_spill] sm:$0xff] %v10740_v51  ;;  %v668_v49 = vpop.f32.mrf.mxu0 }
 0x1cf   :  { %v936_v0 = vpop.f32.mrf.mxu1  ;;  %9274 = vmatmul.msk.bf16.gmra.mxu2 %vm28_vm1, %v2396_v20  ;;  %v2340_v20 = vld [vmem:[#allocation2 + $0xd1] sm:$0xff] }
 0x1d0   :  { %v10742_v35 = vadd.f32 %v936_v0, %v668_v49  ;;  %9307 = vmatmul.msk.bf16.gmra.mxu3 %vm28_vm1, %v10366_v54  ;;  %v2398_v54 = vpack.c.bf16 %v2340_v20, %v2339_v9  ;;  %v2341_v9 = vld [vmem:[#allocation2 + $0xe9] sm:$0xff] }
 0x1d1   :  { %9340 = vmatmul.msk.bf16.gmra.mxu0 %vm28_vm1, %v10364_v53 }
 0x1d2   :  { %9373 = vmatmul.msk.bf16.gmra.mxu1 %vm28_vm1, %v2397_v36  ;;  %v748_v41 = vpop.f32.mrf.mxu2 }
 0x1d3   :  { %v1016_v29 = vpop.f32.mrf.mxu3 }
 0x1d4   :  { %v10750_v62 = vadd.f32 %v1016_v29, %v748_v41 }
 0x1d6   :  { %14313 = vst [vmem:[#allocation32_spill] sm:$0xff] %v10750_v62  ;;  %v670_v8 = vpop.f32.mrf.mxu0 }
 0x1d7   :  { %v938_v7 = vpop.f32.mrf.mxu1 }
 0x1d8   :  { %v10752_v30 = vadd.f32 %v938_v7, %v670_v8 }
 0x1da   :  { %v750_v0 = vpop.f32.mrf.mxu2 }
 0x1db   :  { %v1018_v49 = vpop.f32.mrf.mxu3 }
 0x1dc   :  { %v10754_v3 = vadd.f32 %v1018_v49, %v750_v0 }
 0x1de   :  { %14314 = vst [vmem:[#allocation33_spill] sm:$0xff] %v10754_v3  ;;  %v673_v51 = vpop.f32.mrf.mxu0 }
 0x1df   :  { %v941_v16 = vpop.f32.mrf.mxu1  ;;  %9275 = vmatmul.msk.bf16.gmra.mxu2 %vm28_vm1, %v2397_v36  ;;  %v2342_v36 = vld [vmem:[#allocation2 + $0xf1] sm:$0xff] }
 0x1e0   :  { %v10756_v53 = vadd.f32 %v941_v16, %v673_v51  ;;  %9308 = vmatmul.msk.bf16.gmra.mxu3 %vm28_vm1, %v10394_v12  ;;  %v2399_v12 = vpack.c.bf16 %v2342_v36, %v2341_v9  ;;  %v2343_v9 = vld [vmem:[#allocation2 + $0x109] sm:$0xff] }
 0x1e1   :  { %9341 = vmatmul.msk.bf16.gmra.mxu0 %vm28_vm1, %v10392_v11 }
 0x1e2   :  { %9374 = vmatmul.msk.bf16.gmra.mxu1 %vm28_vm1, %v2398_v54  ;;  %v753_v41 = vpop.f32.mrf.mxu2 }
 0x1e3   :  { %v1021_v29 = vpop.f32.mrf.mxu3 }
 0x1e4   :  { %v10764_v8 = vadd.f32 %v1021_v29, %v753_v41 }
 0x1e6   :  { %14315 = vst [vmem:[#allocation34_spill] sm:$0xff] %v10764_v8  ;;  %v675_v7 = vpop.f32.mrf.mxu0 }
 0x1e7   :  { %v943_v0 = vpop.f32.mrf.mxu1 }
 0x1e8   :  { %v10766_v49 = vadd.f32 %v943_v0, %v675_v7 }
 0x1ea   :  { %v755_v16 = vpop.f32.mrf.mxu2 }
 0x1eb   :  { %v1023_v51 = vpop.f32.mrf.mxu3 }
 0x1ec   :  { %v10768_v20 = vadd.f32 %v1023_v51, %v755_v16 }
 0x1ee   :  { %14316 = vst [vmem:[#allocation35_spill] sm:$0xff] %v10768_v20  ;;  %v678_v3 = vpop.f32.mrf.mxu0 }
 0x1ef   :  { %v946_v62 = vpop.f32.mrf.mxu1  ;;  %9276 = vmatmul.msk.bf16.gmra.mxu2 %vm28_vm1, %v2398_v54  ;;  %v2344_v54 = vld [vmem:[#allocation2 + $0x111] sm:$0xff] }
 0x1f0   :  { %v10770_v11 = vadd.f32 %v946_v62, %v678_v3  ;;  %9309 = vmatmul.msk.bf16.gmra.mxu3 %vm28_vm1, %v10422_v33  ;;  %v2400_v33 = vpack.c.bf16 %v2344_v54, %v2343_v9  ;;  %v2345_v9 = vld [vmem:[#allocation2 + $0x129] sm:$0xff] }
 0x1f1   :  { %9342 = vmatmul.msk.bf16.gmra.mxu0 %vm28_vm1, %v10420_v32 }
 0x1f2   :  { %9375 = vmatmul.msk.bf16.gmra.mxu1 %vm28_vm1, %v2399_v12  ;;  %v758_v41 = vpop.f32.mrf.mxu2 }
 0x1f3   :  { %v1026_v29 = vpop.f32.mrf.mxu3 }
 0x1f4   :  { %v10778_v7 = vadd.f32 %v1026_v29, %v758_v41 }
 0x1f6   :  { %14317 = vst [vmem:[#allocation36_spill] sm:$0xff] %v10778_v7  ;;  %v680_v0 = vpop.f32.mrf.mxu0 }
 0x1f7   :  { %v948_v16 = vpop.f32.mrf.mxu1 }
 0x1f8   :  { %v10780_v51 = vadd.f32 %v948_v16, %v680_v0 }
 0x1fa   :  { %v760_v62 = vpop.f32.mrf.mxu2 }
 0x1fb   :  { %v1028_v3 = vpop.f32.mrf.mxu3 }
 0x1fc   :  { %v10782_v36 = vadd.f32 %v1028_v3, %v760_v62 }
 0x1fe   :  { %14318 = vst [vmem:[#allocation37_spill] sm:$0xff] %v10782_v36  ;;  %v683_v20 = vpop.f32.mrf.mxu0 }
 0x1ff   :  { %v951_v8 = vpop.f32.mrf.mxu1  ;;  %9277 = vmatmul.msk.bf16.gmra.mxu2 %vm28_vm1, %v2399_v12  ;;  %v2346_v12 = vld [vmem:[#allocation2 + $0x131] sm:$0xff] }
 0x200   :  { %v10784_v32 = vadd.f32 %v951_v8, %v683_v20  ;;  %9310 = vmatmul.msk.bf16.gmra.mxu3 %vm28_vm1, %v10448_v55  ;;  %v2401_v55 = vpack.c.bf16 %v2346_v12, %v2345_v9  ;;  %v879_v9 = vadd.f32 %v10458_v57, %v10456_v56 }
 0x201   :  { %9343 = vmatmul.msk.bf16.gmra.mxu0 %vm28_vm1, %v10446_v52 }
 0x202   :  { %14319 = vst [vmem:[#allocation38_spill] sm:$0xff] %v10784_v32  ;;  %9376 = vmatmul.msk.bf16.gmra.mxu1 %vm28_vm1, %v2400_v33  ;;  %v763_v41 = vpop.f32.mrf.mxu2 }
 0x203   :  { %v1031_v29 = vpop.f32.mrf.mxu3 }
 0x204   :  { %v10792_v0 = vadd.f32 %v1031_v29, %v763_v41 }
 0x206   :  { %14320 = vst [vmem:[#allocation39_spill] sm:$0xff] %v10792_v0  ;;  %v685_v16 = vpop.f32.mrf.mxu0  ;;  %v2348_v0 = vld [vmem:[#allocation2 + $0x151] sm:$0xff] }
 0x207   :  { %v953_v62 = vpop.f32.mrf.mxu1 }
 0x208   :  { %v10794_v3 = vadd.f32 %v953_v62, %v685_v16 }
 0x20a   :  { %14321 = vst [vmem:[#allocation40_spill] sm:$0xff] %v10794_v3  ;;  %v765_v8 = vpop.f32.mrf.mxu2 }
 0x20b   :  { %v1033_v20 = vpop.f32.mrf.mxu3 }
 0x20c   :  { %v10796_v54 = vadd.f32 %v1033_v20, %v765_v8 }
 0x20e   :  { %14322 = vst [vmem:[#allocation41_spill] sm:$0xff] %v10796_v54  ;;  %v2105_v36 = vpop.f32.mrf.mxu0  ;;  %v2347_v54 = vld [vmem:[#allocation2 + $0x149] sm:$0xff] }
 0x20f   :  { %v2536_v7 = vpop.f32.mrf.mxu1  ;;  %9278 = vmatmul.msk.bf16.gmra.mxu2 %vm28_vm1, %v2400_v33  ;;  %v2402_v63 = vpack.c.bf16 %v2348_v0, %v2347_v54 }
 0x210   :  { %9311 = vmatmul.msk.bf16.gmra.mxu3 %vm28_vm1, %v10482_v18 }
 0x211   :  { %9344 = vmatmul.msk.bf16.gmra.mxu0 %vm28_vm1, %v10480_v17 }
 0x212   :  { %9377 = vmatmul.msk.bf16.gmra.mxu1 %vm28_vm1, %v2401_v55  ;;  %v1243_v52 = vpop.f32.mrf.mxu2 }
 0x213   :  { %v1674_v41 = vpop.f32.mrf.mxu3  ;;  %v1403_v29 = vadd.f32 %v1243_v52, %v10380_v59 }
 0x215   :  { %v1834_v16 = vadd.f32 %v1674_v41, %v1403_v29 }
 0x216   :  { %v2107_v62 = vpop.f32.mrf.mxu0 }
 0x217   :  { %v2538_v8 = vpop.f32.mrf.mxu1  ;;  %v2265_v20 = vadd.f32 %v2105_v36, %v1834_v16  ;;  %v2350_v16 = vld [vmem:[#allocation2 + $0x171] sm:$0xff] }
 0x219   :  { %v10807_v33 = vadd.f32 %v2536_v7, %v2265_v20 }
 0x21a   :  { %v1245_v12 = vpop.f32.mrf.mxu2 }
 0x21b   :  { %v1676_v18 = vpop.f32.mrf.mxu3  ;;  %v1404_v17 = vadd.f32 %v1245_v12, %v879_v9 }
 0x21d   :  { %v1835_v46 = vadd.f32 %v1676_v18, %v1404_v17 }
 0x21e   :  { %v2110_v3 = vpop.f32.mrf.mxu0 }
 0x21f   :  { %v2541_v32 = vpop.f32.mrf.mxu1  ;;  %9279 = vmatmul.msk.bf16.gmra.mxu2 %vm28_vm1, %v2401_v55  ;;  %v2266_v59 = vadd.f32 %v2107_v62, %v1835_v46  ;;  %v2349_v46 = vld [vmem:[#allocation2 + $0x169] sm:$0xff] }
 0x220   :  { %9312 = vmatmul.msk.bf16.gmra.mxu3 %vm28_vm1, %v10516_v61 }
 0x221   :  { %v10812_v36 = vadd.f32 %v2538_v8, %v2266_v59  ;;  %9345 = vmatmul.msk.bf16.gmra.mxu0 %vm28_vm1, %v10514_v60  ;;  %v2403_v60 = vpack.c.bf16 %v2350_v16, %v2349_v46 }
 0x222   :  { %9378 = vmatmul.msk.bf16.gmra.mxu1 %vm28_vm1, %v2402_v63  ;;  %v1248_v56 = vpop.f32.mrf.mxu2 }
 0x223   :  { %v1679_v57 = vpop.f32.mrf.mxu3  ;;  %v1405_v7 = vadd.f32 %v1248_v56, %v10484_v23 }
 0x225   :  { %v1836_v0 = vadd.f32 %v1679_v57, %v1405_v7  ;;  %v2351_v7 = vld [vmem:[#allocation2 + $0x189] sm:$0xff] }
 0x226   :  { %v2112_v54 = vpop.f32.mrf.mxu0 }
 0x227   :  { %v2543_v52 = vpop.f32.mrf.mxu1  ;;  %v2267_v41 = vadd.f32 %v2110_v3, %v1836_v0  ;;  %v2352_v0 = vld [vmem:[#allocation2 + $0x191] sm:$0xff] }
 0x229   :  { %v10818_v55 = vadd.f32 %v2541_v32, %v2267_v41 }
 0x22a   :  { %v1250_v29 = vpop.f32.mrf.mxu2 }
 0x22b   :  { %v1681_v61 = vpop.f32.mrf.mxu3  ;;  %v1406_v62 = vadd.f32 %v1250_v29, %v10508_v37 }
 0x22d   :  { %v1837_v8 = vadd.f32 %v1681_v61, %v1406_v62 }
 0x22e   :  { %v2115_v20 = vpop.f32.mrf.mxu0 }
 0x22f   :  { %v2546_v9 = vpop.f32.mrf.mxu1  ;;  %9280 = vmatmul.msk.bf16.gmra.mxu2 %vm28_vm1, %v2402_v63  ;;  %v2268_v23 = vadd.f32 %v2112_v54, %v1837_v8 }
 0x230   :  { %9313 = vmatmul.msk.bf16.gmra.mxu3 %vm28_vm1, %v10550_v44 }
 0x231   :  { %v10824_v12 = vadd.f32 %v2543_v52, %v2268_v23  ;;  %9346 = vmatmul.msk.bf16.gmra.mxu0 %vm28_vm1, %v10548_v43  ;;  %v2404_v43 = vpack.c.bf16 %v2352_v0, %v2351_v7  ;;  %v203_v7 = vld [vmem:[%s14191_s0 + $0xf0] sm:$0xff] }
 0x232   :  { %9379 = vmatmul.msk.bf16.gmra.mxu1 %vm28_vm1, %v2403_v60  ;;  %v1253_v32 = vpop.f32.mrf.mxu2  ;;  %268 = vst.msk [vmem:[#allocation2 + $0x208] sm:$0xff] %vm28_vm1, %v203_v7 }
 0x233   :  { %v1684_v3 = vpop.f32.mrf.mxu3  ;;  %v1407_v37 = vadd.f32 %v1253_v32, %v10518_v5  ;;  %v2353_v32 = vld [vmem:[#allocation2 + $0x1a9] sm:$0xff] }
 0x235   :  { %v1838_v18 = vadd.f32 %v1684_v3, %v1407_v37  ;;  %v2354_v3 = vld [vmem:[#allocation2 + $0x1b1] sm:$0xff] }
 0x236   :  { %v2117_v17 = vpop.f32.mrf.mxu0 }
 0x237   :  { %v2548_v59 = vpop.f32.mrf.mxu1  ;;  %v2269_v56 = vadd.f32 %v2115_v20, %v1838_v18 }
 0x239   :  { %v10830_v63 = vadd.f32 %v2546_v9, %v2269_v56 }
 0x23a   :  { %v1255_v57 = vpop.f32.mrf.mxu2 }
 0x23b   :  { %v1686_v44 = vpop.f32.mrf.mxu3  ;;  %v1408_v54 = vadd.f32 %v1255_v57, %v10542_v22 }
 0x23d   :  { %v1839_v52 = vadd.f32 %v1686_v44, %v1408_v54 }
 0x23e   :  { %v2120_v41 = vpop.f32.mrf.mxu0 }
 0x23f   :  { %v2551_v29 = vpop.f32.mrf.mxu1  ;;  %9281 = vmatmul.msk.bf16.gmra.mxu2 %vm28_vm1, %v2403_v60  ;;  %v2270_v5 = vadd.f32 %v2117_v17, %v1839_v52 }
 0x240   :  { %9314 = vmatmul.msk.bf16.gmra.mxu3 %vm28_vm1, %v10584_v45 }
 0x241   :  { %v10836_v61 = vadd.f32 %v2548_v59, %v2270_v5  ;;  %9347 = vmatmul.msk.bf16.gmra.mxu0 %vm28_vm1, %v10582_v42  ;;  %v2405_v42 = vpack.c.bf16 %v2354_v3, %v2353_v32  ;;  %v2356_v5 = vld [vmem:[#allocation2 + $0x1d1] sm:$0xff] }
 0x242   :  { %9380 = vmatmul.msk.bf16.gmra.mxu1 %vm28_vm1, %v2404_v43  ;;  %v1258_v46 = vpop.f32.mrf.mxu2 }
 0x243   :  { %v1689_v16 = vpop.f32.mrf.mxu3  ;;  %v1409_v22 = vadd.f32 %v1258_v46, %v10552_v47 }
 0x245   :  { %v1840_v62 = vadd.f32 %v1689_v16, %v1409_v22 }
 0x246   :  { %v2122_v8 = vpop.f32.mrf.mxu0 }
 0x247   :  { %v2553_v20 = vpop.f32.mrf.mxu1  ;;  %v2271_v9 = vadd.f32 %v2120_v41, %v1840_v62 }
 0x249   :  { %v10842_v60 = vadd.f32 %v2551_v29, %v2271_v9  ;;  %v2355_v29 = vld [vmem:[#allocation2 + $0x1c9] sm:$0xff] }
 0x24a   :  { %v1260_v23 = vpop.f32.mrf.mxu2  ;;  %v2406_v22 = vpack.c.bf16 %v2356_v5, %v2355_v29  ;;  %v1497_v29 = vld [vmem:[#allocation2 + $0x207] sm:$0xff] }
 0x24b   :  { %v1691_v45 = vpop.f32.mrf.mxu3  ;;  %v1410_v37 = vadd.f32 %v1260_v23, %v10576_v14 }
 0x24d   :  { %v1841_v18 = vadd.f32 %v1691_v45, %v1410_v37 }
 0x24e   :  { %v2125_v17 = vpop.f32.mrf.mxu0 }
 0x24f   :  { %v2556_v59 = vpop.f32.mrf.mxu1  ;;  %9282 = vmatmul.msk.bf16.gmra.mxu2 %vm28_vm1, %v2404_v43  ;;  %v2272_v47 = vadd.f32 %v2122_v8, %v1841_v18 }
 0x250   :  { %9315 = vmatmul.msk.bf16.gmra.mxu3 %vm28_vm1, %v10618_v13  ;;  %v204_v13 = vld [vmem:[%s14191_s0 + $0xf8] sm:$0xff] }
 0x251   :  { %v10848_v56 = vadd.f32 %v2553_v20, %v2272_v47  ;;  %9348 = vmatmul.msk.bf16.gmra.mxu0 %vm28_vm1, %v10616_v10  ;;  %269 = vst.msk [vmem:[#allocation2 + $0x210] sm:$0xff] %vm28_vm1, %v204_v13  ;;  %v2358_v47 = vld [vmem:[#allocation2 + $0x1f1] sm:$0xff] }
 0x252   :  { %9381 = vmatmul.msk.bf16.gmra.mxu1 %vm28_vm1, %v2405_v42  ;;  %v1263_v57 = vpop.f32.mrf.mxu2 }
 0x253   :  { %v1694_v44 = vpop.f32.mrf.mxu3  ;;  %v1411_v14 = vadd.f32 %v1263_v57, %v10586_v58 }
 0x255   :  { %v1842_v0 = vadd.f32 %v1694_v44, %v1411_v14 }
 0x256   :  { %v2127_v54 = vpop.f32.mrf.mxu0 }
 0x257   :  { %v2558_v52 = vpop.f32.mrf.mxu1  ;;  %v2273_v10 = vadd.f32 %v2125_v17, %v1842_v0 }
 0x258   :  { %v1498_v5 = vld [vmem:[#allocation2 + $0x20f] sm:$0xff] }
 0x259   :  { %v10862_v43 = vadd.f32 %v2556_v59, %v2273_v10  ;;  %v2357_v59 = vld [vmem:[#allocation2 + $0x1e9] sm:$0xff] }
 0x25a   :  { %v1265_v41 = vpop.f32.mrf.mxu2 }
 0x25b   :  { %v1696_v58 = vpop.f32.mrf.mxu3  ;;  %v1412_v46 = vadd.f32 %v1265_v41, %v10610_v25 }
 0x25d   :  { %v1843_v16 = vadd.f32 %v1696_v58, %v1412_v46 }
 0x25e   :  { %v2130_v62 = vpop.f32.mrf.mxu0 }
 0x25f   :  { %v2561_v8 = vpop.f32.mrf.mxu1  ;;  %9283 = vmatmul.msk.bf16.gmra.mxu2 %vm28_vm1, %v2405_v42  ;;  %v2274_v20 = vadd.f32 %v2127_v54, %v1843_v16 }
 0x260   :  { %9316 = vmatmul.msk.bf16.gmra.mxu3 %vm28_vm1, %v10636_v27 }
 0x261   :  { %v10868_v9 = vadd.f32 %v2558_v52, %v2274_v20  ;;  %9349 = vmatmul.msk.bf16.gmra.mxu0 %vm28_vm1, %v10634_v24  ;;  %v2407_v24 = vpack.c.bf16 %v2358_v47, %v2357_v59 }
 0x262   :  { %9382 = vmatmul.msk.bf16.gmra.mxu1 %vm28_vm1, %v2406_v22  ;;  %v1268_v23 = vpop.f32.mrf.mxu2 }
 0x263   :  { %v1699_v45 = vpop.f32.mrf.mxu3  ;;  %v1413_v25 = vadd.f32 %v1268_v23, %v10620_v4  ;;  %v1546_v23 = vpack.c.bf16 %v1498_v5, %v1497_v29 }
 0x265   :  { %v1844_v32 = vadd.f32 %v1699_v45, %v1413_v25 }
 0x266   :  { %v2132_v3 = vpop.f32.mrf.mxu0 }
 0x267   :  { %v2563_v37 = vpop.f32.mrf.mxu1  ;;  %v2275_v18 = vadd.f32 %v2130_v62, %v1844_v32  ;;  %v1929_v62 = vld [vmem:[#allocation2 + $0x210] sm:$0xff] }
 0x269   :  { %v10874_v42 = vadd.f32 %v2561_v8, %v2275_v18  ;;  %v2359_v8 = vld [vmem:[#allocation2 + $0x209] sm:$0xff] }
 0x26a   :  { %v1270_v17 = vpop.f32.mrf.mxu2 }
 0x26b   :  { %v1701_v27 = vpop.f32.mrf.mxu3  ;;  %v1414_v57 = vadd.f32 %v1270_v17, %v10630_v31 }
 0x26d   :  { %v1845_v44 = vadd.f32 %v1701_v27, %v1414_v57 }
 0x26e   :  { %v2135_v14 = vpop.f32.mrf.mxu0 }
 0x26f   :  { %v2566_v7 = vpop.f32.mrf.mxu1  ;;  %9284 = vmatmul.msk.bf16.gmra.mxu2 %vm28_vm1, %v2406_v22  ;;  %v2276_v4 = vadd.f32 %v2132_v3, %v1845_v44 }
 0x270   :  { %9317 = vmatmul.msk.bf16.gmra.mxu3 %vm28_vm1, %v10670_v1  ;;  %v1928_v1 = vld [vmem:[#allocation2 + $0x208] sm:$0xff] }
 0x271   :  { %v10880_v13 = vadd.f32 %v2563_v37, %v2276_v4  ;;  %9350 = vmatmul.msk.bf16.gmra.mxu0 %vm28_vm1, %v10668_v26  ;;  %v2360_v26 = vld [vmem:[#allocation2 + $0x211] sm:$0xff]  ;;  %v1977_v25 = vpack.c.bf16 %v1929_v62, %v1928_v1 }
 0x272   :  { %9383 = vmatmul.msk.bf16.gmra.mxu1 %vm28_vm1, %v2407_v24  ;;  %v1273_v0 = vpop.f32.mrf.mxu2  ;;  %v1500_v4 = vld [vmem:[#allocation2 + $0x26f] sm:$0xff] }
 0x273   :  { %v1704_v54 = vpop.f32.mrf.mxu3  ;;  %v1415_v31 = vadd.f32 %v1273_v0, %v10638_v28  ;;  %v2408_v28 = vpack.c.bf16 %v2360_v26, %v2359_v8 }
 0x275   :  { %v1846_v52 = vadd.f32 %v1704_v54, %v1415_v31  ;;  %v1930_v54 = vld [vmem:[#allocation2 + $0x268] sm:$0xff] }
 0x276   :  { %v2137_v10 = vpop.f32.mrf.mxu0 }
 0x277   :  { %v2568_v41 = vpop.f32.mrf.mxu1  ;;  %v2277_v58 = vadd.f32 %v2135_v14, %v1846_v52  ;;  %v1068_v14 = vld [vmem:[#allocation2 + $0x249] sm:$0xff] }
 0x279   :  { %v10886_v46 = vadd.f32 %v2566_v7, %v2277_v58  ;;  %v1069_v7 = vld [vmem:[#allocation2 + $0x251] sm:$0xff] }
 0x27a   :  { %v1275_v16 = vpop.f32.mrf.mxu2  ;;  %v2362_v58 = vld [vmem:[#allocation2 + $0x271] sm:$0xff]  ;;  %v1116_v5 = vpack.c.bf16 %v1069_v7, %v1068_v14 }
 0x27b   :  { %v1706_v22 = vpop.f32.mrf.mxu3  ;;  %v1416_v20 = vadd.f32 %v1275_v16, %v10659_v21  ;;  %v2364_v14 = vld [vmem:[#allocation2 + $0x291] sm:$0xff] }
 0x27d   :  { %v1847_v45 = vadd.f32 %v1706_v22, %v1416_v20 }
 0x27e   :  { %v2140_v32 = vpop.f32.mrf.mxu0 }
 0x27f   :  { %v2571_v3 = vpop.f32.mrf.mxu1  ;;  %9285 = vmatmul.msk.bf16.gmra.mxu2 %vm28_vm1, %v2407_v24  ;;  %v2278_v37 = vadd.f32 %v2137_v10, %v1847_v45  ;;  %v1499_v24 = vld [vmem:[#allocation2 + $0x267] sm:$0xff]  ;;  %v1931_v10 = vld [vmem:[#allocation2 + $0x270] sm:$0xff] }
 0x280   :  { %9318 = vmatmul.msk.bf16.gmra.mxu3 %vm28_vm1, %v1546_v23  ;;  %v1978_v16 = vpack.c.bf16 %v1931_v10, %v1930_v54 }
 0x281   :  { %v10891_v18 = vadd.f32 %v2568_v41, %v2278_v37  ;;  %9351 = vmatmul.msk.bf16.gmra.mxu0 %vm28_vm1, %v1977_v25  ;;  %v2361_v41 = vld [vmem:[#allocation2 + $0x269] sm:$0xff] }
 0x282   :  { %9384 = vmatmul.msk.bf16.gmra.mxu1 %vm28_vm1, %v2408_v28  ;;  %v1278_v17 = vpop.f32.mrf.mxu2  ;;  %v2409_v22 = vpack.c.bf16 %v2362_v58, %v2361_v41  ;;  %v1501_v37 = vld [vmem:[#allocation2 + $0x287] sm:$0xff] }
 0x283   :  { %v1709_v27 = vpop.f32.mrf.mxu3  ;;  %v1417_v21 = vadd.f32 %v1278_v17, %v10672_v6  ;;  %v1547_v6 = vpack.c.bf16 %v1500_v4, %v1499_v24  ;;  %v1502_v17 = vld [vmem:[#allocation2 + $0x28f] sm:$0xff] }
 0x284   :  { %v1548_v24 = vpack.c.bf16 %v1502_v17, %v1501_v37 }
 0x285   :  { %v1848_v59 = vadd.f32 %v1709_v27, %v1417_v21  ;;  %v1932_v21 = vld [vmem:[#allocation2 + $0x288] sm:$0xff] }
 0x286   :  { %v2142_v47 = vpop.f32.mrf.mxu0 }
 0x287   :  { %v2573_v57 = vpop.f32.mrf.mxu1  ;;  %v2279_v44 = vadd.f32 %v2140_v32, %v1848_v59 }
 0x289   :  { %v10896_v0 = vadd.f32 %v2571_v3, %v2279_v44  ;;  %v2363_v44 = vld [vmem:[#allocation2 + $0x289] sm:$0xff] }
 0x28a   :  { %v1280_v31 = vpop.f32.mrf.mxu2 }
 0x28b   :  { %v1711_v52 = vpop.f32.mrf.mxu3  ;;  %v1418_v29 = vadd.f32 %v1280_v31, %v10682_v34 }
 0x28d   :  { %v1849_v1 = vadd.f32 %v1711_v52, %v1418_v29 }
 0x28e   :  { %v2145_v62 = vpop.f32.mrf.mxu0 }
 0x28f   :  { %v2576_v8 = vpop.f32.mrf.mxu1  ;;  %9286 = vmatmul.msk.bf16.gmra.mxu2 %vm28_vm1, %v1116_v5  ;;  %v2280_v26 = vadd.f32 %v2142_v47, %v1849_v1 }
 0x290   :  { %9319 = vmatmul.msk.bf16.gmra.mxu3 %vm28_vm1, %v1547_v6 }
 0x291   :  { %v10901_v20 = vadd.f32 %v2573_v57, %v2280_v26  ;;  %9352 = vmatmul.msk.bf16.gmra.mxu0 %vm28_vm1, %v1978_v16  ;;  %v1933_v57 = vld [vmem:[#allocation2 + $0x290] sm:$0xff]  ;;  %v1934_v26 = vld [vmem:[#allocation2 + $0x2a8] sm:$0xff] }
 0x292   :  { %9385 = vmatmul.msk.bf16.gmra.mxu1 %vm28_vm1, %v2409_v22  ;;  %v1283_v23 = vpop.f32.mrf.mxu2  ;;  %v1979_v54 = vpack.c.bf16 %v1933_v57, %v1932_v21 }
 0x293   :  { %v1714_v34 = vpop.f32.mrf.mxu3  ;;  %v1419_v45 = vadd.f32 %v1283_v23, %v10686_v15  ;;  %v2410_v15 = vpack.c.bf16 %v2364_v14, %v2363_v44 }
 0x295   :  { %v1850_v25 = vadd.f32 %v1714_v34, %v1419_v45  ;;  %v1935_v45 = vld [vmem:[#allocation2 + $0x2b0] sm:$0xff] }
 0x296   :  { %v2147_v28 = vpop.f32.mrf.mxu0  ;;  %v1980_v17 = vpack.c.bf16 %v1935_v45, %v1934_v26 }
 0x297   :  { %v2578_v32 = vpop.f32.mrf.mxu1  ;;  %v2281_v3 = vadd.f32 %v2145_v62, %v1850_v25  ;;  %v1503_v62 = vld [vmem:[#allocation2 + $0x2a7] sm:$0xff] }
 0x298   :  { %v2365_v25 = vld [vmem:[#allocation2 + $0x2a9] sm:$0xff] }
 0x299   :  { %v10906_v27 = vadd.f32 %v2576_v8, %v2281_v3  ;;  %v1504_v8 = vld [vmem:[#allocation2 + $0x2af] sm:$0xff] }
 0x29a   :  { %v1285_v59 = vpop.f32.mrf.mxu2  ;;  %v1549_v3 = vpack.c.bf16 %v1504_v8, %v1503_v62 }
 0x29b   :  { %v1716_v47 = vpop.f32.mrf.mxu3  ;;  %v1420_v7 = vadd.f32 %v1285_v59, %v10696_v39 }
 0x29d   :  { %v1851_v4 = vadd.f32 %v1716_v47, %v1420_v7 }
 0x29e   :  { %v2150_v31 = vpop.f32.mrf.mxu0 }
 0x29f   :  { %v2581_v52 = vpop.f32.mrf.mxu1  ;;  %9287 = vmatmul.msk.bf16.gmra.mxu2 %vm28_vm1, %v2409_v22  ;;  %v2282_v10 = vadd.f32 %v2147_v28, %v1851_v4  ;;  %v2366_v28 = vld [vmem:[#allocation2 + $0x2b1] sm:$0xff] }
 0x2a0   :  { %9320 = vmatmul.msk.bf16.gmra.mxu3 %vm28_vm1, %v1548_v24 }
 0x2a1   :  { %v10911_v41 = vadd.f32 %v2578_v32, %v2282_v10  ;;  %9353 = vmatmul.msk.bf16.gmra.mxu0 %vm28_vm1, %v1979_v54  ;;  %v1936_v10 = vld [vmem:[#allocation2 + $0x2c8] sm:$0xff] }
 0x2a2   :  { %9386 = vmatmul.msk.bf16.gmra.mxu1 %vm28_vm1, %v2410_v15  ;;  %v1288_v58 = vpop.f32.mrf.mxu2 }
 0x2a3   :  { %v1719_v29 = vpop.f32.mrf.mxu3  ;;  %v1421_v39 = vadd.f32 %v1288_v58, %v10700_v50  ;;  %v2411_v50 = vpack.c.bf16 %v2366_v28, %v2365_v25 }
 0x2a5   :  { %v1852_v5 = vadd.f32 %v1719_v29, %v1421_v39  ;;  %v1937_v39 = vld [vmem:[#allocation2 + $0x2d0] sm:$0xff] }
 0x2a6   :  { %v2152_v6 = vpop.f32.mrf.mxu0  ;;  %v1981_v8 = vpack.c.bf16 %v1937_v39, %v1936_v10 }
 0x2a7   :  { %v2583_v1 = vpop.f32.mrf.mxu1  ;;  %v2283_v16 = vadd.f32 %v2150_v31, %v1852_v5  ;;  %v1505_v31 = vld [vmem:[#allocation2 + $0x2c7] sm:$0xff] }
 0x2a8   :  { %v2367_v5 = vld [vmem:[#allocation2 + $0x2c9] sm:$0xff] }
 0x2a9   :  { %v10916_v22 = vadd.f32 %v2581_v52, %v2283_v16  ;;  %v1506_v52 = vld [vmem:[#allocation2 + $0x2cf] sm:$0xff] }
 0x2aa   :  { %v1290_v23 = vpop.f32.mrf.mxu2  ;;  %v1550_v16 = vpack.c.bf16 %v1506_v52, %v1505_v31 }
 0x2ab   :  { %v1721_v34 = vpop.f32.mrf.mxu3  ;;  %v1422_v32 = vadd.f32 %v1290_v23, %v10710_v38 }
 0x2ad   :  { %v1853_v37 = vadd.f32 %v1721_v34, %v1422_v32 }
 0x2ae   :  { %v2155_v21 = vpop.f32.mrf.mxu0 }
 0x2af   :  { %v2586_v59 = vpop.f32.mrf.mxu1  ;;  %9288 = vmatmul.msk.bf16.gmra.mxu2 %vm28_vm1, %v2410_v15  ;;  %v2284_v47 = vadd.f32 %v2152_v6, %v1853_v37  ;;  %v2368_v6 = vld [vmem:[#allocation2 + $0x2d1] sm:$0xff] }
 0x2b0   :  { %9321 = vmatmul.msk.bf16.gmra.mxu3 %vm28_vm1, %v1549_v3 }
 0x2b1   :  { %v10921_v57 = vadd.f32 %v2583_v1, %v2284_v47  ;;  %9354 = vmatmul.msk.bf16.gmra.mxu0 %vm28_vm1, %v1980_v17  ;;  %v1938_v47 = vld [vmem:[#allocation2 + $0x2e8] sm:$0xff] }
 0x2b2   :  { %9387 = vmatmul.msk.bf16.gmra.mxu1 %vm28_vm1, %v2411_v50  ;;  %v1293_v44 = vpop.f32.mrf.mxu2 }
 0x2b3   :  { %v1724_v14 = vpop.f32.mrf.mxu3  ;;  %v1423_v38 = vadd.f32 %v1293_v44, %v10714_v2  ;;  %v2412_v2 = vpack.c.bf16 %v2368_v6, %v2367_v5 }
 0x2b5   :  { %v1854_v7 = vadd.f32 %v1724_v14, %v1423_v38  ;;  %v1939_v38 = vld [vmem:[#allocation2 + $0x2f0] sm:$0xff] }
 0x2b6   :  { %v2157_v24 = vpop.f32.mrf.mxu0  ;;  %v1982_v52 = vpack.c.bf16 %v1939_v38, %v1938_v47 }
 0x2b7   :  { %v2588_v4 = vpop.f32.mrf.mxu1  ;;  %v2285_v54 = vadd.f32 %v2155_v21, %v1854_v7  ;;  %v1507_v21 = vld [vmem:[#allocation2 + $0x2e7] sm:$0xff] }
 0x2b8   :  { %v2369_v7 = vld [vmem:[#allocation2 + $0x2e9] sm:$0xff] }
 0x2b9   :  { %v10926_v15 = vadd.f32 %v2586_v59, %v2285_v54  ;;  %v1508_v59 = vld [vmem:[#allocation2 + $0x2ef] sm:$0xff] }
 0x2ba   :  { %v1295_v58 = vpop.f32.mrf.mxu2  ;;  %v1551_v54 = vpack.c.bf16 %v1508_v59, %v1507_v21 }
 0x2bb   :  { %v1726_v29 = vpop.f32.mrf.mxu3  ;;  %v1424_v1 = vadd.f32 %v1295_v58, %v10724_v40 }
 0x2bd   :  { %v1855_v62 = vadd.f32 %v1726_v29, %v1424_v1 }
 0x2be   :  { %v2160_v26 = vpop.f32.mrf.mxu0 }
 0x2bf   :  { %v2591_v23 = vpop.f32.mrf.mxu1  ;;  %9289 = vmatmul.msk.bf16.gmra.mxu2 %vm28_vm1, %v2411_v50  ;;  %v2286_v34 = vadd.f32 %v2157_v24, %v1855_v62  ;;  %v2370_v24 = vld [vmem:[#allocation2 + $0x2f1] sm:$0xff] }
 0x2c0   :  { %9322 = vmatmul.msk.bf16.gmra.mxu3 %vm28_vm1, %v1550_v16 }
 0x2c1   :  { %v10931_v45 = vadd.f32 %v2588_v4, %v2286_v34  ;;  %9355 = vmatmul.msk.bf16.gmra.mxu0 %vm28_vm1, %v1981_v8  ;;  %v1940_v34 = vld [vmem:[#allocation2 + $0x308] sm:$0xff] }
 0x2c2   :  { %9388 = vmatmul.msk.bf16.gmra.mxu1 %vm28_vm1, %v2412_v2  ;;  %v1298_v25 = vpop.f32.mrf.mxu2 }
 0x2c3   :  { %v1729_v28 = vpop.f32.mrf.mxu3  ;;  %v1425_v40 = vadd.f32 %v1298_v25, %v10728_v19  ;;  %v2413_v19 = vpack.c.bf16 %v2370_v24, %v2369_v7 }
 0x2c5   :  { %v1856_v32 = vadd.f32 %v1729_v28, %v1425_v40  ;;  %v1941_v40 = vld [vmem:[#allocation2 + $0x310] sm:$0xff] }
 0x2c6   :  { %v2162_v3 = vpop.f32.mrf.mxu0  ;;  %v1983_v59 = vpack.c.bf16 %v1941_v40, %v1940_v34 }
 0x2c7   :  { %v2593_v37 = vpop.f32.mrf.mxu1  ;;  %v2287_v17 = vadd.f32 %v2160_v26, %v1856_v32  ;;  %v1509_v26 = vld [vmem:[#allocation2 + $0x307] sm:$0xff] }
 0x2c8   :  { %v2371_v32 = vld [vmem:[#allocation2 + $0x309] sm:$0xff] }
 0x2c9   :  { %v10936_v50 = vadd.f32 %v2591_v23, %v2287_v17  ;;  %v1510_v23 = vld [vmem:[#allocation2 + $0x30f] sm:$0xff] }
 0x2ca   :  { %v1300_v44 = vpop.f32.mrf.mxu2  ;;  %v1552_v17 = vpack.c.bf16 %v1510_v23, %v1509_v26 }
 0x2cb   :  { %v1731_v14 = vpop.f32.mrf.mxu3  ;;  %v1426_v4 = vadd.f32 %v1300_v44, %v10738_v48 }
 0x2cd   :  { %v1857_v31 = vadd.f32 %v1731_v14, %v1426_v4 }
 0x2ce   :  { %v2165_v10 = vpop.f32.mrf.mxu0 }
 0x2cf   :  { %v2596_v58 = vpop.f32.mrf.mxu1  ;;  %9290 = vmatmul.msk.bf16.gmra.mxu2 %vm28_vm1, %v2412_v2  ;;  %v2288_v29 = vadd.f32 %v2162_v3, %v1857_v31  ;;  %v2372_v3 = vld [vmem:[#allocation2 + $0x311] sm:$0xff] }
 0x2d0   :  { %9323 = vmatmul.msk.bf16.gmra.mxu3 %vm28_vm1, %v1551_v54 }
 0x2d1   :  { %v10941_v39 = vadd.f32 %v2593_v37, %v2288_v29  ;;  %9356 = vmatmul.msk.bf16.gmra.mxu0 %vm28_vm1, %v1982_v52  ;;  %v1942_v29 = vld [vmem:[#allocation2 + $0x328] sm:$0xff] }
 0x2d2   :  { %9389 = vmatmul.msk.bf16.gmra.mxu1 %vm28_vm1, %v2413_v19  ;;  %v1303_v5 = vpop.f32.mrf.mxu2 }
 0x2d3   :  { %v1734_v6 = vpop.f32.mrf.mxu3  ;;  %v1427_v48 = vadd.f32 %v1303_v5, %v10742_v35  ;;  %v2414_v35 = vpack.c.bf16 %v2372_v3, %v2371_v32 }
 0x2d5   :  { %v1858_v1 = vadd.f32 %v1734_v6, %v1427_v48  ;;  %v1943_v48 = vld [vmem:[#allocation2 + $0x330] sm:$0xff] }
 0x2d6   :  { %v2167_v16 = vpop.f32.mrf.mxu0  ;;  %v1984_v23 = vpack.c.bf16 %v1943_v48, %v1942_v29 }
 0x2d7   :  { %v2598_v62 = vpop.f32.mrf.mxu1  ;;  %v2289_v8 = vadd.f32 %v2165_v10, %v1858_v1  ;;  %v1511_v10 = vld [vmem:[#allocation2 + $0x327] sm:$0xff] }
 0x2d8   :  { %v2373_v1 = vld [vmem:[#allocation2 + $0x329] sm:$0xff] }
 0x2d9   :  { %v10946_v2 = vadd.f32 %v2596_v58, %v2289_v8  ;;  %v1512_v58 = vld [vmem:[#allocation2 + $0x32f] sm:$0xff] }
 0x2da   :  { %v1305_v25 = vpop.f32.mrf.mxu2  ;;  %v1553_v8 = vpack.c.bf16 %v1512_v58, %v1511_v10 }
 0x2db   :  { %v1736_v28 = vpop.f32.mrf.mxu3  ;;  %v1428_v37 = vadd.f32 %v1305_v25, %v10752_v30 }
 0x2dd   :  { %v1859_v21 = vadd.f32 %v1736_v28, %v1428_v37 }
 0x2de   :  { %v2170_v47 = vpop.f32.mrf.mxu0 }
 0x2df   :  { %v2601_v44 = vpop.f32.mrf.mxu1  ;;  %9291 = vmatmul.msk.bf16.gmra.mxu2 %vm28_vm1, %v2413_v19  ;;  %v2290_v14 = vadd.f32 %v2167_v16, %v1859_v21  ;;  %v2374_v16 = vld [vmem:[#allocation2 + $0x331] sm:$0xff] }
 0x2e0   :  { %9324 = vmatmul.msk.bf16.gmra.mxu3 %vm28_vm1, %v1552_v17 }
 0x2e1   :  { %v10951_v38 = vadd.f32 %v2598_v62, %v2290_v14  ;;  %9357 = vmatmul.msk.bf16.gmra.mxu0 %vm28_vm1, %v1983_v59  ;;  %v1944_v14 = vld [vmem:[#allocation2 + $0x348] sm:$0xff] }
 0x2e2   :  { %9390 = vmatmul.msk.bf16.gmra.mxu1 %vm28_vm1, %v2414_v35  ;;  %v1308_v7 = vpop.f32.mrf.mxu2 }
 0x2e3   :  { %v1739_v24 = vpop.f32.mrf.mxu3  ;;  %v1429_v30 = vadd.f32 %v1308_v7, %v10756_v53  ;;  %v2415_v53 = vpack.c.bf16 %v2374_v16, %v2373_v1 }
 0x2e5   :  { %v1860_v4 = vadd.f32 %v1739_v24, %v1429_v30  ;;  %v1945_v30 = vld [vmem:[#allocation2 + $0x350] sm:$0xff] }
 0x2e6   :  { %v2172_v54 = vpop.f32.mrf.mxu0  ;;  %v1985_v58 = vpack.c.bf16 %v1945_v30, %v1944_v14 }
 0x2e7   :  { %v2603_v31 = vpop.f32.mrf.mxu1  ;;  %v2291_v52 = vadd.f32 %v2170_v47, %v1860_v4  ;;  %v1513_v47 = vld [vmem:[#allocation2 + $0x347] sm:$0xff] }
 0x2e8   :  { %v2375_v4 = vld [vmem:[#allocation2 + $0x349] sm:$0xff] }
 0x2e9   :  { %v10956_v19 = vadd.f32 %v2601_v44, %v2291_v52  ;;  %v1514_v44 = vld [vmem:[#allocation2 + $0x34f] sm:$0xff] }
 0x2ea   :  { %v1310_v5 = vpop.f32.mrf.mxu2  ;;  %v1554_v52 = vpack.c.bf16 %v1514_v44, %v1513_v47 }
 0x2eb   :  { %v1741_v6 = vpop.f32.mrf.mxu3  ;;  %v1430_v62 = vadd.f32 %v1310_v5, %v10766_v49 }
 0x2ed   :  { %v1861_v26 = vadd.f32 %v1741_v6, %v1430_v62 }
 0x2ee   :  { %v2175_v34 = vpop.f32.mrf.mxu0 }
 0x2ef   :  { %v2606_v25 = vpop.f32.mrf.mxu1  ;;  %9292 = vmatmul.msk.bf16.gmra.mxu2 %vm28_vm1, %v2414_v35  ;;  %v2292_v28 = vadd.f32 %v2172_v54, %v1861_v26  ;;  %v2376_v54 = vld [vmem:[#allocation2 + $0x351] sm:$0xff] }
 0x2f0   :  { %9325 = vmatmul.msk.bf16.gmra.mxu3 %vm28_vm1, %v1553_v8 }
 0x2f1   :  { %v10961_v40 = vadd.f32 %v2603_v31, %v2292_v28  ;;  %9358 = vmatmul.msk.bf16.gmra.mxu0 %vm28_vm1, %v1984_v23  ;;  %v1516_v28 = vld [vmem:[#allocation2 + $0x36f] sm:$0xff] }
 0x2f2   :  { %9391 = vmatmul.msk.bf16.gmra.mxu1 %vm28_vm1, %v2415_v53  ;;  %v1313_v32 = vpop.f32.mrf.mxu2 }
 0x2f3   :  { %v1744_v3 = vpop.f32.mrf.mxu3  ;;  %v1431_v49 = vadd.f32 %v1313_v32, %v10770_v11  ;;  %v2416_v11 = vpack.c.bf16 %v2376_v54, %v2375_v4  ;;  %v1946_v32 = vld [vmem:[#allocation2 + $0x368] sm:$0xff] }
 0x2f5   :  { %v1862_v37 = vadd.f32 %v1744_v3, %v1431_v49 }
 0x2f6   :  { %v2177_v17 = vpop.f32.mrf.mxu0 }
 0x2f7   :  { %v2608_v21 = vpop.f32.mrf.mxu1  ;;  %v2293_v59 = vadd.f32 %v2175_v34, %v1862_v37  ;;  %v1947_v37 = vld [vmem:[#allocation2 + $0x370] sm:$0xff] }
 0x2f9   :  { %v10966_v35 = vadd.f32 %v2606_v25, %v2293_v59  ;;  %v1515_v25 = vld [vmem:[#allocation2 + $0x367] sm:$0xff] }
 0x2fa   :  { %v1315_v7 = vpop.f32.mrf.mxu2  ;;  %v14324_v59 = vld [vmem:[#allocation40_spill] sm:$0xff]  ;;  %v1555_v44 = vpack.c.bf16 %v1516_v28, %v1515_v25 }
 0x2fb   :  { %v1746_v24 = vpop.f32.mrf.mxu3  ;;  %v1432_v31 = vadd.f32 %v1315_v7, %v10780_v51  ;;  %v14323_v51 = vld [vmem:[#allocation38_spill] sm:$0xff]  ;;  %v1986_v7 = vpack.c.bf16 %v1947_v37, %v1946_v32  ;;  %v1949_v32 = vld [vmem:[#allocation2 + $0x390] sm:$0xff] }
 0x2fd   :  { %v1863_v10 = vadd.f32 %v1746_v24, %v1432_v31 }
 0x2fe   :  { %v2180_v29 = vpop.f32.mrf.mxu0 }
 0x2ff   :  { %v2611_v5 = vpop.f32.mrf.mxu1  ;;  %9293 = vmatmul.msk.bf16.gmra.mxu2 %vm28_vm1, %v2415_v53  ;;  %v2294_v6 = vadd.f32 %v2177_v17, %v1863_v10  ;;  %v2377_v17 = vld [vmem:[#allocation2 + $0x369] sm:$0xff] }
 0x300   :  { %9326 = vmatmul.msk.bf16.gmra.mxu3 %vm28_vm1, %v1554_v52 }
 0x301   :  { %v10971_v48 = vadd.f32 %v2608_v21, %v2294_v6  ;;  %9359 = vmatmul.msk.bf16.gmra.mxu0 %vm28_vm1, %v1985_v58  ;;  %v2378_v21 = vld [vmem:[#allocation2 + $0x371] sm:$0xff]  ;;  %v14325_v58 = vld [vmem:[#allocation7_spill] sm:$0xff] }
 0x302   :  { %9392 = vmatmul.msk.bf16.gmra.mxu1 %vm28_vm1, %v2416_v11  ;;  %v1318_v1 = vpop.f32.mrf.mxu2  ;;  %v2417_v24 = vpack.c.bf16 %v2378_v21, %v2377_v17 }
 0x303   :  { %v1749_v16 = vpop.f32.mrf.mxu3  ;;  %v1433_v62 = vadd.f32 %v1318_v1, %v14323_v51  ;;  %v1517_v51 = vld [vmem:[#allocation2 + $0x387] sm:$0xff] }
 0x305   :  { %v1864_v8 = vadd.f32 %v1749_v16, %v1433_v62  ;;  %v1518_v62 = vld [vmem:[#allocation2 + $0x38f] sm:$0xff] }
 0x306   :  { %v2182_v26 = vpop.f32.mrf.mxu0  ;;  %v1556_v17 = vpack.c.bf16 %v1518_v62, %v1517_v51  ;;  %v1519_v51 = vld [vmem:[#allocation2 + $0x3a7] sm:$0xff]  ;;  %v1520_v62 = vld [vmem:[#allocation2 + $0x3af] sm:$0xff] }
 0x307   :  { %v2613_v23 = vpop.f32.mrf.mxu1  ;;  %v2295_v34 = vadd.f32 %v2180_v29, %v1864_v8  ;;  %v14327_v8 = vld [vmem:[#allocation9_spill] sm:$0xff] }
 0x309   :  { %v10976_v53 = vadd.f32 %v2611_v5, %v2295_v34 }
 0x30a   :  { %v1320_v3 = vpop.f32.mrf.mxu2 }
 0x30b   :  { %v1751_v49 = vpop.f32.mrf.mxu3  ;;  %v1434_v47 = vadd.f32 %v1320_v3, %v14324_v59  ;;  %v2379_v3 = vld [vmem:[#allocation2 + $0x389] sm:$0xff] }
 0x30d   :  { %v1865_v14 = vadd.f32 %v1751_v49, %v1434_v47  ;;  %v2380_v49 = vld [vmem:[#allocation2 + $0x391] sm:$0xff] }
 0x30e   :  { %v2185_v30 = vpop.f32.mrf.mxu0  ;;  %v2418_v47 = vpack.c.bf16 %v2380_v49, %v2379_v3 }
 0x30f   :  { %v2616_v4 = vpop.f32.mrf.mxu1  ;;  %9294 = vmatmul.msk.bf16.gmra.mxu2 %vm28_vm1, %v2416_v11  ;;  %v2296_v54 = vadd.f32 %v2182_v26, %v1865_v14  ;;  %v14326_v11 = vld [vmem:[#allocation8_spill] sm:$0xff] }
 0x310   :  { %9327 = vmatmul.msk.bf16.gmra.mxu3 %vm28_vm1, %v1555_v44  ;;  %v959_v34 = vadd.f32 %v14327_v8, %v14326_v11  ;;  %v1950_v11 = vld [vmem:[#allocation2 + $0x3a8] sm:$0xff]  ;;  %v1951_v8 = vld [vmem:[#allocation2 + $0x3b0] sm:$0xff] }
 0x311   :  { %v10981_v31 = vadd.f32 %v2613_v23, %v2296_v54  ;;  %9360 = vmatmul.msk.bf16.gmra.mxu0 %vm28_vm1, %v1986_v7  ;;  %v1948_v23 = vld [vmem:[#allocation2 + $0x388] sm:$0xff]  ;;  %v1988_v49 = vpack.c.bf16 %v1951_v8, %v1950_v11  ;;  %v2384_v8 = vld [vmem:[#allocation2 + $0x3d1] sm:$0xff] }
 0x312   :  { %9393 = vmatmul.msk.bf16.gmra.mxu1 %vm28_vm1, %v2417_v24  ;;  %v1323_v52 = vpop.f32.mrf.mxu2  ;;  %v1987_v59 = vpack.c.bf16 %v1949_v32, %v1948_v23  ;;  %v2382_v23 = vld [vmem:[#allocation2 + $0x3b1] sm:$0xff]  ;;  %v1557_v32 = vpack.c.bf16 %v1520_v62, %v1519_v51  ;;  %v1521_v51 = vld [vmem:[#allocation2 + $0x3c7] sm:$0xff] }
 0x313   :  { %v1754_v10 = vpop.f32.mrf.mxu3  ;;  %v1435_v29 = vadd.f32 %v1323_v52, %v14325_v58  ;;  %v14328_v52 = vld [vmem:[#allocation10_spill] sm:$0xff]  ;;  %v1522_v62 = vld [vmem:[#allocation2 + $0x3cf] sm:$0xff] }
 0x314   :  { %v1952_v11 = vld [vmem:[#allocation2 + $0x3c8] sm:$0xff] }
 0x315   :  { %v1866_v5 = vadd.f32 %v1754_v10, %v1435_v29 }
 0x316   :  { %v2187_v6 = vpop.f32.mrf.mxu0 }
 0x317   :  { %v2618_v1 = vpop.f32.mrf.mxu1  ;;  %v2297_v16 = vadd.f32 %v2185_v30, %v1866_v5 }
 0x319   :  { %v10988_v26 = vadd.f32 %v2616_v4, %v2297_v16 }
 0x31a   :  { %v1325_v25 = vpop.f32.mrf.mxu2 }
 0x31b   :  { %v1756_v28 = vpop.f32.mrf.mxu3  ;;  %v1436_v37 = vadd.f32 %v1325_v25, %v959_v34  ;;  %v2381_v34 = vld [vmem:[#allocation2 + $0x3a9] sm:$0xff]  ;;  %v14329_v25 = vld [vmem:[#allocation11_spill] sm:$0xff] }
 0x31d   :  { %v1867_v21 = vadd.f32 %v1756_v28, %v1436_v37  ;;  %v2419_v37 = vpack.c.bf16 %v2382_v23, %v2381_v34  ;;  %v14331_v34 = vld [vmem:[#allocation13_spill] sm:$0xff] }
 0x31e   :  { %v2190_v44 = vpop.f32.mrf.mxu0 }
 0x31f   :  { %v2621_v14 = vpop.f32.mrf.mxu1  ;;  %9295 = vmatmul.msk.bf16.gmra.mxu2 %vm28_vm1, %v2417_v24  ;;  %v2298_v7 = vadd.f32 %v2187_v6, %v1867_v21 }
 0x320   :  { %9328 = vmatmul.msk.bf16.gmra.mxu3 %vm28_vm1, %v1556_v17 }
 0x321   :  { %v10992_v30 = vadd.f32 %v2618_v1, %v2298_v7  ;;  %9361 = vmatmul.msk.bf16.gmra.mxu0 %vm28_vm1, %v1987_v59 }
 0x322   :  { %9394 = vmatmul.msk.bf16.gmra.mxu1 %vm28_vm1, %v2418_v47  ;;  %v1328_v4 = vpop.f32.mrf.mxu2 }
 0x323   :  { %v1759_v54 = vpop.f32.mrf.mxu3  ;;  %v1437_v10 = vadd.f32 %v1328_v4, %v14328_v52  ;;  %v14330_v4 = vld [vmem:[#allocation12_spill] sm:$0xff] }
 0x325   :  { %v1868_v58 = vadd.f32 %v1759_v54, %v1437_v10 }
 0x326   :  { %v2192_v29 = vpop.f32.mrf.mxu0 }
 0x327   :  { %v2623_v5 = vpop.f32.mrf.mxu1  ;;  %v2299_v16 = vadd.f32 %v2190_v44, %v1868_v58 }
 0x329   :  { %v10997_v24 = vadd.f32 %v2621_v14, %v2299_v16 }
 0x32a   :  { %v1330_v6 = vpop.f32.mrf.mxu2 }
 0x32b   :  { %v1761_v1 = vpop.f32.mrf.mxu3  ;;  %v1438_v28 = vadd.f32 %v1330_v6, %v14329_v25  ;;  %v1953_v6 = vld [vmem:[#allocation2 + $0x3d0] sm:$0xff]  ;;  %v1558_v25 = vpack.c.bf16 %v1522_v62, %v1521_v51 }
 0x32d   :  { %v1869_v3 = vadd.f32 %v1761_v1, %v1438_v28  ;;  %v2383_v1 = vld [vmem:[#allocation2 + $0x3c9] sm:$0xff] }
 0x32e   :  { %v2195_v17 = vpop.f32.mrf.mxu0 }
 0x32f   :  { %v2626_v21 = vpop.f32.mrf.mxu1  ;;  %9296 = vmatmul.msk.bf16.gmra.mxu2 %vm28_vm1, %v2418_v47  ;;  %v2300_v59 = vadd.f32 %v2192_v29, %v1869_v3  ;;  %v2420_v3 = vpack.c.bf16 %v2384_v8, %v2383_v1  ;;  %v2385_v1 = vld [vmem:[#allocation2 + $0x3e9] sm:$0xff]  ;;  %v2386_v8 = vld [vmem:[#allocation2 + $0x3f1] sm:$0xff] }
 0x330   :  { %9329 = vmatmul.msk.bf16.gmra.mxu3 %vm28_vm1, %v1557_v32  ;;  %v1989_v32 = vpack.c.bf16 %v1953_v6, %v1952_v11  ;;  %v1523_v11 = vld [vmem:[#allocation2 + $0x3e7] sm:$0xff]  ;;  %v1955_v6 = vld [vmem:[#allocation2 + $0x3f0] sm:$0xff] }
 0x331   :  { %v11002_v44 = vadd.f32 %v2623_v5, %v2300_v59  ;;  %9362 = vmatmul.msk.bf16.gmra.mxu0 %vm28_vm1, %v1988_v49 }
 0x332   :  { %9395 = vmatmul.msk.bf16.gmra.mxu1 %vm28_vm1, %v2419_v37  ;;  %v1333_v14 = vpop.f32.mrf.mxu2 }
 0x333   :  { %v1764_v7 = vpop.f32.mrf.mxu3  ;;  %v1439_v54 = vadd.f32 %v1333_v14, %v14330_v4  ;;  %v14332_v4 = vld [vmem:[#allocation14_spill] sm:$0xff] }
 0x335   :  { %v1870_v52 = vadd.f32 %v1764_v7, %v1439_v54 }
 0x336   :  { %v2197_v10 = vpop.f32.mrf.mxu0 }
 0x337   :  { %v2628_v58 = vpop.f32.mrf.mxu1  ;;  %v2301_v16 = vadd.f32 %v2195_v17, %v1870_v52 }
 0x339   :  { %v11007_v47 = vadd.f32 %v2626_v21, %v2301_v16 }
 0x33a   :  { %v1335_v29 = vpop.f32.mrf.mxu2 }
 0x33b   :  { %v1766_v5 = vpop.f32.mrf.mxu3  ;;  %v1440_v23 = vadd.f32 %v1335_v29, %v14331_v34  ;;  %v1524_v29 = vld [vmem:[#allocation2 + $0x3ef] sm:$0xff]  ;;  %v14333_v34 = vld [vmem:[#allocation15_spill] sm:$0xff] }
 0x33d   :  { %v1871_v28 = vadd.f32 %v1766_v5, %v1440_v23  ;;  %v1954_v5 = vld [vmem:[#allocation2 + $0x3e8] sm:$0xff] }
 0x33e   :  { %v2200_v49 = vpop.f32.mrf.mxu0 }
 0x33f   :  { %v2631_v59 = vpop.f32.mrf.mxu1  ;;  %9297 = vmatmul.msk.bf16.gmra.mxu2 %vm28_vm1, %v2419_v37  ;;  %v2302_v17 = vadd.f32 %v2197_v10, %v1871_v28 }
 0x340   :  { %9330 = vmatmul.msk.bf16.gmra.mxu3 %vm28_vm1, %v1558_v25  ;;  %v1559_v25 = vpack.c.bf16 %v1524_v29, %v1523_v11  ;;  %v235_v11 = vld [vmem:[%s14191_s0 + $0x1f0] sm:$0xff] }
 0x341   :  { %v11012_v21 = vadd.f32 %v2628_v58, %v2302_v17  ;;  %9363 = vmatmul.msk.bf16.gmra.mxu0 %vm28_vm1, %v1989_v32  ;;  %v1990_v32 = vpack.c.bf16 %v1955_v6, %v1954_v5  ;;  %v2421_v17 = vpack.c.bf16 %v2386_v8, %v2385_v1  ;;  %300 = vst.msk [vmem:[#allocation2 + $0x448] sm:$0xff] %vm28_vm1, %v235_v11  ;;  %v1956_v1 = vld [vmem:[#allocation2 + $0x408] sm:$0xff] }
 0x342   :  { %9396 = vmatmul.msk.bf16.gmra.mxu1 %vm28_vm1, %v2420_v3  ;;  %v1338_v14 = vpop.f32.mrf.mxu2 }
 0x343   :  { %v1769_v7 = vpop.f32.mrf.mxu3  ;;  %v1441_v54 = vadd.f32 %v1338_v14, %v14332_v4 }
 0x345   :  { %v1872_v52 = vadd.f32 %v1769_v7, %v1441_v54 }
 0x346   :  { %v2202_v16 = vpop.f32.mrf.mxu0 }
 0x347   :  { %v2633_v51 = vpop.f32.mrf.mxu1  ;;  %v2303_v62 = vadd.f32 %v2200_v49, %v1872_v52  ;;  %v14334_v52 = vld [vmem:[#allocation16_spill] sm:$0xff] }
 0x349   :  { %v11017_v37 = vadd.f32 %v2631_v59, %v2303_v62 }
 0x34a   :  { %v1340_v10 = vpop.f32.mrf.mxu2 }
 0x34b   :  { %v1771_v58 = vpop.f32.mrf.mxu3  ;;  %v1442_v23 = vadd.f32 %v1340_v10, %v14333_v34  ;;  %v1525_v10 = vld [vmem:[#allocation2 + $0x407] sm:$0xff] }
 0x34d   :  { %v1873_v28 = vadd.f32 %v1771_v58, %v1442_v23  ;;  %v1526_v58 = vld [vmem:[#allocation2 + $0x40f] sm:$0xff] }
 0x34e   :  { %v2205_v14 = vpop.f32.mrf.mxu0  ;;  %v1957_v23 = vld [vmem:[#allocation2 + $0x410] sm:$0xff] }
 0x34f   :  { %v2636_v7 = vpop.f32.mrf.mxu1  ;;  %9298 = vmatmul.msk.bf16.gmra.mxu2 %vm28_vm1, %v2420_v3  ;;  %v2304_v49 = vadd.f32 %v2202_v16, %v1873_v28  ;;  %v236_v3 = vld [vmem:[%s14191_s0 + $0x1f8] sm:$0xff]  ;;  %s9192_s0 = sshll.u32 %s14198_s7, 4  ;;  %s9859_s7 = smov 8   ;;  %s9193_s0 = int_to_ptr.hbm [resolvable:$true] %s9192_s0 }
 0x350   :  { %9331 = vmatmul.msk.bf16.gmra.mxu3 %vm28_vm1, %v1559_v25  ;;  %301 = vst.msk [vmem:[#allocation2 + $0x450] sm:$0xff] %vm28_vm1, %v236_v3  ;;  %v2387_v25 = vld [vmem:[#allocation2 + $0x409] sm:$0xff]  ;;  %v2388_v28 = vld [vmem:[#allocation2 + $0x411] sm:$0xff] }
 0x351   :  { %v11022_v59 = vadd.f32 %v2633_v51, %v2304_v49  ;;  %9364 = vmatmul.msk.bf16.gmra.mxu0 %vm28_vm1, %v1990_v32  ;;  %v14337_v32 = vld [vmem:[#allocation17_spill] sm:$0xff] }
 0x352   :  { %9397 = vmatmul.msk.bf16.gmra.mxu1 %vm28_vm1, %v2421_v17  ;;  %v1343_v4 = vpop.f32.mrf.mxu2 }
 0x353   :  { %v1774_v54 = vpop.f32.mrf.mxu3  ;;  %v1443_v62 = vadd.f32 %v1343_v4, %v14334_v52  ;;  %v1560_v4 = vpack.c.bf16 %v1526_v58, %v1525_v10  ;;  %v1991_v52 = vpack.c.bf16 %v1957_v23, %v1956_v1  ;;  %v1528_v23 = vld [vmem:[#allocation2 + $0x42f] sm:$0xff] }
 0x355   :  { %v1874_v29 = vadd.f32 %v1774_v54, %v1443_v62  ;;  %v2422_v62 = vpack.c.bf16 %v2388_v28, %v2387_v25  ;;  %v1958_v25 = vld [vmem:[#allocation2 + $0x428] sm:$0xff] }
 0x356   :  { %v2207_v16 = vpop.f32.mrf.mxu0 }
 0x357   :  { %v11034_v51 = vpop.f32.mrf.mxu1  ;;  %v2305_v5 = vadd.f32 %v2205_v14, %v1874_v29  ;;  %v14339_v29 = vld [vmem:[#allocation18_spill] sm:$0xff] }
 0x358   :  { %14335 = vst [vmem:[#allocation38_spill] sm:$0xff] %v11034_v51 }
 0x359   :  { %v11037_v6 = vadd.f32 %v2636_v7, %v2305_v5 }
 0x35a   :  { %v1345_v8 = vpop.f32.mrf.mxu2 }
 0x35b   :  { %14336 = vst [vmem:[#allocation40_spill] sm:$0xff] %v11037_v6  ;;  %v1776_v34 = vpop.f32.mrf.mxu3  ;;  %v1444_v49 = vadd.f32 %v1345_v8, %v14337_v32  ;;  %v1959_v32 = vld [vmem:[#allocation2 + $0x430] sm:$0xff] }
 0x35d   :  { %v1875_v54 = vadd.f32 %v1776_v34, %v1444_v49  ;;  %v1527_v34 = vld [vmem:[#allocation2 + $0x427] sm:$0xff] }
 0x35e   :  { %v2210_v11 = vpop.f32.mrf.mxu0  ;;  %v2389_v49 = vld [vmem:[#allocation2 + $0x429] sm:$0xff] }
 0x35f   :  { %v2641_v51 = vpop.f32.mrf.mxu1  ;;  %9299 = vmatmul.msk.bf16.gmra.mxu2 %vm28_vm1, %v2421_v17  ;;  %v11042_v14 = vadd.f32 %v2207_v16, %v1875_v54  ;;  %v14342_v54 = vld [vmem:[#allocation19_spill] sm:$0xff] }
 0x360   :  { %9332 = vmatmul.msk.bf16.gmra.mxu3 %vm28_vm1, %v1560_v4  ;;  %v2390_v4 = vld [vmem:[#allocation2 + $0x431] sm:$0xff] }
 0x361   :  { %14338 = vst [vmem:[#allocation7_spill] sm:$0xff] %v11042_v14  ;;  %9365 = vmatmul.msk.bf16.gmra.mxu0 %vm28_vm1, %v1991_v52  ;;  %v1561_v14 = vpack.c.bf16 %v1528_v23, %v1527_v34 }
 0x362   :  { %9398 = vmatmul.msk.bf16.gmra.mxu1 %vm28_vm1, %v2422_v62  ;;  %v1348_v7 = vpop.f32.mrf.mxu2 }
 0x363   :  { %v1779_v3 = vpop.f32.mrf.mxu3  ;;  %v1445_v5 = vadd.f32 %v1348_v7, %v14339_v29  ;;  %v1992_v7 = vpack.c.bf16 %v1959_v32, %v1958_v25  ;;  %v1529_v32 = vld [vmem:[#allocation2 + $0x447] sm:$0xff] }
 0x365   :  { %v1876_v10 = vadd.f32 %v1779_v3, %v1445_v5  ;;  %v2423_v3 = vpack.c.bf16 %v2390_v4, %v2389_v49  ;;  %v1530_v49 = vld [vmem:[#allocation2 + $0x44f] sm:$0xff] }
 0x366   :  { %v2212_v58 = vpop.f32.mrf.mxu0  ;;  %v1961_v4 = vld [vmem:[#allocation2 + $0x450] sm:$0xff] }
 0x367   :  { %v11047_v1 = vpop.f32.mrf.mxu1  ;;  %v2307_v8 = vadd.f32 %v2210_v11, %v1876_v10 }
 0x368   :  { %14340 = vst [vmem:[#allocation8_spill] sm:$0xff] %v11047_v1 }
 0x369   :  { %v11049_v17 = vadd.f32 %v2641_v51, %v2307_v8  ;;  %v14344_v8 = vld [vmem:[#allocation20_spill] sm:$0xff] }
 0x36a   :  { %v1350_v16 = vpop.f32.mrf.mxu2 }
 0x36b   :  { %14341 = vst [vmem:[#allocation9_spill] sm:$0xff] %v11049_v17  ;;  %v1781_v28 = vpop.f32.mrf.mxu3  ;;  %v1446_v52 = vadd.f32 %v1350_v16, %v14342_v54  ;;  %v2391_v54 = vld [vmem:[#allocation2 + $0x449] sm:$0xff] }
 0x36d   :  { %v1877_v6 = vadd.f32 %v1781_v28, %v1446_v52  ;;  %v2392_v52 = vld [vmem:[#allocation2 + $0x451] sm:$0xff] }
 0x36e   :  { %v2215_v29 = vpop.f32.mrf.mxu0 }
 0x36f   :  { %v2646_v5 = vpop.f32.mrf.mxu1  ;;  %9300 = vmatmul.msk.bf16.gmra.mxu2 %vm28_vm1, %v2422_v62  ;;  %v11054_v51 = vadd.f32 %v2212_v58, %v1877_v6 }
 0x370   :  { %9333 = vmatmul.msk.bf16.gmra.mxu3 %vm28_vm1, %v1561_v14  ;;  %v1960_v14 = vld [vmem:[#allocation2 + $0x448] sm:$0xff] }
 0x371   :  { %14343 = vst [vmem:[#allocation10_spill] sm:$0xff] %v11054_v51  ;;  %9366 = vmatmul.msk.bf16.gmra.mxu0 %vm28_vm1, %v1992_v7  ;;  %v14346_v7 = vld [vmem:[#allocation21_spill] sm:$0xff]  ;;  %v1562_v51 = vpack.c.bf16 %v1530_v49, %v1529_v32 }
 0x372   :  { %9399 = vmatmul.msk.bf16.gmra.mxu1 %vm28_vm1, %v2423_v3  ;;  %v1353_v11 = vpop.f32.mrf.mxu2 }
 0x373   :  { %v1784_v10 = vpop.f32.mrf.mxu3  ;;  %v1447_v16 = vadd.f32 %v1353_v11, %v14344_v8  ;;  %v1993_v11 = vpack.c.bf16 %v1961_v4, %v1960_v14  ;;  %v2762_v4 = vld [vmem:[#allocation2 + $0x4f] sm:$0xff] }
 0x375   :  { %v1878_v34 = vadd.f32 %v1784_v10, %v1447_v16  ;;  %v2424_v10 = vpack.c.bf16 %v2392_v52, %v2391_v54  ;;  %v3193_v54 = vld [vmem:[#allocation2 + $0x50] sm:$0xff] }
 0x376   :  { %v2217_v23 = vpop.f32.mrf.mxu0  ;;  %v3623_v52 = vld [vmem:[#allocation2 + $0x49] sm:$0xff] }
 0x377   :  { %v11059_v25 = vpop.f32.mrf.mxu1  ;;  %v2309_v28 = vadd.f32 %v2215_v29, %v1878_v34 }
 0x378   :  { %14345 = vst [vmem:[#allocation11_spill] sm:$0xff] %v11059_v25 }
 0x379   :  { %v11061_v62 = vadd.f32 %v2646_v5, %v2309_v28  ;;  %v14348_v28 = vld [vmem:[#allocation22_spill] sm:$0xff] }
 0x37a   :  { %v1355_v6 = vpop.f32.mrf.mxu2 }
 0x37b   :  { %v1786_v58 = vpop.f32.mrf.mxu3  ;;  %v1448_v1 = vadd.f32 %v1355_v6, %v14346_v7  ;;  %v3624_v7 = vld [vmem:[#allocation2 + $0x51] sm:$0xff] }
 0x37d   :  { %v1879_v17 = vadd.f32 %v1786_v58, %v1448_v1  ;;  %v2761_v58 = vld [vmem:[#allocation2 + $0x47] sm:$0xff] }
 0x37e   :  { %v2220_v8 = vpop.f32.mrf.mxu0  ;;  %v2825_v25 = vpack.c.bf16 %v2762_v4, %v2761_v58  ;;  %v2763_v4 = vld [vmem:[#allocation2 + $0x67] sm:$0xff] }
 0x37f   :  { %v2651_v16 = vpop.f32.mrf.mxu1  ;;  %9301 = vmatmul.msk.bf16.gmra.mxu2 %vm28_vm1, %v2423_v3  ;;  %v11066_v29 = vadd.f32 %v2217_v23, %v1879_v17  ;;  %v3192_v3 = vld [vmem:[#allocation2 + $0x48] sm:$0xff] }
 0x380   :  { %9334 = vmatmul.msk.bf16.gmra.mxu3 %vm28_vm1, %v1562_v51 }
 0x381   :  { %14347 = vst [vmem:[#allocation12_spill] sm:$0xff] %v11066_v29  ;;  %9367 = vmatmul.msk.bf16.gmra.mxu0 %vm28_vm1, %v1993_v11  ;;  %v14351_v11 = vld [vmem:[#allocation23_spill] sm:$0xff]  ;;  %v3256_v29 = vpack.c.bf16 %v3193_v54, %v3192_v3  ;;  %v2764_v54 = vld [vmem:[#allocation2 + $0x6f] sm:$0xff] }
 0x382   :  { %9400 = vmatmul.msk.bf16.gmra.mxu1 %vm28_vm1, %v2424_v10  ;;  %v1358_v5 = vpop.f32.mrf.mxu2 }
 0x383   :  { %v1789_v34 = vpop.f32.mrf.mxu3  ;;  %v1449_v6 = vadd.f32 %v1358_v5, %v14348_v28 }
 0x385   :  { %v1880_v32 = vadd.f32 %v1789_v34, %v1449_v6  ;;  %v3687_v34 = vpack.c.bf16 %v3624_v7, %v3623_v52  ;;  %v3195_v52 = vld [vmem:[#allocation2 + $0x70] sm:$0xff] }
 0x386   :  { %v2222_v1 = vpop.f32.mrf.mxu0  ;;  %v3625_v7 = vld [vmem:[#allocation2 + $0x69] sm:$0xff] }
 0x387   :  { %v11071_v49 = vpop.f32.mrf.mxu1  ;;  %v2311_v14 = vadd.f32 %v2220_v8, %v1880_v32 }
 0x388   :  { %14349 = vst [vmem:[#allocation13_spill] sm:$0xff] %v11071_v49 }
 0x389   :  { %v11073_v51 = vadd.f32 %v2651_v16, %v2311_v14  ;;  %v14353_v14 = vld [vmem:[#allocation24_spill] sm:$0xff] }
 0x38a   :  { %v1360_v17 = vpop.f32.mrf.mxu2 }
 0x38b   :  { %14350 = vst [vmem:[#allocation14_spill] sm:$0xff] %v11073_v51  ;;  %v1791_v23 = vpop.f32.mrf.mxu3  ;;  %v1450_v10 = vadd.f32 %v1360_v17, %v14351_v11  ;;  %v3626_v11 = vld [vmem:[#allocation2 + $0x71] sm:$0xff] }
 0x38d   :  { %v1881_v5 = vadd.f32 %v1791_v23, %v1450_v10  ;;  %v3194_v23 = vld [vmem:[#allocation2 + $0x68] sm:$0xff]  ;;  %v14356_v10 = vld [vmem:[#allocation25_spill] sm:$0xff] }
 0x38e   :  { %v2225_v28 = vpop.f32.mrf.mxu0 }
 0x38f   :  { %v2656_v6 = vpop.f32.mrf.mxu1  ;;  %9402 = vmatmul.msk.bf16.vlgmr.msra.gmra.mxu2 %vm28_vm1, %v2825_v25  ;;  %v11078_v8 = vadd.f32 %v2222_v1, %v1881_v5 }
 0x390   :  { %9435 = vmatmul.msk.bf16.vlgmr.msra.gmra.mxu3 %vm28_vm1, %v3256_v29 }
 0x391   :  { %14352 = vst [vmem:[#allocation15_spill] sm:$0xff] %v11078_v8  ;;  %9468 = vmatmul.msk.bf16.vlgmr.msra.gmra.mxu0 %vm28_vm1, %v3687_v34  ;;  %v2826_v34 = vpack.c.bf16 %v2764_v54, %v2763_v4  ;;  %v3257_v8 = vpack.c.bf16 %v3195_v52, %v3194_v23  ;;  %v2765_v54 = vld [vmem:[#allocation2 + $0x87] sm:$0xff]  ;;  %v2766_v23 = vld [vmem:[#allocation2 + $0x8f] sm:$0xff] }
 0x392   :  { %v1363_v16 = vpop.f32.mrf.mxu2  ;;  %v3196_v52 = vld [vmem:[#allocation2 + $0x88] sm:$0xff] }
 0x393   :  { %v1794_v32 = vpop.f32.mrf.mxu3  ;;  %v1451_v49 = vadd.f32 %v1363_v16, %v14353_v14 }
 0x395   :  { %v1882_v51 = vadd.f32 %v1794_v32, %v1451_v49  ;;  %v3688_v49 = vpack.c.bf16 %v3626_v11, %v3625_v7 }
 0x396   :  { %v2227_v17 = vpop.f32.mrf.mxu0 }
 0x397   :  { %v2313_v58 = vadd.f32 %v2225_v28, %v1882_v51  ;;  %v11082_v3 = vpop.f32.mrf.mxu1 }
 0x398   :  { %14354 = vst [vmem:[#allocation16_spill] sm:$0xff] %v11082_v3 }
 0x399   :  { %v11084_v25 = vadd.f32 %v2656_v6, %v2313_v58  ;;  %v14358_v58 = vld [vmem:[#allocation26_spill] sm:$0xff] }
 0x39a   :  { %v1365_v29 = vpop.f32.mrf.mxu2 }
 0x39b   :  { %14355 = vst [vmem:[#allocation17_spill] sm:$0xff] %v11084_v25  ;;  %v1796_v1 = vpop.f32.mrf.mxu3  ;;  %v1452_v5 = vadd.f32 %v1365_v29, %v14356_v10  ;;  %v3628_v10 = vld [vmem:[#allocation2 + $0x91] sm:$0xff] }
 0x39d   :  { %v1883_v16 = vadd.f32 %v1796_v1, %v1452_v5  ;;  %v3197_v1 = vld [vmem:[#allocation2 + $0x90] sm:$0xff]  ;;  %v14360_v5 = vld [vmem:[#allocation27_spill] sm:$0xff] }
 0x39e   :  { %v2230_v32 = vpop.f32.mrf.mxu0 }
 0x39f   :  { %9403 = vmatmul.msk.bf16.gmra.mxu2 %vm28_vm1, %v2826_v34  ;;  %v11089_v51 = vadd.f32 %v2227_v17, %v1883_v16  ;;  %v2661_v28 = vpop.f32.mrf.mxu1  ;;  %v3627_v17 = vld [vmem:[#allocation2 + $0x89] sm:$0xff]  ;;  %v2827_v16 = vpack.c.bf16 %v2766_v23, %v2765_v54 }
 0x3a0   :  { %9436 = vmatmul.msk.bf16.gmra.mxu3 %vm28_vm1, %v3257_v8 }
 0x3a1   :  { %14357 = vst [vmem:[#allocation18_spill] sm:$0xff] %v11089_v51  ;;  %9469 = vmatmul.msk.bf16.gmra.mxu0 %vm28_vm1, %v3688_v49  ;;  %v3258_v49 = vpack.c.bf16 %v3197_v1, %v3196_v52  ;;  %v2767_v1 = vld [vmem:[#allocation2 + $0xa7] sm:$0xff] }
 0x3a2   :  { %v1368_v6 = vpop.f32.mrf.mxu2 }
 0x3a3   :  { %v1799_v14 = vpop.f32.mrf.mxu3  ;;  %v1453_v3 = vadd.f32 %v1368_v6, %v14358_v58  ;;  %v14363_v58 = vld [vmem:[#allocation28_spill] sm:$0xff] }
 0x3a5   :  { %v1884_v25 = vadd.f32 %v1799_v14, %v1453_v3  ;;  %v3689_v3 = vpack.c.bf16 %v3628_v10, %v3627_v17  ;;  %v3198_v17 = vld [vmem:[#allocation2 + $0xa8] sm:$0xff]  ;;  %v3199_v10 = vld [vmem:[#allocation2 + $0xb0] sm:$0xff] }
 0x3a6   :  { %v2232_v29 = vpop.f32.mrf.mxu0 }
 0x3a7   :  { %v2315_v4 = vadd.f32 %v2230_v32, %v1884_v25  ;;  %v11096_v51 = vpop.f32.mrf.mxu1 }
 0x3a8   :  { %14361 = vst [vmem:[#allocation20_spill] sm:$0xff] %v11096_v51 }
 0x3a9   :  { %v11093_v7 = vadd.f32 %v2661_v28, %v2315_v4 }
 0x3aa   :  { %v1370_v11 = vpop.f32.mrf.mxu2 }
 0x3ab   :  { %14359 = vst [vmem:[#allocation19_spill] sm:$0xff] %v11093_v7  ;;  %v1801_v8 = vpop.f32.mrf.mxu3  ;;  %v1454_v34 = vadd.f32 %v1370_v11, %v14360_v5 }
 0x3ad   :  { %v1885_v6 = vadd.f32 %v1801_v8, %v1454_v34  ;;  %v2768_v8 = vld [vmem:[#allocation2 + $0xaf] sm:$0xff] }
 0x3ae   :  { %v2235_v14 = vpop.f32.mrf.mxu0  ;;  %v2828_v51 = vpack.c.bf16 %v2768_v8, %v2767_v1  ;;  %v2769_v1 = vld [vmem:[#allocation2 + $0xc7] sm:$0xff]  ;;  %v2770_v8 = vld [vmem:[#allocation2 + $0xcf] sm:$0xff] }
 0x3af   :  { %9404 = vmatmul.msk.bf16.gmra.mxu2 %vm28_vm1, %v2827_v16  ;;  %v11100_v25 = vadd.f32 %v2232_v29, %v1885_v6  ;;  %v2666_v23 = vpop.f32.mrf.mxu1  ;;  %v3629_v29 = vld [vmem:[#allocation2 + $0xa9] sm:$0xff] }
 0x3b0   :  { %9437 = vmatmul.msk.bf16.gmra.mxu3 %vm28_vm1, %v3258_v49  ;;  %v3630_v49 = vld [vmem:[#allocation2 + $0xb1] sm:$0xff] }
 0x3b1   :  { %14362 = vst [vmem:[#allocation21_spill] sm:$0xff] %v11100_v25  ;;  %9470 = vmatmul.msk.bf16.gmra.mxu0 %vm28_vm1, %v3689_v3  ;;  %v14365_v6 = vld [vmem:[#allocation29_spill] sm:$0xff]  ;;  %v3259_v25 = vpack.c.bf16 %v3199_v10, %v3198_v17  ;;  %v3200_v17 = vld [vmem:[#allocation2 + $0xc8] sm:$0xff] }
 0x3b2   :  { %v1373_v32 = vpop.f32.mrf.mxu2  ;;  %v3201_v10 = vld [vmem:[#allocation2 + $0xd0] sm:$0xff] }
 0x3b3   :  { %v1804_v28 = vpop.f32.mrf.mxu3  ;;  %v1455_v4 = vadd.f32 %v1373_v32, %v14363_v58  ;;  %v3690_v32 = vpack.c.bf16 %v3630_v49, %v3629_v29  ;;  %v3631_v29 = vld [vmem:[#allocation2 + $0xc9] sm:$0xff]  ;;  %v2829_v49 = vpack.c.bf16 %v2770_v8, %v2769_v1 }
 0x3b4   :  { %v2771_v1 = vld [vmem:[#allocation2 + $0xe7] sm:$0xff]  ;;  %v2772_v8 = vld [vmem:[#allocation2 + $0xef] sm:$0xff] }
 0x3b5   :  { %v1886_v11 = vadd.f32 %v1804_v28, %v1455_v4 }
 0x3b6   :  { %v2237_v54 = vpop.f32.mrf.mxu0 }
 0x3b7   :  { %v2317_v52 = vadd.f32 %v2235_v14, %v1886_v11  ;;  %v14367_v11 = vld [vmem:[#allocation30_spill] sm:$0xff] }
 0x3b9   :  { %v11104_v5 = vadd.f32 %v2666_v23, %v2317_v52 }
 0x3ba   :  { %v1375_v34 = vpop.f32.mrf.mxu2 }
 0x3bb   :  { %14364 = vst [vmem:[#allocation22_spill] sm:$0xff] %v11104_v5  ;;  %v1806_v16 = vpop.f32.mrf.mxu3  ;;  %v1456_v3 = vadd.f32 %v1375_v34, %v14365_v6  ;;  %v3260_v6 = vpack.c.bf16 %v3201_v10, %v3200_v17  ;;  %v3202_v17 = vld [vmem:[#allocation2 + $0xe8] sm:$0xff]  ;;  %v3203_v10 = vld [vmem:[#allocation2 + $0xf0] sm:$0xff] }
 0x3bd   :  { %v1887_v7 = vadd.f32 %v1806_v16, %v1456_v3 }
 0x3be   :  { %v2240_v28 = vpop.f32.mrf.mxu0 }
 0x3bf   :  { %9405 = vmatmul.msk.bf16.gmra.mxu2 %vm28_vm1, %v2828_v51  ;;  %v11109_v14 = vadd.f32 %v2237_v54, %v1887_v7  ;;  %v14369_v7 = vld [vmem:[#allocation31_spill] sm:$0xff] }
 0x3c0   :  { %9438 = vmatmul.msk.bf16.gmra.mxu3 %vm28_vm1, %v3259_v25  ;;  %v3632_v25 = vld [vmem:[#allocation2 + $0xd1] sm:$0xff] }
 0x3c1   :  { %14366 = vst [vmem:[#allocation23_spill] sm:$0xff] %v11109_v14  ;;  %9471 = vmatmul.msk.bf16.gmra.mxu0 %vm28_vm1, %v3690_v32  ;;  %v3691_v32 = vpack.c.bf16 %v3632_v25, %v3631_v29  ;;  %v3633_v25 = vld [vmem:[#allocation2 + $0xe9] sm:$0xff] }
 0x3c2   :  { %v1378_v58 = vpop.f32.mrf.mxu2 }
 0x3c3   :  { %v1809_v4 = vpop.f32.mrf.mxu3  ;;  %v1457_v23 = vadd.f32 %v1378_v58, %v14367_v11  ;;  %v14371_v11 = vld [vmem:[#allocation32_spill] sm:$0xff] }
 0x3c5   :  { %v1888_v52 = vadd.f32 %v1809_v4, %v1457_v23 }
 0x3c6   :  { %v2242_v5 = vpop.f32.mrf.mxu0 }
 0x3c7   :  { %v11113_v34 = vadd.f32 %v2240_v28, %v1888_v52 }
 0x3c9   :  { %14368 = vst [vmem:[#allocation24_spill] sm:$0xff] %v11113_v34 }
 0x3ca   :  { %v1380_v16 = vpop.f32.mrf.mxu2 }
 0x3cb   :  { %v1811_v51 = vpop.f32.mrf.mxu3  ;;  %v1458_v54 = vadd.f32 %v1380_v16, %v14369_v7  ;;  %v3634_v7 = vld [vmem:[#allocation2 + $0xf1] sm:$0xff] }
 0x3cd   :  { %v1889_v3 = vadd.f32 %v1811_v51, %v1458_v54 }
 0x3ce   :  { %v2245_v14 = vpop.f32.mrf.mxu0 }
 0x3cf   :  { %9406 = vmatmul.msk.bf16.gmra.mxu2 %vm28_vm1, %v2829_v49  ;;  %v11118_v28 = vadd.f32 %v2242_v5, %v1889_v3  ;;  %v14373_v5 = vld [vmem:[#allocation33_spill] sm:$0xff]  ;;  %v2830_v49 = vpack.c.bf16 %v2772_v8, %v2771_v1  ;;  %v2773_v1 = vld [vmem:[#allocation2 + $0x107] sm:$0xff] }
 0x3d0   :  { %9439 = vmatmul.msk.bf16.gmra.mxu3 %vm28_vm1, %v3260_v6  ;;  %v3261_v6 = vpack.c.bf16 %v3203_v10, %v3202_v17  ;;  %v2774_v8 = vld [vmem:[#allocation2 + $0x10f] sm:$0xff] }
 0x3d1   :  { %14370 = vst [vmem:[#allocation25_spill] sm:$0xff] %v11118_v28  ;;  %9472 = vmatmul.msk.bf16.gmra.mxu0 %vm28_vm1, %v3691_v32  ;;  %v3692_v32 = vpack.c.bf16 %v3634_v7, %v3633_v25  ;;  %v3204_v17 = vld [vmem:[#allocation2 + $0x108] sm:$0xff]  ;;  %v3205_v10 = vld [vmem:[#allocation2 + $0x110] sm:$0xff] }
 0x3d2   :  { %v1383_v58 = vpop.f32.mrf.mxu2  ;;  %v3635_v7 = vld [vmem:[#allocation2 + $0x109] sm:$0xff] }
 0x3d3   :  { %v1814_v4 = vpop.f32.mrf.mxu3  ;;  %v1459_v23 = vadd.f32 %v1383_v58, %v14371_v11  ;;  %v14375_v11 = vld [vmem:[#allocation34_spill] sm:$0xff] }
 0x3d5   :  { %v1890_v52 = vadd.f32 %v1814_v4, %v1459_v23 }
 0x3d6   :  { %v2247_v34 = vpop.f32.mrf.mxu0 }
 0x3d7   :  { %v11122_v16 = vadd.f32 %v2245_v14, %v1890_v52 }
 0x3d9   :  { %14372 = vst [vmem:[#allocation26_spill] sm:$0xff] %v11122_v16 }
 0x3da   :  { %v1385_v51 = vpop.f32.mrf.mxu2 }
 0x3db   :  { %v1816_v29 = vpop.f32.mrf.mxu3  ;;  %v1460_v54 = vadd.f32 %v1385_v51, %v14373_v5  ;;  %v3636_v5 = vld [vmem:[#allocation2 + $0x111] sm:$0xff] }
 0x3dd   :  { %v1891_v3 = vadd.f32 %v1816_v29, %v1460_v54 }
 0x3de   :  { %v2250_v28 = vpop.f32.mrf.mxu0 }
 0x3df   :  { %9407 = vmatmul.msk.bf16.gmra.mxu2 %vm28_vm1, %v2830_v49  ;;  %v11127_v14 = vadd.f32 %v2247_v34, %v1891_v3  ;;  %v14377_v34 = vld [vmem:[#allocation35_spill] sm:$0xff]  ;;  %v2831_v49 = vpack.c.bf16 %v2774_v8, %v2773_v1  ;;  %v2776_v8 = vld [vmem:[#allocation2 + $0x12f] sm:$0xff] }
 0x3e0   :  { %9440 = vmatmul.msk.bf16.gmra.mxu3 %vm28_vm1, %v3261_v6  ;;  %v3262_v6 = vpack.c.bf16 %v3205_v10, %v3204_v17  ;;  %v2775_v1 = vld [vmem:[#allocation2 + $0x127] sm:$0xff]  ;;  %v3207_v10 = vld [vmem:[#allocation2 + $0x130] sm:$0xff] }
 0x3e1   :  { %14374 = vst [vmem:[#allocation27_spill] sm:$0xff] %v11127_v14  ;;  %9473 = vmatmul.msk.bf16.gmra.mxu0 %vm28_vm1, %v3692_v32  ;;  %v3693_v32 = vpack.c.bf16 %v3636_v5, %v3635_v7  ;;  %v3206_v17 = vld [vmem:[#allocation2 + $0x128] sm:$0xff] }
 0x3e2   :  { %v1388_v58 = vpop.f32.mrf.mxu2  ;;  %v3637_v5 = vld [vmem:[#allocation2 + $0x129] sm:$0xff] }
 0x3e3   :  { %v1819_v4 = vpop.f32.mrf.mxu3  ;;  %v1461_v23 = vadd.f32 %v1388_v58, %v14375_v11  ;;  %v14379_v11 = vld [vmem:[#allocation36_spill] sm:$0xff] }
 0x3e5   :  { %v1892_v52 = vadd.f32 %v1819_v4, %v1461_v23 }
 0x3e6   :  { %v2252_v16 = vpop.f32.mrf.mxu0 }
 0x3e7   :  { %v11131_v51 = vadd.f32 %v2250_v28, %v1892_v52 }
 0x3e9   :  { %14376 = vst [vmem:[#allocation28_spill] sm:$0xff] %v11131_v51 }
 0x3ea   :  { %v1390_v29 = vpop.f32.mrf.mxu2 }
 0x3eb   :  { %v1821_v25 = vpop.f32.mrf.mxu3  ;;  %v1462_v54 = vadd.f32 %v1390_v29, %v14377_v34  ;;  %v3638_v34 = vld [vmem:[#allocation2 + $0x131] sm:$0xff] }
 0x3ed   :  { %v1893_v3 = vadd.f32 %v1821_v25, %v1462_v54  ;;  %v14381_v25 = vmov 0.0  }
 0x3ee   :  { %v2255_v14 = vpop.f32.mrf.mxu0  ;;  %4609 = vst.msk [vmem:[#allocation3 + $0x28] sm:$0xff] %vm4054_vm2, %v14381_v25 }
 0x3ef   :  { %9408 = vmatmul.msk.bf16.gmra.mxu2 %vm28_vm1, %v2831_v49  ;;  %v11136_v28 = vadd.f32 %v2252_v16, %v1893_v3  ;;  %4604 = vst.msk [vmem:[#allocation3] sm:$0xff] %vm4054_vm2, %v14381_v25  ;;  %v2832_v49 = vpack.c.bf16 %v2776_v8, %v2775_v1 }
 0x3f0   :  { %9441 = vmatmul.msk.bf16.gmra.mxu3 %vm28_vm1, %v3262_v6  ;;  %4605 = vst.msk [vmem:[#allocation3 + $0x8] sm:$0xff] %vm4054_vm2, %v14381_v25  ;;  %v3263_v6 = vpack.c.bf16 %v3207_v10, %v3206_v17  ;;  %v2777_v10 = vld [vmem:[#allocation2 + $0x147] sm:$0xff] }
 0x3f1   :  { %14378 = vst [vmem:[#allocation29_spill] sm:$0xff] %v11136_v28  ;;  %9474 = vmatmul.msk.bf16.gmra.mxu0 %vm28_vm1, %v3693_v32  ;;  %v3694_v32 = vpack.c.bf16 %v3638_v34, %v3637_v5  ;;  %v3209_v5 = vld [vmem:[#allocation2 + $0x150] sm:$0xff] }
 0x3f2   :  { %v1393_v58 = vpop.f32.mrf.mxu2  ;;  %4606 = vst.msk [vmem:[#allocation3 + $0x10] sm:$0xff] %vm4054_vm2, %v14381_v25 }
 0x3f3   :  { %v1824_v4 = vpop.f32.mrf.mxu3  ;;  %v1463_v23 = vadd.f32 %v1393_v58, %v14379_v11  ;;  %4607 = vst.msk [vmem:[#allocation3 + $0x18] sm:$0xff] %vm4054_vm2, %v14381_v25 }
 0x3f4   :  { %4608 = vst.msk [vmem:[#allocation3 + $0x20] sm:$0xff] %vm4054_vm2, %v14381_v25 }
 0x3f5   :  { %v1894_v52 = vadd.f32 %v1824_v4, %v1463_v23  ;;  %4610 = vst.msk [vmem:[#allocation3 + $0x30] sm:$0xff] %vm4054_vm2, %v14381_v25 }
 0x3f6   :  { %v2257_v51 = vpop.f32.mrf.mxu0  ;;  %4611 = vst.msk [vmem:[#allocation3 + $0x38] sm:$0xff] %vm4054_vm2, %v14381_v25 }
 0x3f7   :  { %v11140_v29 = vadd.f32 %v2255_v14, %v1894_v52  ;;  %v14382_v14 = vld [vmem:[#allocation37_spill] sm:$0xff]  ;;  %4612 = vst.msk [vmem:[#allocation3 + $0x40] sm:$0xff] %vm4054_vm2, %v14381_v25  ;;  %v14384_v52 = vld [vmem:[#allocation39_spill] sm:$0xff] }
 0x3f8   :  { %4613 = vst.msk [vmem:[#allocation3 + $0x48] sm:$0xff] %vm4054_vm2, %v14381_v25 }
 0x3f9   :  { %14380 = vst [vmem:[#allocation30_spill] sm:$0xff] %v11140_v29 }
 0x3fa   :  { %v1395_v16 = vpop.f32.mrf.mxu2  ;;  %4614 = vst.msk [vmem:[#allocation3 + $0x50] sm:$0xff] %vm4054_vm2, %v14381_v25 }
 0x3fb   :  { %v1826_v7 = vpop.f32.mrf.mxu3  ;;  %v1464_v54 = vadd.f32 %v1395_v16, %v14382_v14  ;;  %4615 = vst.msk [vmem:[#allocation3 + $0x58] sm:$0xff] %vm4054_vm2, %v14381_v25  ;;  %v2778_v16 = vld [vmem:[#allocation2 + $0x14f] sm:$0xff] }
 0x3fc   :  { %4616 = vst.msk [vmem:[#allocation3 + $0x60] sm:$0xff] %vm4054_vm2, %v14381_v25 }
 0x3fd   :  { %v1895_v3 = vadd.f32 %v1826_v7, %v1464_v54  ;;  %4617 = vst.msk [vmem:[#allocation3 + $0x68] sm:$0xff] %vm4054_vm2, %v14381_v25  ;;  %v3208_v7 = vld [vmem:[#allocation2 + $0x148] sm:$0xff] }
 0x3fe   :  { %v2260_v58 = vpop.f32.mrf.mxu0  ;;  %4618 = vst.msk [vmem:[#allocation3 + $0x70] sm:$0xff] %vm4054_vm2, %v14381_v25  ;;  %v3639_v54 = vld [vmem:[#allocation2 + $0x149] sm:$0xff] }
 0x3ff   :  { %9409 = vmatmul.msk.bf16.gmra.mxu2 %vm28_vm1, %v2832_v49  ;;  %v11159_v4 = vadd.f32 %v2257_v51, %v1895_v3  ;;  %4619 = vst.msk [vmem:[#allocation3 + $0x78] sm:$0xff] %vm4054_vm2, %v14381_v25  ;;  %v3640_v49 = vld [vmem:[#allocation2 + $0x151] sm:$0xff] }
 0x400   :  { %9442 = vmatmul.msk.bf16.gmra.mxu3 %vm28_vm1, %v3263_v6  ;;  %4620 = vst.msk [vmem:[#allocation3 + $0x80] sm:$0xff] %vm4054_vm2, %v14381_v25  ;;  %v14386_v6 = vld [vmem:[#allocation41_spill] sm:$0xff] }
 0x401   :  { %14383 = vst [vmem:[#allocation31_spill] sm:$0xff] %v11159_v4  ;;  %9475 = vmatmul.msk.bf16.gmra.mxu0 %vm28_vm1, %v3694_v32  ;;  %v2833_v32 = vpack.c.bf16 %v2778_v16, %v2777_v10 }
 0x402   :  { %v1398_v11 = vpop.f32.mrf.mxu2  ;;  %4621 = vst.msk [vmem:[#allocation3 + $0x88] sm:$0xff] %vm4054_vm2, %v14381_v25 }
 0x403   :  { %v1829_v23 = vpop.f32.mrf.mxu3  ;;  %v1465_v1 = vadd.f32 %v1398_v11, %v14384_v52  ;;  %4622 = vst.msk [vmem:[#allocation3 + $0x90] sm:$0xff] %vm4054_vm2, %v14381_v25 }
 0x404   :  { %4623 = vst.msk [vmem:[#allocation3 + $0x98] sm:$0xff] %vm4054_vm2, %v14381_v25 }
 0x405   :  { %v1896_v51 = vadd.f32 %v1829_v23, %v1465_v1  ;;  %4624 = vst.msk [vmem:[#allocation3 + $0xa0] sm:$0xff] %vm4054_vm2, %v14381_v25  ;;  %v3695_v23 = vpack.c.bf16 %v3640_v49, %v3639_v54  ;;  %v3211_v54 = vld [vmem:[#allocation2 + $0x170] sm:$0xff] }
 0x406   :  { %v2262_v8 = vpop.f32.mrf.mxu0  ;;  %4625 = vst.msk [vmem:[#allocation3 + $0xa8] sm:$0xff] %vm4054_vm2, %v14381_v25 }
 0x407   :  { %v11179_v17 = vadd.f32 %v2260_v58, %v1896_v51  ;;  %v3264_v58 = vpack.c.bf16 %v3209_v5, %v3208_v7  ;;  %4626 = vst.msk [vmem:[#allocation3 + $0xb0] sm:$0xff] %vm4054_vm2, %v14381_v25 }
 0x408   :  { %4627 = vst.msk [vmem:[#allocation3 + $0xb8] sm:$0xff] %vm4054_vm2, %v14381_v25 }
 0x409   :  { %14385 = vst [vmem:[#allocation32_spill] sm:$0xff] %v11179_v17 }
 0x40a   :  { %v1400_v34 = vpop.f32.mrf.mxu2  ;;  %4628 = vst.msk [vmem:[#allocation3 + $0xc0] sm:$0xff] %vm4054_vm2, %v14381_v25 }
 0x40b   :  { %v1831_v14 = vpop.f32.mrf.mxu3  ;;  %v1466_v3 = vadd.f32 %v1400_v34, %v14386_v6  ;;  %4629 = vst.msk [vmem:[#allocation3 + $0xc8] sm:$0xff] %vm4054_vm2, %v14381_v25  ;;  %v2780_v34 = vld [vmem:[#allocation2 + $0x16f] sm:$0xff] }
 0x40c   :  { %4630 = vst.msk [vmem:[#allocation3 + $0xd0] sm:$0xff] %vm4054_vm2, %v14381_v25 }
 0x40d   :  { %v1897_v11 = vadd.f32 %v1831_v14, %v1466_v3  ;;  %4631 = vst.msk [vmem:[#allocation3 + $0xd8] sm:$0xff] %vm4054_vm2, %v14381_v25  ;;  %v3210_v14 = vld [vmem:[#allocation2 + $0x168] sm:$0xff] }
 0x40e   :  { %v3830_v52 = vpop.f32.mrf.mxu0  ;;  %4632 = vst.msk [vmem:[#allocation3 + $0xe0] sm:$0xff] %vm4054_vm2, %v14381_v25  ;;  %v3641_v3 = vld [vmem:[#allocation2 + $0x169] sm:$0xff] }
 0x40f   :  { %9410 = vmatmul.msk.bf16.gmra.mxu2 %vm28_vm1, %v2833_v32  ;;  %v11200_v1 = vadd.f32 %v2262_v8, %v1897_v11  ;;  %4633 = vst.msk [vmem:[#allocation3 + $0xe8] sm:$0xff] %vm4054_vm2, %v14381_v25  ;;  %v3642_v32 = vld [vmem:[#allocation2 + $0x171] sm:$0xff] }
 0x410   :  { %9443 = vmatmul.msk.bf16.gmra.mxu3 %vm28_vm1, %v3264_v58  ;;  %4634 = vst.msk [vmem:[#allocation3 + $0xf0] sm:$0xff] %vm4054_vm2, %v14381_v25 }
 0x411   :  { %14387 = vst [vmem:[#allocation33_spill] sm:$0xff] %v11200_v1  ;;  %9476 = vmatmul.msk.bf16.gmra.mxu0 %vm28_vm1, %v3695_v23  ;;  %v3265_v23 = vpack.c.bf16 %v3211_v54, %v3210_v14  ;;  %v2781_v54 = vld [vmem:[#allocation2 + $0x187] sm:$0xff] }
 0x412   :  { %v2968_v51 = vpop.f32.mrf.mxu2  ;;  %4635 = vst.msk [vmem:[#allocation3 + $0xf8] sm:$0xff] %vm4054_vm2, %v14381_v25 }
 0x413   :  { %v3399_v10 = vpop.f32.mrf.mxu3  ;;  %v3128_v16 = vadd.f32 %v2968_v51, %v10807_v33  ;;  %v2779_v33 = vld [vmem:[#allocation2 + $0x167] sm:$0xff]  ;;  %4636 = vst.msk [vmem:[#allocation3 + $0x100] sm:$0xff] %vm4054_vm2, %v14381_v25  ;;  %v3696_v51 = vpack.c.bf16 %v3642_v32, %v3641_v3 }
 0x414   :  { %4637 = vst.msk [vmem:[#allocation3 + $0x108] sm:$0xff] %vm4054_vm2, %v14381_v25  ;;  %v2834_v11 = vpack.c.bf16 %v2780_v34, %v2779_v33 }
 0x415   :  { %v3559_v8 = vadd.f32 %v3399_v10, %v3128_v16  ;;  %4638 = vst.msk [vmem:[#allocation3 + $0x110] sm:$0xff] %vm4054_vm2, %v14381_v25 }
 0x416   :  { %v3832_v7 = vpop.f32.mrf.mxu0  ;;  %4639 = vst.msk [vmem:[#allocation3 + $0x118] sm:$0xff] %vm4054_vm2, %v14381_v25 }
 0x417   :  { %v11220_v5 = vadd.f32 %v3830_v52, %v3559_v8  ;;  %4640 = vst.msk [vmem:[#allocation3 + $0x120] sm:$0xff] %vm4054_vm2, %v14381_v25 }
 0x418   :  { %4641 = vst.msk [vmem:[#allocation3 + $0x128] sm:$0xff] %vm4054_vm2, %v14381_v25 }
 0x419   :  { %14388 = vst [vmem:[#allocation34_spill] sm:$0xff] %v11220_v5 }
 0x41a   :  { %v2970_v49 = vpop.f32.mrf.mxu2  ;;  %4642 = vst.msk [vmem:[#allocation3 + $0x130] sm:$0xff] %vm4054_vm2, %v14381_v25 }
 0x41b   :  { %v3401_v6 = vpop.f32.mrf.mxu3  ;;  %v3129_v58 = vadd.f32 %v2970_v49, %v10812_v36  ;;  %4643 = vst.msk [vmem:[#allocation3 + $0x138] sm:$0xff] %vm4054_vm2, %v14381_v25  ;;  %v3212_v49 = vld [vmem:[#allocation2 + $0x188] sm:$0xff] }
 0x41c   :  { %4644 = vst.msk [vmem:[#allocation3 + $0x140] sm:$0xff] %vm4054_vm2, %v14381_v25 }
 0x41d   :  { %v3560_v52 = vadd.f32 %v3401_v6, %v3129_v58  ;;  %4645 = vst.msk [vmem:[#allocation3 + $0x148] sm:$0xff] %vm4054_vm2, %v14381_v25  ;;  %v3213_v6 = vld [vmem:[#allocation2 + $0x190] sm:$0xff] }
 0x41e   :  { %v3835_v10 = vpop.f32.mrf.mxu0  ;;  %4646 = vst.msk [vmem:[#allocation3 + $0x150] sm:$0xff] %vm4054_vm2, %v14381_v25  ;;  %v3643_v58 = vld [vmem:[#allocation2 + $0x189] sm:$0xff] }
 0x41f   :  { %v11241_v16 = vadd.f32 %v3832_v7, %v3560_v52  ;;  %9411 = vmatmul.msk.bf16.gmra.mxu2 %vm28_vm1, %v2834_v11  ;;  %4647 = vst.msk [vmem:[#allocation3 + $0x158] sm:$0xff] %vm4054_vm2, %v14381_v25  ;;  %v3644_v11 = vld [vmem:[#allocation2 + $0x191] sm:$0xff] }
 0x420   :  { %9444 = vmatmul.msk.bf16.gmra.mxu3 %vm28_vm1, %v3265_v23  ;;  %4648 = vst.msk [vmem:[#allocation3 + $0x160] sm:$0xff] %vm4054_vm2, %v14381_v25 }
 0x421   :  { %14389 = vst [vmem:[#allocation35_spill] sm:$0xff] %v11241_v16  ;;  %9477 = vmatmul.msk.bf16.gmra.mxu0 %vm28_vm1, %v3696_v51  ;;  %v3266_v51 = vpack.c.bf16 %v3213_v6, %v3212_v49  ;;  %v2783_v6 = vld [vmem:[#allocation2 + $0x1a7] sm:$0xff] }
 0x422   :  { %v2973_v36 = vpop.f32.mrf.mxu2  ;;  %4649 = vst.msk [vmem:[#allocation3 + $0x168] sm:$0xff] %vm4054_vm2, %v14381_v25 }
 0x423   :  { %v3404_v8 = vpop.f32.mrf.mxu3  ;;  %v3130_v7 = vadd.f32 %v2973_v36, %v10818_v55  ;;  %4650 = vst.msk [vmem:[#allocation3 + $0x170] sm:$0xff] %vm4054_vm2, %v14381_v25  ;;  %v2782_v55 = vld [vmem:[#allocation2 + $0x18f] sm:$0xff]  ;;  %v3697_v36 = vpack.c.bf16 %v3644_v11, %v3643_v58 }
 0x424   :  { %4651 = vst.msk [vmem:[#allocation3 + $0x178] sm:$0xff] %vm4054_vm2, %v14381_v25  ;;  %v2835_v52 = vpack.c.bf16 %v2782_v55, %v2781_v54 }
 0x425   :  { %v3561_v33 = vadd.f32 %v3404_v8, %v3130_v7  ;;  %4652 = vst.msk [vmem:[#allocation3 + $0x180] sm:$0xff] %vm4054_vm2, %v14381_v25 }
 0x426   :  { %v3837_v34 = vpop.f32.mrf.mxu0  ;;  %4653 = vst.msk [vmem:[#allocation3 + $0x188] sm:$0xff] %vm4054_vm2, %v14381_v25 }
 0x427   :  { %v11263_v14 = vadd.f32 %v3835_v10, %v3561_v33  ;;  %4654 = vst.msk [vmem:[#allocation3 + $0x190] sm:$0xff] %vm4054_vm2, %v14381_v25 }
 0x428   :  { %4655 = vst.msk [vmem:[#allocation3 + $0x198] sm:$0xff] %vm4054_vm2, %v14381_v25 }
 0x429   :  { %14390 = vst [vmem:[#allocation36_spill] sm:$0xff] %v11263_v14 }
 0x42a   :  { %v2975_v3 = vpop.f32.mrf.mxu2  ;;  %4656 = vst.msk [vmem:[#allocation3 + $0x1a0] sm:$0xff] %vm4054_vm2, %v14381_v25 }
 0x42b   :  { %v3406_v32 = vpop.f32.mrf.mxu3  ;;  %v3131_v23 = vadd.f32 %v2975_v3, %v10824_v12  ;;  %4657 = vst.msk [vmem:[#allocation3 + $0x1a8] sm:$0xff] %vm4054_vm2, %v14381_v25  ;;  %v3214_v3 = vld [vmem:[#allocation2 + $0x1a8] sm:$0xff] }
 0x42c   :  { %4658 = vst.msk [vmem:[#allocation3 + $0x1b0] sm:$0xff] %vm4054_vm2, %v14381_v25 }
 0x42d   :  { %v3562_v10 = vadd.f32 %v3406_v32, %v3131_v23  ;;  %4659 = vst.msk [vmem:[#allocation3 + $0x1b8] sm:$0xff] %vm4054_vm2, %v14381_v25  ;;  %v3215_v32 = vld [vmem:[#allocation2 + $0x1b0] sm:$0xff] }
 0x42e   :  { %v3840_v8 = vpop.f32.mrf.mxu0  ;;  %4660 = vst.msk [vmem:[#allocation3 + $0x1c0] sm:$0xff] %vm4054_vm2, %v14381_v25  ;;  %v3645_v23 = vld [vmem:[#allocation2 + $0x1a9] sm:$0xff] }
 0x42f   :  { %v11282_v7 = vadd.f32 %v3837_v34, %v3562_v10  ;;  %9412 = vmatmul.msk.bf16.gmra.mxu2 %vm28_vm1, %v2835_v52  ;;  %4661 = vst.msk [vmem:[#allocation3 + $0x1c8] sm:$0xff] %vm4054_vm2, %v14381_v25  ;;  %v3646_v52 = vld [vmem:[#allocation2 + $0x1b1] sm:$0xff] }
 0x430   :  { %9445 = vmatmul.msk.bf16.gmra.mxu3 %vm28_vm1, %v3266_v51  ;;  %4662 = vst.msk [vmem:[#allocation3 + $0x1d0] sm:$0xff] %vm4054_vm2, %v14381_v25 }
 0x431   :  { %14391 = vst [vmem:[#allocation37_spill] sm:$0xff] %v11282_v7  ;;  %9478 = vmatmul.msk.bf16.gmra.mxu0 %vm28_vm1, %v3697_v36  ;;  %v3267_v36 = vpack.c.bf16 %v3215_v32, %v3214_v3  ;;  %v2785_v32 = vld [vmem:[#allocation2 + $0x1c7] sm:$0xff] }
 0x432   :  { %v2978_v12 = vpop.f32.mrf.mxu2  ;;  %4663 = vst.msk [vmem:[#allocation3 + $0x1d8] sm:$0xff] %vm4054_vm2, %v14381_v25 }
 0x433   :  { %v3409_v33 = vpop.f32.mrf.mxu3  ;;  %v3132_v34 = vadd.f32 %v2978_v12, %v10830_v63  ;;  %4664 = vst.msk [vmem:[#allocation3 + $0x1e0] sm:$0xff] %vm4054_vm2, %v14381_v25  ;;  %v2784_v63 = vld [vmem:[#allocation2 + $0x1af] sm:$0xff]  ;;  %v3698_v12 = vpack.c.bf16 %v3646_v52, %v3645_v23 }
 0x434   :  { %4665 = vst.msk [vmem:[#allocation3 + $0x1e8] sm:$0xff] %vm4054_vm2, %v14381_v25  ;;  %v2836_v10 = vpack.c.bf16 %v2784_v63, %v2783_v6 }
 0x435   :  { %v3563_v54 = vadd.f32 %v3409_v33, %v3132_v34  ;;  %4666 = vst.msk [vmem:[#allocation3 + $0x1f0] sm:$0xff] %vm4054_vm2, %v14381_v25 }
 0x436   :  { %v3842_v55 = vpop.f32.mrf.mxu0  ;;  %4667 = vst.msk [vmem:[#allocation3 + $0x1f8] sm:$0xff] %vm4054_vm2, %v14381_v25 }
 0x437   :  { %v11304_v49 = vadd.f32 %v3840_v8, %v3563_v54  ;;  %4668 = vst.msk [vmem:[#allocation3 + $0x200] sm:$0xff] %vm4054_vm2, %v14381_v25 }
 0x438   :  { %4669 = vst.msk [vmem:[#allocation3 + $0x208] sm:$0xff] %vm4054_vm2, %v14381_v25 }
 0x439   :  { %14392 = vst [vmem:[#allocation39_spill] sm:$0xff] %v11304_v49 }
 0x43a   :  { %4670 = vst.msk [vmem:[#allocation3 + $0x210] sm:$0xff] %vm4054_vm2, %v14381_v25  ;;  %v2980_v58 = vpop.f32.mrf.mxu2 }
 0x43b   :  { %v3411_v11 = vpop.f32.mrf.mxu3  ;;  %4671 = vst.msk [vmem:[#allocation3 + $0x218] sm:$0xff] %vm4054_vm2, %v14381_v25  ;;  %v3133_v51 = vadd.f32 %v2980_v58, %v10836_v61  ;;  %v3216_v58 = vld [vmem:[#allocation2 + $0x1c8] sm:$0xff] }
 0x43c   :  { %4672 = vst.msk [vmem:[#allocation3 + $0x220] sm:$0xff] %vm4054_vm2, %v14381_v25 }
 0x43d   :  { %4673 = vst.msk [vmem:[#allocation3 + $0x228] sm:$0xff] %vm4054_vm2, %v14381_v25  ;;  %v3564_v8 = vadd.f32 %v3411_v11, %v3133_v51  ;;  %v3217_v11 = vld [vmem:[#allocation2 + $0x1d0] sm:$0xff] }
 0x43e   :  { %4674 = vst.msk [vmem:[#allocation3 + $0x230] sm:$0xff] %vm4054_vm2, %v14381_v25  ;;  %v3845_v33 = vpop.f32.mrf.mxu0  ;;  %v3647_v51 = vld [vmem:[#allocation2 + $0x1c9] sm:$0xff] }
 0x43f   :  { %4675 = vst.msk [vmem:[#allocation3 + $0x238] sm:$0xff] %vm4054_vm2, %v14381_v25  ;;  %v11323_v34 = vadd.f32 %v3842_v55, %v3564_v8  ;;  %9413 = vmatmul.msk.bf16.gmra.mxu2 %vm28_vm1, %v2836_v10  ;;  %v3648_v10 = vld [vmem:[#allocation2 + $0x1d1] sm:$0xff] }
 0x440   :  { %9446 = vmatmul.msk.bf16.gmra.mxu3 %vm28_vm1, %v3267_v36  ;;  %4676 = vst.msk [vmem:[#allocation3 + $0x240] sm:$0xff] %vm4054_vm2, %v14381_v25 }
 0x441   :  { %14393 = vst [vmem:[#allocation41_spill] sm:$0xff] %v11323_v34  ;;  %9479 = vmatmul.msk.bf16.gmra.mxu0 %vm28_vm1, %v3698_v12  ;;  %v3268_v12 = vpack.c.bf16 %v3217_v11, %v3216_v58  ;;  %v2787_v11 = vld [vmem:[#allocation2 + $0x1e7] sm:$0xff] }
 0x442   :  { %4677 = vst.msk [vmem:[#allocation3 + $0x248] sm:$0xff] %vm4054_vm2, %v14381_v25  ;;  %v2983_v61 = vpop.f32.mrf.mxu2 }
 0x443   :  { %4678 = vst.msk [vmem:[#allocation3 + $0x250] sm:$0xff] %vm4054_vm2, %v14381_v25  ;;  %v3414_v54 = vpop.f32.mrf.mxu3  ;;  %v3134_v55 = vadd.f32 %v2983_v61, %v10842_v60  ;;  %v2786_v60 = vld [vmem:[#allocation2 + $0x1cf] sm:$0xff]  ;;  %v3699_v61 = vpack.c.bf16 %v3648_v10, %v3647_v51 }
 0x444   :  { %4679 = vst.msk [vmem:[#allocation3 + $0x258] sm:$0xff] %vm4054_vm2, %v14381_v25  ;;  %v2837_v8 = vpack.c.bf16 %v2786_v60, %v2785_v32 }
 0x445   :  { %4680 = vst.msk [vmem:[#allocation3 + $0x260] sm:$0xff] %vm4054_vm2, %v14381_v25  ;;  %v3565_v6 = vadd.f32 %v3414_v54, %v3134_v55 }
 0x446   :  { %4681 = vst.msk [vmem:[#allocation3 + $0x268] sm:$0xff] %vm4054_vm2, %v14381_v25  ;;  %v3847_v63 = vpop.f32.mrf.mxu0 }
 0x447   :  { %4682 = vst.msk [vmem:[#allocation3 + $0x270] sm:$0xff] %vm4054_vm2, %v14381_v25  ;;  %v11345_v3 = vadd.f32 %v3845_v33, %v3565_v6 }
 0x448   :  { %4683 = vst.msk [vmem:[#allocation3 + $0x278] sm:$0xff] %vm4054_vm2, %v14381_v25 }
 0x449   :  { %14394 = vst [vmem:[#allocation42_spill] sm:$0xff] %v11345_v3 }
 0x44a   :  { %4684 = vst.msk [vmem:[#allocation3 + $0x280] sm:$0xff] %vm4054_vm2, %v14381_v25  ;;  %v2985_v23 = vpop.f32.mrf.mxu2 }
 0x44b   :  { %4685 = vst.msk [vmem:[#allocation3 + $0x288] sm:$0xff] %vm4054_vm2, %v14381_v25  ;;  %v3416_v52 = vpop.f32.mrf.mxu3  ;;  %v3135_v36 = vadd.f32 %v2985_v23, %v10848_v56  ;;  %v3218_v23 = vld [vmem:[#allocation2 + $0x1e8] sm:$0xff] }
 0x44c   :  { %4686 = vst.msk [vmem:[#allocation3 + $0x290] sm:$0xff] %vm4054_vm2, %v14381_v25 }
 0x44d   :  { %4687 = vst.msk [vmem:[#allocation3 + $0x298] sm:$0xff] %vm4054_vm2, %v14381_v25  ;;  %v3566_v33 = vadd.f32 %v3416_v52, %v3135_v36  ;;  %v3219_v52 = vld [vmem:[#allocation2 + $0x1f0] sm:$0xff] }
 0x44e   :  { %4688 = vst.msk [vmem:[#allocation3 + $0x2a0] sm:$0xff] %vm4054_vm2, %v14381_v25  ;;  %v3850_v54 = vpop.f32.mrf.mxu0  ;;  %v3649_v36 = vld [vmem:[#allocation2 + $0x1e9] sm:$0xff] }
 0x44f   :  { %4689 = vst.msk [vmem:[#allocation3 + $0x2a8] sm:$0xff] %vm4054_vm2, %v14381_v25  ;;  %v11364_v55 = vadd.f32 %v3847_v63, %v3566_v33  ;;  %9414 = vmatmul.msk.bf16.gmra.mxu2 %vm28_vm1, %v2837_v8  ;;  %v3650_v8 = vld [vmem:[#allocation2 + $0x1f1] sm:$0xff] }
 0x450   :  { %4690 = vst.msk [vmem:[#allocation3 + $0x2b0] sm:$0xff] %vm4054_vm2, %v14381_v25  ;;  %9447 = vmatmul.msk.bf16.gmra.mxu3 %vm28_vm1, %v3268_v12 }
 0x451   :  { %4691 = vst.msk [vmem:[#allocation3 + $0x2b8] sm:$0xff] %vm4054_vm2, %v14381_v25  ;;  %9480 = vmatmul.msk.bf16.gmra.mxu0 %vm28_vm1, %v3699_v61  ;;  %v3269_v61 = vpack.c.bf16 %v3219_v52, %v3218_v23  ;;  %v9502_v23 = vld [vmem:[%s14195_s4 + $0x30] sm:$0xff] }
 0x452   :  { %14395 = vst [vmem:[#allocation43_spill] sm:$0xff] %v11364_v55  ;;  %v2988_v56 = vpop.f32.mrf.mxu2 }
 0x453   :  { %4692 = vst.msk [vmem:[#allocation3 + $0x2c0] sm:$0xff] %vm4054_vm2, %v14381_v25  ;;  %v3419_v6 = vpop.f32.mrf.mxu3  ;;  %v3136_v63 = vadd.f32 %v2988_v56, %v10862_v43  ;;  %v2788_v43 = vld [vmem:[#allocation2 + $0x1ef] sm:$0xff]  ;;  %v3700_v56 = vpack.c.bf16 %v3650_v8, %v3649_v36 }
 0x454   :  { %4693 = vst.msk [vmem:[#allocation3 + $0x2c8] sm:$0xff] %vm4054_vm2, %v14381_v25  ;;  %v2838_v33 = vpack.c.bf16 %v2788_v43, %v2787_v11  ;;  %v2790_v36 = vld [vmem:[#allocation2 + $0x20f] sm:$0xff] }
 0x455   :  { %4694 = vst.msk [vmem:[#allocation3 + $0x2d0] sm:$0xff] %vm4054_vm2, %v14381_v25  ;;  %v3567_v32 = vadd.f32 %v3419_v6, %v3136_v63  ;;  %v3220_v8 = vld [vmem:[#allocation2 + $0x208] sm:$0xff] }
 0x456   :  { %4695 = vst.msk [vmem:[#allocation3 + $0x2d8] sm:$0xff] %vm4054_vm2, %v14381_v25  ;;  %v3852_v60 = vpop.f32.mrf.mxu0 }
 0x457   :  { %4696 = vst.msk [vmem:[#allocation3 + $0x2e0] sm:$0xff] %vm4054_vm2, %v14381_v25  ;;  %v11386_v58 = vadd.f32 %v3850_v54, %v3567_v32 }
 0x458   :  { %4697 = vst.msk [vmem:[#allocation3 + $0x2e8] sm:$0xff] %vm4054_vm2, %v14381_v25 }
 0x459   :  { %4698 = vst.msk [vmem:[#allocation3 + $0x2f0] sm:$0xff] %vm4054_vm2, %v14381_v25 }
 0x45a   :  { %4699 = vst.msk [vmem:[#allocation3 + $0x2f8] sm:$0xff] %vm4054_vm2, %v14381_v25  ;;  %v2990_v51 = vpop.f32.mrf.mxu2 }
 0x45b   :  { %14396 = vst [vmem:[#allocation44_spill] sm:$0xff] %v11386_v58  ;;  %v3421_v10 = vpop.f32.mrf.mxu3  ;;  %v3137_v12 = vadd.f32 %v2990_v51, %v10868_v9  ;;  %v2789_v51 = vld [vmem:[#allocation2 + $0x207] sm:$0xff] }
 0x45c   :  { %4700 = vst.msk [vmem:[#allocation3 + $0x300] sm:$0xff] %vm4054_vm2, %v14381_v25 }
 0x45d   :  { %4701 = vst.msk [vmem:[#allocation3 + $0x308] sm:$0xff] %vm4054_vm2, %v14381_v25  ;;  %v3568_v54 = vadd.f32 %v3421_v10, %v3137_v12  ;;  %v3221_v12 = vld [vmem:[#allocation2 + $0x210] sm:$0xff] }
 0x45e   :  { %4702 = vst.msk [vmem:[#allocation3 + $0x310] sm:$0xff] %vm4054_vm2, %v14381_v25  ;;  %v3855_v6 = vpop.f32.mrf.mxu0 }
 0x45f   :  { %4703 = vst.msk [vmem:[#allocation3 + $0x318] sm:$0xff] %vm4054_vm2, %v14381_v25  ;;  %v11405_v63 = vadd.f32 %v3852_v60, %v3568_v54  ;;  %9415 = vmatmul.msk.bf16.gmra.mxu2 %vm28_vm1, %v2838_v33  ;;  %v3651_v54 = vld [vmem:[#allocation2 + $0x209] sm:$0xff] }
 0x460   :  { %4704 = vst.msk [vmem:[#allocation3 + $0x320] sm:$0xff] %vm4054_vm2, %v14381_v25  ;;  %9448 = vmatmul.msk.bf16.gmra.mxu3 %vm28_vm1, %v3269_v61 }
 0x461   :  { %4705 = vst.msk [vmem:[#allocation3 + $0x328] sm:$0xff] %vm4054_vm2, %v14381_v25  ;;  %9481 = vmatmul.msk.bf16.gmra.mxu0 %vm28_vm1, %v3700_v56  ;;  %v3652_v56 = vld [vmem:[#allocation2 + $0x211] sm:$0xff] }
 0x462   :  { %4706 = vst.msk [vmem:[#allocation3 + $0x330] sm:$0xff] %vm4054_vm2, %v14381_v25  ;;  %v2993_v9 = vpop.f32.mrf.mxu2 }
 0x463   :  { %4707 = vst.msk [vmem:[#allocation3 + $0x338] sm:$0xff] %vm4054_vm2, %v14381_v25  ;;  %v3424_v32 = vpop.f32.mrf.mxu3  ;;  %v3138_v60 = vadd.f32 %v2993_v9, %v10874_v42  ;;  %v9503_v42 = vld [vmem:[%s14195_s4 + $0x38] sm:$0xff]  ;;  %v2839_v9 = vpack.c.bf16 %v2790_v36, %v2789_v51 }
 0x464   :  { %14397 = vst [vmem:[#allocation45_spill] sm:$0xff] %v11405_v63  ;;  %v5017_v10 = vpack.c.bf16 %v9503_v42, %v9502_v23 }
 0x465   :  { %4708 = vst.msk [vmem:[#allocation3 + $0x340] sm:$0xff] %vm4054_vm2, %v14381_v25  ;;  %v3569_v11 = vadd.f32 %v3424_v32, %v3138_v60  ;;  %v3270_v32 = vpack.c.bf16 %v3221_v12, %v3220_v8  ;;  %v2791_v12 = vld [vmem:[#allocation2 + $0x227] sm:$0xff] }
 0x466   :  { %4709 = vst.msk [vmem:[#allocation3 + $0x348] sm:$0xff] %vm4054_vm2, %v14381_v25  ;;  %v3857_v43 = vpop.f32.mrf.mxu0  ;;  %5120 = vmatpush.bf16.msra.mxu1 %v5017_v10 }
 0x467   :  { %4710 = vst.msk [vmem:[#allocation3 + $0x350] sm:$0xff] %vm4054_vm2, %v14381_v25  ;;  %v11433_v52 = vadd.f32 %v3855_v6, %v3569_v11  ;;  %v3701_v11 = vpack.c.bf16 %v3652_v56, %v3651_v54 }
 0x468   :  { %4711 = vst.msk [vmem:[#allocation3 + $0x358] sm:$0xff] %vm4054_vm2, %v14381_v25 }
 0x469   :  { %4712 = vst.msk [vmem:[#allocation3 + $0x360] sm:$0xff] %vm4054_vm2, %v14381_v25 }
 0x46a   :  { %4713 = vst.msk [vmem:[#allocation3 + $0x368] sm:$0xff] %vm4054_vm2, %v14381_v25  ;;  %v2995_v33 = vpop.f32.mrf.mxu2 }
 0x46b   :  { %4714 = vst.msk [vmem:[#allocation3 + $0x370] sm:$0xff] %vm4054_vm2, %v14381_v25  ;;  %v3426_v61 = vpop.f32.mrf.mxu3  ;;  %v3139_v6 = vadd.f32 %v2995_v33, %v10880_v13  ;;  %v3222_v33 = vld [vmem:[#allocation2 + $0x228] sm:$0xff] }
 0x46c   :  { %4715 = vst.msk [vmem:[#allocation3 + $0x378] sm:$0xff] %vm4054_vm2, %v14381_v25 }
 0x46d   :  { %14398 = vst [vmem:[#allocation46_spill] sm:$0xff] %v11433_v52  ;;  %v3570_v60 = vadd.f32 %v3426_v61, %v3139_v6  ;;  %v3223_v61 = vld [vmem:[#allocation2 + $0x230] sm:$0xff] }
 0x46e   :  { %4716 = vst.msk [vmem:[#allocation3 + $0x380] sm:$0xff] %vm4054_vm2, %v14381_v25  ;;  %v3860_v23 = vpop.f32.mrf.mxu0  ;;  %v3653_v6 = vld [vmem:[#allocation2 + $0x229] sm:$0xff] }
 0x46f   :  { %4717 = vst.msk [vmem:[#allocation3 + $0x388] sm:$0xff] %vm4054_vm2, %v14381_v25  ;;  %v11452_v42 = vadd.f32 %v3857_v43, %v3570_v60  ;;  %9416 = vmatmul.msk.bf16.gmra.mxu2 %vm28_vm1, %v2839_v9  ;;  %v3654_v9 = vld [vmem:[#allocation2 + $0x231] sm:$0xff] }
 0x470   :  { %4718 = vst.msk [vmem:[#allocation3 + $0x390] sm:$0xff] %vm4054_vm2, %v14381_v25  ;;  %9449 = vmatmul.msk.bf16.gmra.mxu3 %vm28_vm1, %v3270_v32 }
 0x471   :  { %4719 = vst.msk [vmem:[#allocation3 + $0x398] sm:$0xff] %vm4054_vm2, %v14381_v25  ;;  %9482 = vmatmul.msk.bf16.gmra.mxu0 %vm28_vm1, %v3701_v11  ;;  %v3271_v11 = vpack.c.bf16 %v3223_v61, %v3222_v33  ;;  %v2793_v61 = vld [vmem:[#allocation2 + $0x287] sm:$0xff] }
 0x472   :  { %4720 = vst.msk [vmem:[#allocation3 + $0x3a0] sm:$0xff] %vm4054_vm2, %v14381_v25  ;;  %v2998_v13 = vpop.f32.mrf.mxu2 }
 0x473   :  { %4721 = vst.msk [vmem:[#allocation3 + $0x3a8] sm:$0xff] %vm4054_vm2, %v14381_v25  ;;  %v3429_v51 = vpop.f32.mrf.mxu3  ;;  %v3140_v43 = vadd.f32 %v2998_v13, %v10886_v46  ;;  %v2792_v46 = vld [vmem:[#allocation2 + $0x22f] sm:$0xff]  ;;  %v3702_v13 = vpack.c.bf16 %v3654_v9, %v3653_v6 }
 0x474   :  { %4722 = vst.msk [vmem:[#allocation3 + $0x3b0] sm:$0xff] %vm4054_vm2, %v14381_v25  ;;  %v2840_v60 = vpack.c.bf16 %v2792_v46, %v2791_v12 }
 0x475   :  { %4723 = vst.msk [vmem:[#allocation3 + $0x3b8] sm:$0xff] %vm4054_vm2, %v14381_v25  ;;  %v3571_v10 = vadd.f32 %v3429_v51, %v3140_v43 }
 0x476   :  { %14399 = vst [vmem:[#allocation47_spill] sm:$0xff] %v11452_v42  ;;  %v3862_v36 = vpop.f32.mrf.mxu0 }
 0x477   :  { %4724 = vst.msk [vmem:[#allocation3 + $0x3c0] sm:$0xff] %vm4054_vm2, %v14381_v25  ;;  %v11474_v8 = vadd.f32 %v3860_v23, %v3571_v10 }
 0x478   :  { %4725 = vst.msk [vmem:[#allocation3 + $0x3c8] sm:$0xff] %vm4054_vm2, %v14381_v25 }
 0x479   :  { %4726 = vst.msk [vmem:[#allocation3 + $0x3d0] sm:$0xff] %vm4054_vm2, %v14381_v25 }
 0x47a   :  { %4727 = vst.msk [vmem:[#allocation3 + $0x3d8] sm:$0xff] %vm4054_vm2, %v14381_v25  ;;  %v3000_v54 = vpop.f32.mrf.mxu2 }
 0x47b   :  { %4728 = vst.msk [vmem:[#allocation3 + $0x3e0] sm:$0xff] %vm4054_vm2, %v14381_v25  ;;  %v3431_v56 = vpop.f32.mrf.mxu3  ;;  %v3141_v32 = vadd.f32 %v3000_v54, %v10891_v18  ;;  %v2794_v54 = vld [vmem:[#allocation2 + $0x28f] sm:$0xff] }
 0x47c   :  { %4729 = vst.msk [vmem:[#allocation3 + $0x3e8] sm:$0xff] %vm4054_vm2, %v14381_v25 }
 0x47d   :  { %4730 = vst.msk [vmem:[#allocation3 + $0x3f0] sm:$0xff] %vm4054_vm2, %v14381_v25  ;;  %v3572_v23 = vadd.f32 %v3431_v56, %v3141_v32  ;;  %v3224_v56 = vld [vmem:[#allocation2 + $0x288] sm:$0xff] }
 0x47e   :  { %4731 = vst.msk [vmem:[#allocation3 + $0x3f8] sm:$0xff] %vm4054_vm2, %v14381_v25  ;;  %v3865_v51 = vpop.f32.mrf.mxu0  ;;  %v3655_v32 = vld [vmem:[#allocation2 + $0x289] sm:$0xff] }
 0x47f   :  { %14400 = vst [vmem:[#allocation48_spill] sm:$0xff] %v11474_v8  ;;  %v11493_v43 = vadd.f32 %v3862_v36, %v3572_v23  ;;  %9417 = vmatmul.msk.bf16.gmra.mxu2 %vm28_vm1, %v2840_v60  ;;  %v3656_v60 = vld [vmem:[#allocation2 + $0x291] sm:$0xff]  ;;  %v2841_v23 = vpack.c.bf16 %v2794_v54, %v2793_v61  ;;  %v2795_v61 = vld [vmem:[#allocation2 + $0x2a7] sm:$0xff] }
 0x480   :  { %4732 = vst.msk [vmem:[#allocation3 + $0x400] sm:$0xff] %vm4054_vm2, %v14381_v25  ;;  %9450 = vmatmul.msk.bf16.gmra.mxu3 %vm28_vm1, %v3271_v11  ;;  %v2796_v54 = vld [vmem:[#allocation2 + $0x2af] sm:$0xff] }
 0x481   :  { %4733 = vst.msk [vmem:[#allocation3 + $0x408] sm:$0xff] %vm4054_vm2, %v14381_v25  ;;  %9483 = vmatmul.msk.bf16.gmra.mxu0 %vm28_vm1, %v3702_v13 }
 0x482   :  { %4734 = vst.msk [vmem:[#allocation3 + $0x410] sm:$0xff] %vm4054_vm2, %v14381_v25  ;;  %v3003_v18 = vpop.f32.mrf.mxu2 }
 0x483   :  { %4735 = vst.msk [vmem:[#allocation3 + $0x418] sm:$0xff] %vm4054_vm2, %v14381_v25  ;;  %v3434_v10 = vpop.f32.mrf.mxu3  ;;  %v3142_v36 = vadd.f32 %v3003_v18, %v10896_v0  ;;  %v3225_v0 = vld [vmem:[#allocation2 + $0x290] sm:$0xff] }
 0x484   :  { %4736 = vst.msk [vmem:[#allocation3 + $0x420] sm:$0xff] %vm4054_vm2, %v14381_v25  ;;  %v3272_v13 = vpack.c.bf16 %v3225_v0, %v3224_v56  ;;  %v3226_v56 = vld [vmem:[#allocation2 + $0x2a8] sm:$0xff]  ;;  %v3227_v0 = vld [vmem:[#allocation2 + $0x2b0] sm:$0xff] }
 0x485   :  { %4737 = vst.msk [vmem:[#allocation3 + $0x428] sm:$0xff] %vm4054_vm2, %v14381_v25  ;;  %v3573_v12 = vadd.f32 %v3434_v10, %v3142_v36  ;;  %v3703_v10 = vpack.c.bf16 %v3656_v60, %v3655_v32  ;;  %v3658_v32 = vld [vmem:[#allocation2 + $0x2b1] sm:$0xff] }
 0x486   :  { %4738 = vst.msk [vmem:[#allocation3 + $0x430] sm:$0xff] %vm4054_vm2, %v14381_v25  ;;  %v3867_v46 = vpop.f32.mrf.mxu0 }
 0x487   :  { %4739 = vst.msk [vmem:[#allocation3 + $0x438] sm:$0xff] %vm4054_vm2, %v14381_v25  ;;  %v11515_v33 = vadd.f32 %v3865_v51, %v3573_v12 }
 0x488   :  { %14401 = vst [vmem:[#allocation49_spill] sm:$0xff] %v11493_v43 }
 0x489   :  { %4740 = vst.msk [vmem:[#allocation3 + $0x440] sm:$0xff] %vm4054_vm2, %v14381_v25 }
 0x48a   :  { %4741 = vst.msk [vmem:[#allocation3 + $0x448] sm:$0xff] %vm4054_vm2, %v14381_v25  ;;  %v3005_v6 = vpop.f32.mrf.mxu2 }
 0x48b   :  { %4742 = vst.msk [vmem:[#allocation3 + $0x450] sm:$0xff] %vm4054_vm2, %v14381_v25  ;;  %v3436_v9 = vpop.f32.mrf.mxu3  ;;  %v3143_v11 = vadd.f32 %v3005_v6, %v10901_v20 }
 0x48c   :  { %4743 = vst.msk [vmem:[#allocation3 + $0x458] sm:$0xff] %vm4054_vm2, %v14381_v25 }
 0x48d   :  { %4744 = vst.msk [vmem:[#allocation3 + $0x460] sm:$0xff] %vm4054_vm2, %v14381_v25  ;;  %v3574_v18 = vadd.f32 %v3436_v9, %v3143_v11  ;;  %v3657_v9 = vld [vmem:[#allocation2 + $0x2a9] sm:$0xff]  ;;  %v2842_v11 = vpack.c.bf16 %v2796_v54, %v2795_v61 }
 0x48e   :  { %4745 = vst.msk [vmem:[#allocation3 + $0x468] sm:$0xff] %vm4054_vm2, %v14381_v25  ;;  %v3870_v36 = vpop.f32.mrf.mxu0  ;;  %v2797_v61 = vld [vmem:[#allocation2 + $0x2c7] sm:$0xff]  ;;  %v2798_v54 = vld [vmem:[#allocation2 + $0x2cf] sm:$0xff] }
 0x48f   :  { %4746 = vst.msk [vmem:[#allocation3 + $0x470] sm:$0xff] %vm4054_vm2, %v14381_v25  ;;  %v11518_v1 = vadd.f32 %v3867_v46, %v3574_v18  ;;  %9418 = vmatmul.msk.bf16.gmra.mxu2 %vm28_vm1, %v2841_v23  ;;  %v3273_v23 = vpack.c.bf16 %v3227_v0, %v3226_v56  ;;  %v3704_v18 = vpack.c.bf16 %v3658_v32, %v3657_v9  ;;  %v3228_v56 = vld [vmem:[#allocation2 + $0x2c8] sm:$0xff]  ;;  %v3229_v0 = vld [vmem:[#allocation2 + $0x2d0] sm:$0xff] }
 0x490   :  { %4747 = vst.msk [vmem:[#allocation3 + $0x478] sm:$0xff] %vm4054_vm2, %v14381_v25  ;;  %9451 = vmatmul.msk.bf16.gmra.mxu3 %vm28_vm1, %v3272_v13  ;;  %v3660_v9 = vld [vmem:[#allocation2 + $0x2d1] sm:$0xff] }
 0x491   :  { %14402 = vst [vmem:[#allocation50_spill] sm:$0xff] %v11515_v33  ;;  %9484 = vmatmul.msk.bf16.gmra.mxu0 %vm28_vm1, %v3703_v10 }
 0x492   :  { %14403 = vst [vmem:[#allocation51_spill] sm:$0xff] %v11518_v1  ;;  %v3008_v25 = vpop.f32.mrf.mxu2 }
 0x493   :  { %v3439_v51 = vpop.f32.mrf.mxu3  ;;  %v3144_v12 = vadd.f32 %v3008_v25, %v10906_v27 }
 0x495   :  { %v3575_v17 = vadd.f32 %v3439_v51, %v3144_v12 }
 0x496   :  { %v3872_v4 = vpop.f32.mrf.mxu0 }
 0x497   :  { %v11524_v20 = vadd.f32 %v3870_v36, %v3575_v17 }
 0x499   :  { %14404 = vst [vmem:[#allocation52_spill] sm:$0xff] %v11524_v20 }
 0x49a   :  { %v3010_v46 = vpop.f32.mrf.mxu2 }
 0x49b   :  { %v3441_v6 = vpop.f32.mrf.mxu3  ;;  %v3145_v60 = vadd.f32 %v3010_v46, %v10911_v41 }
 0x49d   :  { %v3576_v13 = vadd.f32 %v3441_v6, %v3145_v60  ;;  %v3659_v6 = vld [vmem:[#allocation2 + $0x2c9] sm:$0xff]  ;;  %v2843_v60 = vpack.c.bf16 %v2798_v54, %v2797_v61 }
 0x49e   :  { %v3875_v10 = vpop.f32.mrf.mxu0  ;;  %v2799_v61 = vld [vmem:[#allocation2 + $0x2e7] sm:$0xff]  ;;  %v2800_v54 = vld [vmem:[#allocation2 + $0x2ef] sm:$0xff] }
 0x49f   :  { %v11527_v27 = vadd.f32 %v3872_v4, %v3576_v13  ;;  %9419 = vmatmul.msk.bf16.gmra.mxu2 %vm28_vm1, %v2842_v11  ;;  %v3274_v11 = vpack.c.bf16 %v3229_v0, %v3228_v56  ;;  %v3705_v13 = vpack.c.bf16 %v3660_v9, %v3659_v6  ;;  %v3230_v56 = vld [vmem:[#allocation2 + $0x2e8] sm:$0xff]  ;;  %v3231_v0 = vld [vmem:[#allocation2 + $0x2f0] sm:$0xff] }
 0x4a0   :  { %9452 = vmatmul.msk.bf16.gmra.mxu3 %vm28_vm1, %v3273_v23  ;;  %v3662_v6 = vld [vmem:[#allocation2 + $0x2f1] sm:$0xff] }
 0x4a1   :  { %14405 = vst [vmem:[#allocation53_spill] sm:$0xff] %v11527_v27  ;;  %9485 = vmatmul.msk.bf16.gmra.mxu0 %vm28_vm1, %v3704_v18 }
 0x4a2   :  { %v3013_v17 = vpop.f32.mrf.mxu2 }
 0x4a3   :  { %v3444_v36 = vpop.f32.mrf.mxu3  ;;  %v3146_v25 = vadd.f32 %v3013_v17, %v10916_v22 }
 0x4a5   :  { %v3577_v51 = vadd.f32 %v3444_v36, %v3146_v25 }
 0x4a6   :  { %v3877_v12 = vpop.f32.mrf.mxu0 }
 0x4a7   :  { %v11533_v41 = vadd.f32 %v3875_v10, %v3577_v51 }
 0x4a9   :  { %14406 = vst [vmem:[#allocation54_spill] sm:$0xff] %v11533_v41 }
 0x4aa   :  { %v3015_v4 = vpop.f32.mrf.mxu2 }
 0x4ab   :  { %v3446_v46 = vpop.f32.mrf.mxu3  ;;  %v3147_v32 = vadd.f32 %v3015_v4, %v10921_v57 }
 0x4ad   :  { %v3578_v23 = vadd.f32 %v3446_v46, %v3147_v32  ;;  %v3661_v46 = vld [vmem:[#allocation2 + $0x2e9] sm:$0xff]  ;;  %v2844_v32 = vpack.c.bf16 %v2800_v54, %v2799_v61 }
 0x4ae   :  { %v3880_v18 = vpop.f32.mrf.mxu0  ;;  %v2801_v61 = vld [vmem:[#allocation2 + $0x307] sm:$0xff]  ;;  %v2802_v54 = vld [vmem:[#allocation2 + $0x30f] sm:$0xff] }
 0x4af   :  { %v11536_v22 = vadd.f32 %v3877_v12, %v3578_v23  ;;  %9420 = vmatmul.msk.bf16.gmra.mxu2 %vm28_vm1, %v2843_v60  ;;  %v3275_v60 = vpack.c.bf16 %v3231_v0, %v3230_v56  ;;  %v3706_v23 = vpack.c.bf16 %v3662_v6, %v3661_v46  ;;  %v3232_v56 = vld [vmem:[#allocation2 + $0x308] sm:$0xff]  ;;  %v3233_v0 = vld [vmem:[#allocation2 + $0x310] sm:$0xff] }
 0x4b0   :  { %9453 = vmatmul.msk.bf16.gmra.mxu3 %vm28_vm1, %v3274_v11  ;;  %v3664_v46 = vld [vmem:[#allocation2 + $0x311] sm:$0xff] }
 0x4b1   :  { %14407 = vst [vmem:[#allocation55_spill] sm:$0xff] %v11536_v22  ;;  %9486 = vmatmul.msk.bf16.gmra.mxu0 %vm28_vm1, %v3705_v13 }
 0x4b2   :  { %v3018_v10 = vpop.f32.mrf.mxu2 }
 0x4b3   :  { %v3449_v17 = vpop.f32.mrf.mxu3  ;;  %v3148_v36 = vadd.f32 %v3018_v10, %v10926_v15 }
 0x4b5   :  { %v3579_v25 = vadd.f32 %v3449_v17, %v3148_v36 }
 0x4b6   :  { %v3882_v51 = vpop.f32.mrf.mxu0 }
 0x4b7   :  { %v11542_v57 = vadd.f32 %v3880_v18, %v3579_v25 }
 0x4b9   :  { %14408 = vst [vmem:[#allocation56_spill] sm:$0xff] %v11542_v57 }
 0x4ba   :  { %v3020_v12 = vpop.f32.mrf.mxu2 }
 0x4bb   :  { %v3451_v4 = vpop.f32.mrf.mxu3  ;;  %v3149_v9 = vadd.f32 %v3020_v12, %v10931_v45 }
 0x4bd   :  { %v3580_v11 = vadd.f32 %v3451_v4, %v3149_v9  ;;  %v3663_v4 = vld [vmem:[#allocation2 + $0x309] sm:$0xff]  ;;  %v2845_v9 = vpack.c.bf16 %v2802_v54, %v2801_v61 }
 0x4be   :  { %v3885_v13 = vpop.f32.mrf.mxu0  ;;  %v2803_v61 = vld [vmem:[#allocation2 + $0x327] sm:$0xff]  ;;  %v2804_v54 = vld [vmem:[#allocation2 + $0x32f] sm:$0xff] }
 0x4bf   :  { %v11545_v15 = vadd.f32 %v3882_v51, %v3580_v11  ;;  %9421 = vmatmul.msk.bf16.gmra.mxu2 %vm28_vm1, %v2844_v32  ;;  %v3276_v32 = vpack.c.bf16 %v3233_v0, %v3232_v56  ;;  %v3707_v11 = vpack.c.bf16 %v3664_v46, %v3663_v4  ;;  %v3234_v56 = vld [vmem:[#allocation2 + $0x328] sm:$0xff]  ;;  %v3235_v0 = vld [vmem:[#allocation2 + $0x330] sm:$0xff] }
 0x4c0   :  { %9454 = vmatmul.msk.bf16.gmra.mxu3 %vm28_vm1, %v3275_v60  ;;  %v3666_v4 = vld [vmem:[#allocation2 + $0x331] sm:$0xff] }
 0x4c1   :  { %14409 = vst [vmem:[#allocation57_spill] sm:$0xff] %v11545_v15  ;;  %9487 = vmatmul.msk.bf16.gmra.mxu0 %vm28_vm1, %v3706_v23 }
 0x4c2   :  { %v3023_v18 = vpop.f32.mrf.mxu2 }
 0x4c3   :  { %v3454_v10 = vpop.f32.mrf.mxu3  ;;  %v3150_v17 = vadd.f32 %v3023_v18, %v10936_v50 }
 0x4c5   :  { %v3581_v36 = vadd.f32 %v3454_v10, %v3150_v17 }
 0x4c6   :  { %v3887_v25 = vpop.f32.mrf.mxu0 }
 0x4c7   :  { %v11551_v45 = vadd.f32 %v3885_v13, %v3581_v36 }
 0x4c9   :  { %14410 = vst [vmem:[#allocation58_spill] sm:$0xff] %v11551_v45 }
 0x4ca   :  { %v3025_v51 = vpop.f32.mrf.mxu2 }
 0x4cb   :  { %v3456_v12 = vpop.f32.mrf.mxu3  ;;  %v3151_v6 = vadd.f32 %v3025_v51, %v10941_v39 }
 0x4cd   :  { %v3582_v60 = vadd.f32 %v3456_v12, %v3151_v6  ;;  %v3665_v12 = vld [vmem:[#allocation2 + $0x329] sm:$0xff]  ;;  %v2846_v6 = vpack.c.bf16 %v2804_v54, %v2803_v61 }
 0x4ce   :  { %v3890_v23 = vpop.f32.mrf.mxu0  ;;  %v2805_v61 = vld [vmem:[#allocation2 + $0x347] sm:$0xff]  ;;  %v2806_v54 = vld [vmem:[#allocation2 + $0x34f] sm:$0xff] }
 0x4cf   :  { %v11554_v50 = vadd.f32 %v3887_v25, %v3582_v60  ;;  %9422 = vmatmul.msk.bf16.gmra.mxu2 %vm28_vm1, %v2845_v9  ;;  %v3277_v9 = vpack.c.bf16 %v3235_v0, %v3234_v56  ;;  %v3708_v60 = vpack.c.bf16 %v3666_v4, %v3665_v12  ;;  %v3236_v56 = vld [vmem:[#allocation2 + $0x348] sm:$0xff]  ;;  %v3237_v0 = vld [vmem:[#allocation2 + $0x350] sm:$0xff] }
 0x4d0   :  { %9455 = vmatmul.msk.bf16.gmra.mxu3 %vm28_vm1, %v3276_v32  ;;  %v3668_v12 = vld [vmem:[#allocation2 + $0x351] sm:$0xff] }
 0x4d1   :  { %14411 = vst [vmem:[#allocation59_spill] sm:$0xff] %v11554_v50  ;;  %9488 = vmatmul.msk.bf16.gmra.mxu0 %vm28_vm1, %v3707_v11 }
 0x4d2   :  { %v3028_v13 = vpop.f32.mrf.mxu2 }
 0x4d3   :  { %v3459_v18 = vpop.f32.mrf.mxu3  ;;  %v3152_v10 = vadd.f32 %v3028_v13, %v10946_v2 }
 0x4d5   :  { %v3583_v17 = vadd.f32 %v3459_v18, %v3152_v10 }
 0x4d6   :  { %v3892_v36 = vpop.f32.mrf.mxu0 }
 0x4d7   :  { %v11560_v39 = vadd.f32 %v3890_v23, %v3583_v17 }
 0x4d9   :  { %14412 = vst [vmem:[#allocation60_spill] sm:$0xff] %v11560_v39 }
 0x4da   :  { %v3030_v25 = vpop.f32.mrf.mxu2 }
 0x4db   :  { %v3461_v51 = vpop.f32.mrf.mxu3  ;;  %v3153_v46 = vadd.f32 %v3030_v25, %v10951_v38 }
 0x4dd   :  { %v3584_v32 = vadd.f32 %v3461_v51, %v3153_v46  ;;  %v3667_v51 = vld [vmem:[#allocation2 + $0x349] sm:$0xff]  ;;  %v2847_v46 = vpack.c.bf16 %v2806_v54, %v2805_v61 }
 0x4de   :  { %v3895_v11 = vpop.f32.mrf.mxu0  ;;  %v2807_v61 = vld [vmem:[#allocation2 + $0x367] sm:$0xff]  ;;  %v2808_v54 = vld [vmem:[#allocation2 + $0x36f] sm:$0xff] }
 0x4df   :  { %v11563_v2 = vadd.f32 %v3892_v36, %v3584_v32  ;;  %9423 = vmatmul.msk.bf16.gmra.mxu2 %vm28_vm1, %v2846_v6  ;;  %v3278_v6 = vpack.c.bf16 %v3237_v0, %v3236_v56  ;;  %v3709_v32 = vpack.c.bf16 %v3668_v12, %v3667_v51  ;;  %v3238_v56 = vld [vmem:[#allocation2 + $0x368] sm:$0xff]  ;;  %v3239_v0 = vld [vmem:[#allocation2 + $0x370] sm:$0xff] }
 0x4e0   :  { %9456 = vmatmul.msk.bf16.gmra.mxu3 %vm28_vm1, %v3277_v9  ;;  %v3670_v51 = vld [vmem:[#allocation2 + $0x371] sm:$0xff] }
 0x4e1   :  { %14413 = vst [vmem:[#allocation61_spill] sm:$0xff] %v11563_v2  ;;  %9489 = vmatmul.msk.bf16.gmra.mxu0 %vm28_vm1, %v3708_v60 }
 0x4e2   :  { %v3033_v23 = vpop.f32.mrf.mxu2 }
 0x4e3   :  { %v3464_v13 = vpop.f32.mrf.mxu3  ;;  %v3154_v18 = vadd.f32 %v3033_v23, %v10956_v19 }
 0x4e5   :  { %v3585_v10 = vadd.f32 %v3464_v13, %v3154_v18 }
 0x4e6   :  { %v3897_v17 = vpop.f32.mrf.mxu0 }
 0x4e7   :  { %v11569_v38 = vadd.f32 %v3895_v11, %v3585_v10 }
 0x4e9   :  { %14414 = vst [vmem:[#allocation62_spill] sm:$0xff] %v11569_v38 }
 0x4ea   :  { %v3035_v36 = vpop.f32.mrf.mxu2 }
 0x4eb   :  { %v3466_v25 = vpop.f32.mrf.mxu3  ;;  %v3155_v4 = vadd.f32 %v3035_v36, %v10961_v40 }
 0x4ed   :  { %v3586_v9 = vadd.f32 %v3466_v25, %v3155_v4  ;;  %v3669_v25 = vld [vmem:[#allocation2 + $0x369] sm:$0xff]  ;;  %v2848_v4 = vpack.c.bf16 %v2808_v54, %v2807_v61 }
 0x4ee   :  { %v3900_v60 = vpop.f32.mrf.mxu0  ;;  %v2809_v61 = vld [vmem:[#allocation2 + $0x387] sm:$0xff]  ;;  %v2810_v54 = vld [vmem:[#allocation2 + $0x38f] sm:$0xff] }
 0x4ef   :  { %v11572_v19 = vadd.f32 %v3897_v17, %v3586_v9  ;;  %9424 = vmatmul.msk.bf16.gmra.mxu2 %vm28_vm1, %v2847_v46  ;;  %v3279_v46 = vpack.c.bf16 %v3239_v0, %v3238_v56  ;;  %v3710_v9 = vpack.c.bf16 %v3670_v51, %v3669_v25  ;;  %v3240_v56 = vld [vmem:[#allocation2 + $0x388] sm:$0xff]  ;;  %v3241_v0 = vld [vmem:[#allocation2 + $0x390] sm:$0xff] }
 0x4f0   :  { %9457 = vmatmul.msk.bf16.gmra.mxu3 %vm28_vm1, %v3278_v6  ;;  %v3672_v25 = vld [vmem:[#allocation2 + $0x391] sm:$0xff] }
 0x4f1   :  { %14415 = vst [vmem:[#allocation63_spill] sm:$0xff] %v11572_v19  ;;  %9490 = vmatmul.msk.bf16.gmra.mxu0 %vm28_vm1, %v3709_v32 }
 0x4f2   :  { %v3038_v11 = vpop.f32.mrf.mxu2 }
 0x4f3   :  { %v3469_v23 = vpop.f32.mrf.mxu3  ;;  %v3156_v13 = vadd.f32 %v3038_v11, %v10966_v35 }
 0x4f5   :  { %v3587_v18 = vadd.f32 %v3469_v23, %v3156_v13 }
 0x4f6   :  { %v3902_v10 = vpop.f32.mrf.mxu0 }
 0x4f7   :  { %v11578_v40 = vadd.f32 %v3900_v60, %v3587_v18 }
 0x4f9   :  { %14416 = vst [vmem:[#allocation64_spill] sm:$0xff] %v11578_v40 }
 0x4fa   :  { %v3040_v17 = vpop.f32.mrf.mxu2 }
 0x4fb   :  { %v3471_v36 = vpop.f32.mrf.mxu3  ;;  %v3157_v12 = vadd.f32 %v3040_v17, %v10971_v48 }
 0x4fd   :  { %v3588_v6 = vadd.f32 %v3471_v36, %v3157_v12  ;;  %v3671_v36 = vld [vmem:[#allocation2 + $0x389] sm:$0xff]  ;;  %v2849_v12 = vpack.c.bf16 %v2810_v54, %v2809_v61 }
 0x4fe   :  { %v3905_v32 = vpop.f32.mrf.mxu0  ;;  %v2811_v61 = vld [vmem:[#allocation2 + $0x3a7] sm:$0xff]  ;;  %v2812_v54 = vld [vmem:[#allocation2 + $0x3af] sm:$0xff] }
 0x4ff   :  { %v11581_v35 = vadd.f32 %v3902_v10, %v3588_v6  ;;  %9425 = vmatmul.msk.bf16.gmra.mxu2 %vm28_vm1, %v2848_v4  ;;  %v3280_v4 = vpack.c.bf16 %v3241_v0, %v3240_v56  ;;  %v3711_v6 = vpack.c.bf16 %v3672_v25, %v3671_v36  ;;  %v3242_v56 = vld [vmem:[#allocation2 + $0x3a8] sm:$0xff]  ;;  %v3243_v0 = vld [vmem:[#allocation2 + $0x3b0] sm:$0xff] }
 0x500   :  { %9458 = vmatmul.msk.bf16.gmra.mxu3 %vm28_vm1, %v3279_v46  ;;  %v3674_v36 = vld [vmem:[#allocation2 + $0x3b1] sm:$0xff] }
 0x501   :  { %14417 = vst [vmem:[#allocation65_spill] sm:$0xff] %v11581_v35  ;;  %9491 = vmatmul.msk.bf16.gmra.mxu0 %vm28_vm1, %v3710_v9 }
 0x502   :  { %v3043_v60 = vpop.f32.mrf.mxu2 }
 0x503   :  { %v3474_v11 = vpop.f32.mrf.mxu3  ;;  %v3158_v23 = vadd.f32 %v3043_v60, %v10976_v53 }
 0x505   :  { %v3589_v13 = vadd.f32 %v3474_v11, %v3158_v23 }
 0x506   :  { %v3907_v18 = vpop.f32.mrf.mxu0 }
 0x507   :  { %v11587_v48 = vadd.f32 %v3905_v32, %v3589_v13 }
 0x509   :  { %14418 = vst [vmem:[#allocation66_spill] sm:$0xff] %v11587_v48 }
 0x50a   :  { %v3045_v10 = vpop.f32.mrf.mxu2 }
 0x50b   :  { %v3476_v17 = vpop.f32.mrf.mxu3  ;;  %v3159_v51 = vadd.f32 %v3045_v10, %v10981_v31 }
 0x50d   :  { %v3590_v46 = vadd.f32 %v3476_v17, %v3159_v51  ;;  %v3673_v17 = vld [vmem:[#allocation2 + $0x3a9] sm:$0xff]  ;;  %v2850_v51 = vpack.c.bf16 %v2812_v54, %v2811_v61 }
 0x50e   :  { %v3910_v9 = vpop.f32.mrf.mxu0  ;;  %v2813_v61 = vld [vmem:[#allocation2 + $0x3c7] sm:$0xff]  ;;  %v2814_v54 = vld [vmem:[#allocation2 + $0x3cf] sm:$0xff] }
 0x50f   :  { %v11590_v53 = vadd.f32 %v3907_v18, %v3590_v46  ;;  %9426 = vmatmul.msk.bf16.gmra.mxu2 %vm28_vm1, %v2849_v12  ;;  %v3281_v12 = vpack.c.bf16 %v3243_v0, %v3242_v56  ;;  %v3712_v46 = vpack.c.bf16 %v3674_v36, %v3673_v17  ;;  %v3244_v56 = vld [vmem:[#allocation2 + $0x3c8] sm:$0xff]  ;;  %v3245_v0 = vld [vmem:[#allocation2 + $0x3d0] sm:$0xff] }
 0x510   :  { %9459 = vmatmul.msk.bf16.gmra.mxu3 %vm28_vm1, %v3280_v4  ;;  %v3676_v17 = vld [vmem:[#allocation2 + $0x3d1] sm:$0xff] }
 0x511   :  { %14419 = vst [vmem:[#allocation67_spill] sm:$0xff] %v11590_v53  ;;  %9492 = vmatmul.msk.bf16.gmra.mxu0 %vm28_vm1, %v3711_v6 }
 0x512   :  { %v3048_v32 = vpop.f32.mrf.mxu2 }
 0x513   :  { %v3479_v60 = vpop.f32.mrf.mxu3  ;;  %v3160_v11 = vadd.f32 %v3048_v32, %v10988_v26 }
 0x515   :  { %v3591_v23 = vadd.f32 %v3479_v60, %v3160_v11 }
 0x516   :  { %v3912_v13 = vpop.f32.mrf.mxu0 }
 0x517   :  { %v11596_v31 = vadd.f32 %v3910_v9, %v3591_v23 }
 0x519   :  { %14420 = vst [vmem:[#allocation68_spill] sm:$0xff] %v11596_v31 }
 0x51a   :  { %v3050_v18 = vpop.f32.mrf.mxu2 }
 0x51b   :  { %v3481_v10 = vpop.f32.mrf.mxu3  ;;  %v3161_v25 = vadd.f32 %v3050_v18, %v10992_v30 }
 0x51d   :  { %v3592_v4 = vadd.f32 %v3481_v10, %v3161_v25  ;;  %v3675_v10 = vld [vmem:[#allocation2 + $0x3c9] sm:$0xff]  ;;  %v2851_v25 = vpack.c.bf16 %v2814_v54, %v2813_v61 }
 0x51e   :  { %v3915_v6 = vpop.f32.mrf.mxu0 }
 0x51f   :  { %v11599_v26 = vadd.f32 %v3912_v13, %v3592_v4  ;;  %9427 = vmatmul.msk.bf16.gmra.mxu2 %vm28_vm1, %v2850_v51  ;;  %v3282_v51 = vpack.c.bf16 %v3245_v0, %v3244_v56  ;;  %v2815_v0 = vld [vmem:[#allocation2 + $0x3e7] sm:$0xff] }
 0x520   :  { %9460 = vmatmul.msk.bf16.gmra.mxu3 %vm28_vm1, %v3281_v12  ;;  %v9501_v12 = vld [vmem:[%s14195_s4 + $0x28] sm:$0xff] }
 0x521   :  { %14421 = vst [vmem:[#allocation69_spill] sm:$0xff] %v11599_v26  ;;  %9493 = vmatmul.msk.bf16.gmra.mxu0 %vm28_vm1, %v3712_v46  ;;  %v3713_v46 = vpack.c.bf16 %v3676_v17, %v3675_v10 }
 0x522   :  { %v3053_v9 = vpop.f32.mrf.mxu2 }
 0x523   :  { %v3484_v32 = vpop.f32.mrf.mxu3  ;;  %v3162_v60 = vadd.f32 %v3053_v9, %v10997_v24  ;;  %v9500_v24 = vld [vmem:[%s14195_s4 + $0x20] sm:$0xff] }
 0x525   :  { %v3593_v11 = vadd.f32 %v3484_v32, %v3162_v60 }
 0x526   :  { %v3917_v23 = vpop.f32.mrf.mxu0 }
 0x527   :  { %v11605_v30 = vadd.f32 %v3915_v6, %v3593_v11  ;;  %v5016_v6 = vpack.c.bf16 %v9501_v12, %v9500_v24 }
 0x529   :  { %14422 = vst [vmem:[#allocation70_spill] sm:$0xff] %v11605_v30  ;;  %5121 = vmatpush.bf16.msra.mxu1 %v5016_v6 }
 0x52a   :  { %v3055_v13 = vpop.f32.mrf.mxu2 }
 0x52b   :  { %v3486_v18 = vpop.f32.mrf.mxu3  ;;  %v3163_v36 = vadd.f32 %v3055_v13, %v11002_v44  ;;  %v2816_v13 = vld [vmem:[#allocation2 + $0x3ef] sm:$0xff] }
 0x52c   :  { %v2852_v24 = vpack.c.bf16 %v2816_v13, %v2815_v0  ;;  %v2817_v0 = vld [vmem:[#allocation2 + $0x407] sm:$0xff]  ;;  %v2818_v13 = vld [vmem:[#allocation2 + $0x40f] sm:$0xff] }
 0x52d   :  { %v3594_v4 = vadd.f32 %v3486_v18, %v3163_v36  ;;  %v3246_v18 = vld [vmem:[#allocation2 + $0x3e8] sm:$0xff] }
 0x52e   :  { %v3920_v9 = vpop.f32.mrf.mxu0  ;;  %v3677_v36 = vld [vmem:[#allocation2 + $0x3e9] sm:$0xff] }
 0x52f   :  { %v11614_v32 = vadd.f32 %v3917_v23, %v3594_v4  ;;  %9428 = vmatmul.msk.bf16.gmra.mxu2 %vm28_vm1, %v2851_v25  ;;  %v3247_v23 = vld [vmem:[#allocation2 + $0x3f0] sm:$0xff] }
 0x530   :  { %9461 = vmatmul.msk.bf16.gmra.mxu3 %vm28_vm1, %v3282_v51  ;;  %v3678_v25 = vld [vmem:[#allocation2 + $0x3f1] sm:$0xff]  ;;  %v3283_v12 = vpack.c.bf16 %v3247_v23, %v3246_v18  ;;  %v3248_v18 = vld [vmem:[#allocation2 + $0x408] sm:$0xff] }
 0x531   :  { %14423 = vst [vmem:[#allocation71_spill] sm:$0xff] %v11614_v32  ;;  %9494 = vmatmul.msk.bf16.gmra.mxu0 %vm28_vm1, %v3713_v46  ;;  %v3714_v46 = vpack.c.bf16 %v3678_v25, %v3677_v36  ;;  %v3249_v23 = vld [vmem:[#allocation2 + $0x410] sm:$0xff] }
 0x532   :  { %v3058_v44 = vpop.f32.mrf.mxu2  ;;  %v3680_v36 = vld [vmem:[#allocation2 + $0x411] sm:$0xff] }
 0x533   :  { %v3489_v60 = vpop.f32.mrf.mxu3  ;;  %v3164_v11 = vadd.f32 %v3058_v44, %v11007_v47 }
 0x535   :  { %v3595_v61 = vadd.f32 %v3489_v60, %v3164_v11 }
 0x536   :  { %v3922_v54 = vpop.f32.mrf.mxu0 }
 0x537   :  { %v11620_v56 = vadd.f32 %v3920_v9, %v3595_v61 }
 0x539   :  { %14424 = vst [vmem:[#allocation72_spill] sm:$0xff] %v11620_v56 }
 0x53a   :  { %v3060_v10 = vpop.f32.mrf.mxu2 }
 0x53b   :  { %v3491_v17 = vpop.f32.mrf.mxu3  ;;  %v3165_v51 = vadd.f32 %v3060_v10, %v11012_v21 }
 0x53d   :  { %v3596_v4 = vadd.f32 %v3491_v17, %v3165_v51  ;;  %v3679_v17 = vld [vmem:[#allocation2 + $0x409] sm:$0xff]  ;;  %v2853_v51 = vpack.c.bf16 %v2818_v13, %v2817_v0 }
 0x53e   :  { %v3925_v6 = vpop.f32.mrf.mxu0  ;;  %v2819_v0 = vld [vmem:[#allocation2 + $0x427] sm:$0xff]  ;;  %v2820_v13 = vld [vmem:[#allocation2 + $0x42f] sm:$0xff] }
 0x53f   :  { %v11623_v47 = vadd.f32 %v3922_v54, %v3596_v4  ;;  %9429 = vmatmul.msk.bf16.gmra.mxu2 %vm28_vm1, %v2852_v24  ;;  %v3284_v24 = vpack.c.bf16 %v3249_v23, %v3248_v18  ;;  %v3715_v4 = vpack.c.bf16 %v3680_v36, %v3679_v17  ;;  %v3250_v18 = vld [vmem:[#allocation2 + $0x428] sm:$0xff]  ;;  %v3682_v17 = vld [vmem:[#allocation2 + $0x431] sm:$0xff]  ;;  %v2854_v36 = vpack.c.bf16 %v2820_v13, %v2819_v0 }
 0x540   :  { %9462 = vmatmul.msk.bf16.gmra.mxu3 %vm28_vm1, %v3283_v12  ;;  %v2822_v0 = vld [vmem:[#allocation2 + $0x44f] sm:$0xff] }
 0x541   :  { %9495 = vmatmul.msk.bf16.gmra.mxu0 %vm28_vm1, %v3714_v46  ;;  %v3252_v13 = vld [vmem:[#allocation2 + $0x448] sm:$0xff] }
 0x542   :  { %v3063_v9 = vpop.f32.mrf.mxu2 }
 0x543   :  { %v3494_v44 = vpop.f32.mrf.mxu3  ;;  %v3166_v60 = vadd.f32 %v3063_v9, %v11017_v37 }
 0x545   :  { %v3597_v11 = vadd.f32 %v3494_v44, %v3166_v60  ;;  %v14425_v44 = vld [vmem:[#allocation40_spill] sm:$0xff] }
 0x546   :  { %v3927_v61 = vpop.f32.mrf.mxu0 }
 0x547   :  { %v11629_v21 = vadd.f32 %v3925_v6, %v3597_v11 }
 0x54a   :  { %v3065_v54 = vpop.f32.mrf.mxu2 }
 0x54b   :  { %v3496_v10 = vpop.f32.mrf.mxu3  ;;  %v3167_v25 = vadd.f32 %v3065_v54, %v11022_v59 }
 0x54d   :  { %v3598_v12 = vadd.f32 %v3496_v10, %v3167_v25  ;;  %v3681_v10 = vld [vmem:[#allocation2 + $0x429] sm:$0xff] }
 0x54e   :  { %v3930_v46 = vpop.f32.mrf.mxu0 }
 0x54f   :  { %v11632_v37 = vadd.f32 %v3927_v61, %v3598_v12  ;;  %9430 = vmatmul.msk.bf16.gmra.mxu2 %vm28_vm1, %v2853_v51  ;;  %v3251_v61 = vld [vmem:[#allocation2 + $0x430] sm:$0xff]  ;;  %v3716_v51 = vpack.c.bf16 %v3682_v17, %v3681_v10 }
 0x550   :  { %9463 = vmatmul.msk.bf16.gmra.mxu3 %vm28_vm1, %v3284_v24  ;;  %v3285_v25 = vpack.c.bf16 %v3251_v61, %v3250_v18  ;;  %v3253_v18 = vld [vmem:[#allocation2 + $0x450] sm:$0xff] }
 0x551   :  { %9496 = vmatmul.msk.bf16.gmra.mxu0 %vm28_vm1, %v3715_v4  ;;  %v3683_v17 = vld [vmem:[#allocation2 + $0x449] sm:$0xff] }
 0x552   :  { %v3068_v6 = vpop.f32.mrf.mxu2 }
 0x553   :  { %v3499_v9 = vpop.f32.mrf.mxu3  ;;  %v3168_v60 = vadd.f32 %v3068_v6, %v14425_v44 }
 0x555   :  { %v3599_v11 = vadd.f32 %v3499_v9, %v3168_v60 }
 0x556   :  { %v11638_v29 = vpop.f32.mrf.mxu0 }
 0x557   :  { %14426 = vst [vmem:[#allocation40_spill] sm:$0xff] %v11638_v29  ;;  %v11640_v59 = vadd.f32 %v3930_v46, %v3599_v11  ;;  %v14428_v46 = vld [vmem:[#allocation9_spill] sm:$0xff]  ;;  %v2821_v11 = vld [vmem:[#allocation2 + $0x447] sm:$0xff] }
 0x559   :  { %14427 = vst [vmem:[#allocation73_spill] sm:$0xff] %v11640_v59 }
 0x55a   :  { %v11642_v23 = vpop.f32.mrf.mxu2 }
 0x55b   :  { %v11644_v54 = vpop.f32.mrf.mxu3 }
 0x55e   :  { %v3935_v24 = vpop.f32.mrf.mxu0 }
 0x55f   :  { %9431 = vmatmul.msk.bf16.gmra.mxu2 %vm28_vm1, %v2854_v36  ;;  %v3684_v36 = vld [vmem:[#allocation2 + $0x451] sm:$0xff] }
 0x560   :  { %9464 = vmatmul.msk.bf16.gmra.mxu3 %vm28_vm1, %v3285_v25  ;;  %v2855_v25 = vpack.c.bf16 %v2822_v0, %v2821_v11  ;;  %v3717_v28 = vpack.c.bf16 %v3684_v36, %v3683_v17  ;;  %v2824_v11 = vld [vmem:[#allocation2 + $0x46f] sm:$0xff] }
 0x561   :  { %9497 = vmatmul.msk.bf16.gmra.mxu0 %vm28_vm1, %v3716_v51  ;;  %v3286_v51 = vpack.c.bf16 %v3253_v18, %v3252_v13  ;;  %v3254_v0 = vld [vmem:[#allocation2 + $0x468] sm:$0xff]  ;;  %v3255_v13 = vld [vmem:[#allocation2 + $0x470] sm:$0xff] }
 0x562   :  { %v3073_v12 = vpop.f32.mrf.mxu2  ;;  %v3685_v36 = vld [vmem:[#allocation2 + $0x469] sm:$0xff] }
 0x563   :  { %v3504_v4 = vpop.f32.mrf.mxu3  ;;  %v3170_v6 = vadd.f32 %v3073_v12, %v14428_v46 }
 0x565   :  { %v3601_v9 = vadd.f32 %v3504_v4, %v3170_v6 }
 0x566   :  { %v11650_v44 = vpop.f32.mrf.mxu0 }
 0x567   :  { %14429 = vst [vmem:[#allocation9_spill] sm:$0xff] %v11650_v44  ;;  %v11652_v60 = vadd.f32 %v3935_v24, %v3601_v9 }
 0x569   :  { %14430 = vst [vmem:[#allocation74_spill] sm:$0xff] %v11652_v60  ;;  %v2823_v60 = vld [vmem:[#allocation2 + $0x467] sm:$0xff] }
 0x56a   :  { %v11654_v61 = vpop.f32.mrf.mxu2 }
 0x56b   :  { %v11656_v10 = vpop.f32.mrf.mxu3 }
 0x56e   :  { %v3940_v59 = vpop.f32.mrf.mxu0 }
 0x56f   :  { %9432 = vmatmul.msk.bf16.gmra.mxu2 %vm28_vm1, %v2855_v25  ;;  %v3686_v25 = vld [vmem:[#allocation2 + $0x471] sm:$0xff] }
 0x570   :  { %9465 = vmatmul.msk.bf16.gmra.mxu3 %vm28_vm1, %v3286_v51  ;;  %v3287_v51 = vpack.c.bf16 %v3255_v13, %v3254_v0  ;;  %v3718_v44 = vpack.c.bf16 %v3686_v25, %v3685_v36  ;;  %v4190_v0 = vmul.f32 %v11241_v16, %v11241_v16  ;;  %v4056_v25 = vsel %vm4054_vm2, %v11241_v16, 0.0 }
 0x571   :  { %9498 = vmatmul.msk.bf16.gmra.mxu0 %vm28_vm1, %v3717_v28  ;;  %v2856_v28 = vpack.c.bf16 %v2824_v11, %v2823_v60 }
 0x572   :  { %v3078_v24 = vpop.f32.mrf.mxu2 }
 0x573   :  { %v3509_v12 = vpop.f32.mrf.mxu3  ;;  %v3172_v4 = vadd.f32 %v3078_v24, %v11061_v62  ;;  %v14434_v24 = vld [vmem:[#allocation14_spill] sm:$0xff] }
 0x575   :  { %v3603_v46 = vadd.f32 %v3509_v12, %v3172_v4 }
 0x576   :  { %v11662_v6 = vpop.f32.mrf.mxu0 }
 0x577   :  { %14431 = vst [vmem:[#allocation75_spill] sm:$0xff] %v11662_v6  ;;  %v11664_v9 = vadd.f32 %v3940_v59, %v3603_v46 }
 0x579   :  { %14432 = vst [vmem:[#allocation76_spill] sm:$0xff] %v11664_v9 }
 0x57a   :  { %v11666_v18 = vpop.f32.mrf.mxu2 }
 0x57b   :  { %v11668_v17 = vpop.f32.mrf.mxu3 }
 0x57c   :  { %14433 = vst [vmem:[#allocation77_spill] sm:$0xff] %v11668_v17 }
 0x57e   :  { %v3945_v29 = vpop.f32.mrf.mxu0 }
 0x57f   :  { %9433 = vmatmul.msk.bf16.gmra.mxu2 %vm28_vm1, %v2856_v28  ;;  %v14438_v28 = vld [vmem:[#allocation17_spill] sm:$0xff] }
 0x580   :  { %9466 = vmatmul.msk.bf16.gmra.mxu3 %vm28_vm1, %v3287_v51 }
 0x581   :  { %9499 = vmatmul.msk.bf16.gmra.mxu0 %vm28_vm1, %v3718_v44  ;;  %v4189_v44 = vmul.f32 %v11220_v5, %v11220_v5 }
 0x582   :  { %v3083_v62 = vpop.f32.mrf.mxu2 }
 0x583   :  { %v3514_v59 = vpop.f32.mrf.mxu3  ;;  %v3174_v12 = vadd.f32 %v3083_v62, %v14434_v24  ;;  %v4055_v62 = vsel %vm4054_vm2, %v11220_v5, 0.0  ;;  %v4058_v24 = vsel %vm4054_vm2, %v11263_v14, 0.0 }
 0x584   :  { %v4057_v16 = vadd.f32 %v4056_v25, %v4055_v62 }
 0x585   :  { %v3605_v4 = vadd.f32 %v3514_v59, %v3174_v12  ;;  %v4254_v59 = vsel %vm4054_vm2, %v4190_v0, 0.0  ;;  %v4192_v12 = vmul.f32 %v11282_v7, %v11282_v7  ;;  %v4193_v0 = vmul.f32 %v11304_v49, %v11304_v49 }
 0x586   :  { %v11674_v46 = vpop.f32.mrf.mxu0  ;;  %v4059_v5 = vadd.f32 %v4058_v24, %v4057_v16  ;;  %v4195_v16 = vmul.f32 %v11345_v3, %v11345_v3 }
 0x587   :  { %14435 = vst [vmem:[#allocation14_spill] sm:$0xff] %v11674_v46  ;;  %v11676_v9 = vadd.f32 %v3945_v29, %v3605_v4  ;;  %v4191_v29 = vmul.f32 %v11263_v14, %v11263_v14  ;;  %v4258_v17 = vsel %vm4054_vm2, %v4192_v12, 0.0 }
 0x589   :  { %14436 = vst [vmem:[#allocation78_spill] sm:$0xff] %v11676_v9  ;;  %v4253_v9 = vsel %vm4054_vm2, %v4189_v44, 0.0  ;;  %v4062_v44 = vsel %vm4054_vm2, %v11304_v49, 0.0 }
 0x58a   :  { %v11678_v6 = vpop.f32.mrf.mxu2  ;;  %v4255_v14 = vadd.f32 %v4254_v59, %v4253_v9  ;;  %v4064_v9 = vsel %vm4054_vm2, %v11323_v34, 0.0 }
 0x58b   :  { %v11680_v60 = vpop.f32.mrf.mxu3 }
 0x58c   :  { %14437 = vst [vmem:[#allocation79_spill] sm:$0xff] %v11680_v60  ;;  %v4256_v60 = vsel %vm4054_vm2, %v4191_v29, 0.0 }
 0x58d   :  { %v4257_v25 = vadd.f32 %v4256_v60, %v4255_v14  ;;  %v4066_v14 = vsel %vm4054_vm2, %v11345_v3, 0.0 }
 0x58e   :  { %v3950_v11 = vpop.f32.mrf.mxu0 }
 0x592   :  { %v3088_v13 = vpop.f32.mrf.mxu2 }
 0x593   :  { %v3519_v36 = vpop.f32.mrf.mxu3  ;;  %v3176_v51 = vadd.f32 %v3088_v13, %v14438_v28  ;;  %v4060_v13 = vsel %vm4054_vm2, %v11282_v7, 0.0  ;;  %v4260_v7 = vsel %vm4054_vm2, %v4193_v0, 0.0  ;;  %v4264_v0 = vsel %vm4054_vm2, %v4195_v16, 0.0 }
 0x594   :  { %v4061_v29 = vadd.f32 %v4060_v13, %v4059_v5  ;;  %v4196_v5 = vmul.f32 %v11364_v55, %v11364_v55  ;;  %v11727_v13 = vpop.f32.mrf.mxu1 }
 0x595   :  { %v3607_v4 = vadd.f32 %v3519_v36, %v3176_v51  ;;  %v4194_v36 = vmul.f32 %v11323_v34, %v11323_v34  ;;  %v4068_v34 = vsel %vm4054_vm2, %v11364_v55, 0.0  ;;  %v4072_v55 = vsel %vm4054_vm2, %v11405_v63, 0.0 }
 0x596   :  { %v11699_v46 = vpop.f32.mrf.mxu0  ;;  %v4063_v59 = vadd.f32 %v4062_v44, %v4061_v29  ;;  %v4070_v29 = vsel %vm4054_vm2, %v11386_v58, 0.0 }
 0x597   :  { %v11706_v28 = vadd.f32 %v3950_v11, %v3607_v4  ;;  %v4259_v11 = vadd.f32 %v4258_v17, %v4257_v25  ;;  %v4262_v24 = vsel %vm4054_vm2, %v4194_v36, 0.0  ;;  %v4197_v17 = vmul.f32 %v11386_v58, %v11386_v58 }
 0x598   :  { %v4065_v12 = vadd.f32 %v4064_v9, %v4063_v59  ;;  %v4266_v25 = vsel %vm4054_vm2, %v4196_v5, 0.0 }
 0x599   :  { %v4261_v60 = vadd.f32 %v4260_v7, %v4259_v11  ;;  %v4198_v7 = vmul.f32 %v11405_v63, %v11405_v63  ;;  %v4268_v3 = vsel %vm4054_vm2, %v4197_v17, 0.0 }
 0x59a   :  { %v11713_v51 = vpop.f32.mrf.mxu2  ;;  %v4067_v36 = vadd.f32 %v4066_v14, %v4065_v12  ;;  %v14439_v14 = vld [vmem:[#allocation19_spill] sm:$0xff] }
 0x59b   :  { %v11715_v62 = vpop.f32.mrf.mxu3  ;;  %v4263_v44 = vadd.f32 %v4262_v24, %v4261_v60  ;;  %v4199_v24 = vmul.f32 %v11433_v52, %v11433_v52  ;;  %v4270_v58 = vsel %vm4054_vm2, %v4198_v7, 0.0 }
 0x59c   :  { %v4069_v11 = vadd.f32 %v4068_v34, %v4067_v36  ;;  %v4200_v34 = vmul.f32 %v11452_v42, %v11452_v42 }
 0x59d   :  { %v4265_v9 = vadd.f32 %v4264_v0, %v4263_v44  ;;  %v4074_v0 = vsel %vm4054_vm2, %v11433_v52, 0.0  ;;  %v4272_v63 = vsel %vm4054_vm2, %v4199_v24, 0.0 }
 0x59e   :  { %v3955_v4 = vpop.f32.mrf.mxu0  ;;  %v4071_v12 = vadd.f32 %v4070_v29, %v4069_v11  ;;  %v11759_v11 = vpop.f32.mrf.mxu1 }
 0x59f   :  { %v4267_v60 = vadd.f32 %v4266_v25, %v4265_v9  ;;  %v4201_v25 = vmul.f32 %v11474_v8, %v11474_v8 }
 0x5a0   :  { %v4073_v36 = vadd.f32 %v4072_v55, %v4071_v12  ;;  %v4202_v55 = vmul.f32 %v11493_v43, %v11493_v43  ;;  %v4203_v12 = vmul.f32 %v11515_v33, %v11515_v33 }
 0x5a1   :  { %v4269_v17 = vadd.f32 %v4268_v3, %v4267_v60  ;;  %v4078_v3 = vsel %vm4054_vm2, %v11474_v8, 0.0 }
 0x5a2   :  { %v3093_v59 = vpop.f32.mrf.mxu2  ;;  %v4075_v9 = vadd.f32 %v4074_v0, %v4073_v36 }
 0x5a3   :  { %v3524_v16 = vpop.f32.mrf.mxu3  ;;  %v3178_v5 = vadd.f32 %v3093_v59, %v14439_v14  ;;  %v4076_v59 = vsel %vm4054_vm2, %v11452_v42, 0.0  ;;  %v4271_v7 = vadd.f32 %v4270_v58, %v4269_v17  ;;  %v4080_v58 = vsel %vm4054_vm2, %v11493_v43, 0.0  ;;  %v14458_v42 = vld [vmem:[#allocation74_spill] sm:$0xff] }
 0x5a4   :  { %v4077_v14 = vadd.f32 %v4076_v59, %v4075_v9  ;;  %v4204_v17 = vmul.f32 %v11518_v1, %v11518_v1  ;;  %v4084_v9 = vsel %vm4054_vm2, %v11518_v1, 0.0 }
 0x5a5   :  { %v3609_v44 = vadd.f32 %v3524_v16, %v3178_v5  ;;  %v4274_v16 = vsel %vm4054_vm2, %v4200_v34, 0.0  ;;  %v4273_v24 = vadd.f32 %v4272_v63, %v4271_v7  ;;  %v4082_v63 = vsel %vm4054_vm2, %v11515_v33, 0.0 }
 0x5a6   :  { %v11750_v49 = vpop.f32.mrf.mxu0  ;;  %v4079_v34 = vadd.f32 %v4078_v3, %v4077_v14  ;;  %v4086_v14 = vsel %vm4054_vm2, %v11524_v20, 0.0  ;;  %v11790_v33 = vpop.f32.mrf.mxu1 }
 0x5a7   :  { %v11757_v29 = vadd.f32 %v3955_v4, %v3609_v44  ;;  %v4276_v4 = vsel %vm4054_vm2, %v4201_v25, 0.0  ;;  %v4275_v0 = vadd.f32 %v4274_v16, %v4273_v24  ;;  %v4278_v44 = vsel %vm4054_vm2, %v4202_v55, 0.0 }
 0x5a8   :  { %v4081_v59 = vadd.f32 %v4080_v58, %v4079_v34  ;;  %v4280_v25 = vsel %vm4054_vm2, %v4203_v12, 0.0  ;;  %v4205_v16 = vmul.f32 %v11524_v20, %v11524_v20  ;;  %v4282_v55 = vsel %vm4054_vm2, %v4204_v17, 0.0  ;;  %v14440_v17 = vld [vmem:[#allocation22_spill] sm:$0xff] }
 0x5a9   :  { %v4277_v36 = vadd.f32 %v4276_v4, %v4275_v0  ;;  %v4206_v4 = vmul.f32 %v11527_v27, %v11527_v27 }
 0x5aa   :  { %v11766_v5 = vpop.f32.mrf.mxu2  ;;  %v4083_v24 = vadd.f32 %v4082_v63, %v4081_v59  ;;  %v4284_v1 = vsel %vm4054_vm2, %v4205_v16, 0.0  ;;  %v4207_v63 = vmul.f32 %v11533_v41, %v11533_v41 }
 0x5ab   :  { %v11768_v60 = vpop.f32.mrf.mxu3  ;;  %v4279_v3 = vadd.f32 %v4278_v44, %v4277_v36  ;;  %v4088_v44 = vsel %vm4054_vm2, %v11527_v27, 0.0  ;;  %v4286_v43 = vsel %vm4054_vm2, %v4206_v4, 0.0 }
 0x5ac   :  { %v4085_v0 = vadd.f32 %v4084_v9, %v4083_v24  ;;  %v4208_v9 = vmul.f32 %v11536_v22, %v11536_v22  ;;  %v4288_v27 = vsel %vm4054_vm2, %v4207_v63, 0.0 }
 0x5ad   :  { %v4281_v58 = vadd.f32 %v4280_v25, %v4279_v3  ;;  %v4090_v25 = vsel %vm4054_vm2, %v11533_v41, 0.0 }
 0x5ae   :  { %v3960_v7 = vpop.f32.mrf.mxu0  ;;  %v4087_v20 = vadd.f32 %v4086_v14, %v4085_v0  ;;  %v4290_v0 = vsel %vm4054_vm2, %v4208_v9, 0.0  ;;  %v11826_v9 = vpop.f32.mrf.mxu1 }
 0x5af   :  { %v4283_v59 = vadd.f32 %v4282_v55, %v4281_v58  ;;  %v4209_v55 = vmul.f32 %v11542_v57, %v11542_v57 }
 0x5b0   :  { %v4089_v24 = vadd.f32 %v4088_v44, %v4087_v20  ;;  %v4210_v20 = vmul.f32 %v11545_v15, %v11545_v15 }
 0x5b1   :  { %v4285_v16 = vadd.f32 %v4284_v1, %v4283_v59  ;;  %v4094_v1 = vsel %vm4054_vm2, %v11542_v57, 0.0 }
 0x5b2   :  { %v3098_v34 = vpop.f32.mrf.mxu2  ;;  %v4091_v58 = vadd.f32 %v4090_v25, %v4089_v24 }
 0x5b3   :  { %v3529_v12 = vpop.f32.mrf.mxu3  ;;  %v3180_v36 = vadd.f32 %v3098_v34, %v14440_v17  ;;  %v4092_v34 = vsel %vm4054_vm2, %v11536_v22, 0.0  ;;  %v4287_v4 = vadd.f32 %v4286_v43, %v4285_v16  ;;  %v4096_v43 = vsel %vm4054_vm2, %v11545_v15, 0.0 }
 0x5b4   :  { %v4093_v44 = vadd.f32 %v4092_v34, %v4091_v58  ;;  %v4212_v16 = vmul.f32 %v11554_v50, %v11554_v50  ;;  %v4100_v58 = vsel %vm4054_vm2, %v11554_v50, 0.0 }
 0x5b5   :  { %v3611_v3 = vadd.f32 %v3529_v12, %v3180_v36  ;;  %v4289_v12 = vadd.f32 %v4288_v27, %v4287_v4  ;;  %v4292_v36 = vsel %vm4054_vm2, %v4209_v55, 0.0  ;;  %v4098_v27 = vsel %vm4054_vm2, %v11551_v45, 0.0 }
 0x5b6   :  { %v11803_v8 = vpop.f32.mrf.mxu0  ;;  %v4095_v25 = vadd.f32 %v4094_v1, %v4093_v44  ;;  %v4102_v44 = vsel %vm4054_vm2, %v11560_v39, 0.0 }
 0x5b7   :  { %v11810_v14 = vadd.f32 %v3960_v7, %v3611_v3  ;;  %v4211_v7 = vmul.f32 %v11551_v45, %v11551_v45  ;;  %v4291_v59 = vadd.f32 %v4290_v0, %v4289_v12  ;;  %v4294_v3 = vsel %vm4054_vm2, %v4210_v20, 0.0  ;;  %v14442_v45 = vld [vmem:[#allocation38_spill] sm:$0xff] }
 0x5b8   :  { %v4097_v34 = vadd.f32 %v4096_v43, %v4095_v25  ;;  %v4213_v0 = vmul.f32 %v11560_v39, %v11560_v39  ;;  %v4298_v12 = vsel %vm4054_vm2, %v4212_v16, 0.0 }
 0x5b9   :  { %v4293_v24 = vadd.f32 %v4292_v36, %v4291_v59  ;;  %v4296_v4 = vsel %vm4054_vm2, %v4211_v7, 0.0  ;;  %v4214_v36 = vmul.f32 %v11563_v2, %v11563_v2 }
 0x5ba   :  { %v11817_v63 = vpop.f32.mrf.mxu2  ;;  %v4099_v20 = vadd.f32 %v4098_v27, %v4097_v34  ;;  %v4300_v50 = vsel %vm4054_vm2, %v4213_v0, 0.0  ;;  %v4215_v27 = vmul.f32 %v11569_v38, %v11569_v38  ;;  %v11861_v0 = vpop.f32.mrf.mxu1 }
 0x5bb   :  { %v11819_v17 = vpop.f32.mrf.mxu3  ;;  %v4295_v1 = vadd.f32 %v4294_v3, %v4293_v24  ;;  %v4104_v3 = vsel %vm4054_vm2, %v11563_v2, 0.0  ;;  %v4302_v34 = vsel %vm4054_vm2, %v4214_v36, 0.0 }
 0x5bc   :  { %v4101_v59 = vadd.f32 %v4100_v58, %v4099_v20  ;;  %v4216_v58 = vmul.f32 %v11572_v19, %v11572_v19  ;;  %v4304_v2 = vsel %vm4054_vm2, %v4215_v27, 0.0 }
 0x5bd   :  { %v4297_v43 = vadd.f32 %v4296_v4, %v4295_v1  ;;  %v4106_v4 = vsel %vm4054_vm2, %v11569_v38, 0.0 }
 0x5be   :  { %v11833_v55 = vpop.f32.mrf.mxu0  ;;  %v4103_v24 = vadd.f32 %v4102_v44, %v4101_v59  ;;  %v4217_v44 = vmul.f32 %v11578_v40, %v11578_v40  ;;  %v4306_v59 = vsel %vm4054_vm2, %v4216_v58, 0.0 }
 0x5bf   :  { %v4299_v16 = vadd.f32 %v4298_v12, %v4297_v43  ;;  %v4108_v12 = vsel %vm4054_vm2, %v11572_v19, 0.0 }
 0x5c0   :  { %v4105_v20 = vadd.f32 %v4104_v3, %v4103_v24  ;;  %v4218_v3 = vmul.f32 %v11581_v35, %v11581_v35  ;;  %v4308_v19 = vsel %vm4054_vm2, %v4217_v44, 0.0 }
 0x5c1   :  { %v4301_v1 = vadd.f32 %v4300_v50, %v4299_v16  ;;  %v4110_v50 = vsel %vm4054_vm2, %v11578_v40, 0.0 }
 0x5c2   :  { %v11845_v25 = vpop.f32.mrf.mxu2  ;;  %v4107_v43 = vadd.f32 %v4106_v4, %v4105_v20  ;;  %v4219_v4 = vmul.f32 %v11587_v48, %v11587_v48  ;;  %v4310_v20 = vsel %vm4054_vm2, %v4218_v3, 0.0 }
 0x5c3   :  { %v11847_v7 = vpop.f32.mrf.mxu3  ;;  %v4303_v36 = vadd.f32 %v4302_v34, %v4301_v1  ;;  %v4112_v34 = vsel %vm4054_vm2, %v11581_v35, 0.0  ;;  %v4116_v35 = vsel %vm4054_vm2, %v11590_v53, 0.0 }
 0x5c4   :  { %v4109_v24 = vadd.f32 %v4108_v12, %v4107_v43  ;;  %v4220_v12 = vmul.f32 %v11590_v53, %v11590_v53  ;;  %v4312_v44 = vsel %vm4054_vm2, %v4219_v4, 0.0 }
 0x5c5   :  { %v4305_v16 = vadd.f32 %v4304_v2, %v4303_v36  ;;  %v4114_v2 = vsel %vm4054_vm2, %v11587_v48, 0.0  ;;  %v14441_v48 = vld [vmem:[#allocation7_spill] sm:$0xff] }
 0x5c6   :  { %v11859_v39 = vpop.f32.mrf.mxu0  ;;  %v4111_v1 = vadd.f32 %v4110_v50, %v4109_v24  ;;  %v4314_v24 = vsel %vm4054_vm2, %v4220_v12, 0.0  ;;  %v4120_v12 = vsel %vm4054_vm2, %v11599_v26, 0.0 }
 0x5c7   :  { %v4307_v58 = vadd.f32 %v4306_v59, %v4305_v16  ;;  %v4221_v59 = vmul.f32 %v11596_v31, %v11596_v31  ;;  %v11894_v16 = vpop.f32.mrf.mxu1 }
 0x5c8   :  { %v4113_v43 = vadd.f32 %v4112_v34, %v4111_v1  ;;  %v4222_v34 = vmul.f32 %v11599_v26, %v11599_v26 }
 0x5c9   :  { %v4309_v36 = vadd.f32 %v4308_v19, %v4307_v58  ;;  %v4118_v19 = vsel %vm4054_vm2, %v11596_v31, 0.0 }
 0x5ca   :  { %v11873_v38 = vpop.f32.mrf.mxu2  ;;  %v4115_v3 = vadd.f32 %v4114_v2, %v4113_v43  ;;  %v4316_v2 = vsel %vm4054_vm2, %v4221_v59, 0.0  ;;  %v14444_v59 = vld [vmem:[#allocation8_spill] sm:$0xff] }
 0x5cb   :  { %v11875_v27 = vpop.f32.mrf.mxu3  ;;  %v4311_v50 = vadd.f32 %v4310_v20, %v4309_v36  ;;  %v2737_v20 = vadd.f32 %v14442_v45, %v14441_v48  ;;  %v4223_v36 = vmul.f32 %v11605_v30, %v11605_v30  ;;  %v14443_v48 = vld [vmem:[#allocation10_spill] sm:$0xff] }
 0x5cc   :  { %v4117_v4 = vadd.f32 %v4116_v35, %v4115_v3  ;;  %v4122_v35 = vsel %vm4054_vm2, %v11605_v30, 0.0  ;;  %v2739_v3 = vadd.f32 %v14444_v59, %v14443_v48 }
 0x5cd   :  { %v4313_v58 = vadd.f32 %v4312_v44, %v4311_v50  ;;  %v4318_v44 = vsel %vm4054_vm2, %v4222_v34, 0.0  ;;  %v4224_v50 = vmul.f32 %v11614_v32, %v11614_v32  ;;  %v3169_v45 = vadd.f32 %v11642_v23, %v2737_v20 }
 0x5ce   :  { %v11887_v40 = vpop.f32.mrf.mxu0  ;;  %v4119_v31 = vadd.f32 %v4118_v19, %v4117_v4  ;;  %v4124_v19 = vsel %vm4054_vm2, %v11614_v32, 0.0  ;;  %v4225_v34 = vmul.f32 %v11620_v56, %v11620_v56  ;;  %v4226_v23 = vmul.f32 %v11623_v47, %v11623_v47  ;;  %v14450_v32 = vld [vmem:[#allocation13_spill] sm:$0xff] }
 0x5cf   :  { %v4315_v43 = vadd.f32 %v4314_v24, %v4313_v58  ;;  %v4320_v24 = vsel %vm4054_vm2, %v4223_v36, 0.0  ;;  %v3171_v20 = vadd.f32 %v11654_v61, %v2739_v3  ;;  %v4227_v3 = vmul.f32 %v11629_v21, %v11629_v21 }
 0x5d0   :  { %v4121_v26 = vadd.f32 %v4120_v12, %v4119_v31  ;;  %v4126_v31 = vsel %vm4054_vm2, %v11620_v56, 0.0  ;;  %v3600_v12 = vadd.f32 %v11644_v54, %v3169_v45  ;;  %v4324_v61 = vsel %vm4054_vm2, %v4225_v34, 0.0  ;;  %v14449_v56 = vld [vmem:[#allocation15_spill] sm:$0xff] }
 0x5d1   :  { %v4317_v15 = vadd.f32 %v4316_v2, %v4315_v43  ;;  %v4322_v2 = vsel %vm4054_vm2, %v4224_v50, 0.0  ;;  %v4128_v50 = vsel %vm4054_vm2, %v11623_v47, 0.0  ;;  %v2743_v30 = vadd.f32 %v14450_v32, %v14449_v56 }
 0x5d2   :  { %v11901_v1 = vpop.f32.mrf.mxu2  ;;  %v4123_v4 = vadd.f32 %v4122_v35, %v4121_v26  ;;  %v14446_v26 = vld [vmem:[#allocation11_spill] sm:$0xff]  ;;  %v11940_v35 = vpop.f32.mrf.mxu1 }
 0x5d3   :  { %v11903_v53 = vpop.f32.mrf.mxu3  ;;  %v4319_v58 = vadd.f32 %v4318_v44, %v4317_v15  ;;  %v14445_v15 = vld [vmem:[#allocation12_spill] sm:$0xff] }
 0x5d4   :  { %v4125_v43 = vadd.f32 %v4124_v19, %v4123_v4  ;;  %v2741_v44 = vadd.f32 %v14446_v26, %v14445_v15  ;;  %v3602_v19 = vadd.f32 %v11656_v10, %v3171_v20  ;;  %v4228_v4 = vmul.f32 %v11632_v37, %v11632_v37  ;;  %v14447_v15 = vld [vmem:[#allocation40_spill] sm:$0xff]  ;;  %v14451_v20 = vld [vmem:[#allocation73_spill] sm:$0xff] }
 0x5d5   :  { %v4321_v36 = vadd.f32 %v4320_v24, %v4319_v58  ;;  %v4326_v24 = vsel %vm4054_vm2, %v4226_v23, 0.0  ;;  %v4130_v58 = vsel %vm4054_vm2, %v11629_v21, 0.0  ;;  %v11954_v34 = vadd.f32 %v14447_v15, %v3600_v12  ;;  %v14452_v15 = vld [vmem:[#allocation9_spill] sm:$0xff] }
 0x5d6   :  { %v11920_v57 = vpop.f32.mrf.mxu0  ;;  %v4127_v45 = vadd.f32 %v4126_v31, %v4125_v43  ;;  %v3173_v26 = vadd.f32 %v11666_v18, %v2741_v44  ;;  %v4328_v10 = vsel %vm4054_vm2, %v4227_v3, 0.0  ;;  %v4132_v23 = vsel %vm4054_vm2, %v11632_v37, 0.0  ;;  %v14454_v3 = vld [vmem:[#allocation18_spill] sm:$0xff] }
 0x5d7   :  { %v4323_v54 = vadd.f32 %v4322_v2, %v4321_v36  ;;  %14448 = vst [vmem:[#allocation17_spill] sm:$0xff] %v11954_v34  ;;  %v4229_v43 = vmul.f32 %v14451_v20, %v14451_v20  ;;  %v11967_v41 = vadd.f32 %v14452_v15, %v3602_v19  ;;  %v3175_v18 = vadd.f32 %v11678_v6, %v2743_v30  ;;  %v14456_v30 = vld [vmem:[#allocation21_spill] sm:$0xff]  ;;  %v14457_v6 = vld [vmem:[#allocation20_spill] sm:$0xff] }
 0x5d8   :  { %v4129_v31 = vadd.f32 %v4128_v50, %v4127_v45  ;;  %v4330_v32 = vsel %vm4054_vm2, %v4228_v4, 0.0  ;;  %v4134_v56 = vsel %vm4054_vm2, %v14451_v20, 0.0  ;;  %v4230_v44 = vmul.f32 %v11954_v34, %v11954_v34 }
 0x5d9   :  { %v4325_v2 = vadd.f32 %v4324_v61, %v4323_v54  ;;  %v14453_v61 = vld [vmem:[#allocation77_spill] sm:$0xff]  ;;  %v14455_v54 = vld [vmem:[#allocation16_spill] sm:$0xff]  ;;  %v2747_v4 = vadd.f32 %v14457_v6, %v14456_v30  ;;  %v4136_v15 = vsel %vm4054_vm2, %v11954_v34, 0.0  ;;  %v14461_v34 = vld [vmem:[#allocation23_spill] sm:$0xff] }
 0x5da   :  { %v11934_v48 = vpop.f32.mrf.mxu2  ;;  %v4131_v12 = vadd.f32 %v4130_v58, %v4129_v31  ;;  %v3604_v50 = vadd.f32 %v14453_v61, %v3173_v26  ;;  %v2745_v45 = vadd.f32 %v14455_v54, %v14454_v3  ;;  %v4332_v31 = vsel %vm4054_vm2, %v4229_v43, 0.0  ;;  %v14460_v43 = vld [vmem:[#allocation75_spill] sm:$0xff] }
 0x5db   :  { %v11936_v59 = vpop.f32.mrf.mxu3  ;;  %v4327_v22 = vadd.f32 %v4326_v24, %v4325_v2  ;;  %v4231_v26 = vmul.f32 %v14458_v42, %v14458_v42  ;;  %v4334_v3 = vsel %vm4054_vm2, %v4230_v44, 0.0  ;;  %v4138_v54 = vsel %vm4054_vm2, %v14458_v42, 0.0 }
 0x5dc   :  { %v4133_v58 = vadd.f32 %v4132_v23, %v4131_v12  ;;  %v2686_v12 = vpop.f32.mrf.mxu1  ;;  %v11996_v30 = vadd.f32 %v14460_v43, %v3604_v50  ;;  %v3177_v6 = vadd.f32 %v11713_v51, %v2745_v45  ;;  %v4140_v50 = vsel %vm4054_vm2, %v11967_v41, 0.0  ;;  %v14464_v43 = vld [vmem:[#allocation76_spill] sm:$0xff] }
 0x5dd   :  { %v4329_v24 = vadd.f32 %v4328_v10, %v4327_v22  ;;  %v4232_v22 = vmul.f32 %v11967_v41, %v11967_v41  ;;  %v14459_v10 = vld [vmem:[#allocation79_spill] sm:$0xff]  ;;  %v4336_v42 = vsel %vm4054_vm2, %v4231_v26, 0.0  ;;  %v4233_v51 = vmul.f32 %v14464_v43, %v14464_v43 }
 0x5de   :  { %v11959_v36 = vpop.f32.mrf.mxu0  ;;  %v4135_v52 = vadd.f32 %v4134_v56, %v4133_v58  ;;  %v3606_v23 = vadd.f32 %v14459_v10, %v3175_v18  ;;  %v14462_v56 = vld [vmem:[#allocation24_spill] sm:$0xff]  ;;  %v14463_v10 = vld [vmem:[#allocation25_spill] sm:$0xff]  ;;  %v3179_v26 = vadd.f32 %v11766_v5, %v2747_v4  ;;  %v14469_v5 = vld [vmem:[#allocation78_spill] sm:$0xff] }
 0x5df   :  { %v4331_v61 = vadd.f32 %v4330_v32, %v4329_v24  ;;  %v2749_v32 = vadd.f32 %v11727_v13, %v14461_v34  ;;  %v2750_v24 = vadd.f32 %v11759_v11, %v14462_v56  ;;  %v2751_v44 = vadd.f32 %v11790_v33, %v14463_v10  ;;  %v14465_v11 = vld [vmem:[#allocation14_spill] sm:$0xff]  ;;  %v14468_v10 = vld [vmem:[#allocation28_spill] sm:$0xff] }
 0x5e0   :  { %v4137_v20 = vadd.f32 %v4136_v15, %v4135_v52  ;;  %v4338_v34 = vsel %vm4054_vm2, %v4232_v22, 0.0  ;;  %v4142_v52 = vsel %vm4054_vm2, %v14464_v43, 0.0  ;;  %v4234_v33 = vmul.f32 %v11996_v30, %v11996_v30 }
 0x5e1   :  { %v4333_v58 = vadd.f32 %v4332_v31, %v4331_v61  ;;  %v12014_v31 = vadd.f32 %v14465_v11, %v3606_v23  ;;  %v3608_v15 = vadd.f32 %v11715_v62, %v3177_v6  ;;  %v14466_v61 = vld [vmem:[#allocation26_spill] sm:$0xff]  ;;  %v2754_v11 = vadd.f32 %v11894_v16, %v14468_v10 }
 0x5e2   :  { %v11978_v2 = vpop.f32.mrf.mxu2  ;;  %v4139_v13 = vadd.f32 %v4138_v54, %v4137_v20  ;;  %v2752_v56 = vadd.f32 %v11826_v9, %v14466_v61  ;;  %v4340_v43 = vsel %vm4054_vm2, %v4233_v51, 0.0  ;;  %v4144_v62 = vsel %vm4054_vm2, %v11996_v30, 0.0 }
 0x5e3   :  { %v11980_v19 = vpop.f32.mrf.mxu3  ;;  %v4335_v45 = vadd.f32 %v4334_v3, %v4333_v58  ;;  %v14467_v3 = vld [vmem:[#allocation27_spill] sm:$0xff]  ;;  %v4235_v9 = vmul.f32 %v14469_v5, %v14469_v5  ;;  %v4146_v16 = vsel %vm4054_vm2, %v14469_v5, 0.0  ;;  %v12044_v51 = vadd.f32 %v11699_v46, %v3608_v15 }
 0x5e4   :  { %v2753_v20 = vadd.f32 %v11861_v0, %v14467_v3  ;;  %v4141_v54 = vadd.f32 %v4140_v50, %v4139_v13  ;;  %v3181_v0 = vadd.f32 %v11817_v63, %v2749_v32  ;;  %v4342_v50 = vsel %vm4054_vm2, %v4234_v33, 0.0  ;;  %v14470_v13 = vld [vmem:[#allocation29_spill] sm:$0xff] }
 0x5e5   :  { %v4337_v22 = vadd.f32 %v4336_v42, %v4335_v45  ;;  %v4236_v42 = vmul.f32 %v12014_v31, %v12014_v31  ;;  %v3610_v45 = vadd.f32 %v11768_v60, %v3179_v26  ;;  %v2755_v61 = vadd.f32 %v11940_v35, %v14470_v13 }
 0x5e6   :  { %v12003_v18 = vpop.f32.mrf.mxu0  ;;  %v4143_v6 = vadd.f32 %v4142_v52, %v4141_v54  ;;  %v2688_v54 = vpop.f32.mrf.mxu1  ;;  %v4344_v63 = vsel %vm4054_vm2, %v4235_v9, 0.0  ;;  %v4148_v32 = vsel %vm4054_vm2, %v12014_v31, 0.0  ;;  %v4237_v33 = vmul.f32 %v11706_v28, %v11706_v28 }
 0x5e7   :  { %v4339_v4 = vadd.f32 %v4338_v34, %v4337_v22  ;;  %v14471_v34 = vld [vmem:[#allocation30_spill] sm:$0xff]  ;;  %v3182_v46 = vadd.f32 %v11845_v25, %v2750_v24  ;;  %v4346_v35 = vsel %vm4054_vm2, %v4236_v42, 0.0  ;;  %v4238_v10 = vmul.f32 %v12044_v51, %v12044_v51  ;;  %v14472_v25 = vld [vmem:[#allocation31_spill] sm:$0xff] }
 0x5e8   :  { %v2756_v52 = vadd.f32 %v2686_v12, %v14471_v34  ;;  %v4145_v22 = vadd.f32 %v4144_v62, %v4143_v6  ;;  %v3612_v12 = vadd.f32 %v11819_v17, %v3181_v0  ;;  %v12065_v62 = vadd.f32 %v11750_v49, %v3610_v45 }
 0x5e9   :  { %v4341_v3 = vadd.f32 %v4340_v43, %v4339_v4  ;;  %v4150_v43 = vsel %vm4054_vm2, %v11706_v28, 0.0  ;;  %v3183_v9 = vadd.f32 %v11873_v38, %v2751_v44  ;;  %v2757_v24 = vadd.f32 %v2688_v54, %v14472_v25 }
 0x5ea   :  { %v12026_v23 = vpop.f32.mrf.mxu2  ;;  %v4147_v26 = vadd.f32 %v4146_v16, %v4145_v22  ;;  %v4348_v17 = vsel %vm4054_vm2, %v4237_v33, 0.0  ;;  %v4152_v0 = vsel %vm4054_vm2, %v12044_v51, 0.0  ;;  %v4239_v13 = vmul.f32 %v11757_v29, %v11757_v29 }
 0x5eb   :  { %v12028_v58 = vpop.f32.mrf.mxu3  ;;  %v4343_v60 = vadd.f32 %v4342_v50, %v4341_v3  ;;  %v3184_v50 = vadd.f32 %v11901_v1, %v2752_v56  ;;  %v3613_v49 = vadd.f32 %v11847_v7, %v3182_v46  ;;  %v12077_v44 = vadd.f32 %v11803_v8, %v3612_v12 }
 0x5ec   :  { %v4149_v6 = vadd.f32 %v4148_v32, %v4147_v26  ;;  %v3185_v34 = vadd.f32 %v11934_v48, %v2753_v20  ;;  %v4350_v1 = vsel %vm4054_vm2, %v4238_v10, 0.0  ;;  %v4154_v56 = vsel %vm4054_vm2, %v11757_v29, 0.0 }
 0x5ed   :  { %v4345_v4 = vadd.f32 %v4344_v63, %v4343_v60  ;;  %v4240_v3 = vmul.f32 %v12065_v62, %v12065_v62  ;;  %v3614_v22 = vadd.f32 %v11875_v27, %v3183_v9  ;;  %v4241_v7 = vmul.f32 %v11810_v14, %v11810_v14 }
 0x5ee   :  { %v12056_v15 = vpop.f32.mrf.mxu0  ;;  %v4151_v38 = vadd.f32 %v4150_v43, %v4149_v6  ;;  %v3615_v8 = vadd.f32 %v11903_v53, %v3184_v50  ;;  %v4352_v32 = vsel %vm4054_vm2, %v4239_v13, 0.0  ;;  %v4156_v48 = vsel %vm4054_vm2, %v12065_v62, 0.0 }
 0x5ef   :  { %v4347_v45 = vadd.f32 %v4346_v35, %v4345_v4  ;;  %v12093_v20 = vadd.f32 %v11833_v55, %v3613_v49  ;;  %v3186_v33 = vadd.f32 %v11978_v2, %v2754_v11  ;;  %v4242_v27 = vmul.f32 %v12077_v44, %v12077_v44 }
 0x5f0   :  { %v4153_v63 = vadd.f32 %v4152_v0, %v4151_v38  ;;  %v3616_v26 = vadd.f32 %v11936_v59, %v3185_v34  ;;  %v4354_v35 = vsel %vm4054_vm2, %v4240_v3, 0.0  ;;  %v4158_v53 = vsel %vm4054_vm2, %v11810_v14, 0.0  ;;  %v14473_v3 = vld [vmem:[#allocation32_spill] sm:$0xff] }
 0x5f1   :  { %v4349_v54 = vadd.f32 %v4348_v17, %v4347_v45  ;;  %v12103_v12 = vadd.f32 %v11859_v39, %v3614_v22  ;;  %v3187_v55 = vadd.f32 %v12026_v23, %v2755_v61  ;;  %v4356_v11 = vsel %vm4054_vm2, %v4241_v7, 0.0  ;;  %v2691_v23 = vpop.f32.mrf.mxu1 }
 0x5f2   :  { %v3118_v42 = vpop.f32.mrf.mxu2  ;;  %v4155_v60 = vadd.f32 %v4154_v56, %v4153_v63  ;;  %v12108_v9 = vadd.f32 %v11887_v40, %v3615_v8  ;;  %v4160_v4 = vsel %vm4054_vm2, %v12077_v44, 0.0  ;;  %v4243_v6 = vmul.f32 %v12093_v20, %v12093_v20 }
 0x5f3   :  { %v3549_v16 = vpop.f32.mrf.mxu3  ;;  %v4351_v46 = vadd.f32 %v4350_v1, %v4349_v54  ;;  %v3617_v39 = vadd.f32 %v11980_v19, %v3186_v33  ;;  %v3188_v50 = vadd.f32 %v3118_v42, %v2756_v52  ;;  %v4358_v0 = vsel %vm4054_vm2, %v4242_v27, 0.0 }
 0x5f4   :  { %v4157_v2 = vadd.f32 %v4156_v48, %v4155_v60  ;;  %v12117_v13 = vadd.f32 %v11920_v57, %v3616_v26  ;;  %v4162_v40 = vsel %vm4054_vm2, %v12093_v20, 0.0  ;;  %v4244_v49 = vmul.f32 %v12103_v12, %v12103_v12 }
 0x5f5   :  { %v4353_v10 = vadd.f32 %v4352_v32, %v4351_v46  ;;  %v3618_v45 = vadd.f32 %v12028_v58, %v3187_v55  ;;  %v4245_v52 = vmul.f32 %v12108_v9, %v12108_v9  ;;  %v4360_v42 = vsel %vm4054_vm2, %v4243_v6, 0.0 }
 0x5f6   :  { %v3982_v43 = vpop.f32.mrf.mxu0  ;;  %v4159_v17 = vadd.f32 %v4158_v53, %v4157_v2  ;;  %v4164_v57 = vsel %vm4054_vm2, %v12103_v12, 0.0  ;;  %v12130_v1 = vadd.f32 %v11959_v36, %v3617_v39  ;;  %v3619_v56 = vadd.f32 %v3549_v16, %v3188_v50 }
 0x5f7   :  { %v4355_v61 = vadd.f32 %v4354_v35, %v4353_v10  ;;  %v2758_v22 = vadd.f32 %v2691_v23, %v14473_v3  ;;  %v4246_v58 = vmul.f32 %v12117_v13, %v12117_v13  ;;  %v4166_v7 = vsel %vm4054_vm2, %v12108_v9, 0.0 }
 0x5f8   :  { %v4161_v19 = vadd.f32 %v4160_v4, %v4159_v17  ;;  %v12139_v8 = vadd.f32 %v12003_v18, %v3618_v45  ;;  %v4364_v16 = vsel %vm4054_vm2, %v4245_v52, 0.0  ;;  %v4168_v60 = vsel %vm4054_vm2, %v12117_v13, 0.0 }
 0x5f9   :  { %v4357_v34 = vadd.f32 %v4356_v11, %v4355_v61  ;;  %v4247_v27 = vmul.f32 %v12130_v1, %v12130_v1  ;;  %v12147_v26 = vadd.f32 %v12056_v15, %v3619_v56  ;;  %v4366_v55 = vsel %vm4054_vm2, %v4246_v58, 0.0  ;;  %v2693_v4 = vpop.f32.mrf.mxu1 }
 0x5fa   :  { %v3120_v25 = vpop.f32.mrf.mxu2  ;;  %v4163_v63 = vadd.f32 %v4162_v40, %v4161_v19  ;;  %v4170_v2 = vsel %vm4054_vm2, %v12130_v1, 0.0  ;;  %v4248_v11 = vmul.f32 %v12139_v8, %v12139_v8  ;;  %v4172_v50 = vsel %vm4054_vm2, %v12139_v8, 0.0  ;;  %v14474_v40 = vld [vmem:[#allocation33_spill] sm:$0xff] }
 0x5fb   :  { %v3551_v59 = vpop.f32.mrf.mxu3  ;;  %v3189_v38 = vadd.f32 %v3120_v25, %v2757_v24  ;;  %v4359_v54 = vadd.f32 %v4358_v0, %v4357_v34  ;;  %v4362_v24 = vsel %vm4054_vm2, %v4244_v49, 0.0  ;;  %v4368_v15 = vsel %vm4054_vm2, %v4247_v27, 0.0 }
 0x5fc   :  { %v4165_v36 = vadd.f32 %v4164_v57, %v4163_v63  ;;  %v4249_v23 = vmul.f32 %v12147_v26, %v12147_v26  ;;  %v2759_v49 = vadd.f32 %v2693_v4, %v14474_v40  ;;  %v4174_v45 = vsel %vm4054_vm2, %v12147_v26, 0.0 }
 0x5fd   :  { %v3620_v32 = vadd.f32 %v3551_v59, %v3189_v38  ;;  %v4361_v48 = vadd.f32 %v4360_v42, %v4359_v54 }
 0x5fe   :  { %v4167_v18 = vadd.f32 %v4166_v7, %v4165_v36  ;;  %v3985_v10 = vpop.f32.mrf.mxu0  ;;  %v4372_v42 = vsel %vm4054_vm2, %v4249_v23, 0.0  ;;  %v4912_v23 = vld [vmem:[%s14195_s4 + $0x18] sm:$0xff] }
 0x5ff   :  { %v4363_v53 = vadd.f32 %v4362_v24, %v4361_v48  ;;  %v12154_v25 = vadd.f32 %v3982_v43, %v3620_v32  ;;  %v4370_v43 = vsel %vm4054_vm2, %v4248_v11, 0.0 }
 0x600   :  { %v4169_v39 = vadd.f32 %v4168_v60, %v4167_v18 }
 0x601   :  { %v4365_v6 = vadd.f32 %v4364_v16, %v4363_v53  ;;  %v4250_v38 = vmul.f32 %v12154_v25, %v12154_v25  ;;  %v4176_v57 = vsel %vm4054_vm2, %v12154_v25, 0.0 }
 0x602   :  { %v3123_v33 = vpop.f32.mrf.mxu2  ;;  %v4171_v0 = vadd.f32 %v4170_v2, %v4169_v39 }
 0x603   :  { %v3554_v46 = vpop.f32.mrf.mxu3  ;;  %v3190_v35 = vadd.f32 %v3123_v33, %v2758_v22  ;;  %v4367_v17 = vadd.f32 %v4366_v55, %v4365_v6  ;;  %v4374_v58 = vsel %vm4054_vm2, %v4250_v38, 0.0 }
 0x604   :  { %v4173_v19 = vadd.f32 %v4172_v50, %v4171_v0  ;;  %v4911_v50 = vld [vmem:[%s14195_s4 + $0x10] sm:$0xff] }
 0x605   :  { %v3621_v59 = vadd.f32 %v3554_v46, %v3190_v35  ;;  %v4369_v34 = vadd.f32 %v4368_v15, %v4367_v17  ;;  %v4914_v17 = vpack.c.bf16 %v4912_v23, %v4911_v50  ;;  %v14477_v50 = vld [vmem:[#allocation36_spill] sm:$0xff] }
 0x606   :  { %v4175_v54 = vadd.f32 %v4174_v45, %v4173_v19  ;;  %v3987_v36 = vpop.f32.mrf.mxu0 }
 0x607   :  { %v12161_v61 = vadd.f32 %v3985_v10, %v3621_v59  ;;  %v4371_v22 = vadd.f32 %v4370_v43, %v4369_v34  ;;  %5385 = vmatpush.bf16.msrb.mxu2 %v4914_v17  ;;  %v14478_v17 = vld [vmem:[#allocation37_spill] sm:$0xff] }
 0x608   :  { %v4177_v48 = vadd.f32 %v4176_v57, %v4175_v54 }
 0x609   :  { %v4251_v56 = vmul.f32 %v12161_v61, %v12161_v61  ;;  %v4178_v24 = vsel %vm4054_vm2, %v12161_v61, 0.0  ;;  %v4373_v32 = vadd.f32 %v4372_v42, %v4371_v22 }
 0x60a   :  { %v3125_v52 = vpop.f32.mrf.mxu2  ;;  %v4179_v60 = vadd.f32 %v4178_v24, %v4177_v48  ;;  %v4910_v48 = vld [vmem:[%s14195_s4 + $0x8] sm:$0xff] }
 0x60b   :  { %v3191_v3 = vadd.f32 %v3125_v52, %v2759_v49  ;;  %v3556_v63 = vpop.f32.mrf.mxu3  ;;  %v4376_v16 = vsel %vm4054_vm2, %v4251_v56, 0.0  ;;  %v4375_v46 = vadd.f32 %v4374_v58, %v4373_v32  ;;  %v9570_v56 = vld [vmem:[%s14195_s4 + $0x50] sm:$0xff]  ;;  %v4909_v32 = vld [vmem:[%s14195_s4] sm:$0xff] }
 0x60d   :  { %v3622_v7 = vadd.f32 %v3556_v63, %v3191_v3  ;;  %v4377_v53 = vadd.f32 %v4376_v16, %v4375_v46  ;;  %v9571_v3 = vld [vmem:[%s14195_s4 + $0x58] sm:$0xff]  ;;  %v4913_v46 = vpack.c.bf16 %v4910_v48, %v4909_v32 }
 0x60e   :  { %v5650_v22 = vpack.c.bf16 %v9571_v3, %v9570_v56  ;;  %v14487_v32 = vld [vmem:[#allocation74_spill] sm:$0xff] }
 0x60f   :  { %v4053_v33 = vadd.f32 %v3987_v36, %v3622_v7  ;;  %v4390_v36 = vld [vmem:[%s14193_s2] sm:$0x1]  ;;  %5386 = vmatpush.bf16.msrb.mxu2 %v4913_v46 }
 0x610   :  { %5753 = vmatpush.bf16.msrb.mxu3 %v5650_v22 }
 0x611   :  { %v4180_v27 = vsel %vm4054_vm2, %v4053_v33, 0.0  ;;  %v4252_v35 = vmul.f32 %v4053_v33, %v4053_v33 }
 0x612   :  { %v4181_v18 = vadd.f32 %v4180_v27, %v4179_v60 }
 0x613   :  { %v4378_v55 = vsel %vm4054_vm2, %v4252_v35, 0.0  ;;  %v4403_v35 = vld [vmem:[%s14194_s3] sm:$0x1] }
 0x614   :  { %v4182_v10 = vrot.slane %v4181_v18, 4  ;;  %v4379_v2 = vadd.f32 %v4378_v55, %v4377_v53 }
 0x616   :  { %v4183_v11 = vadd.f32 %v4182_v10, %v4181_v18  ;;  %v4380_v59 = vrot.slane %v4379_v2, 4 }
 0x618   :  { %v4184_v4 = vrot.slane %v4183_v11, 2  ;;  %v4381_v6 = vadd.f32 %v4380_v59, %v4379_v2 }
 0x61a   :  { %v4185_v39 = vadd.f32 %v4184_v4, %v4183_v11  ;;  %v4382_v15 = vrot.slane %v4381_v6, 2  ;;  %v14475_v4 = vld [vmem:[#allocation34_spill] sm:$0xff] }
 0x61c   :  { %v4186_v0 = vrot.slane %v4185_v39, 1  ;;  %v4383_v40 = vadd.f32 %v4382_v15, %v4381_v6 }
 0x61e   :  { %v4187_v49 = vadd.f32 %v4186_v0, %v4185_v39  ;;  %v4384_v43 = vrot.slane %v4383_v40, 1  ;;  %v14476_v39 = vld [vmem:[#allocation35_spill] sm:$0xff] }
 0x620   :  { %v4188_v45 = vmul.f32 0.001953125, %v4187_v49  ;;  %v4385_v38 = vadd.f32 %v4384_v43, %v4383_v40  ;;  %v14480_v49 = vld [vmem:[#allocation41_spill] sm:$0xff] }
 0x622   :  { %v4386_v34 = vmul.f32 0.001953125, %v4385_v38  ;;  %v4387_v19 = vmul.f32 %v4188_v45, %v4188_v45 }
 0x624   :  { %v4388_v52 = vsub.f32 %v4386_v34, %v4387_v19  ;;  %v14482_v34 = vld [vmem:[#allocation43_spill] sm:$0xff] }
 0x626   :  { %v4389_v42 = vmax.f32 %v4388_v52, 0.0  ;;  %v14483_v52 = vld [vmem:[#allocation44_spill] sm:$0xff] }
 0x628   :  { %v4391_v57 = vadd.f32 1e-05, %v4389_v42 }
 0x62a   :  { %9826 = vrsqrt.f32 %v4391_v57  ;;  %vm4398_vm4 = vweird.f32 %v4391_v57 }
 0x630   :  { %v9827_v54 = vpop.eup %9826 }
 0x631   :  { %v4393_v63 = vmul.f32 %v9827_v54, %v4391_v57  ;;  %vm4399_vm3 = vweird.f32 %v9827_v54  ;;  %v14484_v57 = vld [vmem:[#allocation45_spill] sm:$0xff] }
 0x632   :  { %vm4400_vm5 = vmor %vm4398_vm4, %vm4399_vm3 }
 0x633   :  { %v4394_v58 = vmul.f32 %v9827_v54, %v4393_v63  ;;  %v14485_v63 = vld [vmem:[#allocation73_spill] sm:$0xff] }
 0x635   :  { %v4395_v24 = vmul.f32 0.5, %v4394_v58 }
 0x637   :  { %v4396_v7 = vsub.f32 1.5, %v4395_v24  ;;  %v14486_v24 = vld [vmem:[#allocation17_spill] sm:$0xff] }
 0x639   :  { %v4397_v16 = vmul.f32 %v9827_v54, %v4396_v7 }
 0x63b   :  { %v4401_v60 = vsel %vm4400_vm5, %v9827_v54, %v4397_v16  ;;  %v14488_v16 = vld [vmem:[#allocation76_spill] sm:$0xff] }
 0x63c   :  { %v4402_v27 = vmul.f32 %v4401_v60, %v4390_v36 }
 0x63e   :  { %v4404_v53 = vmul.f32 %v4402_v27, %v4188_v45  ;;  %v12204_v18 = vperm.slane %v4402_v27, 0  ;;  %v14481_v45 = vld [vmem:[#allocation42_spill] sm:$0xff] }
 0x640   :  { %v4405_v55 = vsub.f32 %v4403_v35, %v4404_v53  ;;  %v4472_v10 = vmul.f32 %v12204_v18, %v4053_v33  ;;  %v4409_v6 = vmul.f32 %v12204_v18, %v14475_v4  ;;  %v4410_v15 = vmul.f32 %v12204_v18, %v14476_v39  ;;  %v14479_v33 = vld [vmem:[#allocation39_spill] sm:$0xff] }
 0x641   :  { %v4411_v23 = vmul.f32 %v12204_v18, %v14477_v50  ;;  %v4412_v0 = vmul.f32 %v12204_v18, %v14478_v17  ;;  %v4413_v40 = vmul.f32 %v12204_v18, %v14479_v33  ;;  %v4414_v43 = vmul.f32 %v12204_v18, %v14480_v49 }
 0x642   :  { %v12207_v2 = vperm.slane %v4405_v55, 0  ;;  %v4415_v38 = vmul.f32 %v12204_v18, %v14481_v45  ;;  %v12227_v19 = vmul.f32 %v12204_v18, %v14482_v34  ;;  %v12231_v42 = vmul.f32 %v12204_v18, %v14483_v52 }
 0x643   :  { %v12235_v56 = vmul.f32 %v12204_v18, %v14484_v57  ;;  %v4446_v3 = vmul.f32 %v12204_v18, %v11623_v47  ;;  %v4447_v22 = vmul.f32 %v12204_v18, %v11629_v21  ;;  %v4448_v54 = vmul.f32 %v12204_v18, %v11632_v37 }
 0x644   :  { %v4539_v11 = vadd.f32 %v12207_v2, %v4472_v10  ;;  %v4449_v58 = vmul.f32 %v12204_v18, %v14485_v63  ;;  %v4450_v7 = vmul.f32 %v12204_v18, %v14486_v24  ;;  %v4451_v48 = vmul.f32 %v12204_v18, %v14487_v32 }
 0x645   :  { %v4452_v36 = vmul.f32 %v12204_v18, %v11967_v41  ;;  %v4453_v47 = vmul.f32 %v12204_v18, %v14488_v16  ;;  %v4454_v21 = vmul.f32 %v12204_v18, %v11996_v30  ;;  %v4455_v37 = vmul.f32 %v12204_v18, %v14469_v5 }
 0x646   :  { %v4603_v59 = vmax.f32 %v4539_v11, 0.0  ;;  %v4456_v46 = vmul.f32 %v12204_v18, %v12014_v31  ;;  %v4457_v60 = vmul.f32 %v12204_v18, %v11706_v28  ;;  %v4458_v27 = vmul.f32 %v12204_v18, %v12044_v51 }
 0x647   :  { %v4459_v41 = vmul.f32 %v12204_v18, %v11757_v29  ;;  %v4460_v35 = vmul.f32 %v12204_v18, %v12065_v62  ;;  %v4461_v30 = vmul.f32 %v12204_v18, %v11810_v14  ;;  %v4462_v5 = vmul.f32 %v12204_v18, %v12077_v44 }
 0x648   :  { %4812 = vst.msk [vmem:[#allocation3 + $0x450] sm:$0xff] %vm4054_vm2, %v4603_v59  ;;  %v4463_v31 = vmul.f32 %v12204_v18, %v12093_v20  ;;  %v4464_v28 = vmul.f32 %v12204_v18, %v12103_v12  ;;  %v4465_v51 = vmul.f32 %v12204_v18, %v12108_v9  ;;  %v4466_v29 = vmul.f32 %v12204_v18, %v12117_v13 }
 0x649   :  { %v4467_v62 = vmul.f32 %v12204_v18, %v12130_v1  ;;  %v4468_v14 = vmul.f32 %v12204_v18, %v12139_v8  ;;  %v4469_v44 = vmul.f32 %v12204_v18, %v12147_v26  ;;  %v4470_v20 = vmul.f32 %v12204_v18, %v12154_v25 }
 0x64a   :  { %v4471_v12 = vmul.f32 %v12204_v18, %v12161_v61  ;;  %v4476_v9 = vadd.f32 %v12207_v2, %v4409_v6  ;;  %v4477_v53 = vadd.f32 %v12207_v2, %v4410_v15  ;;  %v4478_v13 = vadd.f32 %v12207_v2, %v4411_v23 }
 0x64b   :  { %v4479_v1 = vadd.f32 %v12207_v2, %v4412_v0  ;;  %v4480_v55 = vadd.f32 %v12207_v2, %v4413_v40  ;;  %v4481_v8 = vadd.f32 %v12207_v2, %v4414_v43  ;;  %v4482_v26 = vadd.f32 %v12207_v2, %v4415_v38 }
 0x64c   :  { %v12297_v10 = vadd.f32 %v12207_v2, %v4446_v3  ;;  %v12300_v25 = vadd.f32 %v12207_v2, %v4447_v22  ;;  %v12303_v61 = vadd.f32 %v12207_v2, %v4448_v54  ;;  %v12306_v11 = vadd.f32 %v12207_v2, %v4449_v58 }
 0x64d   :  { %v12309_v59 = vadd.f32 %v12207_v2, %v4450_v7  ;;  %v12312_v4 = vadd.f32 %v12207_v2, %v4451_v48  ;;  %v12315_v6 = vadd.f32 %v12207_v2, %v4452_v36  ;;  %v12318_v39 = vadd.f32 %v12207_v2, %v4453_v47  ;;  %v14489_v36 = vld [vmem:[#allocation46_spill] sm:$0xff] }
 0x64e   :  { %v12321_v15 = vadd.f32 %v12207_v2, %v4454_v21  ;;  %v12324_v50 = vadd.f32 %v12207_v2, %v4455_v37  ;;  %v12327_v23 = vadd.f32 %v12207_v2, %v4456_v46  ;;  %v12330_v17 = vadd.f32 %v12207_v2, %v4457_v60  ;;  %v14490_v37 = vld [vmem:[#allocation47_spill] sm:$0xff] }
 0x64f   :  { %v12333_v0 = vadd.f32 %v12207_v2, %v4458_v27  ;;  %v12336_v33 = vadd.f32 %v12207_v2, %v4459_v41  ;;  %v12339_v40 = vadd.f32 %v12207_v2, %v4460_v35  ;;  %v12342_v49 = vadd.f32 %v12207_v2, %v4461_v30 }
 0x650   :  { %v12345_v43 = vadd.f32 %v12207_v2, %v4462_v5  ;;  %v12348_v45 = vadd.f32 %v12207_v2, %v4463_v31  ;;  %v12351_v38 = vadd.f32 %v12207_v2, %v4464_v28  ;;  %v12354_v34 = vadd.f32 %v12207_v2, %v4465_v51 }
 0x651   :  { %v12357_v52 = vadd.f32 %v12207_v2, %v4466_v29  ;;  %v12360_v57 = vadd.f32 %v12207_v2, %v4467_v62  ;;  %v12363_v3 = vadd.f32 %v12207_v2, %v4468_v14  ;;  %v12366_v22 = vadd.f32 %v12207_v2, %v4469_v44  ;;  %v14494_v14 = vld [vmem:[#allocation51_spill] sm:$0xff] }
 0x652   :  { %v12369_v54 = vadd.f32 %v12207_v2, %v4470_v20  ;;  %v12372_v63 = vadd.f32 %v12207_v2, %v4471_v12  ;;  %v4540_v58 = vmax.f32 %v4476_v9, 0.0  ;;  %v4483_v24 = vadd.f32 %v12207_v2, %v12227_v19  ;;  %v14491_v19 = vld [vmem:[#allocation48_spill] sm:$0xff] }
 0x653   :  { %v4541_v7 = vmax.f32 %v4477_v53, 0.0  ;;  %v4542_v32 = vmax.f32 %v4478_v13, 0.0  ;;  %v4543_v48 = vmax.f32 %v4479_v1, 0.0  ;;  %v4419_v16 = vmul.f32 %v12204_v18, %v14489_v36  ;;  %v14495_v9 = vld [vmem:[#allocation52_spill] sm:$0xff]  ;;  %v14498_v36 = vld [vmem:[#allocation55_spill] sm:$0xff] }
 0x654   :  { %v4484_v47 = vadd.f32 %v12207_v2, %v12231_v42  ;;  %v4544_v21 = vmax.f32 %v4480_v55, 0.0  ;;  %4749 = vst.msk [vmem:[#allocation3 + $0x28] sm:$0xff] %vm4054_vm2, %v4540_v58  ;;  %v4420_v46 = vmul.f32 %v12204_v18, %v14490_v37  ;;  %v4485_v60 = vadd.f32 %v12207_v2, %v12235_v56  ;;  %v14492_v42 = vld [vmem:[#allocation49_spill] sm:$0xff]  ;;  %v14493_v56 = vld [vmem:[#allocation50_spill] sm:$0xff]  ;;  %v14499_v37 = vld [vmem:[#allocation56_spill] sm:$0xff] }
 0x655   :  { %v4545_v27 = vmax.f32 %v4481_v8, 0.0  ;;  %4750 = vst.msk [vmem:[#allocation3 + $0x30] sm:$0xff] %vm4054_vm2, %v4541_v7  ;;  %v4421_v41 = vmul.f32 %v12204_v18, %v14491_v19  ;;  %v4486_v35 = vadd.f32 %v12207_v2, %v4419_v16  ;;  %v4546_v30 = vmax.f32 %v4482_v26, 0.0  ;;  %v14496_v55 = vld [vmem:[#allocation53_spill] sm:$0xff]  ;;  %v9568_v19 = vld [vmem:[%s14195_s4 + $0x40] sm:$0xff] }
 0x656   :  { %4751 = vst.msk [vmem:[#allocation3 + $0x48] sm:$0xff] %vm4054_vm2, %v4542_v32  ;;  %v4422_v5 = vmul.f32 %v12204_v18, %v14492_v42  ;;  %v4487_v31 = vadd.f32 %v12207_v2, %v4420_v46  ;;  %v4547_v28 = vmax.f32 %v4483_v24, 0.0  ;;  %v4423_v51 = vmul.f32 %v12204_v18, %v14493_v56  ;;  %v14497_v24 = vld [vmem:[#allocation54_spill] sm:$0xff] }
 0x657   :  { %4752 = vst.msk [vmem:[#allocation3 + $0x50] sm:$0xff] %vm4054_vm2, %v4543_v48  ;;  %v4488_v29 = vadd.f32 %v12207_v2, %v4421_v41  ;;  %v4548_v62 = vmax.f32 %v4484_v47, 0.0  ;;  %v4424_v44 = vmul.f32 %v12204_v18, %v14494_v14  ;;  %v4549_v12 = vmax.f32 %v4485_v60, 0.0  ;;  %v14500_v41 = vld [vmem:[#allocation57_spill] sm:$0xff]  ;;  %v14501_v56 = vld [vmem:[#allocation58_spill] sm:$0xff] }
 0x658   :  { %4753 = vst.msk [vmem:[#allocation3 + $0x68] sm:$0xff] %vm4054_vm2, %v4544_v21  ;;  %v4489_v20 = vadd.f32 %v12207_v2, %v4422_v5  ;;  %v4425_v53 = vmul.f32 %v12204_v18, %v14495_v9  ;;  %v4490_v13 = vadd.f32 %v12207_v2, %v4423_v51  ;;  %v4550_v1 = vmax.f32 %v4486_v35, 0.0  ;;  %v9569_v5 = vld [vmem:[%s14195_s4 + $0x48] sm:$0xff] }
 0x659   :  { %4754 = vst.msk [vmem:[#allocation3 + $0x70] sm:$0xff] %vm4054_vm2, %v4545_v27  ;;  %v4426_v8 = vmul.f32 %v12204_v18, %v14496_v55  ;;  %v4491_v26 = vadd.f32 %v12207_v2, %v4424_v44  ;;  %v4551_v58 = vmax.f32 %v4487_v31, 0.0  ;;  %v4427_v7 = vmul.f32 %v12204_v18, %v14497_v24  ;;  %v4813_v31 = vld [vmem:[#allocation3 + $0x7] sm:$0xff] }
 0x65a   :  { %4755 = vst.msk [vmem:[#allocation3 + $0x88] sm:$0xff] %vm4054_vm2, %v4546_v30  ;;  %v4492_v32 = vadd.f32 %v12207_v2, %v4425_v53  ;;  %v4552_v48 = vmax.f32 %v4488_v29, 0.0  ;;  %v4428_v16 = vmul.f32 %v12204_v18, %v14498_v36  ;;  %v4553_v21 = vmax.f32 %v4489_v20, 0.0  ;;  %v14502_v29 = vld [vmem:[#allocation59_spill] sm:$0xff]  ;;  %v5548_v20 = vld [vmem:[#allocation3 + $0x9] sm:$0xff] }
 0x65b   :  { %4756 = vst.msk [vmem:[#allocation3 + $0x90] sm:$0xff] %vm4054_vm2, %v4547_v28  ;;  %v4493_v47 = vadd.f32 %v12207_v2, %v4426_v8  ;;  %v4429_v46 = vmul.f32 %v12204_v18, %v14499_v37  ;;  %v4494_v60 = vadd.f32 %v12207_v2, %v4427_v7  ;;  %v4554_v27 = vmax.f32 %v4490_v13, 0.0  ;;  %v4814_v28 = vld [vmem:[#allocation3 + $0xf] sm:$0xff] }
 0x65c   :  { %4757 = vst.msk [vmem:[#allocation3 + $0xa8] sm:$0xff] %vm4054_vm2, %v4548_v62  ;;  %v4430_v35 = vmul.f32 %v12204_v18, %v14500_v41  ;;  %v4495_v30 = vadd.f32 %v12207_v2, %v4428_v16  ;;  %v4555_v42 = vmax.f32 %v4491_v26, 0.0  ;;  %v4431_v51 = vmul.f32 %v12204_v18, %v14501_v56  ;;  %v14503_v9 = vld [vmem:[#allocation60_spill] sm:$0xff]  ;;  %v14504_v13 = vld [vmem:[#allocation61_spill] sm:$0xff]  ;;  %v14505_v41 = vld [vmem:[#allocation62_spill] sm:$0xff] }
 0x65d   :  { %4758 = vst.msk [vmem:[#allocation3 + $0xb0] sm:$0xff] %vm4054_vm2, %v4549_v12  ;;  %v4432_v62 = vmul.f32 %v12204_v18, %v14502_v29  ;;  %v4496_v14 = vadd.f32 %v12207_v2, %v4429_v46  ;;  %v4556_v44 = vmax.f32 %v4492_v32, 0.0  ;;  %v5549_v12 = vld [vmem:[#allocation3 + $0x11] sm:$0xff]  ;;  %v4433_v53 = vmul.f32 %v12204_v18, %v14503_v9  ;;  %v4915_v26 = vld [vmem:[#allocation3 + $0x8] sm:$0xff]  ;;  %v14510_v9 = vld [vmem:[#allocation67_spill] sm:$0xff] }
 0x65e   :  { %4759 = vst.msk [vmem:[#allocation3 + $0xc8] sm:$0xff] %vm4054_vm2, %v4550_v1  ;;  %v4434_v1 = vmul.f32 %v12204_v18, %v14504_v13  ;;  %v4497_v55 = vadd.f32 %v12207_v2, %v4430_v35  ;;  %v4557_v8 = vmax.f32 %v4493_v47, 0.0  ;;  %v4558_v24 = vmax.f32 %v4494_v60, 0.0  ;;  %v14506_v60 = vld [vmem:[#allocation63_spill] sm:$0xff]  ;;  %v14508_v56 = vld [vmem:[#allocation65_spill] sm:$0xff] }
 0x65f   :  { %4760 = vst.msk [vmem:[#allocation3 + $0xd0] sm:$0xff] %vm4054_vm2, %v4551_v58  ;;  %v4498_v58 = vadd.f32 %v12207_v2, %v4431_v51  ;;  %v5649_v7 = vpack.c.bf16 %v9569_v5, %v9568_v19  ;;  %v4877_v32 = vpack.c.bf16 %v4814_v28, %v4813_v31  ;;  %v4499_v36 = vadd.f32 %v12207_v2, %v4432_v62 }
 0x660   :  { %4761 = vst.msk [vmem:[#allocation3 + $0xe8] sm:$0xff] %vm4054_vm2, %v4552_v48  ;;  %v4916_v48 = vld [vmem:[#allocation3 + $0x10] sm:$0xff]  ;;  %v4559_v16 = vmax.f32 %v4495_v30, 0.0  ;;  %v5612_v37 = vpack.c.bf16 %v5549_v12, %v5548_v20  ;;  %v4435_v47 = vmul.f32 %v12204_v18, %v14505_v41  ;;  %v4560_v35 = vmax.f32 %v4496_v14, 0.0  ;;  %v14509_v14 = vld [vmem:[#allocation66_spill] sm:$0xff]  ;;  %v14514_v41 = vld [vmem:[#allocation71_spill] sm:$0xff] }
 0x661   :  { %4762 = vst.msk [vmem:[#allocation3 + $0xf0] sm:$0xff] %vm4054_vm2, %v4553_v21  ;;  %v4979_v46 = vpack.c.bf16 %v4916_v48, %v4915_v26  ;;  %v4500_v21 = vadd.f32 %v12207_v2, %v4433_v53  ;;  %5754 = vmatpush.bf16.msrb.mxu3 %v5649_v7  ;;  %9536 = vmatmul.msk.bf16.vlgmr.msrb.gmra.mxu2 %vm4054_vm2, %v4877_v32  ;;  %v4561_v30 = vmax.f32 %v4497_v55, 0.0  ;;  %v4562_v28 = vmax.f32 %v4498_v58, 0.0  ;;  %v14511_v55 = vld [vmem:[#allocation68_spill] sm:$0xff] }
 0x662   :  { %4763 = vst.msk [vmem:[#allocation3 + $0x108] sm:$0xff] %vm4054_vm2, %v4554_v27  ;;  %v4436_v27 = vmul.f32 %v12204_v18, %v14506_v60  ;;  %v4501_v19 = vadd.f32 %v12207_v2, %v4434_v1  ;;  %v4502_v31 = vadd.f32 %v12207_v2, %v4435_v47  ;;  %v4438_v51 = vmul.f32 %v12204_v18, %v14508_v56  ;;  %v14515_v60 = vld [vmem:[#allocation72_spill] sm:$0xff] }
 0x663   :  { %4764 = vst.msk [vmem:[#allocation3 + $0x110] sm:$0xff] %vm4054_vm2, %v4555_v42  ;;  %9504 = vmatmul.msk.bf16.vlgmr.msra.gmra.mxu1 %vm4054_vm2, %v4979_v46  ;;  %v14507_v42 = vld [vmem:[#allocation64_spill] sm:$0xff]  ;;  %v4563_v62 = vmax.f32 %v4499_v36, 0.0  ;;  %v4564_v12 = vmax.f32 %v4500_v21, 0.0  ;;  %v4440_v53 = vmul.f32 %v12204_v18, %v14510_v9  ;;  %v14513_v36 = vld [vmem:[#allocation70_spill] sm:$0xff]  ;;  %v4444_v47 = vmul.f32 %v12204_v18, %v14514_v41 }
 0x664   :  { %4765 = vst.msk [vmem:[#allocation3 + $0x128] sm:$0xff] %vm4054_vm2, %v4556_v44  ;;  %v4437_v5 = vmul.f32 %v12204_v18, %v14507_v42  ;;  %v4503_v29 = vadd.f32 %v12207_v2, %v4436_v27  ;;  %9572 = vmatmul.msk.bf16.vlgmr.msrb.gmra.mxu3 %vm4054_vm2, %v5612_v37  ;;  %v4439_v44 = vmul.f32 %v12204_v18, %v14509_v14  ;;  %v4565_v1 = vmax.f32 %v4501_v19, 0.0 }
 0x665   :  { %4766 = vst.msk [vmem:[#allocation3 + $0x130] sm:$0xff] %vm4054_vm2, %v4557_v8  ;;  %v4505_v13 = vadd.f32 %v12207_v2, %v4438_v51  ;;  %v4441_v8 = vmul.f32 %v12204_v18, %v14511_v55  ;;  %v4566_v58 = vmax.f32 %v4502_v31, 0.0  ;;  %v4507_v32 = vadd.f32 %v12207_v2, %v4440_v53  ;;  %v4815_v55 = vld [vmem:[#allocation3 + $0x27] sm:$0xff] }
 0x666   :  { %4767 = vst.msk [vmem:[#allocation3 + $0x148] sm:$0xff] %vm4054_vm2, %v4558_v24  ;;  %v4504_v20 = vadd.f32 %v12207_v2, %v4437_v5  ;;  %v4506_v26 = vadd.f32 %v12207_v2, %v4439_v44  ;;  %v14512_v24 = vld [vmem:[#allocation69_spill] sm:$0xff]  ;;  %v4567_v48 = vmax.f32 %v4503_v29, 0.0  ;;  %v4445_v27 = vmul.f32 %v12204_v18, %v14515_v60  ;;  %v9607_v29 = vld [vmem:[%s14195_s4 + $0x78] sm:$0xff] }
 0x667   :  { %4768 = vst.msk [vmem:[#allocation3 + $0x150] sm:$0xff] %vm4054_vm2, %v4559_v16  ;;  %v4442_v7 = vmul.f32 %v12204_v18, %v14512_v24  ;;  %v4443_v16 = vmul.f32 %v12204_v18, %v14513_v36  ;;  %v4508_v37 = vadd.f32 %v12207_v2, %v4441_v8  ;;  %v4511_v42 = vadd.f32 %v12207_v2, %v4444_v47  ;;  %v9606_v18 = vld [vmem:[%s14195_s4 + $0x70] sm:$0xff]  ;;  %v9643_v44 = vld [vmem:[%s14195_s4 + $0x98] sm:$0xff]  ;;  %v4919_v47 = vld [vmem:[#allocation3 + $0x48] sm:$0xff] }
 0x668   :  { %4769 = vst.msk [vmem:[#allocation3 + $0x168] sm:$0xff] %vm4054_vm2, %v4560_v35  ;;  %v4568_v46 = vmax.f32 %v4504_v20, 0.0  ;;  %v4569_v35 = vmax.f32 %v4505_v13, 0.0  ;;  %v4571_v5 = vmax.f32 %v4507_v32, 0.0  ;;  %v4512_v31 = vadd.f32 %v12207_v2, %v4445_v27  ;;  %v9604_v20 = vld [vmem:[%s14195_s4 + $0x60] sm:$0xff]  ;;  %v4917_v13 = vld [vmem:[#allocation3 + $0x28] sm:$0xff] }
 0x669   :  { %4770 = vst.msk [vmem:[#allocation3 + $0x170] sm:$0xff] %vm4054_vm2, %v4561_v30  ;;  %v4509_v21 = vadd.f32 %v12207_v2, %v4442_v7  ;;  %v4510_v19 = vadd.f32 %v12207_v2, %v4443_v16  ;;  %v4570_v30 = vmax.f32 %v4506_v26, 0.0  ;;  %v9642_v2 = vld [vmem:[%s14195_s4 + $0x90] sm:$0xff]  ;;  %v6082_v14 = vpack.c.bf16 %v9607_v29, %v9606_v18 }
 0x66a   :  { %4771 = vst.msk [vmem:[#allocation3 + $0x188] sm:$0xff] %vm4054_vm2, %v4562_v28  ;;  %v4572_v28 = vmax.f32 %v4508_v37, 0.0  ;;  %v4576_v9 = vmax.f32 %v4512_v31, 0.0  ;;  %v6514_v53 = vpack.c.bf16 %v9643_v44, %v9642_v2  ;;  %v4577_v8 = vmax.f32 %v12297_v10, 0.0  ;;  %v4816_v24 = vld [vmem:[#allocation3 + $0x2f] sm:$0xff]  ;;  %v4821_v2 = vld [vmem:[#allocation3 + $0x87] sm:$0xff] }
 0x66b   :  { %4772 = vst.msk [vmem:[#allocation3 + $0x190] sm:$0xff] %vm4054_vm2, %v4563_v62  ;;  %v4573_v56 = vmax.f32 %v4509_v21, 0.0  ;;  %v4574_v51 = vmax.f32 %v4510_v19, 0.0  ;;  %v4575_v62 = vmax.f32 %v4511_v42, 0.0  ;;  %6185 = vmatpush.bf16.msrb.mxu0 %v6082_v14  ;;  %v5550_v7 = vld [vmem:[#allocation3 + $0x29] sm:$0xff]  ;;  %v5551_v32 = vld [vmem:[#allocation3 + $0x31] sm:$0xff]  ;;  %v4878_v36 = vpack.c.bf16 %v4816_v24, %v4815_v55 }
 0x66c   :  { %4773 = vst.msk [vmem:[#allocation3 + $0x1a8] sm:$0xff] %vm4054_vm2, %v4564_v12  ;;  %v9605_v12 = vld [vmem:[%s14195_s4 + $0x68] sm:$0xff]  ;;  %6617 = vmatpush.bf16.msrb.mxu1 %v6514_v53  ;;  %v5613_v16 = vpack.c.bf16 %v5551_v32, %v5550_v7  ;;  %v4579_v37 = vmax.f32 %v12303_v61, 0.0  ;;  %v4580_v10 = vmax.f32 %v12306_v11, 0.0  ;;  %v4583_v61 = vmax.f32 %v12315_v6, 0.0  ;;  %v4924_v29 = vld [vmem:[#allocation3 + $0x90] sm:$0xff] }
 0x66d   :  { %4774 = vst.msk [vmem:[#allocation3 + $0x1b0] sm:$0xff] %vm4054_vm2, %v4565_v1  ;;  %v4918_v1 = vld [vmem:[#allocation3 + $0x30] sm:$0xff]  ;;  %v6081_v26 = vpack.c.bf16 %v9605_v12, %v9604_v20  ;;  %v4584_v11 = vmax.f32 %v12318_v39, 0.0  ;;  %v4585_v41 = vmax.f32 %v12321_v15, 0.0  ;;  %v4588_v6 = vmax.f32 %v12330_v17, 0.0  ;;  %v4817_v21 = vld [vmem:[#allocation3 + $0x47] sm:$0xff] }
 0x66e   :  { %4775 = vst.msk [vmem:[#allocation3 + $0x1c8] sm:$0xff] %vm4054_vm2, %v4566_v58  ;;  %v4980_v58 = vpack.c.bf16 %v4918_v1, %v4917_v13  ;;  %v4589_v39 = vmax.f32 %v12333_v0, 0.0  ;;  %v4590_v15 = vmax.f32 %v12336_v33, 0.0  ;;  %v5552_v60 = vld [vmem:[#allocation3 + $0x49] sm:$0xff]  ;;  %v5553_v17 = vld [vmem:[#allocation3 + $0x51] sm:$0xff]  ;;  %v4592_v27 = vmax.f32 %v12342_v49, 0.0 }
 0x66f   :  { %4776 = vst.msk [vmem:[#allocation3 + $0x1d0] sm:$0xff] %vm4054_vm2, %v4567_v48  ;;  %v4578_v48 = vmax.f32 %v12300_v25, 0.0  ;;  %v4581_v25 = vmax.f32 %v12309_v59, 0.0  ;;  %6186 = vmatpush.bf16.msrb.mxu0 %v6081_v26  ;;  %v4586_v59 = vmax.f32 %v12324_v50, 0.0  ;;  %v4920_v50 = vld [vmem:[#allocation3 + $0x50] sm:$0xff]  ;;  %v4593_v0 = vmax.f32 %v12345_v43, 0.0 }
 0x670   :  { %4777 = vst.msk [vmem:[#allocation3 + $0x1e8] sm:$0xff] %vm4054_vm2, %v4568_v46  ;;  %v4582_v46 = vmax.f32 %v12312_v4, 0.0  ;;  %v4587_v4 = vmax.f32 %v12327_v23, 0.0  ;;  %v4818_v23 = vld [vmem:[#allocation3 + $0x4f] sm:$0xff]  ;;  %v4981_v33 = vpack.c.bf16 %v4920_v50, %v4919_v47  ;;  %v4594_v19 = vmax.f32 %v12348_v45, 0.0  ;;  %v4823_v1 = vld [vmem:[#allocation3 + $0xa7] sm:$0xff] }
 0x671   :  { %4778 = vst.msk [vmem:[#allocation3 + $0x1f0] sm:$0xff] %vm4054_vm2, %v4569_v35  ;;  %9537 = vmatmul.msk.bf16.gmra.mxu2 %vm4054_vm2, %v4878_v36  ;;  %v4591_v35 = vmax.f32 %v12339_v40, 0.0  ;;  %v5614_v40 = vpack.c.bf16 %v5553_v17, %v5552_v60  ;;  %v4595_v42 = vmax.f32 %v12351_v38, 0.0  ;;  %v4596_v49 = vmax.f32 %v12354_v34, 0.0  ;;  %v4820_v31 = vld [vmem:[#allocation3 + $0x6f] sm:$0xff]  ;;  %v4829_v60 = vld [vmem:[#allocation3 + $0x107] sm:$0xff] }
 0x672   :  { %4779 = vst.msk [vmem:[#allocation3 + $0x208] sm:$0xff] %vm4054_vm2, %v4570_v30  ;;  %9608 = vmatmul.msk.bf16.vlgmr.msrb.gmra.mxu0 %vm4054_vm2, %v4878_v36  ;;  %v4879_v30 = vpack.c.bf16 %v4818_v23, %v4817_v21  ;;  %v4597_v43 = vmax.f32 %v12357_v52, 0.0  ;;  %v4598_v45 = vmax.f32 %v12360_v57, 0.0  ;;  %v4599_v38 = vmax.f32 %v12363_v3, 0.0  ;;  %v4921_v57 = vld [vmem:[#allocation3 + $0x68] sm:$0xff]  ;;  %v4922_v3 = vld [vmem:[#allocation3 + $0x70] sm:$0xff] }
 0x673   :  { %4780 = vst.msk [vmem:[#allocation3 + $0x210] sm:$0xff] %vm4054_vm2, %v4571_v5  ;;  %9505 = vmatmul.msk.bf16.gmra.mxu1 %vm4054_vm2, %v4980_v58  ;;  %v4600_v34 = vmax.f32 %v12366_v22, 0.0  ;;  %v4601_v5 = vmax.f32 %v12369_v54, 0.0  ;;  %v4602_v52 = vmax.f32 %v12372_v63, 0.0  ;;  %v4819_v22 = vld [vmem:[#allocation3 + $0x67] sm:$0xff]  ;;  %v5555_v54 = vld [vmem:[#allocation3 + $0x71] sm:$0xff] }
 0x674   :  { %4781 = vst.msk [vmem:[#allocation3 + $0x268] sm:$0xff] %vm4054_vm2, %v4572_v28  ;;  %9573 = vmatmul.msk.bf16.gmra.mxu3 %vm4054_vm2, %v5613_v16  ;;  %v5554_v28 = vld [vmem:[#allocation3 + $0x69] sm:$0xff]  ;;  %v5557_v44 = vld [vmem:[#allocation3 + $0x91] sm:$0xff] }
 0x675   :  { %4782 = vst.msk [vmem:[#allocation3 + $0x270] sm:$0xff] %vm4054_vm2, %v4573_v56  ;;  %v4982_v56 = vpack.c.bf16 %v4922_v3, %v4921_v57  ;;  %v5615_v18 = vpack.c.bf16 %v5555_v54, %v5554_v28  ;;  %v4923_v63 = vld [vmem:[#allocation3 + $0x88] sm:$0xff]  ;;  %v4926_v13 = vld [vmem:[#allocation3 + $0xb0] sm:$0xff] }
 0x676   :  { %4783 = vst.msk [vmem:[#allocation3 + $0x288] sm:$0xff] %vm4054_vm2, %v4574_v51  ;;  %v4880_v51 = vpack.c.bf16 %v4820_v31, %v4819_v22  ;;  %v5556_v14 = vld [vmem:[#allocation3 + $0x89] sm:$0xff]  ;;  %v4983_v20 = vpack.c.bf16 %v4924_v29, %v4923_v63  ;;  %v5559_v26 = vld [vmem:[#allocation3 + $0xb1] sm:$0xff] }
 0x677   :  { %4784 = vst.msk [vmem:[#allocation3 + $0x290] sm:$0xff] %vm4054_vm2, %v4575_v62  ;;  %v4822_v62 = vld [vmem:[#allocation3 + $0x8f] sm:$0xff]  ;;  %v4825_v36 = vld [vmem:[#allocation3 + $0xc7] sm:$0xff] }
 0x678   :  { %4785 = vst.msk [vmem:[#allocation3 + $0x2a8] sm:$0xff] %vm4054_vm2, %v4576_v9  ;;  %v4881_v12 = vpack.c.bf16 %v4822_v62, %v4821_v2  ;;  %v5616_v9 = vpack.c.bf16 %v5557_v44, %v5556_v14  ;;  %v4925_v53 = vld [vmem:[#allocation3 + $0xa8] sm:$0xff]  ;;  %v4932_v23 = vld [vmem:[#allocation3 + $0x110] sm:$0xff] }
 0x679   :  { %4786 = vst.msk [vmem:[#allocation3 + $0x2b0] sm:$0xff] %vm4054_vm2, %v4577_v8  ;;  %v4824_v55 = vld [vmem:[#allocation3 + $0xaf] sm:$0xff]  ;;  %v4984_v58 = vpack.c.bf16 %v4926_v13, %v4925_v53  ;;  %v4831_v3 = vld [vmem:[#allocation3 + $0x127] sm:$0xff] }
 0x67a   :  { %4787 = vst.msk [vmem:[#allocation3 + $0x2c8] sm:$0xff] %vm4054_vm2, %v4578_v48  ;;  %v5558_v8 = vld [vmem:[#allocation3 + $0xa9] sm:$0xff]  ;;  %v4882_v24 = vpack.c.bf16 %v4824_v55, %v4823_v1  ;;  %v5567_v54 = vld [vmem:[#allocation3 + $0x131] sm:$0xff] }
 0x67b   :  { %4788 = vst.msk [vmem:[#allocation3 + $0x2d0] sm:$0xff] %vm4054_vm2, %v4579_v37  ;;  %v5617_v7 = vpack.c.bf16 %v5559_v26, %v5558_v8  ;;  %v4927_v32 = vld [vmem:[#allocation3 + $0xc8] sm:$0xff]  ;;  %v4928_v48 = vld [vmem:[#allocation3 + $0xd0] sm:$0xff] }
 0x67c   :  { %4789 = vst.msk [vmem:[#allocation3 + $0x2e8] sm:$0xff] %vm4054_vm2, %v4580_v10  ;;  %v4826_v16 = vld [vmem:[#allocation3 + $0xcf] sm:$0xff]  ;;  %v4833_v55 = vld [vmem:[#allocation3 + $0x147] sm:$0xff] }
 0x67d   :  { %4790 = vst.msk [vmem:[#allocation3 + $0x2f0] sm:$0xff] %vm4054_vm2, %v4581_v25  ;;  %v5560_v37 = vld [vmem:[#allocation3 + $0xc9] sm:$0xff]  ;;  %v5561_v10 = vld [vmem:[#allocation3 + $0xd1] sm:$0xff]  ;;  %v4985_v25 = vpack.c.bf16 %v4928_v48, %v4927_v32 }
 0x67e   :  { %4791 = vst.msk [vmem:[#allocation3 + $0x308] sm:$0xff] %vm4054_vm2, %v4582_v46  ;;  %v4883_v46 = vpack.c.bf16 %v4826_v16, %v4825_v36  ;;  %v4830_v17 = vld [vmem:[#allocation3 + $0x10f] sm:$0xff] }
 0x67f   :  { %4792 = vst.msk [vmem:[#allocation3 + $0x310] sm:$0xff] %vm4054_vm2, %v4583_v61  ;;  %v5618_v61 = vpack.c.bf16 %v5561_v10, %v5560_v37  ;;  %v4934_v57 = vld [vmem:[#allocation3 + $0x130] sm:$0xff]  ;;  %v4935_v13 = vld [vmem:[#allocation3 + $0x148] sm:$0xff] }
 0x680   :  { %4793 = vst.msk [vmem:[#allocation3 + $0x328] sm:$0xff] %vm4054_vm2, %v4584_v11  ;;  %v4929_v11 = vld [vmem:[#allocation3 + $0xe8] sm:$0xff]  ;;  %v4936_v1 = vld [vmem:[#allocation3 + $0x150] sm:$0xff] }
 0x681   :  { %4794 = vst.msk [vmem:[#allocation3 + $0x330] sm:$0xff] %vm4054_vm2, %v4585_v41  ;;  %9538 = vmatmul.msk.bf16.gmra.mxu2 %vm4054_vm2, %v4879_v30  ;;  %v4930_v41 = vld [vmem:[#allocation3 + $0xf0] sm:$0xff]  ;;  %v4989_v36 = vpack.c.bf16 %v4936_v1, %v4935_v13 }
 0x682   :  { %4795 = vst.msk [vmem:[#allocation3 + $0x348] sm:$0xff] %vm4054_vm2, %v4586_v59  ;;  %9609 = vmatmul.msk.bf16.gmra.mxu0 %vm4054_vm2, %v4879_v30  ;;  %v4827_v59 = vld [vmem:[#allocation3 + $0xe7] sm:$0xff]  ;;  %v4832_v31 = vld [vmem:[#allocation3 + $0x12f] sm:$0xff] }
 0x683   :  { %4796 = vst.msk [vmem:[#allocation3 + $0x350] sm:$0xff] %vm4054_vm2, %v4587_v4  ;;  %9506 = vmatmul.msk.bf16.gmra.mxu1 %vm4054_vm2, %v4981_v33  ;;  %v4828_v4 = vld [vmem:[#allocation3 + $0xef] sm:$0xff] }
 0x684   :  { %4797 = vst.msk [vmem:[#allocation3 + $0x368] sm:$0xff] %vm4054_vm2, %v4588_v6  ;;  %9574 = vmatmul.msk.bf16.gmra.mxu3 %vm4054_vm2, %v5614_v40  ;;  %v5562_v6 = vld [vmem:[#allocation3 + $0xe9] sm:$0xff]  ;;  %v4884_v47 = vpack.c.bf16 %v4828_v4, %v4827_v59 }
 0x685   :  { %4798 = vst.msk [vmem:[#allocation3 + $0x370] sm:$0xff] %vm4054_vm2, %v4589_v39  ;;  %v5563_v39 = vld [vmem:[#allocation3 + $0xf1] sm:$0xff]  ;;  %v5566_v28 = vld [vmem:[#allocation3 + $0x129] sm:$0xff] }
 0x686   :  { %4799 = vst.msk [vmem:[#allocation3 + $0x388] sm:$0xff] %vm4054_vm2, %v4590_v15  ;;  %v4986_v15 = vpack.c.bf16 %v4930_v41, %v4929_v11  ;;  %v5619_v50 = vpack.c.bf16 %v5563_v39, %v5562_v6  ;;  %v5621_v63 = vpack.c.bf16 %v5567_v54, %v5566_v28 }
 0x687   :  { %4800 = vst.msk [vmem:[#allocation3 + $0x390] sm:$0xff] %vm4054_vm2, %v4591_v35  ;;  %v4931_v35 = vld [vmem:[#allocation3 + $0x108] sm:$0xff] }
 0x688   :  { %4801 = vst.msk [vmem:[#allocation3 + $0x3a8] sm:$0xff] %vm4054_vm2, %v4592_v27  ;;  %v5564_v27 = vld [vmem:[#allocation3 + $0x109] sm:$0xff]  ;;  %v4987_v33 = vpack.c.bf16 %v4932_v23, %v4931_v35 }
 0x689   :  { %4802 = vst.msk [vmem:[#allocation3 + $0x3b0] sm:$0xff] %vm4054_vm2, %v4593_v0  ;;  %v5565_v0 = vld [vmem:[#allocation3 + $0x111] sm:$0xff] }
 0x68a   :  { %4803 = vst.msk [vmem:[#allocation3 + $0x3c8] sm:$0xff] %vm4054_vm2, %v4594_v19  ;;  %v4885_v19 = vpack.c.bf16 %v4830_v17, %v4829_v60  ;;  %v5620_v30 = vpack.c.bf16 %v5565_v0, %v5564_v27  ;;  %v4836_v23 = vld [vmem:[#allocation3 + $0x16f] sm:$0xff] }
 0x68b   :  { %4804 = vst.msk [vmem:[#allocation3 + $0x3d0] sm:$0xff] %vm4054_vm2, %v4595_v42  ;;  %v5570_v60 = vld [vmem:[#allocation3 + $0x169] sm:$0xff]  ;;  %v5571_v17 = vld [vmem:[#allocation3 + $0x171] sm:$0xff] }
 0x68c   :  { %4805 = vst.msk [vmem:[#allocation3 + $0x3e8] sm:$0xff] %vm4054_vm2, %v4596_v49 }
 0x68d   :  { %4806 = vst.msk [vmem:[#allocation3 + $0x3f0] sm:$0xff] %vm4054_vm2, %v4597_v43 }
 0x68e   :  { %4807 = vst.msk [vmem:[#allocation3 + $0x408] sm:$0xff] %vm4054_vm2, %v4598_v45 }
 0x68f   :  { %4808 = vst.msk [vmem:[#allocation3 + $0x410] sm:$0xff] %vm4054_vm2, %v4599_v38 }
 0x690   :  { %4809 = vst.msk [vmem:[#allocation3 + $0x428] sm:$0xff] %vm4054_vm2, %v4600_v34 }
 0x691   :  { %4810 = vst.msk [vmem:[#allocation3 + $0x430] sm:$0xff] %vm4054_vm2, %v4601_v5  ;;  %9539 = vmatmul.msk.bf16.gmra.mxu2 %vm4054_vm2, %v4880_v51 }
 0x692   :  { %4811 = vst.msk [vmem:[#allocation3 + $0x448] sm:$0xff] %vm4054_vm2, %v4602_v52  ;;  %9610 = vmatmul.msk.bf16.gmra.mxu0 %vm4054_vm2, %v4880_v51  ;;  %v4933_v52 = vld [vmem:[#allocation3 + $0x128] sm:$0xff] }
 0x693   :  { %9507 = vmatmul.msk.bf16.gmra.mxu1 %vm4054_vm2, %v4982_v56  ;;  %v4988_v51 = vpack.c.bf16 %v4934_v57, %v4933_v52 }
 0x694   :  { %9575 = vmatmul.msk.bf16.gmra.mxu3 %vm4054_vm2, %v5615_v18  ;;  %v4886_v18 = vpack.c.bf16 %v4832_v31, %v4831_v3  ;;  %v4939_v3 = vld [vmem:[#allocation3 + $0x188] sm:$0xff] }
 0x695   :  { %v4837_v31 = vld [vmem:[#allocation3 + $0x187] sm:$0xff] }
 0x6a1   :  { %9540 = vmatmul.msk.bf16.gmra.mxu2 %vm4054_vm2, %v4881_v12 }
 0x6a2   :  { %9611 = vmatmul.msk.bf16.gmra.mxu0 %vm4054_vm2, %v4881_v12 }
 0x6a3   :  { %9508 = vmatmul.msk.bf16.gmra.mxu1 %vm4054_vm2, %v4983_v20 }
 0x6a4   :  { %9576 = vmatmul.msk.bf16.gmra.mxu3 %vm4054_vm2, %v5616_v9 }
 0x6b1   :  { %9541 = vmatmul.msk.bf16.gmra.mxu2 %vm4054_vm2, %v4882_v24 }
 0x6b2   :  { %9612 = vmatmul.msk.bf16.gmra.mxu0 %vm4054_vm2, %v4882_v24  ;;  %v5568_v24 = vld [vmem:[#allocation3 + $0x149] sm:$0xff] }
 0x6b3   :  { %9509 = vmatmul.msk.bf16.gmra.mxu1 %vm4054_vm2, %v4984_v58  ;;  %v4834_v58 = vld [vmem:[#allocation3 + $0x14f] sm:$0xff] }
 0x6b4   :  { %9577 = vmatmul.msk.bf16.gmra.mxu3 %vm4054_vm2, %v5617_v7  ;;  %v5569_v7 = vld [vmem:[#allocation3 + $0x151] sm:$0xff]  ;;  %v4887_v37 = vpack.c.bf16 %v4834_v58, %v4833_v55 }
 0x6b5   :  { %v5622_v10 = vpack.c.bf16 %v5569_v7, %v5568_v24  ;;  %v4941_v7 = vld [vmem:[#allocation3 + $0x1a8] sm:$0xff] }
 0x6c1   :  { %9542 = vmatmul.msk.bf16.gmra.mxu2 %vm4054_vm2, %v4883_v46 }
 0x6c2   :  { %9613 = vmatmul.msk.bf16.gmra.mxu0 %vm4054_vm2, %v4883_v46 }
 0x6c3   :  { %9510 = vmatmul.msk.bf16.gmra.mxu1 %vm4054_vm2, %v4985_v25 }
 0x6c4   :  { %9578 = vmatmul.msk.bf16.gmra.mxu3 %vm4054_vm2, %v5618_v61 }
 0x6d1   :  { %9543 = vmatmul.msk.bf16.gmra.mxu2 %vm4054_vm2, %v4884_v47 }
 0x6d2   :  { %9614 = vmatmul.msk.bf16.gmra.mxu0 %vm4054_vm2, %v4884_v47  ;;  %v4938_v47 = vld [vmem:[#allocation3 + $0x170] sm:$0xff] }
 0x6d3   :  { %9511 = vmatmul.msk.bf16.gmra.mxu1 %vm4054_vm2, %v4986_v15  ;;  %v4937_v15 = vld [vmem:[#allocation3 + $0x168] sm:$0xff] }
 0x6d4   :  { %9579 = vmatmul.msk.bf16.gmra.mxu3 %vm4054_vm2, %v5619_v50  ;;  %v4835_v50 = vld [vmem:[#allocation3 + $0x167] sm:$0xff] }
 0x6e0   :  { %v5123_v21 = vpop.f32.mrf.mxu1 }
 0x6e1   :  { %9544 = vmatmul.msk.bf16.gmra.mxu2 %vm4054_vm2, %v4885_v19 }
 0x6e2   :  { %9615 = vmatmul.msk.bf16.gmra.mxu0 %vm4054_vm2, %v4885_v19 }
 0x6e3   :  { %9512 = vmatmul.msk.bf16.gmra.mxu1 %vm4054_vm2, %v4987_v33  ;;  %v4990_v33 = vpack.c.bf16 %v4938_v47, %v4937_v15 }
 0x6e4   :  { %v5388_v40 = vpop.f32.mrf.mxu2  ;;  %9580 = vmatmul.msk.bf16.gmra.mxu3 %vm4054_vm2, %v5620_v30  ;;  %v4888_v30 = vpack.c.bf16 %v4836_v23, %v4835_v50 }
 0x6e5   :  { %v5389_v42 = vadd.f32 %v5388_v40, %v5123_v21  ;;  %v5623_v40 = vpack.c.bf16 %v5571_v17, %v5570_v60 }
 0x6e7   :  { %v5756_v49 = vpop.f32.mrf.mxu3 }
 0x6e8   :  { %v5916_v43 = vadd.f32 %v5756_v49, %v5389_v42  ;;  %v5125_v45 = vpop.f32.mrf.mxu1 }
 0x6ec   :  { %v5390_v38 = vpop.f32.mrf.mxu2 }
 0x6ed   :  { %v5391_v34 = vadd.f32 %v5390_v38, %v5125_v45 }
 0x6ef   :  { %v5758_v5 = vpop.f32.mrf.mxu3  ;;  %v6188_v29 = vpop.f32.mrf.mxu0 }
 0x6f0   :  { %v5917_v22 = vadd.f32 %v5758_v5, %v5391_v34  ;;  %v5128_v56 = vpop.f32.mrf.mxu1  ;;  %v12612_v2 = vadd.f32 %v6188_v29, %v5916_v43 }
 0x6f1   :  { %9545 = vmatmul.msk.bf16.gmra.mxu2 %vm4054_vm2, %v4886_v18 }
 0x6f2   :  { %9616 = vmatmul.msk.bf16.gmra.mxu0 %vm4054_vm2, %v4886_v18  ;;  %v5573_v18 = vld [vmem:[#allocation3 + $0x191] sm:$0xff] }
 0x6f3   :  { %9513 = vmatmul.msk.bf16.gmra.mxu1 %vm4054_vm2, %v4988_v51  ;;  %v5572_v51 = vld [vmem:[#allocation3 + $0x189] sm:$0xff] }
 0x6f4   :  { %9581 = vmatmul.msk.bf16.gmra.mxu3 %vm4054_vm2, %v5621_v63  ;;  %v5393_v62 = vpop.f32.mrf.mxu2 }
 0x6f5   :  { %v5394_v44 = vadd.f32 %v5393_v62, %v5128_v56  ;;  %v4838_v56 = vld [vmem:[#allocation3 + $0x18f] sm:$0xff] }
 0x6f7   :  { %v5761_v14 = vpop.f32.mrf.mxu3  ;;  %v6190_v9 = vpop.f32.mrf.mxu0 }
 0x6f8   :  { %v5130_v20 = vpop.f32.mrf.mxu1  ;;  %v5918_v12 = vadd.f32 %v5761_v14, %v5394_v44  ;;  %v12615_v53 = vadd.f32 %v6190_v9, %v5917_v22  ;;  %v4940_v22 = vld [vmem:[#allocation3 + $0x190] sm:$0xff]  ;;  %v4889_v44 = vpack.c.bf16 %v4838_v56, %v4837_v31 }
 0x6f9   :  { %v4991_v62 = vpack.c.bf16 %v4940_v22, %v4939_v3 }
 0x6fc   :  { %v5395_v8 = vpop.f32.mrf.mxu2 }
 0x6fd   :  { %v5396_v32 = vadd.f32 %v5395_v8, %v5130_v20  ;;  %v5624_v20 = vpack.c.bf16 %v5573_v18, %v5572_v51 }
 0x6ff   :  { %v5763_v26 = vpop.f32.mrf.mxu3  ;;  %v6193_v25 = vpop.f32.mrf.mxu0 }
 0x700   :  { %v5133_v48 = vpop.f32.mrf.mxu1  ;;  %v5919_v16 = vadd.f32 %v5763_v26, %v5396_v32  ;;  %v12620_v46 = vadd.f32 %v6193_v25, %v5918_v12  ;;  %v4942_v32 = vld [vmem:[#allocation3 + $0x1b0] sm:$0xff] }
 0x701   :  { %9546 = vmatmul.msk.bf16.gmra.mxu2 %vm4054_vm2, %v4887_v37  ;;  %v5575_v25 = vld [vmem:[#allocation3 + $0x1b1] sm:$0xff] }
 0x702   :  { %9617 = vmatmul.msk.bf16.gmra.mxu0 %vm4054_vm2, %v4887_v37  ;;  %v4840_v37 = vld [vmem:[#allocation3 + $0x1af] sm:$0xff] }
 0x703   :  { %9514 = vmatmul.msk.bf16.gmra.mxu1 %vm4054_vm2, %v4989_v36 }
 0x704   :  { %9582 = vmatmul.msk.bf16.gmra.mxu3 %vm4054_vm2, %v5622_v10  ;;  %v5398_v61 = vpop.f32.mrf.mxu2  ;;  %v5574_v10 = vld [vmem:[#allocation3 + $0x1a9] sm:$0xff] }
 0x705   :  { %v5399_v41 = vadd.f32 %v5398_v61, %v5133_v48  ;;  %v4839_v48 = vld [vmem:[#allocation3 + $0x1a7] sm:$0xff] }
 0x707   :  { %v5766_v11 = vpop.f32.mrf.mxu3  ;;  %v6195_v6 = vpop.f32.mrf.mxu0 }
 0x708   :  { %v5135_v59 = vpop.f32.mrf.mxu1  ;;  %v5920_v4 = vadd.f32 %v5766_v11, %v5399_v41  ;;  %v12623_v39 = vadd.f32 %v6195_v6, %v5919_v16  ;;  %v4992_v41 = vpack.c.bf16 %v4942_v32, %v4941_v7  ;;  %v5625_v6 = vpack.c.bf16 %v5575_v25, %v5574_v10  ;;  %v5579_v7 = vld [vmem:[#allocation3 + $0x1f1] sm:$0xff] }
 0x70c   :  { %v5400_v21 = vpop.f32.mrf.mxu2 }
 0x70d   :  { %v5401_v27 = vadd.f32 %v5400_v21, %v5135_v59 }
 0x70f   :  { %v5768_v35 = vpop.f32.mrf.mxu3  ;;  %v6198_v42 = vpop.f32.mrf.mxu0 }
 0x710   :  { %v5138_v0 = vpop.f32.mrf.mxu1  ;;  %v5921_v19 = vadd.f32 %v5768_v35, %v5401_v27  ;;  %v12628_v49 = vadd.f32 %v6198_v42, %v5920_v4  ;;  %v4890_v4 = vpack.c.bf16 %v4840_v37, %v4839_v48  ;;  %v4842_v42 = vld [vmem:[#allocation3 + $0x1cf] sm:$0xff] }
 0x711   :  { %9547 = vmatmul.msk.bf16.gmra.mxu2 %vm4054_vm2, %v4888_v30 }
 0x712   :  { %9618 = vmatmul.msk.bf16.gmra.mxu0 %vm4054_vm2, %v4888_v30 }
 0x713   :  { %9515 = vmatmul.msk.bf16.gmra.mxu1 %vm4054_vm2, %v4990_v33  ;;  %v4944_v33 = vld [vmem:[#allocation3 + $0x1d0] sm:$0xff] }
 0x714   :  { %9583 = vmatmul.msk.bf16.gmra.mxu3 %vm4054_vm2, %v5623_v40  ;;  %v5403_v43 = vpop.f32.mrf.mxu2 }
 0x715   :  { %v5404_v38 = vadd.f32 %v5403_v43, %v5138_v0  ;;  %v4943_v0 = vld [vmem:[#allocation3 + $0x1c8] sm:$0xff] }
 0x716   :  { %v5576_v43 = vld [vmem:[#allocation3 + $0x1c9] sm:$0xff] }
 0x717   :  { %v5771_v45 = vpop.f32.mrf.mxu3  ;;  %v6200_v52 = vpop.f32.mrf.mxu0 }
 0x718   :  { %v5140_v34 = vpop.f32.mrf.mxu1  ;;  %v5922_v5 = vadd.f32 %v5771_v45, %v5404_v38  ;;  %v12631_v57 = vadd.f32 %v6200_v52, %v5921_v19  ;;  %v4841_v19 = vld [vmem:[#allocation3 + $0x1c7] sm:$0xff]  ;;  %v5577_v45 = vld [vmem:[#allocation3 + $0x1d1] sm:$0xff] }
 0x719   :  { %v4891_v3 = vpack.c.bf16 %v4842_v42, %v4841_v19  ;;  %v5626_v22 = vpack.c.bf16 %v5577_v45, %v5576_v43 }
 0x71c   :  { %v5405_v28 = vpop.f32.mrf.mxu2 }
 0x71d   :  { %v5406_v63 = vadd.f32 %v5405_v28, %v5140_v34 }
 0x71f   :  { %v5773_v54 = vpop.f32.mrf.mxu3  ;;  %v6203_v12 = vpop.f32.mrf.mxu0 }
 0x720   :  { %v5143_v29 = vpop.f32.mrf.mxu1  ;;  %v5923_v14 = vadd.f32 %v5773_v54, %v5406_v63  ;;  %v12636_v9 = vadd.f32 %v6203_v12, %v5922_v5  ;;  %v4993_v5 = vpack.c.bf16 %v4944_v33, %v4943_v0  ;;  %v9640_v63 = vld [vmem:[%s14195_s4 + $0x80] sm:$0xff]  ;;  %v4945_v12 = vld [vmem:[#allocation3 + $0x1e8] sm:$0xff] }
 0x721   :  { %9548 = vmatmul.msk.bf16.gmra.mxu2 %vm4054_vm2, %v4889_v44 }
 0x722   :  { %9619 = vmatmul.msk.bf16.gmra.mxu0 %vm4054_vm2, %v4889_v44 }
 0x723   :  { %9516 = vmatmul.msk.bf16.gmra.mxu1 %vm4054_vm2, %v4991_v62 }
 0x724   :  { %9584 = vmatmul.msk.bf16.gmra.mxu3 %vm4054_vm2, %v5624_v20  ;;  %v5408_v13 = vpop.f32.mrf.mxu2 }
 0x725   :  { %v5409_v55 = vadd.f32 %v5408_v13, %v5143_v29  ;;  %v9641_v29 = vld [vmem:[%s14195_s4 + $0x88] sm:$0xff]  ;;  %v4946_v13 = vld [vmem:[#allocation3 + $0x1f0] sm:$0xff] }
 0x726   :  { %v6513_v62 = vpack.c.bf16 %v9641_v29, %v9640_v63 }
 0x727   :  { %v5776_v1 = vpop.f32.mrf.mxu3  ;;  %v6205_v58 = vpop.f32.mrf.mxu0 }
 0x728   :  { %v5145_v8 = vpop.f32.mrf.mxu1  ;;  %v5924_v26 = vadd.f32 %v5776_v1, %v5409_v55  ;;  %v12639_v24 = vadd.f32 %v6205_v58, %v5923_v14  ;;  %6618 = vmatpush.bf16.msrb.mxu1 %v6513_v62  ;;  %v4843_v1 = vld [vmem:[#allocation3 + $0x1e7] sm:$0xff] }
 0x729   :  { %v5578_v58 = vld [vmem:[#allocation3 + $0x1e9] sm:$0xff] }
 0x72a   :  { %v5627_v10 = vpack.c.bf16 %v5579_v7, %v5578_v58  ;;  %v4949_v62 = vld [vmem:[#allocation3 + $0x268] sm:$0xff] }
 0x72c   :  { %v5410_v36 = vpop.f32.mrf.mxu2 }
 0x72d   :  { %v5411_v61 = vadd.f32 %v5410_v36, %v5145_v8  ;;  %v4994_v36 = vpack.c.bf16 %v4946_v13, %v4945_v12 }
 0x72f   :  { %v5778_v16 = vpop.f32.mrf.mxu3  ;;  %v6208_v15 = vpop.f32.mrf.mxu0 }
 0x730   :  { %v5148_v11 = vpop.f32.mrf.mxu1  ;;  %v5925_v59 = vadd.f32 %v5778_v16, %v5411_v61  ;;  %v12644_v47 = vadd.f32 %v6208_v15, %v5924_v26  ;;  %v4844_v26 = vld [vmem:[#allocation3 + $0x1ef] sm:$0xff] }
 0x731   :  { %9549 = vmatmul.msk.bf16.gmra.mxu2 %vm4054_vm2, %v4890_v4  ;;  %v4892_v37 = vpack.c.bf16 %v4844_v26, %v4843_v1  ;;  %v4947_v15 = vld [vmem:[#allocation3 + $0x248] sm:$0xff] }
 0x732   :  { %9620 = vmatmul.msk.bf16.gmra.mxu0 %vm4054_vm2, %v4890_v4  ;;  %v4848_v1 = vld [vmem:[#allocation3 + $0x26f] sm:$0xff] }
 0x733   :  { %9517 = vmatmul.msk.bf16.gmra.mxu1 %vm4054_vm2, %v4992_v41 }
 0x734   :  { %9585 = vmatmul.msk.bf16.gmra.mxu3 %vm4054_vm2, %v5625_v6  ;;  %v5413_v50 = vpop.f32.mrf.mxu2 }
 0x735   :  { %v5414_v35 = vadd.f32 %v5413_v50, %v5148_v11  ;;  %v4948_v50 = vld [vmem:[#allocation3 + $0x250] sm:$0xff] }
 0x737   :  { %v5781_v21 = vpop.f32.mrf.mxu3  ;;  %v6210_v17 = vpop.f32.mrf.mxu0 }
 0x738   :  { %v5150_v23 = vpop.f32.mrf.mxu1  ;;  %v5926_v60 = vadd.f32 %v5781_v21, %v5414_v35  ;;  %v12647_v27 = vadd.f32 %v6210_v17, %v5925_v59  ;;  %v4845_v21 = vld [vmem:[#allocation3 + $0x247] sm:$0xff]  ;;  %v5581_v17 = vld [vmem:[#allocation3 + $0x251] sm:$0xff] }
 0x73c   :  { %v5415_v30 = vpop.f32.mrf.mxu2 }
 0x73d   :  { %v5416_v38 = vadd.f32 %v5415_v30, %v5150_v23  ;;  %v4846_v23 = vld [vmem:[#allocation3 + $0x24f] sm:$0xff]  ;;  %v4995_v30 = vpack.c.bf16 %v4948_v50, %v4947_v15 }
 0x73e   :  { %v4893_v43 = vpack.c.bf16 %v4846_v23, %v4845_v21  ;;  %v4951_v15 = vld [vmem:[#allocation3 + $0x288] sm:$0xff]  ;;  %v4952_v50 = vld [vmem:[#allocation3 + $0x290] sm:$0xff] }
 0x73f   :  { %v5783_v40 = vpop.f32.mrf.mxu3  ;;  %v6213_v31 = vpop.f32.mrf.mxu0  ;;  %v4849_v21 = vld [vmem:[#allocation3 + $0x287] sm:$0xff] }
 0x740   :  { %v5153_v34 = vpop.f32.mrf.mxu1  ;;  %v5927_v52 = vadd.f32 %v5783_v40, %v5416_v38  ;;  %v12652_v28 = vadd.f32 %v6213_v31, %v5926_v60  ;;  %v5580_v60 = vld [vmem:[#allocation3 + $0x249] sm:$0xff] }
 0x741   :  { %9550 = vmatmul.msk.bf16.gmra.mxu2 %vm4054_vm2, %v4891_v3  ;;  %v5628_v45 = vpack.c.bf16 %v5581_v17, %v5580_v60  ;;  %v4850_v60 = vld [vmem:[#allocation3 + $0x28f] sm:$0xff] }
 0x742   :  { %9621 = vmatmul.msk.bf16.gmra.mxu0 %vm4054_vm2, %v4891_v3  ;;  %v5584_v17 = vld [vmem:[#allocation3 + $0x289] sm:$0xff] }
 0x743   :  { %9518 = vmatmul.msk.bf16.gmra.mxu1 %vm4054_vm2, %v4993_v5  ;;  %v6011_v5 = vld [vmem:[#allocation3 + $0x20f] sm:$0xff] }
 0x744   :  { %9586 = vmatmul.msk.bf16.gmra.mxu3 %vm4054_vm2, %v5626_v22  ;;  %v5418_v54 = vpop.f32.mrf.mxu2 }
 0x745   :  { %v5419_v51 = vadd.f32 %v5418_v54, %v5153_v34  ;;  %v6010_v34 = vld [vmem:[#allocation3 + $0x207] sm:$0xff] }
 0x746   :  { %v6059_v22 = vpack.c.bf16 %v6011_v5, %v6010_v34 }
 0x747   :  { %v5786_v56 = vpop.f32.mrf.mxu3  ;;  %v6215_v44 = vpop.f32.mrf.mxu0 }
 0x748   :  { %v5155_v18 = vpop.f32.mrf.mxu1  ;;  %v5928_v14 = vadd.f32 %v5786_v56, %v5419_v51  ;;  %v12661_v20 = vadd.f32 %v6215_v44, %v5927_v52  ;;  %v4847_v44 = vld [vmem:[#allocation3 + $0x267] sm:$0xff] }
 0x74c   :  { %v5420_v55 = vpop.f32.mrf.mxu2 }
 0x74d   :  { %v5421_v32 = vadd.f32 %v5420_v55, %v5155_v18  ;;  %v5582_v55 = vld [vmem:[#allocation3 + $0x269] sm:$0xff] }
 0x74f   :  { %v5788_v8 = vpop.f32.mrf.mxu3  ;;  %v6218_v25 = vpop.f32.mrf.mxu0 }
 0x750   :  { %v5158_v48 = vpop.f32.mrf.mxu1  ;;  %v5929_v16 = vadd.f32 %v5788_v8, %v5421_v32  ;;  %v12666_v61 = vadd.f32 %v6218_v25, %v5928_v14  ;;  %v4950_v14 = vld [vmem:[#allocation3 + $0x270] sm:$0xff] }
 0x751   :  { %9551 = vmatmul.msk.bf16.gmra.mxu2 %vm4054_vm2, %v4892_v37  ;;  %v5583_v8 = vld [vmem:[#allocation3 + $0x271] sm:$0xff]  ;;  %v4996_v7 = vpack.c.bf16 %v4950_v14, %v4949_v62  ;;  %v4851_v62 = vld [vmem:[#allocation3 + $0x2a7] sm:$0xff] }
 0x752   :  { %9622 = vmatmul.msk.bf16.gmra.mxu0 %vm4054_vm2, %v4892_v37 }
 0x753   :  { %9519 = vmatmul.msk.bf16.gmra.mxu1 %vm4054_vm2, %v4994_v36  ;;  %v5629_v36 = vpack.c.bf16 %v5583_v8, %v5582_v55 }
 0x754   :  { %9587 = vmatmul.msk.bf16.gmra.mxu3 %vm4054_vm2, %v5627_v10  ;;  %v5423_v11 = vpop.f32.mrf.mxu2 }
 0x755   :  { %v5424_v59 = vadd.f32 %v5423_v11, %v5158_v48  ;;  %v4894_v48 = vpack.c.bf16 %v4848_v1, %v4847_v44  ;;  %v5587_v1 = vld [vmem:[#allocation3 + $0x2b1] sm:$0xff] }
 0x757   :  { %v5791_v41 = vpop.f32.mrf.mxu3  ;;  %v6220_v35 = vpop.f32.mrf.mxu0 }
 0x758   :  { %v5160_v4 = vpop.f32.mrf.mxu1  ;;  %v5930_v6 = vadd.f32 %v5791_v41, %v5424_v59  ;;  %v12669_v0 = vadd.f32 %v6220_v35, %v5929_v16 }
 0x75c   :  { %v5425_v33 = vpop.f32.mrf.mxu2 }
 0x75d   :  { %v5426_v40 = vadd.f32 %v5425_v33, %v5160_v4  ;;  %v5585_v33 = vld [vmem:[#allocation3 + $0x291] sm:$0xff] }
 0x75f   :  { %v5793_v19 = vpop.f32.mrf.mxu3  ;;  %v6223_v52 = vpop.f32.mrf.mxu0 }
 0x760   :  { %v5163_v42 = vpop.f32.mrf.mxu1  ;;  %v5931_v38 = vadd.f32 %v5793_v19, %v5426_v40  ;;  %v12674_v3 = vadd.f32 %v6223_v52, %v5930_v6  ;;  %v4997_v40 = vpack.c.bf16 %v4952_v50, %v4951_v15  ;;  %v4955_v15 = vld [vmem:[#allocation3 + $0x2c8] sm:$0xff]  ;;  %v4956_v50 = vld [vmem:[#allocation3 + $0x2d0] sm:$0xff] }
 0x761   :  { %9552 = vmatmul.msk.bf16.gmra.mxu2 %vm4054_vm2, %v4893_v43  ;;  %v4895_v43 = vpack.c.bf16 %v4850_v60, %v4849_v21  ;;  %v4853_v21 = vld [vmem:[#allocation3 + $0x2c7] sm:$0xff]  ;;  %v4854_v60 = vld [vmem:[#allocation3 + $0x2cf] sm:$0xff] }
 0x762   :  { %9623 = vmatmul.msk.bf16.gmra.mxu0 %vm4054_vm2, %v6059_v22 }
 0x763   :  { %9520 = vmatmul.msk.bf16.gmra.mxu1 %vm4054_vm2, %v4995_v30 }
 0x764   :  { %9588 = vmatmul.msk.bf16.gmra.mxu3 %vm4054_vm2, %v5628_v45  ;;  %v5428_v31 = vpop.f32.mrf.mxu2  ;;  %v5630_v45 = vpack.c.bf16 %v5585_v33, %v5584_v17  ;;  %v5588_v17 = vld [vmem:[#allocation3 + $0x2c9] sm:$0xff]  ;;  %v5589_v33 = vld [vmem:[#allocation3 + $0x2d1] sm:$0xff] }
 0x765   :  { %v5429_v56 = vadd.f32 %v5428_v31, %v5163_v42 }
 0x767   :  { %v5796_v54 = vpop.f32.mrf.mxu3  ;;  %v6225_v63 = vpop.f32.mrf.mxu0 }
 0x768   :  { %v5165_v51 = vpop.f32.mrf.mxu1  ;;  %v5932_v18 = vadd.f32 %v5796_v54, %v5429_v56  ;;  %v12677_v29 = vadd.f32 %v6225_v63, %v5931_v38  ;;  %v4954_v63 = vld [vmem:[#allocation3 + $0x2b0] sm:$0xff] }
 0x76c   :  { %v5430_v12 = vpop.f32.mrf.mxu2 }
 0x76d   :  { %v5431_v26 = vadd.f32 %v5430_v12, %v5165_v51  ;;  %v4852_v12 = vld [vmem:[#allocation3 + $0x2af] sm:$0xff] }
 0x76f   :  { %v5798_v13 = vpop.f32.mrf.mxu3  ;;  %v6228_v16 = vpop.f32.mrf.mxu0 }
 0x770   :  { %v5168_v58 = vpop.f32.mrf.mxu1  ;;  %v5933_v32 = vadd.f32 %v5798_v13, %v5431_v26  ;;  %v12682_v37 = vadd.f32 %v6228_v16, %v5932_v18  ;;  %v4953_v18 = vld [vmem:[#allocation3 + $0x2a8] sm:$0xff] }
 0x771   :  { %9553 = vmatmul.msk.bf16.gmra.mxu2 %vm4054_vm2, %v4894_v48  ;;  %v5586_v13 = vld [vmem:[#allocation3 + $0x2a9] sm:$0xff]  ;;  %v4998_v26 = vpack.c.bf16 %v4954_v63, %v4953_v18 }
 0x772   :  { %9624 = vmatmul.msk.bf16.gmra.mxu0 %vm4054_vm2, %v4894_v48 }
 0x773   :  { %9521 = vmatmul.msk.bf16.gmra.mxu1 %vm4054_vm2, %v4996_v7  ;;  %v4896_v7 = vpack.c.bf16 %v4852_v12, %v4851_v62  ;;  %v4957_v62 = vld [vmem:[#allocation3 + $0x2e8] sm:$0xff] }
 0x774   :  { %9589 = vmatmul.msk.bf16.gmra.mxu3 %vm4054_vm2, %v5629_v36  ;;  %v5433_v10 = vpop.f32.mrf.mxu2 }
 0x775   :  { %v5434_v11 = vadd.f32 %v5433_v10, %v5168_v58 }
 0x777   :  { %v5801_v25 = vpop.f32.mrf.mxu3  ;;  %v6230_v4 = vpop.f32.mrf.mxu0 }
 0x778   :  { %v5170_v41 = vpop.f32.mrf.mxu1  ;;  %v5934_v59 = vadd.f32 %v5801_v25, %v5434_v11  ;;  %v12685_v6 = vadd.f32 %v6230_v4, %v5933_v32  ;;  %v5631_v32 = vpack.c.bf16 %v5587_v1, %v5586_v13  ;;  %v4856_v1 = vld [vmem:[#allocation3 + $0x2ef] sm:$0xff] }
 0x77c   :  { %v5435_v35 = vpop.f32.mrf.mxu2 }
 0x77d   :  { %v5436_v19 = vadd.f32 %v5435_v35, %v5170_v41 }
 0x77f   :  { %v5803_v23 = vpop.f32.mrf.mxu3  ;;  %v6233_v38 = vpop.f32.mrf.mxu0 }
 0x780   :  { %v5173_v30 = vpop.f32.mrf.mxu1  ;;  %v5935_v42 = vadd.f32 %v5803_v23, %v5436_v19  ;;  %v12690_v34 = vadd.f32 %v6233_v38, %v5934_v59 }
 0x781   :  { %9554 = vmatmul.msk.bf16.gmra.mxu2 %vm4054_vm2, %v4895_v43 }
 0x782   :  { %9625 = vmatmul.msk.bf16.gmra.mxu0 %vm4054_vm2, %v4895_v43  ;;  %v4897_v43 = vpack.c.bf16 %v4854_v60, %v4853_v21  ;;  %v4960_v60 = vld [vmem:[#allocation3 + $0x310] sm:$0xff] }
 0x783   :  { %9522 = vmatmul.msk.bf16.gmra.mxu1 %vm4054_vm2, %v4997_v40  ;;  %v4999_v40 = vpack.c.bf16 %v4956_v50, %v4955_v15 }
 0x784   :  { %9590 = vmatmul.msk.bf16.gmra.mxu3 %vm4054_vm2, %v5630_v45  ;;  %v5438_v5 = vpop.f32.mrf.mxu2  ;;  %v5632_v45 = vpack.c.bf16 %v5589_v33, %v5588_v17  ;;  %v4857_v17 = vld [vmem:[#allocation3 + $0x307] sm:$0xff] }
 0x785   :  { %v5439_v22 = vadd.f32 %v5438_v5, %v5173_v30 }
 0x787   :  { %v5806_v52 = vpop.f32.mrf.mxu3  ;;  %v6235_v56 = vpop.f32.mrf.mxu0 }
 0x788   :  { %v5175_v31 = vpop.f32.mrf.mxu1  ;;  %v5936_v54 = vadd.f32 %v5806_v52, %v5439_v22  ;;  %v12693_v51 = vadd.f32 %v6235_v56, %v5935_v42 }
 0x78c   :  { %v5440_v14 = vpop.f32.mrf.mxu2 }
 0x78d   :  { %v5441_v55 = vadd.f32 %v5440_v14, %v5175_v31  ;;  %v4958_v14 = vld [vmem:[#allocation3 + $0x2f0] sm:$0xff] }
 0x78f   :  { %v5808_v44 = vpop.f32.mrf.mxu3  ;;  %v6238_v48 = vpop.f32.mrf.mxu0 }
 0x790   :  { %v5178_v8 = vpop.f32.mrf.mxu1  ;;  %v5937_v58 = vadd.f32 %v5808_v44, %v5441_v55  ;;  %v12698_v36 = vadd.f32 %v6238_v48, %v5936_v54  ;;  %v4855_v44 = vld [vmem:[#allocation3 + $0x2e7] sm:$0xff] }
 0x791   :  { %9555 = vmatmul.msk.bf16.gmra.mxu2 %vm4054_vm2, %v4896_v7  ;;  %v5590_v55 = vld [vmem:[#allocation3 + $0x2e9] sm:$0xff]  ;;  %v4898_v48 = vpack.c.bf16 %v4856_v1, %v4855_v44 }
 0x792   :  { %9626 = vmatmul.msk.bf16.gmra.mxu0 %vm4054_vm2, %v4896_v7  ;;  %v5000_v7 = vpack.c.bf16 %v4958_v14, %v4957_v62 }
 0x793   :  { %9523 = vmatmul.msk.bf16.gmra.mxu1 %vm4054_vm2, %v4998_v26 }
 0x794   :  { %9591 = vmatmul.msk.bf16.gmra.mxu3 %vm4054_vm2, %v5631_v32  ;;  %v5443_v16 = vpop.f32.mrf.mxu2 }
 0x795   :  { %v5444_v25 = vadd.f32 %v5443_v16, %v5178_v8  ;;  %v5591_v8 = vld [vmem:[#allocation3 + $0x2f1] sm:$0xff] }
 0x796   :  { %v5633_v16 = vpack.c.bf16 %v5591_v8, %v5590_v55  ;;  %v4961_v55 = vld [vmem:[#allocation3 + $0x328] sm:$0xff]  ;;  %v4962_v8 = vld [vmem:[#allocation3 + $0x330] sm:$0xff] }
 0x797   :  { %v5811_v10 = vpop.f32.mrf.mxu3  ;;  %v6240_v59 = vpop.f32.mrf.mxu0 }
 0x798   :  { %v5180_v11 = vpop.f32.mrf.mxu1  ;;  %v5938_v41 = vadd.f32 %v5811_v10, %v5444_v25  ;;  %v12701_v4 = vadd.f32 %v6240_v59, %v5937_v58 }
 0x79c   :  { %v5445_v35 = vpop.f32.mrf.mxu2 }
 0x79d   :  { %v5446_v19 = vadd.f32 %v5445_v35, %v5180_v11 }
 0x79f   :  { %v5813_v23 = vpop.f32.mrf.mxu3  ;;  %v6243_v38 = vpop.f32.mrf.mxu0 }
 0x7a0   :  { %v5183_v30 = vpop.f32.mrf.mxu1  ;;  %v5939_v42 = vadd.f32 %v5813_v23, %v5446_v19  ;;  %v12706_v5 = vadd.f32 %v6243_v38, %v5938_v41  ;;  %v4959_v23 = vld [vmem:[#allocation3 + $0x308] sm:$0xff] }
 0x7a1   :  { %9556 = vmatmul.msk.bf16.gmra.mxu2 %vm4054_vm2, %v4897_v43  ;;  %v5001_v38 = vpack.c.bf16 %v4960_v60, %v4959_v23 }
 0x7a2   :  { %9627 = vmatmul.msk.bf16.gmra.mxu0 %vm4054_vm2, %v4897_v43 }
 0x7a3   :  { %9524 = vmatmul.msk.bf16.gmra.mxu1 %vm4054_vm2, %v4999_v40  ;;  %v5592_v40 = vld [vmem:[#allocation3 + $0x309] sm:$0xff] }
 0x7a4   :  { %9592 = vmatmul.msk.bf16.gmra.mxu3 %vm4054_vm2, %v5632_v45  ;;  %v5448_v52 = vpop.f32.mrf.mxu2 }
 0x7a5   :  { %v5449_v31 = vadd.f32 %v5448_v52, %v5183_v30  ;;  %v4858_v30 = vld [vmem:[#allocation3 + $0x30f] sm:$0xff] }
 0x7a7   :  { %v5816_v22 = vpop.f32.mrf.mxu3  ;;  %v6245_v18 = vpop.f32.mrf.mxu0 }
 0x7a8   :  { %v5185_v54 = vpop.f32.mrf.mxu1  ;;  %v5940_v56 = vadd.f32 %v5816_v22, %v5449_v31  ;;  %v12709_v63 = vadd.f32 %v6245_v18, %v5939_v42  ;;  %v5593_v42 = vld [vmem:[#allocation3 + $0x311] sm:$0xff]  ;;  %v4899_v22 = vpack.c.bf16 %v4858_v30, %v4857_v17 }
 0x7a9   :  { %v5634_v31 = vpack.c.bf16 %v5593_v42, %v5592_v40 }
 0x7ac   :  { %v5450_v12 = vpop.f32.mrf.mxu2 }
 0x7ad   :  { %v5451_v26 = vadd.f32 %v5450_v12, %v5185_v54 }
 0x7af   :  { %v5818_v13 = vpop.f32.mrf.mxu3  ;;  %v6248_v10 = vpop.f32.mrf.mxu0 }
 0x7b0   :  { %v5188_v58 = vpop.f32.mrf.mxu1  ;;  %v5941_v32 = vadd.f32 %v5818_v13, %v5451_v26  ;;  %v12714_v25 = vadd.f32 %v6248_v10, %v5940_v56  ;;  %v4859_v26 = vld [vmem:[#allocation3 + $0x327] sm:$0xff] }
 0x7b1   :  { %9557 = vmatmul.msk.bf16.gmra.mxu2 %vm4054_vm2, %v4898_v48 }
 0x7b2   :  { %9628 = vmatmul.msk.bf16.gmra.mxu0 %vm4054_vm2, %v4898_v48  ;;  %v5594_v48 = vld [vmem:[#allocation3 + $0x329] sm:$0xff] }
 0x7b3   :  { %9525 = vmatmul.msk.bf16.gmra.mxu1 %vm4054_vm2, %v5000_v7 }
 0x7b4   :  { %9593 = vmatmul.msk.bf16.gmra.mxu3 %vm4054_vm2, %v5633_v16  ;;  %v5453_v11 = vpop.f32.mrf.mxu2  ;;  %v5595_v16 = vld [vmem:[#allocation3 + $0x331] sm:$0xff] }
 0x7b5   :  { %v5454_v59 = vadd.f32 %v5453_v11, %v5188_v58 }
 0x7b7   :  { %v5821_v41 = vpop.f32.mrf.mxu3  ;;  %v6250_v21 = vpop.f32.mrf.mxu0 }
 0x7b8   :  { %v5190_v15 = vpop.f32.mrf.mxu1  ;;  %v5942_v50 = vadd.f32 %v5821_v41, %v5454_v59  ;;  %v12717_v35 = vadd.f32 %v6250_v21, %v5941_v32  ;;  %v4860_v32 = vld [vmem:[#allocation3 + $0x32f] sm:$0xff]  ;;  %v5002_v41 = vpack.c.bf16 %v4962_v8, %v4961_v55 }
 0x7bc   :  { %v5455_v33 = vpop.f32.mrf.mxu2 }
 0x7bd   :  { %v5456_v43 = vadd.f32 %v5455_v33, %v5190_v15  ;;  %v4900_v15 = vpack.c.bf16 %v4860_v32, %v4859_v26 }
 0x7bf   :  { %v5823_v19 = vpop.f32.mrf.mxu3  ;;  %v6253_v54 = vpop.f32.mrf.mxu0 }
 0x7c0   :  { %v5193_v45 = vpop.f32.mrf.mxu1  ;;  %v5943_v52 = vadd.f32 %v5823_v19, %v5456_v43  ;;  %v12722_v56 = vadd.f32 %v6253_v54, %v5942_v50  ;;  %v5635_v50 = vpack.c.bf16 %v5595_v16, %v5594_v48  ;;  %v4963_v43 = vld [vmem:[#allocation3 + $0x348] sm:$0xff] }
 0x7c1   :  { %9558 = vmatmul.msk.bf16.gmra.mxu2 %vm4054_vm2, %v4899_v22  ;;  %v5596_v54 = vld [vmem:[#allocation3 + $0x349] sm:$0xff] }
 0x7c2   :  { %9629 = vmatmul.msk.bf16.gmra.mxu0 %vm4054_vm2, %v4899_v22 }
 0x7c3   :  { %9526 = vmatmul.msk.bf16.gmra.mxu1 %vm4054_vm2, %v5001_v38  ;;  %v4861_v38 = vld [vmem:[#allocation3 + $0x347] sm:$0xff] }
 0x7c4   :  { %9594 = vmatmul.msk.bf16.gmra.mxu3 %vm4054_vm2, %v5634_v31  ;;  %v5458_v18 = vpop.f32.mrf.mxu2  ;;  %v4862_v31 = vld [vmem:[#allocation3 + $0x34f] sm:$0xff] }
 0x7c5   :  { %v5459_v14 = vadd.f32 %v5458_v18, %v5193_v45  ;;  %v4964_v45 = vld [vmem:[#allocation3 + $0x350] sm:$0xff] }
 0x7c6   :  { %v5597_v18 = vld [vmem:[#allocation3 + $0x351] sm:$0xff] }
 0x7c7   :  { %v5826_v62 = vpop.f32.mrf.mxu3  ;;  %v6255_v13 = vpop.f32.mrf.mxu0  ;;  %v5636_v55 = vpack.c.bf16 %v5597_v18, %v5596_v54 }
 0x7c8   :  { %v5195_v44 = vpop.f32.mrf.mxu1  ;;  %v5944_v12 = vadd.f32 %v5826_v62, %v5459_v14  ;;  %v12725_v1 = vadd.f32 %v6255_v13, %v5943_v52  ;;  %v4901_v13 = vpack.c.bf16 %v4862_v31, %v4861_v38 }
 0x7cc   :  { %v5460_v58 = vpop.f32.mrf.mxu2 }
 0x7cd   :  { %v5461_v10 = vadd.f32 %v5460_v58, %v5195_v44  ;;  %v5003_v44 = vpack.c.bf16 %v4964_v45, %v4963_v43 }
 0x7cf   :  { %v5828_v7 = vpop.f32.mrf.mxu3  ;;  %v6258_v21 = vpop.f32.mrf.mxu0 }
 0x7d0   :  { %v5198_v11 = vpop.f32.mrf.mxu1  ;;  %v5945_v59 = vadd.f32 %v5828_v7, %v5461_v10  ;;  %v12730_v23 = vadd.f32 %v6258_v21, %v5944_v12 }
 0x7d1   :  { %9559 = vmatmul.msk.bf16.gmra.mxu2 %vm4054_vm2, %v4900_v15 }
 0x7d2   :  { %9630 = vmatmul.msk.bf16.gmra.mxu0 %vm4054_vm2, %v4900_v15  ;;  %v4863_v15 = vld [vmem:[#allocation3 + $0x367] sm:$0xff] }
 0x7d3   :  { %9527 = vmatmul.msk.bf16.gmra.mxu1 %vm4054_vm2, %v5002_v41  ;;  %v4965_v41 = vld [vmem:[#allocation3 + $0x368] sm:$0xff] }
 0x7d4   :  { %9595 = vmatmul.msk.bf16.gmra.mxu3 %vm4054_vm2, %v5635_v50  ;;  %v5463_v60 = vpop.f32.mrf.mxu2 }
 0x7d5   :  { %v5464_v33 = vadd.f32 %v5463_v60, %v5198_v11  ;;  %v4864_v60 = vld [vmem:[#allocation3 + $0x36f] sm:$0xff] }
 0x7d6   :  { %v4902_v45 = vpack.c.bf16 %v4864_v60, %v4863_v15 }
 0x7d7   :  { %v5831_v17 = vpop.f32.mrf.mxu3  ;;  %v6260_v40 = vpop.f32.mrf.mxu0 }
 0x7d8   :  { %v5200_v19 = vpop.f32.mrf.mxu1  ;;  %v5946_v30 = vadd.f32 %v5831_v17, %v5464_v33  ;;  %v12733_v42 = vadd.f32 %v6260_v40, %v5945_v59  ;;  %v4966_v59 = vld [vmem:[#allocation3 + $0x370] sm:$0xff] }
 0x7d9   :  { %v5598_v17 = vld [vmem:[#allocation3 + $0x369] sm:$0xff]  ;;  %v5599_v33 = vld [vmem:[#allocation3 + $0x371] sm:$0xff]  ;;  %v5004_v40 = vpack.c.bf16 %v4966_v59, %v4965_v41 }
 0x7da   :  { %v5637_v38 = vpack.c.bf16 %v5599_v33, %v5598_v17 }
 0x7dc   :  { %v5465_v52 = vpop.f32.mrf.mxu2 }
 0x7dd   :  { %v5466_v62 = vadd.f32 %v5465_v52, %v5200_v19 }
 0x7df   :  { %v5833_v22 = vpop.f32.mrf.mxu3  ;;  %v6263_v8 = vpop.f32.mrf.mxu0 }
 0x7e0   :  { %v5203_v14 = vpop.f32.mrf.mxu1  ;;  %v5947_v12 = vadd.f32 %v5833_v22, %v5466_v62  ;;  %v12738_v26 = vadd.f32 %v6263_v8, %v5946_v30  ;;  %v4865_v8 = vld [vmem:[#allocation3 + $0x387] sm:$0xff] }
 0x7e1   :  { %9560 = vmatmul.msk.bf16.gmra.mxu2 %vm4054_vm2, %v4901_v13 }
 0x7e2   :  { %9631 = vmatmul.msk.bf16.gmra.mxu0 %vm4054_vm2, %v4901_v13  ;;  %v4967_v13 = vld [vmem:[#allocation3 + $0x388] sm:$0xff] }
 0x7e3   :  { %9528 = vmatmul.msk.bf16.gmra.mxu1 %vm4054_vm2, %v5003_v44 }
 0x7e4   :  { %9596 = vmatmul.msk.bf16.gmra.mxu3 %vm4054_vm2, %v5636_v55  ;;  %v5468_v58 = vpop.f32.mrf.mxu2  ;;  %v4968_v55 = vld [vmem:[#allocation3 + $0x390] sm:$0xff] }
 0x7e5   :  { %v5469_v32 = vadd.f32 %v5468_v58, %v5203_v14  ;;  %v5005_v59 = vpack.c.bf16 %v4968_v55, %v4967_v13  ;;  %v5602_v13 = vld [vmem:[#allocation3 + $0x3a9] sm:$0xff]  ;;  %v5603_v55 = vld [vmem:[#allocation3 + $0x3b1] sm:$0xff] }
 0x7e7   :  { %v5836_v7 = vpop.f32.mrf.mxu3  ;;  %v6265_v10 = vpop.f32.mrf.mxu0 }
 0x7e8   :  { %v5205_v48 = vpop.f32.mrf.mxu1  ;;  %v5948_v16 = vadd.f32 %v5836_v7, %v5469_v32  ;;  %v12741_v11 = vadd.f32 %v6265_v10, %v5947_v12  ;;  %v4866_v32 = vld [vmem:[#allocation3 + $0x38f] sm:$0xff] }
 0x7e9   :  { %v5601_v10 = vld [vmem:[#allocation3 + $0x391] sm:$0xff] }
 0x7ec   :  { %v5470_v50 = vpop.f32.mrf.mxu2 }
 0x7ed   :  { %v5471_v19 = vadd.f32 %v5470_v50, %v5205_v48  ;;  %v5600_v48 = vld [vmem:[#allocation3 + $0x389] sm:$0xff]  ;;  %v4903_v50 = vpack.c.bf16 %v4866_v32, %v4865_v8 }
 0x7ef   :  { %v5838_v21 = vpop.f32.mrf.mxu3  ;;  %v6268_v52 = vpop.f32.mrf.mxu0 }
 0x7f0   :  { %v5208_v30 = vpop.f32.mrf.mxu1  ;;  %v5949_v43 = vadd.f32 %v5838_v21, %v5471_v19  ;;  %v12746_v22 = vadd.f32 %v6268_v52, %v5948_v16  ;;  %v5638_v21 = vpack.c.bf16 %v5601_v10, %v5600_v48  ;;  %v4969_v52 = vld [vmem:[#allocation3 + $0x3a8] sm:$0xff]  ;;  %v5639_v48 = vpack.c.bf16 %v5603_v55, %v5602_v13 }
 0x7f1   :  { %9561 = vmatmul.msk.bf16.gmra.mxu2 %vm4054_vm2, %v4902_v45 }
 0x7f2   :  { %9632 = vmatmul.msk.bf16.gmra.mxu0 %vm4054_vm2, %v4902_v45 }
 0x7f3   :  { %9529 = vmatmul.msk.bf16.gmra.mxu1 %vm4054_vm2, %v5004_v40 }
 0x7f4   :  { %9597 = vmatmul.msk.bf16.gmra.mxu3 %vm4054_vm2, %v5637_v38  ;;  %v5473_v31 = vpop.f32.mrf.mxu2 }
 0x7f5   :  { %v5474_v18 = vadd.f32 %v5473_v31, %v5208_v30  ;;  %v4970_v31 = vld [vmem:[#allocation3 + $0x3b0] sm:$0xff] }
 0x7f7   :  { %v5841_v54 = vpop.f32.mrf.mxu3  ;;  %v6270_v44 = vpop.f32.mrf.mxu0 }
 0x7f8   :  { %v5210_v62 = vpop.f32.mrf.mxu1  ;;  %v5950_v14 = vadd.f32 %v5841_v54, %v5474_v18  ;;  %v12749_v12 = vadd.f32 %v6270_v44, %v5949_v43  ;;  %v4867_v54 = vld [vmem:[#allocation3 + $0x3a7] sm:$0xff]  ;;  %v4868_v44 = vld [vmem:[#allocation3 + $0x3af] sm:$0xff] }
 0x7f9   :  { %v4904_v32 = vpack.c.bf16 %v4868_v44, %v4867_v54  ;;  %v5604_v54 = vld [vmem:[#allocation3 + $0x3c9] sm:$0xff] }
 0x7fc   :  { %v5475_v58 = vpop.f32.mrf.mxu2 }
 0x7fd   :  { %v5476_v16 = vadd.f32 %v5475_v58, %v5210_v62  ;;  %v5006_v58 = vpack.c.bf16 %v4970_v31, %v4969_v52  ;;  %v4870_v31 = vld [vmem:[#allocation3 + $0x3cf] sm:$0xff] }
 0x7ff   :  { %v5843_v7 = vpop.f32.mrf.mxu3  ;;  %v6273_v60 = vpop.f32.mrf.mxu0 }
 0x800   :  { %v5213_v41 = vpop.f32.mrf.mxu1  ;;  %v5951_v15 = vadd.f32 %v5843_v7, %v5476_v16  ;;  %v12754_v17 = vadd.f32 %v6273_v60, %v5950_v14 }
 0x801   :  { %9562 = vmatmul.msk.bf16.gmra.mxu2 %vm4054_vm2, %v4903_v50 }
 0x802   :  { %9633 = vmatmul.msk.bf16.gmra.mxu0 %vm4054_vm2, %v4903_v50 }
 0x803   :  { %9530 = vmatmul.msk.bf16.gmra.mxu1 %vm4054_vm2, %v5005_v59 }
 0x804   :  { %9598 = vmatmul.msk.bf16.gmra.mxu3 %vm4054_vm2, %v5638_v21  ;;  %v5478_v33 = vpop.f32.mrf.mxu2 }
 0x805   :  { %v5479_v30 = vadd.f32 %v5478_v33, %v5213_v41 }
 0x807   :  { %v5846_v19 = vpop.f32.mrf.mxu3  ;;  %v6275_v45 = vpop.f32.mrf.mxu0 }
 0x808   :  { %v5215_v40 = vpop.f32.mrf.mxu1  ;;  %v5952_v43 = vadd.f32 %v5846_v19, %v5479_v30  ;;  %v12757_v38 = vadd.f32 %v6275_v45, %v5951_v15  ;;  %v4971_v19 = vld [vmem:[#allocation3 + $0x3c8] sm:$0xff]  ;;  %v4972_v30 = vld [vmem:[#allocation3 + $0x3d0] sm:$0xff] }
 0x809   :  { %v5007_v44 = vpack.c.bf16 %v4972_v30, %v4971_v19  ;;  %v4871_v19 = vld [vmem:[#allocation3 + $0x3e7] sm:$0xff] }
 0x80c   :  { %v5480_v18 = vpop.f32.mrf.mxu2 }
 0x80d   :  { %v5481_v14 = vadd.f32 %v5480_v18, %v5215_v40  ;;  %v4869_v40 = vld [vmem:[#allocation3 + $0x3c7] sm:$0xff]  ;;  %v5605_v18 = vld [vmem:[#allocation3 + $0x3d1] sm:$0xff] }
 0x80e   :  { %v4905_v55 = vpack.c.bf16 %v4870_v31, %v4869_v40  ;;  %v5607_v31 = vld [vmem:[#allocation3 + $0x3f1] sm:$0xff] }
 0x80f   :  { %v5848_v62 = vpop.f32.mrf.mxu3  ;;  %v6278_v10 = vpop.f32.mrf.mxu0 }
 0x810   :  { %v5218_v8 = vpop.f32.mrf.mxu1  ;;  %v5953_v7 = vadd.f32 %v5848_v62, %v5481_v14  ;;  %v12762_v16 = vadd.f32 %v6278_v10, %v5952_v43  ;;  %v5640_v14 = vpack.c.bf16 %v5605_v18, %v5604_v54 }
 0x811   :  { %9563 = vmatmul.msk.bf16.gmra.mxu2 %vm4054_vm2, %v4904_v32 }
 0x812   :  { %9634 = vmatmul.msk.bf16.gmra.mxu0 %vm4054_vm2, %v4904_v32 }
 0x813   :  { %9531 = vmatmul.msk.bf16.gmra.mxu1 %vm4054_vm2, %v5006_v58 }
 0x814   :  { %9599 = vmatmul.msk.bf16.gmra.mxu3 %vm4054_vm2, %v5639_v48  ;;  %v5483_v41 = vpop.f32.mrf.mxu2 }
 0x815   :  { %v5484_v15 = vadd.f32 %v5483_v41, %v5218_v8 }
 0x817   :  { %v5851_v59 = vpop.f32.mrf.mxu3  ;;  %v6280_v60 = vpop.f32.mrf.mxu0 }
 0x818   :  { %v5220_v50 = vpop.f32.mrf.mxu1  ;;  %v5954_v21 = vadd.f32 %v5851_v59, %v5484_v15  ;;  %v12765_v33 = vadd.f32 %v6280_v60, %v5953_v7  ;;  %v4974_v60 = vld [vmem:[#allocation3 + $0x3f0] sm:$0xff] }
 0x81c   :  { %v5485_v45 = vpop.f32.mrf.mxu2 }
 0x81d   :  { %v5486_v43 = vadd.f32 %v5485_v45, %v5220_v50  ;;  %v4973_v50 = vld [vmem:[#allocation3 + $0x3e8] sm:$0xff] }
 0x81e   :  { %v4872_v45 = vld [vmem:[#allocation3 + $0x3ef] sm:$0xff]  ;;  %v5008_v18 = vpack.c.bf16 %v4974_v60, %v4973_v50 }
 0x81f   :  { %v5853_v52 = vpop.f32.mrf.mxu3  ;;  %v6283_v8 = vpop.f32.mrf.mxu0 }
 0x820   :  { %v5223_v62 = vpop.f32.mrf.mxu1  ;;  %v5955_v13 = vadd.f32 %v5853_v52, %v5486_v43  ;;  %v12770_v58 = vadd.f32 %v6283_v8, %v5954_v21  ;;  %v5606_v52 = vld [vmem:[#allocation3 + $0x3e9] sm:$0xff] }
 0x821   :  { %9564 = vmatmul.msk.bf16.gmra.mxu2 %vm4054_vm2, %v4905_v55 }
 0x822   :  { %9635 = vmatmul.msk.bf16.gmra.mxu0 %vm4054_vm2, %v4905_v55  ;;  %v5641_v55 = vpack.c.bf16 %v5607_v31, %v5606_v52  ;;  %v9715_v52 = vld [vmem:[%s14195_s4 + $0xd8] sm:$0xff] }
 0x823   :  { %9532 = vmatmul.msk.bf16.gmra.mxu1 %vm4054_vm2, %v5007_v44  ;;  %v4906_v44 = vpack.c.bf16 %v4872_v45, %v4871_v19  ;;  %v4975_v19 = vld [vmem:[#allocation3 + $0x408] sm:$0xff]  ;;  %v9714_v45 = vld [vmem:[%s14195_s4 + $0xd0] sm:$0xff] }
 0x824   :  { %9600 = vmatmul.msk.bf16.gmra.mxu3 %vm4054_vm2, %v5640_v14  ;;  %v5488_v7 = vpop.f32.mrf.mxu2 }
 0x825   :  { %v5489_v48 = vadd.f32 %v5488_v7, %v5223_v62 }
 0x827   :  { %v5856_v32 = vpop.f32.mrf.mxu3  ;;  %v6285_v59 = vpop.f32.mrf.mxu0 }
 0x828   :  { %v5225_v10 = vpop.f32.mrf.mxu1  ;;  %v5956_v41 = vadd.f32 %v5856_v32, %v5489_v48  ;;  %v12773_v15 = vadd.f32 %v6285_v59, %v5955_v13  ;;  %v9679_v59 = vld [vmem:[%s14195_s4 + $0xb8] sm:$0xff] }
 0x82c   :  { %v5490_v30 = vpop.f32.mrf.mxu2 }
 0x82d   :  { %v5491_v21 = vadd.f32 %v5490_v30, %v5225_v10  ;;  %v9678_v10 = vld [vmem:[%s14195_s4 + $0xb0] sm:$0xff] }
 0x82e   :  { %v6946_v50 = vpack.c.bf16 %v9679_v59, %v9678_v10 }
 0x82f   :  { %v5858_v40 = vpop.f32.mrf.mxu3  ;;  %v6288_v62 = vpop.f32.mrf.mxu0 }
 0x830   :  { %v5228_v54 = vpop.f32.mrf.mxu1  ;;  %v5957_v43 = vadd.f32 %v5858_v40, %v5491_v21  ;;  %v12778_v13 = vadd.f32 %v6288_v62, %v5956_v41  ;;  %v4976_v41 = vld [vmem:[#allocation3 + $0x410] sm:$0xff]  ;;  %7049 = vmatpush.bf16.msra.mxu2 %v6946_v50  ;;  %v4873_v40 = vld [vmem:[#allocation3 + $0x407] sm:$0xff] }
 0x831   :  { %9565 = vmatmul.msk.bf16.gmra.mxu2 %vm4054_vm2, %v4906_v44 }
 0x832   :  { %14516 = vst [vmem:[#allocation19_spill] sm:$0xff] %v12778_v13  ;;  %9636 = vmatmul.msk.bf16.gmra.mxu0 %vm4054_vm2, %v4906_v44  ;;  %v5609_v44 = vld [vmem:[#allocation3 + $0x411] sm:$0xff] }
 0x833   :  { %9533 = vmatmul.msk.bf16.gmra.mxu1 %vm4054_vm2, %v5008_v18  ;;  %v5608_v18 = vld [vmem:[#allocation3 + $0x409] sm:$0xff] }
 0x834   :  { %9601 = vmatmul.msk.bf16.gmra.mxu3 %vm4054_vm2, %v5641_v55  ;;  %v5493_v14 = vpop.f32.mrf.mxu2  ;;  %v7379_v55 = vpack.c.bf16 %v9715_v52, %v9714_v45  ;;  %v5642_v10 = vpack.c.bf16 %v5609_v44, %v5608_v18  ;;  %v9750_v52 = vld [vmem:[%s14195_s4 + $0xf0] sm:$0xff] }
 0x835   :  { %v5494_v7 = vadd.f32 %v5493_v14, %v5228_v54  ;;  %v4874_v54 = vld [vmem:[#allocation3 + $0x40f] sm:$0xff] }
 0x836   :  { %7482 = vmatpush.bf16.msra.mxu3 %v7379_v55  ;;  %v9786_v55 = vld [vmem:[%s14195_s4 + $0x110] sm:$0xff] }
 0x837   :  { %v5861_v8 = vpop.f32.mrf.mxu3  ;;  %v6290_v60 = vpop.f32.mrf.mxu0 }
 0x838   :  { %v5230_v32 = vpop.f32.mrf.mxu1  ;;  %v5958_v48 = vadd.f32 %v5861_v8, %v5494_v7  ;;  %v12787_v30 = vadd.f32 %v6290_v60, %v5957_v43  ;;  %v5009_v8 = vpack.c.bf16 %v4976_v41, %v4975_v19  ;;  %v4907_v7 = vpack.c.bf16 %v4874_v54, %v4873_v40  ;;  %v9676_v60 = vld [vmem:[%s14195_s4 + $0xa0] sm:$0xff] }
 0x839   :  { %v9712_v19 = vld [vmem:[%s14195_s4 + $0xc0] sm:$0xff] }
 0x83a   :  { %14517 = vst [vmem:[#allocation22_spill] sm:$0xff] %v12787_v30 }
 0x83c   :  { %v5495_v31 = vpop.f32.mrf.mxu2 }
 0x83d   :  { %v5496_v62 = vadd.f32 %v5495_v31, %v5230_v32  ;;  %v9677_v32 = vld [vmem:[%s14195_s4 + $0xa8] sm:$0xff]  ;;  %v9751_v31 = vld [vmem:[%s14195_s4 + $0xf8] sm:$0xff] }
 0x83e   :  { %v6945_v45 = vpack.c.bf16 %v9677_v32, %v9676_v60  ;;  %v7811_v44 = vpack.c.bf16 %v9751_v31, %v9750_v52  ;;  %v4978_v60 = vld [vmem:[#allocation3 + $0x430] sm:$0xff]  ;;  %v4875_v32 = vld [vmem:[#allocation3 + $0x427] sm:$0xff] }
 0x83f   :  { %v5863_v21 = vpop.f32.mrf.mxu3  ;;  %v6293_v59 = vpop.f32.mrf.mxu0  ;;  %v5610_v52 = vld [vmem:[#allocation3 + $0x429] sm:$0xff]  ;;  %v5611_v31 = vld [vmem:[#allocation3 + $0x431] sm:$0xff] }
 0x840   :  { %v5233_v14 = vpop.f32.mrf.mxu1  ;;  %v5959_v43 = vadd.f32 %v5863_v21, %v5496_v62  ;;  %v12798_v50 = vadd.f32 %v6293_v59, %v5958_v48  ;;  %v9713_v48 = vld [vmem:[%s14195_s4 + $0xc8] sm:$0xff]  ;;  %v9787_v62 = vld [vmem:[%s14195_s4 + $0x118] sm:$0xff]  ;;  %7050 = vmatpush.bf16.msra.mxu2 %v6945_v45  ;;  %7914 = vmatpush.bf16.msra.mxu0 %v7811_v44 }
 0x841   :  { %9566 = vmatmul.msk.bf16.gmra.mxu2 %vm4054_vm2, %v4907_v7  ;;  %v7378_v18 = vpack.c.bf16 %v9713_v48, %v9712_v19  ;;  %v4876_v48 = vld [vmem:[#allocation3 + $0x42f] sm:$0xff] }
 0x842   :  { %14518 = vst [vmem:[#allocation7_spill] sm:$0xff] %v12798_v50  ;;  %9637 = vmatmul.msk.bf16.gmra.mxu0 %vm4054_vm2, %v4907_v7 }
 0x843   :  { %9534 = vmatmul.msk.bf16.gmra.mxu1 %vm4054_vm2, %v5009_v8  ;;  %v8243_v8 = vpack.c.bf16 %v9787_v62, %v9786_v55  ;;  %7483 = vmatpush.bf16.msra.mxu3 %v7378_v18  ;;  %v4908_v55 = vpack.c.bf16 %v4876_v48, %v4875_v32  ;;  %v9748_v18 = vld [vmem:[%s14195_s4 + $0xe0] sm:$0xff]  ;;  %v6413_v32 = vld [vmem:[#allocation3 + $0x30] sm:$0xff] }
 0x844   :  { %9602 = vmatmul.msk.bf16.gmra.mxu3 %vm4054_vm2, %v5642_v10  ;;  %v5498_v41 = vpop.f32.mrf.mxu2 }
 0x845   :  { %v5499_v21 = vadd.f32 %v5498_v41, %v5233_v14  ;;  %8346 = vmatpush.bf16.msra.mxu1 %v8243_v8  ;;  %v4977_v14 = vld [vmem:[#allocation3 + $0x428] sm:$0xff] }
 0x846   :  { %v5010_v13 = vpack.c.bf16 %v4978_v60, %v4977_v14  ;;  %v6412_v60 = vld [vmem:[#allocation3 + $0x28] sm:$0xff] }
 0x847   :  { %v5866_v40 = vpop.f32.mrf.mxu3  ;;  %v6295_v59 = vpop.f32.mrf.mxu0 }
 0x848   :  { %v5235_v54 = vpop.f32.mrf.mxu1  ;;  %v5960_v10 = vadd.f32 %v5866_v40, %v5499_v21  ;;  %v12825_v7 = vadd.f32 %v6295_v59, %v5959_v43  ;;  %v5643_v40 = vpack.c.bf16 %v5611_v31, %v5610_v52  ;;  %v6845_v52 = vld [vmem:[#allocation3 + $0x31] sm:$0xff]  ;;  %v7277_v31 = vld [vmem:[#allocation3 + $0x47] sm:$0xff] }
 0x84c   :  { %v5500_v19 = vpop.f32.mrf.mxu2 }
 0x84d   :  { %v5501_v50 = vadd.f32 %v5500_v19, %v5235_v54  ;;  %v9749_v54 = vld [vmem:[%s14195_s4 + $0xe8] sm:$0xff] }
 0x84e   :  { %v7810_v62 = vpack.c.bf16 %v9749_v54, %v9748_v18  ;;  %v6844_v19 = vld [vmem:[#allocation3 + $0x29] sm:$0xff]  ;;  %v6476_v18 = vpack.c.bf16 %v6413_v32, %v6412_v60 }
 0x84f   :  { %v5868_v41 = vpop.f32.mrf.mxu3  ;;  %v6298_v43 = vpop.f32.mrf.mxu0 }
 0x850   :  { %v5238_v30 = vpop.f32.mrf.mxu1  ;;  %v5961_v45 = vadd.f32 %v5868_v41, %v5501_v50  ;;  %v12830_v21 = vadd.f32 %v6298_v43, %v5960_v10  ;;  %7915 = vmatpush.bf16.msra.mxu0 %v7810_v62  ;;  %v6043_v62 = vld [vmem:[#allocation3 + $0x44f] sm:$0xff] }
 0x851   :  { %9567 = vmatmul.msk.bf16.gmra.mxu2 %vm4054_vm2, %v4908_v55 }
 0x852   :  { %14519 = vst [vmem:[#allocation38_spill] sm:$0xff] %v12830_v21  ;;  %9638 = vmatmul.msk.bf16.gmra.mxu0 %vm4054_vm2, %v4908_v55  ;;  %v6908_v55 = vpack.c.bf16 %v6845_v52, %v6844_v19  ;;  %v6415_v52 = vld [vmem:[#allocation3 + $0x50] sm:$0xff] }
 0x853   :  { %9535 = vmatmul.msk.bf16.gmra.mxu1 %vm4054_vm2, %v5010_v13 }
 0x854   :  { %9603 = vmatmul.msk.bf16.gmra.mxu3 %vm4054_vm2, %v5643_v40  ;;  %v5503_v50 = vpop.f32.mrf.mxu2  ;;  %v7278_v40 = vld [vmem:[#allocation3 + $0x4f] sm:$0xff] }
 0x855   :  { %v5504_v13 = vadd.f32 %v5503_v50, %v5238_v30  ;;  %v7341_v30 = vpack.c.bf16 %v7278_v40, %v7277_v31  ;;  %v6042_v50 = vld [vmem:[#allocation3 + $0x447] sm:$0xff] }
 0x856   :  { %v6846_v31 = vld [vmem:[#allocation3 + $0x49] sm:$0xff] }
 0x857   :  { %v5871_v44 = vpop.f32.mrf.mxu3  ;;  %v6300_v14 = vpop.f32.mrf.mxu0 }
 0x858   :  { %v5240_v8 = vpop.f32.mrf.mxu1  ;;  %v5962_v59 = vadd.f32 %v5871_v44, %v5504_v13  ;;  %v12839_v10 = vadd.f32 %v6300_v14, %v5961_v45  ;;  %v6075_v13 = vpack.c.bf16 %v6043_v62, %v6042_v50 }
 0x85a   :  { %14520 = vst [vmem:[#allocation10_spill] sm:$0xff] %v12839_v10 }
 0x85c   :  { %v5505_v41 = vpop.f32.mrf.mxu2 }
 0x85d   :  { %v5506_v43 = vadd.f32 %v5505_v41, %v5240_v8 }
 0x85f   :  { %v5873_v48 = vpop.f32.mrf.mxu3  ;;  %v6303_v45 = vpop.f32.mrf.mxu0 }
 0x860   :  { %v5243_v21 = vpop.f32.mrf.mxu1  ;;  %v5963_v54 = vadd.f32 %v5873_v48, %v5506_v43  ;;  %v12844_v44 = vadd.f32 %v6303_v45, %v5962_v59  ;;  %v6414_v48 = vld [vmem:[#allocation3 + $0x48] sm:$0xff] }
 0x861   :  { %9680 = vmatmul.msk.bf16.vlgmr.msra.gmra.mxu2 %vm4054_vm2, %v6908_v55  ;;  %v7279_v55 = vld [vmem:[#allocation3 + $0x67] sm:$0xff]  ;;  %v7280_v59 = vld [vmem:[#allocation3 + $0x6f] sm:$0xff]  ;;  %v6477_v62 = vpack.c.bf16 %v6415_v52, %v6414_v48 }
 0x862   :  { %14521 = vst [vmem:[#allocation8_spill] sm:$0xff] %v12844_v44  ;;  %9639 = vmatmul.msk.bf16.gmra.mxu0 %vm4054_vm2, %v6075_v13  ;;  %v7342_v13 = vpack.c.bf16 %v7280_v59, %v7279_v55  ;;  %v6849_v55 = vld [vmem:[#allocation3 + $0x71] sm:$0xff]  ;;  %v7281_v59 = vld [vmem:[#allocation3 + $0x87] sm:$0xff] }
 0x863   :  { %9644 = vmatmul.msk.bf16.vlgmr.msrb.gmra.mxu1 %vm4054_vm2, %v6476_v18  ;;  %v6847_v18 = vld [vmem:[#allocation3 + $0x51] sm:$0xff] }
 0x864   :  { %9716 = vmatmul.msk.bf16.vlgmr.msra.gmra.mxu3 %vm4054_vm2, %v7341_v30  ;;  %v5508_v14 = vpop.f32.mrf.mxu2  ;;  %v6909_v44 = vpack.c.bf16 %v6847_v18, %v6846_v31  ;;  %v6416_v31 = vld [vmem:[#allocation3 + $0x68] sm:$0xff] }
 0x865   :  { %v5509_v8 = vadd.f32 %v5508_v14, %v5243_v21 }
 0x867   :  { %v5876_v10 = vpop.f32.mrf.mxu3  ;;  %v6305_v19 = vpop.f32.mrf.mxu0 }
 0x868   :  { %v5245_v60 = vpop.f32.mrf.mxu1  ;;  %v5964_v32 = vadd.f32 %v5876_v10, %v5509_v8  ;;  %v12847_v41 = vadd.f32 %v6305_v19, %v5963_v54 }
 0x86a   :  { %14522 = vst [vmem:[#allocation12_spill] sm:$0xff] %v12847_v41 }
 0x86c   :  { %v5510_v40 = vpop.f32.mrf.mxu2 }
 0x86d   :  { %v5511_v30 = vadd.f32 %v5510_v40, %v5245_v60  ;;  %v6417_v40 = vld [vmem:[#allocation3 + $0x70] sm:$0xff] }
 0x86f   :  { %v5878_v43 = vpop.f32.mrf.mxu3  ;;  %v6308_v21 = vpop.f32.mrf.mxu0 }
 0x870   :  { %v5248_v50 = vpop.f32.mrf.mxu1  ;;  %v5965_v45 = vadd.f32 %v5878_v43, %v5511_v30  ;;  %v12852_v10 = vadd.f32 %v6308_v21, %v5964_v32  ;;  %v6848_v43 = vld [vmem:[#allocation3 + $0x69] sm:$0xff]  ;;  %v6478_v21 = vpack.c.bf16 %v6417_v40, %v6416_v31 }
 0x871   :  { %9681 = vmatmul.msk.bf16.gmra.mxu2 %vm4054_vm2, %v6909_v44  ;;  %v7282_v30 = vld [vmem:[#allocation3 + $0x8f] sm:$0xff]  ;;  %v6910_v41 = vpack.c.bf16 %v6849_v55, %v6848_v43 }
 0x872   :  { %14523 = vst [vmem:[#allocation11_spill] sm:$0xff] %v12852_v10  ;;  %9752 = vmatmul.msk.bf16.vlgmr.msra.gmra.mxu0 %vm4054_vm2, %v6477_v62  ;;  %v6418_v43 = vld [vmem:[#allocation3 + $0x88] sm:$0xff] }
 0x873   :  { %9645 = vmatmul.msk.bf16.gmra.mxu1 %vm4054_vm2, %v6477_v62  ;;  %v7343_v62 = vpack.c.bf16 %v7282_v30, %v7281_v59  ;;  %v6851_v59 = vld [vmem:[#allocation3 + $0x91] sm:$0xff]  ;;  %v7283_v30 = vld [vmem:[#allocation3 + $0xa7] sm:$0xff] }
 0x874   :  { %9717 = vmatmul.msk.bf16.gmra.mxu3 %vm4054_vm2, %v7342_v13  ;;  %v5513_v54 = vpop.f32.mrf.mxu2 }
 0x875   :  { %v5514_v8 = vadd.f32 %v5513_v54, %v5248_v50 }
 0x877   :  { %v5881_v14 = vpop.f32.mrf.mxu3  ;;  %v6310_v48 = vpop.f32.mrf.mxu0 }
 0x878   :  { %v5250_v60 = vpop.f32.mrf.mxu1  ;;  %v5966_v19 = vadd.f32 %v5881_v14, %v5514_v8  ;;  %v12855_v52 = vadd.f32 %v6310_v48, %v5965_v45 }
 0x87a   :  { %14524 = vst [vmem:[#allocation40_spill] sm:$0xff] %v12855_v52 }
 0x87c   :  { %v5515_v18 = vpop.f32.mrf.mxu2 }
 0x87d   :  { %v5516_v32 = vadd.f32 %v5515_v18, %v5250_v60  ;;  %v6419_v18 = vld [vmem:[#allocation3 + $0x90] sm:$0xff] }
 0x87f   :  { %v5883_v44 = vpop.f32.mrf.mxu3  ;;  %v6313_v50 = vpop.f32.mrf.mxu0 }
 0x880   :  { %v5253_v13 = vpop.f32.mrf.mxu1  ;;  %v5967_v10 = vadd.f32 %v5883_v44, %v5516_v32  ;;  %v12860_v45 = vadd.f32 %v6313_v50, %v5966_v19  ;;  %v6850_v44 = vld [vmem:[#allocation3 + $0x89] sm:$0xff]  ;;  %v6479_v50 = vpack.c.bf16 %v6419_v18, %v6418_v43 }
 0x881   :  { %9682 = vmatmul.msk.bf16.gmra.mxu2 %vm4054_vm2, %v6910_v41  ;;  %v7284_v32 = vld [vmem:[#allocation3 + $0xaf] sm:$0xff]  ;;  %v6911_v52 = vpack.c.bf16 %v6851_v59, %v6850_v44 }
 0x882   :  { %14525 = vst [vmem:[#allocation15_spill] sm:$0xff] %v12860_v45  ;;  %9753 = vmatmul.msk.bf16.gmra.mxu0 %vm4054_vm2, %v6478_v21  ;;  %v6420_v44 = vld [vmem:[#allocation3 + $0xa8] sm:$0xff] }
 0x883   :  { %9646 = vmatmul.msk.bf16.gmra.mxu1 %vm4054_vm2, %v6478_v21  ;;  %v7344_v21 = vpack.c.bf16 %v7284_v32, %v7283_v30  ;;  %v6853_v30 = vld [vmem:[#allocation3 + $0xb1] sm:$0xff]  ;;  %v7285_v32 = vld [vmem:[#allocation3 + $0xc7] sm:$0xff] }
 0x884   :  { %9718 = vmatmul.msk.bf16.gmra.mxu3 %vm4054_vm2, %v7343_v62  ;;  %v5518_v54 = vpop.f32.mrf.mxu2 }
 0x885   :  { %v5519_v8 = vadd.f32 %v5518_v54, %v5253_v13 }
 0x887   :  { %v5886_v14 = vpop.f32.mrf.mxu3  ;;  %v6315_v31 = vpop.f32.mrf.mxu0 }
 0x888   :  { %v5255_v60 = vpop.f32.mrf.mxu1  ;;  %v5968_v48 = vadd.f32 %v5886_v14, %v5519_v8  ;;  %v12863_v40 = vadd.f32 %v6315_v31, %v5967_v10 }
 0x88a   :  { %14526 = vst [vmem:[#allocation13_spill] sm:$0xff] %v12863_v40 }
 0x88c   :  { %v5520_v55 = vpop.f32.mrf.mxu2 }
 0x88d   :  { %v5521_v19 = vadd.f32 %v5520_v55, %v5255_v60  ;;  %v6421_v55 = vld [vmem:[#allocation3 + $0xb0] sm:$0xff] }
 0x88f   :  { %v5888_v41 = vpop.f32.mrf.mxu3  ;;  %v6318_v10 = vpop.f32.mrf.mxu0 }
 0x890   :  { %v5258_v62 = vpop.f32.mrf.mxu1  ;;  %v5969_v45 = vadd.f32 %v5888_v41, %v5521_v19  ;;  %v12868_v13 = vadd.f32 %v6318_v10, %v5968_v48  ;;  %v6852_v41 = vld [vmem:[#allocation3 + $0xa9] sm:$0xff]  ;;  %v6480_v10 = vpack.c.bf16 %v6421_v55, %v6420_v44 }
 0x891   :  { %9683 = vmatmul.msk.bf16.gmra.mxu2 %vm4054_vm2, %v6911_v52  ;;  %v7286_v19 = vld [vmem:[#allocation3 + $0xcf] sm:$0xff]  ;;  %v6912_v40 = vpack.c.bf16 %v6853_v30, %v6852_v41 }
 0x892   :  { %14527 = vst [vmem:[#allocation9_spill] sm:$0xff] %v12868_v13  ;;  %9754 = vmatmul.msk.bf16.gmra.mxu0 %vm4054_vm2, %v6479_v50  ;;  %v6422_v41 = vld [vmem:[#allocation3 + $0xc8] sm:$0xff] }
 0x893   :  { %9647 = vmatmul.msk.bf16.gmra.mxu1 %vm4054_vm2, %v6479_v50  ;;  %v7345_v50 = vpack.c.bf16 %v7286_v19, %v7285_v32  ;;  %v6855_v32 = vld [vmem:[#allocation3 + $0xd1] sm:$0xff]  ;;  %v7287_v19 = vld [vmem:[#allocation3 + $0xe7] sm:$0xff] }
 0x894   :  { %9719 = vmatmul.msk.bf16.gmra.mxu3 %vm4054_vm2, %v7344_v21  ;;  %v5523_v54 = vpop.f32.mrf.mxu2 }
 0x895   :  { %v5524_v8 = vadd.f32 %v5523_v54, %v5258_v62 }
 0x897   :  { %v5891_v14 = vpop.f32.mrf.mxu3  ;;  %v6320_v43 = vpop.f32.mrf.mxu0 }
 0x898   :  { %v5260_v60 = vpop.f32.mrf.mxu1  ;;  %v5970_v31 = vadd.f32 %v5891_v14, %v5524_v8  ;;  %v12871_v18 = vadd.f32 %v6320_v43, %v5969_v45 }
 0x89a   :  { %14528 = vst [vmem:[#allocation77_spill] sm:$0xff] %v12871_v18 }
 0x89c   :  { %v5525_v59 = vpop.f32.mrf.mxu2 }
 0x89d   :  { %v5526_v48 = vadd.f32 %v5525_v59, %v5260_v60  ;;  %v6423_v59 = vld [vmem:[#allocation3 + $0xd0] sm:$0xff] }
 0x89f   :  { %v5893_v52 = vpop.f32.mrf.mxu3  ;;  %v6323_v45 = vpop.f32.mrf.mxu0 }
 0x8a0   :  { %v5263_v21 = vpop.f32.mrf.mxu1  ;;  %v5971_v13 = vadd.f32 %v5893_v52, %v5526_v48  ;;  %v12876_v62 = vadd.f32 %v6323_v45, %v5970_v31  ;;  %v6854_v52 = vld [vmem:[#allocation3 + $0xc9] sm:$0xff]  ;;  %v6481_v45 = vpack.c.bf16 %v6423_v59, %v6422_v41 }
 0x8a1   :  { %9684 = vmatmul.msk.bf16.gmra.mxu2 %vm4054_vm2, %v6912_v40  ;;  %v7288_v48 = vld [vmem:[#allocation3 + $0xef] sm:$0xff]  ;;  %v6913_v18 = vpack.c.bf16 %v6855_v32, %v6854_v52 }
 0x8a2   :  { %14529 = vst [vmem:[#allocation18_spill] sm:$0xff] %v12876_v62  ;;  %9755 = vmatmul.msk.bf16.gmra.mxu0 %vm4054_vm2, %v6480_v10  ;;  %v6424_v52 = vld [vmem:[#allocation3 + $0xe8] sm:$0xff] }
 0x8a3   :  { %9648 = vmatmul.msk.bf16.gmra.mxu1 %vm4054_vm2, %v6480_v10  ;;  %v7346_v10 = vpack.c.bf16 %v7288_v48, %v7287_v19  ;;  %v6857_v19 = vld [vmem:[#allocation3 + $0xf1] sm:$0xff]  ;;  %v7289_v48 = vld [vmem:[#allocation3 + $0x107] sm:$0xff] }
 0x8a4   :  { %9720 = vmatmul.msk.bf16.gmra.mxu3 %vm4054_vm2, %v7345_v50  ;;  %v5528_v54 = vpop.f32.mrf.mxu2 }
 0x8a5   :  { %v5529_v8 = vadd.f32 %v5528_v54, %v5263_v21 }
 0x8a7   :  { %v5896_v14 = vpop.f32.mrf.mxu3  ;;  %v6325_v44 = vpop.f32.mrf.mxu0 }
 0x8a8   :  { %v5265_v60 = vpop.f32.mrf.mxu1  ;;  %v5972_v43 = vadd.f32 %v5896_v14, %v5529_v8  ;;  %v12879_v55 = vadd.f32 %v6325_v44, %v5971_v13 }
 0x8aa   :  { %14530 = vst [vmem:[#allocation16_spill] sm:$0xff] %v12879_v55 }
 0x8ac   :  { %v5530_v30 = vpop.f32.mrf.mxu2 }
 0x8ad   :  { %v5531_v31 = vadd.f32 %v5530_v30, %v5265_v60  ;;  %v6425_v30 = vld [vmem:[#allocation3 + $0xf0] sm:$0xff] }
 0x8af   :  { %v5898_v40 = vpop.f32.mrf.mxu3  ;;  %v6328_v13 = vpop.f32.mrf.mxu0 }
 0x8b0   :  { %v5268_v50 = vpop.f32.mrf.mxu1  ;;  %v5973_v62 = vadd.f32 %v5898_v40, %v5531_v31  ;;  %v12884_v21 = vadd.f32 %v6328_v13, %v5972_v43  ;;  %v6856_v40 = vld [vmem:[#allocation3 + $0xe9] sm:$0xff]  ;;  %v6482_v13 = vpack.c.bf16 %v6425_v30, %v6424_v52 }
 0x8b1   :  { %9685 = vmatmul.msk.bf16.gmra.mxu2 %vm4054_vm2, %v6913_v18  ;;  %v7290_v31 = vld [vmem:[#allocation3 + $0x10f] sm:$0xff]  ;;  %v6914_v55 = vpack.c.bf16 %v6857_v19, %v6856_v40 }
 0x8b2   :  { %14531 = vst [vmem:[#allocation21_spill] sm:$0xff] %v12884_v21  ;;  %9756 = vmatmul.msk.bf16.gmra.mxu0 %vm4054_vm2, %v6481_v45  ;;  %v6426_v40 = vld [vmem:[#allocation3 + $0x108] sm:$0xff] }
 0x8b3   :  { %9649 = vmatmul.msk.bf16.gmra.mxu1 %vm4054_vm2, %v6481_v45  ;;  %v7347_v45 = vpack.c.bf16 %v7290_v31, %v7289_v48  ;;  %v6859_v48 = vld [vmem:[#allocation3 + $0x111] sm:$0xff]  ;;  %v7291_v31 = vld [vmem:[#allocation3 + $0x127] sm:$0xff] }
 0x8b4   :  { %9721 = vmatmul.msk.bf16.gmra.mxu3 %vm4054_vm2, %v7346_v10  ;;  %v5533_v54 = vpop.f32.mrf.mxu2 }
 0x8b5   :  { %v5534_v8 = vadd.f32 %v5533_v54, %v5268_v50 }
 0x8b7   :  { %v5901_v14 = vpop.f32.mrf.mxu3  ;;  %v6330_v41 = vpop.f32.mrf.mxu0 }
 0x8b8   :  { %v5270_v60 = vpop.f32.mrf.mxu1  ;;  %v5974_v44 = vadd.f32 %v5901_v14, %v5534_v8  ;;  %v12887_v59 = vadd.f32 %v6330_v41, %v5973_v62 }
 0x8ba   :  { %14532 = vst [vmem:[#allocation20_spill] sm:$0xff] %v12887_v59 }
 0x8bc   :  { %v5535_v32 = vpop.f32.mrf.mxu2 }
 0x8bd   :  { %v5536_v43 = vadd.f32 %v5535_v32, %v5270_v60  ;;  %v6427_v32 = vld [vmem:[#allocation3 + $0x110] sm:$0xff] }
 0x8bf   :  { %v5903_v18 = vpop.f32.mrf.mxu3  ;;  %v6333_v62 = vpop.f32.mrf.mxu0 }
 0x8c0   :  { %v5273_v10 = vpop.f32.mrf.mxu1  ;;  %v5975_v21 = vadd.f32 %v5903_v18, %v5536_v43  ;;  %v12892_v50 = vadd.f32 %v6333_v62, %v5974_v44  ;;  %v6858_v18 = vld [vmem:[#allocation3 + $0x109] sm:$0xff]  ;;  %v6483_v62 = vpack.c.bf16 %v6427_v32, %v6426_v40 }
 0x8c1   :  { %9686 = vmatmul.msk.bf16.gmra.mxu2 %vm4054_vm2, %v6914_v55  ;;  %v7292_v43 = vld [vmem:[#allocation3 + $0x12f] sm:$0xff]  ;;  %v6915_v59 = vpack.c.bf16 %v6859_v48, %v6858_v18 }
 0x8c2   :  { %14533 = vst [vmem:[#allocation79_spill] sm:$0xff] %v12892_v50  ;;  %9757 = vmatmul.msk.bf16.gmra.mxu0 %vm4054_vm2, %v6482_v13  ;;  %v6428_v18 = vld [vmem:[#allocation3 + $0x128] sm:$0xff] }
 0x8c3   :  { %9650 = vmatmul.msk.bf16.gmra.mxu1 %vm4054_vm2, %v6482_v13  ;;  %v7348_v13 = vpack.c.bf16 %v7292_v43, %v7291_v31  ;;  %v6861_v31 = vld [vmem:[#allocation3 + $0x131] sm:$0xff]  ;;  %v7293_v43 = vld [vmem:[#allocation3 + $0x147] sm:$0xff] }
 0x8c4   :  { %9722 = vmatmul.msk.bf16.gmra.mxu3 %vm4054_vm2, %v7347_v45  ;;  %v5538_v54 = vpop.f32.mrf.mxu2 }
 0x8c5   :  { %v5539_v8 = vadd.f32 %v5538_v54, %v5273_v10 }
 0x8c7   :  { %v5906_v14 = vpop.f32.mrf.mxu3  ;;  %v6335_v52 = vpop.f32.mrf.mxu0 }
 0x8c8   :  { %v5275_v60 = vpop.f32.mrf.mxu1  ;;  %v5976_v41 = vadd.f32 %v5906_v14, %v5539_v8  ;;  %v12895_v30 = vadd.f32 %v6335_v52, %v5975_v21 }
 0x8cc   :  { %v5540_v19 = vpop.f32.mrf.mxu2 }
 0x8cd   :  { %v5541_v44 = vadd.f32 %v5540_v19, %v5275_v60  ;;  %v6429_v19 = vld [vmem:[#allocation3 + $0x130] sm:$0xff] }
 0x8cf   :  { %v5908_v55 = vpop.f32.mrf.mxu3  ;;  %v6338_v21 = vpop.f32.mrf.mxu0 }
 0x8d0   :  { %v5278_v45 = vpop.f32.mrf.mxu1  ;;  %v5977_v50 = vadd.f32 %v5908_v55, %v5541_v44  ;;  %v12900_v10 = vadd.f32 %v6338_v21, %v5976_v41  ;;  %v6860_v55 = vld [vmem:[#allocation3 + $0x129] sm:$0xff] }
 0x8d1   :  { %9687 = vmatmul.msk.bf16.gmra.mxu2 %vm4054_vm2, %v6915_v59  ;;  %v7294_v44 = vld [vmem:[#allocation3 + $0x14f] sm:$0xff] }
 0x8d2   :  { %14534 = vst [vmem:[#allocation75_spill] sm:$0xff] %v12900_v10  ;;  %9758 = vmatmul.msk.bf16.gmra.mxu0 %vm4054_vm2, %v6483_v62  ;;  %v6484_v10 = vpack.c.bf16 %v6429_v19, %v6428_v18 }
 0x8d3   :  { %9651 = vmatmul.msk.bf16.gmra.mxu1 %vm4054_vm2, %v6483_v62 }
 0x8d4   :  { %9723 = vmatmul.msk.bf16.gmra.mxu3 %vm4054_vm2, %v7348_v13  ;;  %v5543_v54 = vpop.f32.mrf.mxu2 }
 0x8d5   :  { %v5544_v8 = vadd.f32 %v5543_v54, %v5278_v45  ;;  %v6916_v45 = vpack.c.bf16 %v6861_v31, %v6860_v55  ;;  %v7349_v54 = vpack.c.bf16 %v7294_v44, %v7293_v43  ;;  %v6431_v31 = vld [vmem:[#allocation3 + $0x150] sm:$0xff] }
 0x8d6   :  { %v6862_v43 = vld [vmem:[#allocation3 + $0x149] sm:$0xff] }
 0x8d7   :  { %v5911_v14 = vpop.f32.mrf.mxu3  ;;  %v6340_v40 = vpop.f32.mrf.mxu0 }
 0x8d8   :  { %v5280_v60 = vpop.f32.mrf.mxu1  ;;  %v5978_v52 = vadd.f32 %v5911_v14, %v5544_v8  ;;  %v12903_v32 = vadd.f32 %v6340_v40, %v5977_v50 }
 0x8dc   :  { %v5545_v48 = vpop.f32.mrf.mxu2 }
 0x8dd   :  { %v5546_v41 = vadd.f32 %v5545_v48, %v5280_v60 }
 0x8df   :  { %v5913_v59 = vpop.f32.mrf.mxu3  ;;  %v6343_v50 = vpop.f32.mrf.mxu0 }
 0x8e0   :  { %v6620_v13 = vpop.f32.mrf.mxu1  ;;  %v5979_v62 = vadd.f32 %v5913_v59, %v5546_v41  ;;  %v12909_v14 = vadd.f32 %v6343_v50, %v5978_v52  ;;  %v6430_v59 = vld [vmem:[#allocation3 + $0x148] sm:$0xff] }
 0x8e1   :  { %v6780_v21 = vadd.f32 %v6620_v13, %v12612_v2  ;;  %9688 = vmatmul.msk.bf16.gmra.mxu2 %vm4054_vm2, %v6916_v45  ;;  %v6863_v13 = vld [vmem:[#allocation3 + $0x151] sm:$0xff]  ;;  %v7295_v52 = vld [vmem:[#allocation3 + $0x167] sm:$0xff] }
 0x8e2   :  { %14535 = vst [vmem:[#allocation23_spill] sm:$0xff] %v12909_v14  ;;  %9759 = vmatmul.msk.bf16.gmra.mxu0 %vm4054_vm2, %v6484_v10  ;;  %v7296_v45 = vld [vmem:[#allocation3 + $0x16f] sm:$0xff]  ;;  %v6917_v14 = vpack.c.bf16 %v6863_v13, %v6862_v43 }
 0x8e3   :  { %9652 = vmatmul.msk.bf16.gmra.mxu1 %vm4054_vm2, %v6484_v10 }
 0x8e4   :  { %9724 = vmatmul.msk.bf16.gmra.mxu3 %vm4054_vm2, %v7349_v54  ;;  %v7052_v8 = vpop.f32.mrf.mxu2 }
 0x8e5   :  { %v7212_v60 = vadd.f32 %v7052_v8, %v6780_v21  ;;  %v6485_v21 = vpack.c.bf16 %v6431_v31, %v6430_v59 }
 0x8e7   :  { %v7485_v40 = vpop.f32.mrf.mxu3  ;;  %v6345_v19 = vpop.f32.mrf.mxu0 }
 0x8e8   :  { %v6622_v48 = vpop.f32.mrf.mxu1  ;;  %v7645_v18 = vadd.f32 %v7485_v40, %v7212_v60  ;;  %v12913_v55 = vadd.f32 %v6345_v19, %v5979_v62 }
 0x8e9   :  { %v6781_v2 = vadd.f32 %v6622_v48, %v12615_v53  ;;  %v7350_v53 = vpack.c.bf16 %v7296_v45, %v7295_v52  ;;  %v6865_v45 = vld [vmem:[#allocation3 + $0x171] sm:$0xff] }
 0x8ec   :  { %v7054_v44 = vpop.f32.mrf.mxu2 }
 0x8ed   :  { %v7213_v54 = vadd.f32 %v7054_v44, %v6781_v2  ;;  %v6432_v44 = vld [vmem:[#allocation3 + $0x168] sm:$0xff] }
 0x8ef   :  { %v7487_v41 = vpop.f32.mrf.mxu3  ;;  %v7917_v62 = vpop.f32.mrf.mxu0 }
 0x8f0   :  { %v6625_v50 = vpop.f32.mrf.mxu1  ;;  %v7646_v8 = vadd.f32 %v7487_v41, %v7213_v54  ;;  %v12919_v40 = vadd.f32 %v7917_v62, %v7645_v18  ;;  %v6433_v41 = vld [vmem:[#allocation3 + $0x170] sm:$0xff]  ;;  %v7297_v18 = vld [vmem:[#allocation3 + $0x187] sm:$0xff] }
 0x8f1   :  { %v6782_v10 = vadd.f32 %v6625_v50, %v12620_v46  ;;  %9689 = vmatmul.msk.bf16.gmra.mxu2 %vm4054_vm2, %v6917_v14  ;;  %v6864_v14 = vld [vmem:[#allocation3 + $0x169] sm:$0xff] }
 0x8f2   :  { %9760 = vmatmul.msk.bf16.gmra.mxu0 %vm4054_vm2, %v6485_v21  ;;  %v7298_v54 = vld [vmem:[#allocation3 + $0x18f] sm:$0xff] }
 0x8f3   :  { %9653 = vmatmul.msk.bf16.gmra.mxu1 %vm4054_vm2, %v6485_v21 }
 0x8f4   :  { %9725 = vmatmul.msk.bf16.gmra.mxu3 %vm4054_vm2, %v7350_v53  ;;  %v7057_v60 = vpop.f32.mrf.mxu2 }
 0x8f5   :  { %v7214_v2 = vadd.f32 %v7057_v60, %v6782_v10  ;;  %v6486_v10 = vpack.c.bf16 %v6433_v41, %v6432_v44  ;;  %v6918_v60 = vpack.c.bf16 %v6865_v45, %v6864_v14  ;;  %v6866_v45 = vld [vmem:[#allocation3 + $0x189] sm:$0xff] }
 0x8f7   :  { %v7490_v48 = vpop.f32.mrf.mxu3  ;;  %v7919_v31 = vpop.f32.mrf.mxu0 }
 0x8f8   :  { %v6627_v19 = vpop.f32.mrf.mxu1  ;;  %v7647_v59 = vadd.f32 %v7490_v48, %v7214_v2  ;;  %v12923_v43 = vadd.f32 %v7919_v31, %v7646_v8 }
 0x8f9   :  { %v6783_v46 = vadd.f32 %v6627_v19, %v12623_v39  ;;  %v7351_v39 = vpack.c.bf16 %v7298_v54, %v7297_v18 }
 0x8fc   :  { %v7059_v13 = vpop.f32.mrf.mxu2 }
 0x8fd   :  { %v7215_v50 = vadd.f32 %v7059_v13, %v6783_v46  ;;  %v6434_v13 = vld [vmem:[#allocation3 + $0x188] sm:$0xff] }
 0x8ff   :  { %v7492_v52 = vpop.f32.mrf.mxu3  ;;  %v7922_v8 = vpop.f32.mrf.mxu0 }
 0x900   :  { %v6630_v53 = vpop.f32.mrf.mxu1  ;;  %v7648_v62 = vadd.f32 %v7492_v52, %v7215_v50  ;;  %v12929_v48 = vadd.f32 %v7922_v8, %v7647_v59  ;;  %v6435_v52 = vld [vmem:[#allocation3 + $0x190] sm:$0xff]  ;;  %v7299_v59 = vld [vmem:[#allocation3 + $0x1a7] sm:$0xff] }
 0x901   :  { %v6784_v21 = vadd.f32 %v6630_v53, %v12628_v49  ;;  %9690 = vmatmul.msk.bf16.gmra.mxu2 %vm4054_vm2, %v6918_v60  ;;  %v6867_v50 = vld [vmem:[#allocation3 + $0x191] sm:$0xff] }
 0x902   :  { %9761 = vmatmul.msk.bf16.gmra.mxu0 %vm4054_vm2, %v6486_v10  ;;  %v7300_v53 = vld [vmem:[#allocation3 + $0x1af] sm:$0xff] }
 0x903   :  { %9654 = vmatmul.msk.bf16.gmra.mxu1 %vm4054_vm2, %v6486_v10 }
 0x904   :  { %9726 = vmatmul.msk.bf16.gmra.mxu3 %vm4054_vm2, %v7351_v39  ;;  %v7062_v2 = vpop.f32.mrf.mxu2 }
 0x905   :  { %v7216_v46 = vadd.f32 %v7062_v2, %v6784_v21  ;;  %v6487_v21 = vpack.c.bf16 %v6435_v52, %v6434_v13  ;;  %v6919_v2 = vpack.c.bf16 %v6867_v50, %v6866_v45  ;;  %v6868_v50 = vld [vmem:[#allocation3 + $0x1a9] sm:$0xff] }
 0x907   :  { %v7495_v19 = vpop.f32.mrf.mxu3  ;;  %v7924_v41 = vpop.f32.mrf.mxu0 }
 0x908   :  { %v6632_v31 = vpop.f32.mrf.mxu1  ;;  %v7649_v44 = vadd.f32 %v7495_v19, %v7216_v46  ;;  %v12933_v14 = vadd.f32 %v7924_v41, %v7648_v62 }
 0x909   :  { %v6785_v49 = vadd.f32 %v6632_v31, %v12631_v57  ;;  %v7352_v57 = vpack.c.bf16 %v7300_v53, %v7299_v59 }
 0x90c   :  { %v7064_v18 = vpop.f32.mrf.mxu2 }
 0x90d   :  { %v7217_v60 = vadd.f32 %v7064_v18, %v6785_v49  ;;  %v6436_v18 = vld [vmem:[#allocation3 + $0x1a8] sm:$0xff] }
 0x90f   :  { %v7497_v54 = vpop.f32.mrf.mxu3  ;;  %v7927_v62 = vpop.f32.mrf.mxu0 }
 0x910   :  { %v6635_v39 = vpop.f32.mrf.mxu1  ;;  %v7650_v8 = vadd.f32 %v7497_v54, %v7217_v60  ;;  %v12939_v19 = vadd.f32 %v7927_v62, %v7649_v44  ;;  %v6437_v54 = vld [vmem:[#allocation3 + $0x1b0] sm:$0xff]  ;;  %v7301_v44 = vld [vmem:[#allocation3 + $0x1c7] sm:$0xff] }
 0x911   :  { %v6786_v10 = vadd.f32 %v6635_v39, %v12636_v9  ;;  %9691 = vmatmul.msk.bf16.gmra.mxu2 %vm4054_vm2, %v6919_v2  ;;  %v6869_v60 = vld [vmem:[#allocation3 + $0x1b1] sm:$0xff] }
 0x912   :  { %9762 = vmatmul.msk.bf16.gmra.mxu0 %vm4054_vm2, %v6487_v21  ;;  %v7302_v39 = vld [vmem:[#allocation3 + $0x1cf] sm:$0xff] }
 0x913   :  { %9655 = vmatmul.msk.bf16.gmra.mxu1 %vm4054_vm2, %v6487_v21 }
 0x914   :  { %9727 = vmatmul.msk.bf16.gmra.mxu3 %vm4054_vm2, %v7352_v57  ;;  %v7067_v46 = vpop.f32.mrf.mxu2 }
 0x915   :  { %v7218_v49 = vadd.f32 %v7067_v46, %v6786_v10  ;;  %v6488_v10 = vpack.c.bf16 %v6437_v54, %v6436_v18  ;;  %v6920_v46 = vpack.c.bf16 %v6869_v60, %v6868_v50  ;;  %v6870_v60 = vld [vmem:[#allocation3 + $0x1c9] sm:$0xff] }
 0x917   :  { %v7500_v31 = vpop.f32.mrf.mxu3  ;;  %v7929_v52 = vpop.f32.mrf.mxu0 }
 0x918   :  { %v6637_v41 = vpop.f32.mrf.mxu1  ;;  %v7651_v13 = vadd.f32 %v7500_v31, %v7218_v49  ;;  %v12943_v45 = vadd.f32 %v7929_v52, %v7650_v8 }
 0x919   :  { %v6787_v9 = vadd.f32 %v6637_v41, %v12639_v24  ;;  %v7353_v24 = vpack.c.bf16 %v7302_v39, %v7301_v44 }
 0x91c   :  { %v7069_v59 = vpop.f32.mrf.mxu2 }
 0x91d   :  { %v7219_v2 = vadd.f32 %v7069_v59, %v6787_v9  ;;  %v6438_v59 = vld [vmem:[#allocation3 + $0x1c8] sm:$0xff] }
 0x91f   :  { %v7502_v53 = vpop.f32.mrf.mxu3  ;;  %v7932_v8 = vpop.f32.mrf.mxu0 }
 0x920   :  { %v6640_v57 = vpop.f32.mrf.mxu1  ;;  %v7652_v62 = vadd.f32 %v7502_v53, %v7219_v2  ;;  %v12949_v31 = vadd.f32 %v7932_v8, %v7651_v13  ;;  %v6439_v53 = vld [vmem:[#allocation3 + $0x1d0] sm:$0xff]  ;;  %v7303_v13 = vld [vmem:[#allocation3 + $0x1e7] sm:$0xff] }
 0x921   :  { %v6788_v21 = vadd.f32 %v6640_v57, %v12644_v47  ;;  %9692 = vmatmul.msk.bf16.gmra.mxu2 %vm4054_vm2, %v6920_v46  ;;  %v6871_v2 = vld [vmem:[#allocation3 + $0x1d1] sm:$0xff] }
 0x922   :  { %9763 = vmatmul.msk.bf16.gmra.mxu0 %vm4054_vm2, %v6488_v10  ;;  %v7304_v57 = vld [vmem:[#allocation3 + $0x1ef] sm:$0xff] }
 0x923   :  { %9656 = vmatmul.msk.bf16.gmra.mxu1 %vm4054_vm2, %v6488_v10 }
 0x924   :  { %9728 = vmatmul.msk.bf16.gmra.mxu3 %vm4054_vm2, %v7353_v24  ;;  %v7072_v49 = vpop.f32.mrf.mxu2 }
 0x925   :  { %v7220_v9 = vadd.f32 %v7072_v49, %v6788_v21  ;;  %v6489_v21 = vpack.c.bf16 %v6439_v53, %v6438_v59  ;;  %v6921_v49 = vpack.c.bf16 %v6871_v2, %v6870_v60  ;;  %v6872_v2 = vld [vmem:[#allocation3 + $0x1e9] sm:$0xff] }
 0x927   :  { %v7505_v41 = vpop.f32.mrf.mxu3  ;;  %v7934_v54 = vpop.f32.mrf.mxu0 }
 0x928   :  { %v6642_v52 = vpop.f32.mrf.mxu1  ;;  %v7653_v18 = vadd.f32 %v7505_v41, %v7220_v9  ;;  %v12953_v50 = vadd.f32 %v7934_v54, %v7652_v62 }
 0x929   :  { %v6789_v47 = vadd.f32 %v6642_v52, %v12647_v27  ;;  %v7354_v27 = vpack.c.bf16 %v7304_v57, %v7303_v13 }
 0x92c   :  { %v7074_v44 = vpop.f32.mrf.mxu2 }
 0x92d   :  { %v7221_v46 = vadd.f32 %v7074_v44, %v6789_v47  ;;  %v6440_v44 = vld [vmem:[#allocation3 + $0x1e8] sm:$0xff] }
 0x92f   :  { %v7507_v39 = vpop.f32.mrf.mxu3  ;;  %v7937_v62 = vpop.f32.mrf.mxu0 }
 0x930   :  { %v6645_v24 = vpop.f32.mrf.mxu1  ;;  %v7654_v8 = vadd.f32 %v7507_v39, %v7221_v46  ;;  %v12959_v41 = vadd.f32 %v7937_v62, %v7653_v18  ;;  %v6441_v39 = vld [vmem:[#allocation3 + $0x1f0] sm:$0xff]  ;;  %v7305_v18 = vld [vmem:[#allocation3 + $0x207] sm:$0xff] }
 0x931   :  { %v6790_v10 = vadd.f32 %v6645_v24, %v12652_v28  ;;  %9693 = vmatmul.msk.bf16.gmra.mxu2 %vm4054_vm2, %v6921_v49  ;;  %v6873_v46 = vld [vmem:[#allocation3 + $0x1f1] sm:$0xff] }
 0x932   :  { %9764 = vmatmul.msk.bf16.gmra.mxu0 %vm4054_vm2, %v6489_v21  ;;  %v7306_v24 = vld [vmem:[#allocation3 + $0x20f] sm:$0xff] }
 0x933   :  { %9657 = vmatmul.msk.bf16.gmra.mxu1 %vm4054_vm2, %v6489_v21 }
 0x934   :  { %9729 = vmatmul.msk.bf16.gmra.mxu3 %vm4054_vm2, %v7354_v27  ;;  %v7077_v9 = vpop.f32.mrf.mxu2 }
 0x935   :  { %v7222_v47 = vadd.f32 %v7077_v9, %v6790_v10  ;;  %v6490_v10 = vpack.c.bf16 %v6441_v39, %v6440_v44  ;;  %v6922_v9 = vpack.c.bf16 %v6873_v46, %v6872_v2  ;;  %v9785_v44 = vld [vmem:[%s14195_s4 + $0x108] sm:$0xff] }
 0x936   :  { %v7308_v46 = vld [vmem:[#allocation3 + $0x22f] sm:$0xff] }
 0x937   :  { %v7510_v52 = vpop.f32.mrf.mxu3  ;;  %v7939_v53 = vpop.f32.mrf.mxu0 }
 0x938   :  { %v6647_v54 = vpop.f32.mrf.mxu1  ;;  %v7655_v59 = vadd.f32 %v7510_v52, %v7222_v47  ;;  %v12963_v60 = vadd.f32 %v7939_v53, %v7654_v8 }
 0x939   :  { %v6791_v28 = vadd.f32 %v6647_v54, %v12661_v20  ;;  %v7355_v20 = vpack.c.bf16 %v7306_v24, %v7305_v18  ;;  %v6442_v24 = vld [vmem:[#allocation3 + $0x208] sm:$0xff] }
 0x93c   :  { %v7079_v13 = vpop.f32.mrf.mxu2 }
 0x93d   :  { %v7223_v49 = vadd.f32 %v7079_v13, %v6791_v28 }
 0x93f   :  { %v7512_v57 = vpop.f32.mrf.mxu3  ;;  %v7942_v8 = vpop.f32.mrf.mxu0 }
 0x940   :  { %v6650_v27 = vpop.f32.mrf.mxu1  ;;  %v7656_v62 = vadd.f32 %v7512_v57, %v7223_v49  ;;  %v12969_v52 = vadd.f32 %v7942_v8, %v7655_v59  ;;  %v7307_v57 = vld [vmem:[#allocation3 + $0x227] sm:$0xff]  ;;  %v6443_v49 = vld [vmem:[#allocation3 + $0x210] sm:$0xff] }
 0x941   :  { %v6792_v21 = vadd.f32 %v6650_v27, %v12666_v61  ;;  %9694 = vmatmul.msk.bf16.gmra.mxu2 %vm4054_vm2, %v6922_v9  ;;  %v9784_v61 = vld [vmem:[%s14195_s4 + $0x100] sm:$0xff]  ;;  %v6875_v9 = vld [vmem:[#allocation3 + $0x211] sm:$0xff] }
 0x942   :  { %14536 = vst [vmem:[#allocation24_spill] sm:$0xff] %v12969_v52  ;;  %9765 = vmatmul.msk.bf16.gmra.mxu0 %vm4054_vm2, %v6490_v10  ;;  %v8242_v2 = vpack.c.bf16 %v9785_v44, %v9784_v61 }
 0x943   :  { %9658 = vmatmul.msk.bf16.gmra.mxu1 %vm4054_vm2, %v6490_v10  ;;  %v6874_v10 = vld [vmem:[#allocation3 + $0x209] sm:$0xff] }
 0x944   :  { %9730 = vmatmul.msk.bf16.gmra.mxu3 %vm4054_vm2, %v7355_v20  ;;  %v7082_v47 = vpop.f32.mrf.mxu2  ;;  %8347 = vmatpush.bf16.msra.mxu1 %v8242_v2 }
 0x945   :  { %v7224_v28 = vadd.f32 %v7082_v47, %v6792_v21  ;;  %v7356_v47 = vpack.c.bf16 %v7308_v46, %v7307_v57 }
 0x947   :  { %v7515_v54 = vpop.f32.mrf.mxu3  ;;  %v7944_v59 = vpop.f32.mrf.mxu0 }
 0x948   :  { %v6652_v53 = vpop.f32.mrf.mxu1  ;;  %v7657_v13 = vadd.f32 %v7515_v54, %v7224_v28  ;;  %v12979_v18 = vadd.f32 %v7944_v59, %v7656_v62  ;;  %v6923_v54 = vpack.c.bf16 %v6875_v9, %v6874_v10  ;;  %v6877_v9 = vld [vmem:[#allocation3 + $0x271] sm:$0xff] }
 0x949   :  { %v6793_v39 = vadd.f32 %v6652_v53, %v12669_v0  ;;  %v6491_v0 = vpack.c.bf16 %v6443_v49, %v6442_v24  ;;  %v6444_v24 = vld [vmem:[#allocation3 + $0x268] sm:$0xff]  ;;  %v6445_v49 = vld [vmem:[#allocation3 + $0x270] sm:$0xff] }
 0x94c   :  { %v7084_v27 = vpop.f32.mrf.mxu2 }
 0x94d   :  { %v7225_v20 = vadd.f32 %v7084_v27, %v6793_v39  ;;  %v6876_v27 = vld [vmem:[#allocation3 + $0x269] sm:$0xff] }
 0x94f   :  { %v7517_v21 = vpop.f32.mrf.mxu3  ;;  %v7947_v62 = vpop.f32.mrf.mxu0 }
 0x950   :  { %v6655_v8 = vpop.f32.mrf.mxu1  ;;  %v7658_v53 = vadd.f32 %v7517_v21, %v7225_v20  ;;  %v12985_v28 = vadd.f32 %v7947_v62, %v7657_v13  ;;  %v7309_v13 = vld [vmem:[#allocation3 + $0x287] sm:$0xff]  ;;  %v7310_v20 = vld [vmem:[#allocation3 + $0x28f] sm:$0xff] }
 0x951   :  { %v6794_v52 = vadd.f32 %v6655_v8, %v12674_v3  ;;  %9695 = vmatmul.msk.bf16.gmra.mxu2 %vm4054_vm2, %v6923_v54  ;;  %v7739_v54 = vld [vmem:[#allocation3 + $0x228] sm:$0xff]  ;;  %v7740_v62 = vld [vmem:[#allocation3 + $0x230] sm:$0xff] }
 0x952   :  { %9766 = vmatmul.msk.bf16.gmra.mxu0 %vm4054_vm2, %v6491_v0 }
 0x953   :  { %9659 = vmatmul.msk.bf16.gmra.mxu1 %vm4054_vm2, %v6491_v0 }
 0x954   :  { %9731 = vmatmul.msk.bf16.gmra.mxu3 %vm4054_vm2, %v7356_v47  ;;  %v7087_v61 = vpop.f32.mrf.mxu2 }
 0x955   :  { %v7226_v39 = vadd.f32 %v7087_v61, %v6794_v52  ;;  %v6492_v52 = vpack.c.bf16 %v6445_v49, %v6444_v24  ;;  %v6924_v61 = vpack.c.bf16 %v6877_v9, %v6876_v27  ;;  %v6446_v9 = vld [vmem:[#allocation3 + $0x288] sm:$0xff] }
 0x957   :  { %v7520_v44 = vpop.f32.mrf.mxu3  ;;  %v7949_v57 = vpop.f32.mrf.mxu0 }
 0x958   :  { %v6657_v2 = vpop.f32.mrf.mxu1  ;;  %v7659_v59 = vadd.f32 %v7520_v44, %v7226_v39  ;;  %v12989_v46 = vadd.f32 %v7949_v57, %v7658_v53  ;;  %v7357_v44 = vpack.c.bf16 %v7310_v20, %v7309_v13  ;;  %v7788_v53 = vpack.c.bf16 %v7740_v62, %v7739_v54  ;;  %v6447_v13 = vld [vmem:[#allocation3 + $0x290] sm:$0xff] }
 0x959   :  { %v6795_v3 = vadd.f32 %v6657_v2, %v12677_v29  ;;  %v6878_v20 = vld [vmem:[#allocation3 + $0x289] sm:$0xff] }
 0x95a   :  { %v7312_v54 = vld [vmem:[#allocation3 + $0x2af] sm:$0xff] }
 0x95c   :  { %v7089_v21 = vpop.f32.mrf.mxu2 }
 0x95d   :  { %v7227_v8 = vadd.f32 %v7089_v21, %v6795_v3 }
 0x95f   :  { %v7522_v10 = vpop.f32.mrf.mxu3  ;;  %v7952_v39 = vpop.f32.mrf.mxu0 }
 0x960   :  { %v6660_v47 = vpop.f32.mrf.mxu1  ;;  %v7660_v29 = vadd.f32 %v7522_v10, %v7227_v8  ;;  %v12995_v2 = vadd.f32 %v7952_v39, %v7659_v59  ;;  %v7311_v59 = vld [vmem:[#allocation3 + $0x2a7] sm:$0xff] }
 0x961   :  { %v6796_v0 = vadd.f32 %v6660_v47, %v12682_v37  ;;  %9696 = vmatmul.msk.bf16.gmra.mxu2 %vm4054_vm2, %v6924_v61 }
 0x962   :  { %9767 = vmatmul.msk.bf16.gmra.mxu0 %vm4054_vm2, %v7788_v53 }
 0x963   :  { %9660 = vmatmul.msk.bf16.gmra.mxu1 %vm4054_vm2, %v6492_v52  ;;  %v6879_v52 = vld [vmem:[#allocation3 + $0x291] sm:$0xff] }
 0x964   :  { %9732 = vmatmul.msk.bf16.gmra.mxu3 %vm4054_vm2, %v7357_v44  ;;  %v7092_v3 = vpop.f32.mrf.mxu2  ;;  %v6925_v39 = vpack.c.bf16 %v6879_v52, %v6878_v20  ;;  %v6448_v20 = vld [vmem:[#allocation3 + $0x2a8] sm:$0xff] }
 0x965   :  { %v7228_v37 = vadd.f32 %v7092_v3, %v6796_v0  ;;  %v6493_v0 = vpack.c.bf16 %v6447_v13, %v6446_v9 }
 0x967   :  { %v7525_v57 = vpop.f32.mrf.mxu3  ;;  %v7954_v21 = vpop.f32.mrf.mxu0 }
 0x968   :  { %v6662_v24 = vpop.f32.mrf.mxu1  ;;  %v7661_v27 = vadd.f32 %v7525_v57, %v7228_v37  ;;  %v12999_v10 = vadd.f32 %v7954_v21, %v7660_v29 }
 0x969   :  { %v6797_v49 = vadd.f32 %v6662_v24, %v12685_v6  ;;  %v7358_v6 = vpack.c.bf16 %v7312_v54, %v7311_v59  ;;  %v6881_v54 = vld [vmem:[#allocation3 + $0x2b1] sm:$0xff] }
 0x96c   :  { %v7094_v8 = vpop.f32.mrf.mxu2 }
 0x96d   :  { %v7229_v62 = vadd.f32 %v7094_v8, %v6797_v49  ;;  %v6449_v8 = vld [vmem:[#allocation3 + $0x2b0] sm:$0xff] }
 0x96f   :  { %v7527_v47 = vpop.f32.mrf.mxu3  ;;  %v7957_v29 = vpop.f32.mrf.mxu0 }
 0x970   :  { %v6665_v61 = vpop.f32.mrf.mxu1  ;;  %v7662_v53 = vadd.f32 %v7527_v47, %v7229_v62  ;;  %v13005_v3 = vadd.f32 %v7957_v29, %v7661_v27  ;;  %v6880_v47 = vld [vmem:[#allocation3 + $0x2a9] sm:$0xff] }
 0x971   :  { %v6798_v44 = vadd.f32 %v6665_v61, %v12690_v34  ;;  %9697 = vmatmul.msk.bf16.gmra.mxu2 %vm4054_vm2, %v6925_v39  ;;  %v7313_v27 = vld [vmem:[#allocation3 + $0x2c7] sm:$0xff]  ;;  %v7314_v62 = vld [vmem:[#allocation3 + $0x2cf] sm:$0xff]  ;;  %v6926_v29 = vpack.c.bf16 %v6881_v54, %v6880_v47 }
 0x972   :  { %9768 = vmatmul.msk.bf16.gmra.mxu0 %vm4054_vm2, %v6493_v0  ;;  %v6450_v47 = vld [vmem:[#allocation3 + $0x2c8] sm:$0xff] }
 0x973   :  { %9661 = vmatmul.msk.bf16.gmra.mxu1 %vm4054_vm2, %v6493_v0 }
 0x974   :  { %9733 = vmatmul.msk.bf16.gmra.mxu3 %vm4054_vm2, %v7358_v6  ;;  %v7097_v57 = vpop.f32.mrf.mxu2 }
 0x975   :  { %v7230_v24 = vadd.f32 %v7097_v57, %v6798_v44  ;;  %v6494_v44 = vpack.c.bf16 %v6449_v8, %v6448_v20 }
 0x977   :  { %v7530_v37 = vpop.f32.mrf.mxu3  ;;  %v7959_v9 = vpop.f32.mrf.mxu0 }
 0x978   :  { %v6667_v49 = vpop.f32.mrf.mxu1  ;;  %v7663_v21 = vadd.f32 %v7530_v37, %v7230_v24  ;;  %v13009_v13 = vadd.f32 %v7959_v9, %v7662_v53 }
 0x979   :  { %v6799_v34 = vadd.f32 %v6667_v49, %v12693_v51  ;;  %v7359_v51 = vpack.c.bf16 %v7314_v62, %v7313_v27  ;;  %v6883_v62 = vld [vmem:[#allocation3 + $0x2d1] sm:$0xff] }
 0x97c   :  { %v7099_v52 = vpop.f32.mrf.mxu2 }
 0x97d   :  { %v7231_v61 = vadd.f32 %v7099_v52, %v6799_v34  ;;  %v6451_v52 = vld [vmem:[#allocation3 + $0x2d0] sm:$0xff] }
 0x97f   :  { %v7532_v59 = vpop.f32.mrf.mxu3  ;;  %v7962_v53 = vpop.f32.mrf.mxu0 }
 0x980   :  { %v6670_v39 = vpop.f32.mrf.mxu1  ;;  %v7664_v6 = vadd.f32 %v7532_v59, %v7231_v61  ;;  %v13015_v57 = vadd.f32 %v7962_v53, %v7663_v21  ;;  %v6882_v59 = vld [vmem:[#allocation3 + $0x2c9] sm:$0xff] }
 0x981   :  { %v6800_v0 = vadd.f32 %v6670_v39, %v12698_v36  ;;  %9698 = vmatmul.msk.bf16.gmra.mxu2 %vm4054_vm2, %v6926_v29  ;;  %v7315_v21 = vld [vmem:[#allocation3 + $0x2e7] sm:$0xff]  ;;  %v7316_v61 = vld [vmem:[#allocation3 + $0x2ef] sm:$0xff]  ;;  %v6927_v53 = vpack.c.bf16 %v6883_v62, %v6882_v59 }
 0x982   :  { %9769 = vmatmul.msk.bf16.gmra.mxu0 %vm4054_vm2, %v6494_v44  ;;  %v6452_v59 = vld [vmem:[#allocation3 + $0x2e8] sm:$0xff] }
 0x983   :  { %9662 = vmatmul.msk.bf16.gmra.mxu1 %vm4054_vm2, %v6494_v44 }
 0x984   :  { %9734 = vmatmul.msk.bf16.gmra.mxu3 %vm4054_vm2, %v7359_v51  ;;  %v7102_v37 = vpop.f32.mrf.mxu2 }
 0x985   :  { %v7232_v49 = vadd.f32 %v7102_v37, %v6800_v0  ;;  %v6495_v0 = vpack.c.bf16 %v6451_v52, %v6450_v47 }
 0x987   :  { %v7535_v24 = vpop.f32.mrf.mxu3  ;;  %v7964_v20 = vpop.f32.mrf.mxu0 }
 0x988   :  { %v6672_v34 = vpop.f32.mrf.mxu1  ;;  %v7665_v9 = vadd.f32 %v7535_v24, %v7232_v49  ;;  %v13019_v8 = vadd.f32 %v7964_v20, %v7664_v6 }
 0x989   :  { %v6801_v36 = vadd.f32 %v6672_v34, %v12701_v4  ;;  %v7360_v4 = vpack.c.bf16 %v7316_v61, %v7315_v21  ;;  %v6885_v61 = vld [vmem:[#allocation3 + $0x2f1] sm:$0xff] }
 0x98c   :  { %v7104_v54 = vpop.f32.mrf.mxu2 }
 0x98d   :  { %v7233_v39 = vadd.f32 %v7104_v54, %v6801_v36  ;;  %v6453_v54 = vld [vmem:[#allocation3 + $0x2f0] sm:$0xff] }
 0x98f   :  { %v7537_v27 = vpop.f32.mrf.mxu3  ;;  %v7967_v6 = vpop.f32.mrf.mxu0 }
 0x990   :  { %v6675_v29 = vpop.f32.mrf.mxu1  ;;  %v7666_v51 = vadd.f32 %v7537_v27, %v7233_v39  ;;  %v13025_v37 = vadd.f32 %v7967_v6, %v7665_v9  ;;  %v6884_v27 = vld [vmem:[#allocation3 + $0x2e9] sm:$0xff] }
 0x991   :  { %v6802_v44 = vadd.f32 %v6675_v29, %v12706_v5  ;;  %9699 = vmatmul.msk.bf16.gmra.mxu2 %vm4054_vm2, %v6927_v53  ;;  %v7317_v9 = vld [vmem:[#allocation3 + $0x307] sm:$0xff]  ;;  %v7318_v39 = vld [vmem:[#allocation3 + $0x30f] sm:$0xff]  ;;  %v6928_v6 = vpack.c.bf16 %v6885_v61, %v6884_v27 }
 0x992   :  { %9770 = vmatmul.msk.bf16.gmra.mxu0 %vm4054_vm2, %v6495_v0  ;;  %v6454_v27 = vld [vmem:[#allocation3 + $0x308] sm:$0xff] }
 0x993   :  { %9663 = vmatmul.msk.bf16.gmra.mxu1 %vm4054_vm2, %v6495_v0 }
 0x994   :  { %9735 = vmatmul.msk.bf16.gmra.mxu3 %vm4054_vm2, %v7360_v4  ;;  %v7107_v24 = vpop.f32.mrf.mxu2 }
 0x995   :  { %v7234_v34 = vadd.f32 %v7107_v24, %v6802_v44  ;;  %v6496_v44 = vpack.c.bf16 %v6453_v54, %v6452_v59 }
 0x997   :  { %v7540_v49 = vpop.f32.mrf.mxu3  ;;  %v7969_v47 = vpop.f32.mrf.mxu0 }
 0x998   :  { %v6677_v36 = vpop.f32.mrf.mxu1  ;;  %v7667_v20 = vadd.f32 %v7540_v49, %v7234_v34  ;;  %v13029_v52 = vadd.f32 %v7969_v47, %v7666_v51 }
 0x999   :  { %v6803_v5 = vadd.f32 %v6677_v36, %v12709_v63  ;;  %v7361_v63 = vpack.c.bf16 %v7318_v39, %v7317_v9  ;;  %v6887_v39 = vld [vmem:[#allocation3 + $0x311] sm:$0xff] }
 0x99c   :  { %v7109_v62 = vpop.f32.mrf.mxu2 }
 0x99d   :  { %v7235_v29 = vadd.f32 %v7109_v62, %v6803_v5  ;;  %v6455_v62 = vld [vmem:[#allocation3 + $0x310] sm:$0xff] }
 0x99f   :  { %v7542_v21 = vpop.f32.mrf.mxu3  ;;  %v7972_v51 = vpop.f32.mrf.mxu0 }
 0x9a0   :  { %v6680_v53 = vpop.f32.mrf.mxu1  ;;  %v7668_v4 = vadd.f32 %v7542_v21, %v7235_v29  ;;  %v13035_v24 = vadd.f32 %v7972_v51, %v7667_v20  ;;  %v6886_v21 = vld [vmem:[#allocation3 + $0x309] sm:$0xff] }
 0x9a1   :  { %v6804_v0 = vadd.f32 %v6680_v53, %v12714_v25  ;;  %9700 = vmatmul.msk.bf16.gmra.mxu2 %vm4054_vm2, %v6928_v6  ;;  %v7319_v20 = vld [vmem:[#allocation3 + $0x327] sm:$0xff]  ;;  %v7320_v29 = vld [vmem:[#allocation3 + $0x32f] sm:$0xff]  ;;  %v6929_v51 = vpack.c.bf16 %v6887_v39, %v6886_v21 }
 0x9a2   :  { %9771 = vmatmul.msk.bf16.gmra.mxu0 %vm4054_vm2, %v6496_v44  ;;  %v6456_v21 = vld [vmem:[#allocation3 + $0x328] sm:$0xff] }
 0x9a3   :  { %9664 = vmatmul.msk.bf16.gmra.mxu1 %vm4054_vm2, %v6496_v44 }
 0x9a4   :  { %9736 = vmatmul.msk.bf16.gmra.mxu3 %vm4054_vm2, %v7361_v63  ;;  %v7112_v49 = vpop.f32.mrf.mxu2 }
 0x9a5   :  { %v7236_v36 = vadd.f32 %v7112_v49, %v6804_v0  ;;  %v6497_v0 = vpack.c.bf16 %v6455_v62, %v6454_v27 }
 0x9a7   :  { %v7545_v34 = vpop.f32.mrf.mxu3  ;;  %v7974_v59 = vpop.f32.mrf.mxu0 }
 0x9a8   :  { %v6682_v5 = vpop.f32.mrf.mxu1  ;;  %v7669_v47 = vadd.f32 %v7545_v34, %v7236_v36  ;;  %v13039_v54 = vadd.f32 %v7974_v59, %v7668_v4 }
 0x9a9   :  { %v6805_v25 = vadd.f32 %v6682_v5, %v12717_v35  ;;  %v7362_v35 = vpack.c.bf16 %v7320_v29, %v7319_v20  ;;  %v6889_v29 = vld [vmem:[#allocation3 + $0x331] sm:$0xff] }
 0x9ac   :  { %v7114_v61 = vpop.f32.mrf.mxu2 }
 0x9ad   :  { %v7237_v53 = vadd.f32 %v7114_v61, %v6805_v25  ;;  %v6457_v61 = vld [vmem:[#allocation3 + $0x330] sm:$0xff] }
 0x9af   :  { %v7547_v9 = vpop.f32.mrf.mxu3  ;;  %v7977_v4 = vpop.f32.mrf.mxu0 }
 0x9b0   :  { %v6685_v6 = vpop.f32.mrf.mxu1  ;;  %v7670_v63 = vadd.f32 %v7547_v9, %v7237_v53  ;;  %v13045_v49 = vadd.f32 %v7977_v4, %v7669_v47  ;;  %v6888_v9 = vld [vmem:[#allocation3 + $0x329] sm:$0xff] }
 0x9b1   :  { %v6806_v44 = vadd.f32 %v6685_v6, %v12722_v56  ;;  %9701 = vmatmul.msk.bf16.gmra.mxu2 %vm4054_vm2, %v6929_v51  ;;  %v7321_v47 = vld [vmem:[#allocation3 + $0x347] sm:$0xff]  ;;  %v7322_v53 = vld [vmem:[#allocation3 + $0x34f] sm:$0xff]  ;;  %v6930_v4 = vpack.c.bf16 %v6889_v29, %v6888_v9 }
 0x9b2   :  { %9772 = vmatmul.msk.bf16.gmra.mxu0 %vm4054_vm2, %v6497_v0  ;;  %v6458_v9 = vld [vmem:[#allocation3 + $0x348] sm:$0xff] }
 0x9b3   :  { %9665 = vmatmul.msk.bf16.gmra.mxu1 %vm4054_vm2, %v6497_v0 }
 0x9b4   :  { %9737 = vmatmul.msk.bf16.gmra.mxu3 %vm4054_vm2, %v7362_v35  ;;  %v7117_v34 = vpop.f32.mrf.mxu2 }
 0x9b5   :  { %v7238_v5 = vadd.f32 %v7117_v34, %v6806_v44  ;;  %v6498_v44 = vpack.c.bf16 %v6457_v61, %v6456_v21 }
 0x9b7   :  { %v7550_v36 = vpop.f32.mrf.mxu3  ;;  %v7979_v27 = vpop.f32.mrf.mxu0 }
 0x9b8   :  { %v6687_v25 = vpop.f32.mrf.mxu1  ;;  %v7671_v59 = vadd.f32 %v7550_v36, %v7238_v5  ;;  %v13049_v62 = vadd.f32 %v7979_v27, %v7670_v63 }
 0x9b9   :  { %v6807_v56 = vadd.f32 %v6687_v25, %v12725_v1  ;;  %v7363_v1 = vpack.c.bf16 %v7322_v53, %v7321_v47  ;;  %v6891_v53 = vld [vmem:[#allocation3 + $0x351] sm:$0xff] }
 0x9bc   :  { %v7119_v39 = vpop.f32.mrf.mxu2 }
 0x9bd   :  { %v7239_v6 = vadd.f32 %v7119_v39, %v6807_v56  ;;  %v6459_v39 = vld [vmem:[#allocation3 + $0x350] sm:$0xff] }
 0x9bf   :  { %v7552_v20 = vpop.f32.mrf.mxu3  ;;  %v7982_v63 = vpop.f32.mrf.mxu0 }
 0x9c0   :  { %v6690_v51 = vpop.f32.mrf.mxu1  ;;  %v7672_v35 = vadd.f32 %v7552_v20, %v7239_v6  ;;  %v13055_v34 = vadd.f32 %v7982_v63, %v7671_v59  ;;  %v6890_v20 = vld [vmem:[#allocation3 + $0x349] sm:$0xff] }
 0x9c1   :  { %v6808_v0 = vadd.f32 %v6690_v51, %v12730_v23  ;;  %9702 = vmatmul.msk.bf16.gmra.mxu2 %vm4054_vm2, %v6930_v4  ;;  %v7323_v59 = vld [vmem:[#allocation3 + $0x367] sm:$0xff]  ;;  %v7324_v6 = vld [vmem:[#allocation3 + $0x36f] sm:$0xff]  ;;  %v6931_v63 = vpack.c.bf16 %v6891_v53, %v6890_v20 }
 0x9c2   :  { %9773 = vmatmul.msk.bf16.gmra.mxu0 %vm4054_vm2, %v6498_v44  ;;  %v6460_v20 = vld [vmem:[#allocation3 + $0x368] sm:$0xff] }
 0x9c3   :  { %9666 = vmatmul.msk.bf16.gmra.mxu1 %vm4054_vm2, %v6498_v44 }
 0x9c4   :  { %9738 = vmatmul.msk.bf16.gmra.mxu3 %vm4054_vm2, %v7363_v1  ;;  %v7122_v36 = vpop.f32.mrf.mxu2 }
 0x9c5   :  { %v7240_v25 = vadd.f32 %v7122_v36, %v6808_v0  ;;  %v6499_v0 = vpack.c.bf16 %v6459_v39, %v6458_v9 }
 0x9c7   :  { %v7555_v5 = vpop.f32.mrf.mxu3  ;;  %v7984_v21 = vpop.f32.mrf.mxu0 }
 0x9c8   :  { %v6692_v56 = vpop.f32.mrf.mxu1  ;;  %v7673_v27 = vadd.f32 %v7555_v5, %v7240_v25  ;;  %v13059_v61 = vadd.f32 %v7984_v21, %v7672_v35 }
 0x9c9   :  { %v6809_v23 = vadd.f32 %v6692_v56, %v12733_v42  ;;  %v7364_v42 = vpack.c.bf16 %v7324_v6, %v7323_v59  ;;  %v6893_v6 = vld [vmem:[#allocation3 + $0x371] sm:$0xff] }
 0x9cc   :  { %v7124_v29 = vpop.f32.mrf.mxu2 }
 0x9cd   :  { %v7241_v51 = vadd.f32 %v7124_v29, %v6809_v23  ;;  %v6461_v29 = vld [vmem:[#allocation3 + $0x370] sm:$0xff] }
 0x9cf   :  { %v7557_v47 = vpop.f32.mrf.mxu3  ;;  %v7987_v35 = vpop.f32.mrf.mxu0 }
 0x9d0   :  { %v6695_v4 = vpop.f32.mrf.mxu1  ;;  %v7674_v1 = vadd.f32 %v7557_v47, %v7241_v51  ;;  %v13065_v36 = vadd.f32 %v7987_v35, %v7673_v27  ;;  %v6892_v47 = vld [vmem:[#allocation3 + $0x369] sm:$0xff] }
 0x9d1   :  { %v6810_v44 = vadd.f32 %v6695_v4, %v12738_v26  ;;  %9703 = vmatmul.msk.bf16.gmra.mxu2 %vm4054_vm2, %v6931_v63  ;;  %v7325_v27 = vld [vmem:[#allocation3 + $0x387] sm:$0xff]  ;;  %v7326_v51 = vld [vmem:[#allocation3 + $0x38f] sm:$0xff]  ;;  %v6932_v35 = vpack.c.bf16 %v6893_v6, %v6892_v47 }
 0x9d2   :  { %9774 = vmatmul.msk.bf16.gmra.mxu0 %vm4054_vm2, %v6499_v0  ;;  %v6462_v47 = vld [vmem:[#allocation3 + $0x388] sm:$0xff] }
 0x9d3   :  { %9667 = vmatmul.msk.bf16.gmra.mxu1 %vm4054_vm2, %v6499_v0 }
 0x9d4   :  { %9739 = vmatmul.msk.bf16.gmra.mxu3 %vm4054_vm2, %v7364_v42  ;;  %v7127_v5 = vpop.f32.mrf.mxu2 }
 0x9d5   :  { %v7242_v56 = vadd.f32 %v7127_v5, %v6810_v44  ;;  %v6500_v44 = vpack.c.bf16 %v6461_v29, %v6460_v20 }
 0x9d7   :  { %v7560_v25 = vpop.f32.mrf.mxu3  ;;  %v7989_v9 = vpop.f32.mrf.mxu0 }
 0x9d8   :  { %v6697_v23 = vpop.f32.mrf.mxu1  ;;  %v7675_v21 = vadd.f32 %v7560_v25, %v7242_v56  ;;  %v13069_v39 = vadd.f32 %v7989_v9, %v7674_v1 }
 0x9d9   :  { %v6811_v26 = vadd.f32 %v6697_v23, %v12741_v11  ;;  %v7365_v11 = vpack.c.bf16 %v7326_v51, %v7325_v27  ;;  %v6895_v51 = vld [vmem:[#allocation3 + $0x391] sm:$0xff] }
 0x9dc   :  { %v7129_v53 = vpop.f32.mrf.mxu2 }
 0x9dd   :  { %v7243_v4 = vadd.f32 %v7129_v53, %v6811_v26  ;;  %v6463_v53 = vld [vmem:[#allocation3 + $0x390] sm:$0xff] }
 0x9df   :  { %v7562_v59 = vpop.f32.mrf.mxu3  ;;  %v7992_v1 = vpop.f32.mrf.mxu0 }
 0x9e0   :  { %v6700_v63 = vpop.f32.mrf.mxu1  ;;  %v7676_v42 = vadd.f32 %v7562_v59, %v7243_v4  ;;  %v13075_v5 = vadd.f32 %v7992_v1, %v7675_v21  ;;  %v6894_v59 = vld [vmem:[#allocation3 + $0x389] sm:$0xff] }
 0x9e1   :  { %v6812_v0 = vadd.f32 %v6700_v63, %v12746_v22  ;;  %9704 = vmatmul.msk.bf16.gmra.mxu2 %vm4054_vm2, %v6932_v35  ;;  %v7327_v21 = vld [vmem:[#allocation3 + $0x3a7] sm:$0xff]  ;;  %v7328_v4 = vld [vmem:[#allocation3 + $0x3af] sm:$0xff]  ;;  %v6933_v1 = vpack.c.bf16 %v6895_v51, %v6894_v59 }
 0x9e2   :  { %9775 = vmatmul.msk.bf16.gmra.mxu0 %vm4054_vm2, %v6500_v44  ;;  %v6464_v59 = vld [vmem:[#allocation3 + $0x3a8] sm:$0xff] }
 0x9e3   :  { %9668 = vmatmul.msk.bf16.gmra.mxu1 %vm4054_vm2, %v6500_v44 }
 0x9e4   :  { %9740 = vmatmul.msk.bf16.gmra.mxu3 %vm4054_vm2, %v7365_v11  ;;  %v7132_v25 = vpop.f32.mrf.mxu2 }
 0x9e5   :  { %v7244_v23 = vadd.f32 %v7132_v25, %v6812_v0  ;;  %v6501_v0 = vpack.c.bf16 %v6463_v53, %v6462_v47 }
 0x9e7   :  { %v7565_v56 = vpop.f32.mrf.mxu3  ;;  %v7994_v20 = vpop.f32.mrf.mxu0 }
 0x9e8   :  { %v6702_v26 = vpop.f32.mrf.mxu1  ;;  %v7677_v9 = vadd.f32 %v7565_v56, %v7244_v23  ;;  %v13079_v29 = vadd.f32 %v7994_v20, %v7676_v42 }
 0x9e9   :  { %v6813_v22 = vadd.f32 %v6702_v26, %v12749_v12  ;;  %v7366_v12 = vpack.c.bf16 %v7328_v4, %v7327_v21  ;;  %v6897_v4 = vld [vmem:[#allocation3 + $0x3b1] sm:$0xff] }
 0x9ec   :  { %v7134_v6 = vpop.f32.mrf.mxu2 }
 0x9ed   :  { %v7245_v63 = vadd.f32 %v7134_v6, %v6813_v22  ;;  %v6465_v6 = vld [vmem:[#allocation3 + $0x3b0] sm:$0xff] }
 0x9ef   :  { %v7567_v27 = vpop.f32.mrf.mxu3  ;;  %v7997_v42 = vpop.f32.mrf.mxu0 }
 0x9f0   :  { %v6705_v35 = vpop.f32.mrf.mxu1  ;;  %v7678_v11 = vadd.f32 %v7567_v27, %v7245_v63  ;;  %v13085_v25 = vadd.f32 %v7997_v42, %v7677_v9  ;;  %v6896_v27 = vld [vmem:[#allocation3 + $0x3a9] sm:$0xff] }
 0x9f1   :  { %v6814_v44 = vadd.f32 %v6705_v35, %v12754_v17  ;;  %9705 = vmatmul.msk.bf16.gmra.mxu2 %vm4054_vm2, %v6933_v1  ;;  %v7329_v9 = vld [vmem:[#allocation3 + $0x3c7] sm:$0xff]  ;;  %v7330_v63 = vld [vmem:[#allocation3 + $0x3cf] sm:$0xff]  ;;  %v6934_v42 = vpack.c.bf16 %v6897_v4, %v6896_v27 }
 0x9f2   :  { %9776 = vmatmul.msk.bf16.gmra.mxu0 %vm4054_vm2, %v6501_v0  ;;  %v6466_v27 = vld [vmem:[#allocation3 + $0x3c8] sm:$0xff] }
 0x9f3   :  { %9669 = vmatmul.msk.bf16.gmra.mxu1 %vm4054_vm2, %v6501_v0 }
 0x9f4   :  { %9741 = vmatmul.msk.bf16.gmra.mxu3 %vm4054_vm2, %v7366_v12  ;;  %v7137_v56 = vpop.f32.mrf.mxu2 }
 0x9f5   :  { %v7246_v26 = vadd.f32 %v7137_v56, %v6814_v44  ;;  %v6502_v44 = vpack.c.bf16 %v6465_v6, %v6464_v59 }
 0x9f7   :  { %v7570_v23 = vpop.f32.mrf.mxu3  ;;  %v7999_v47 = vpop.f32.mrf.mxu0 }
 0x9f8   :  { %v6707_v22 = vpop.f32.mrf.mxu1  ;;  %v7679_v20 = vadd.f32 %v7570_v23, %v7246_v26  ;;  %v13089_v53 = vadd.f32 %v7999_v47, %v7678_v11 }
 0x9f9   :  { %v6815_v17 = vadd.f32 %v6707_v22, %v12757_v38  ;;  %v7367_v38 = vpack.c.bf16 %v7330_v63, %v7329_v9  ;;  %v6899_v63 = vld [vmem:[#allocation3 + $0x3d1] sm:$0xff] }
 0x9fc   :  { %v7139_v51 = vpop.f32.mrf.mxu2 }
 0x9fd   :  { %v7247_v35 = vadd.f32 %v7139_v51, %v6815_v17  ;;  %v6467_v51 = vld [vmem:[#allocation3 + $0x3d0] sm:$0xff] }
 0x9ff   :  { %v7572_v21 = vpop.f32.mrf.mxu3  ;;  %v8002_v11 = vpop.f32.mrf.mxu0 }
 0xa00   :  { %v6710_v1 = vpop.f32.mrf.mxu1  ;;  %v7680_v12 = vadd.f32 %v7572_v21, %v7247_v35  ;;  %v13095_v56 = vadd.f32 %v8002_v11, %v7679_v20  ;;  %v6898_v21 = vld [vmem:[#allocation3 + $0x3c9] sm:$0xff] }
 0xa01   :  { %v6816_v0 = vadd.f32 %v6710_v1, %v12762_v16  ;;  %9706 = vmatmul.msk.bf16.gmra.mxu2 %vm4054_vm2, %v6934_v42  ;;  %v7331_v20 = vld [vmem:[#allocation3 + $0x3e7] sm:$0xff]  ;;  %v7332_v35 = vld [vmem:[#allocation3 + $0x3ef] sm:$0xff]  ;;  %v6935_v11 = vpack.c.bf16 %v6899_v63, %v6898_v21 }
 0xa02   :  { %9777 = vmatmul.msk.bf16.gmra.mxu0 %vm4054_vm2, %v6502_v44  ;;  %v6468_v21 = vld [vmem:[#allocation3 + $0x3e8] sm:$0xff] }
 0xa03   :  { %9670 = vmatmul.msk.bf16.gmra.mxu1 %vm4054_vm2, %v6502_v44 }
 0xa04   :  { %9742 = vmatmul.msk.bf16.gmra.mxu3 %vm4054_vm2, %v7367_v38  ;;  %v7142_v23 = vpop.f32.mrf.mxu2 }
 0xa05   :  { %v7248_v22 = vadd.f32 %v7142_v23, %v6816_v0  ;;  %v6503_v0 = vpack.c.bf16 %v6467_v51, %v6466_v27 }
 0xa07   :  { %v7575_v26 = vpop.f32.mrf.mxu3  ;;  %v8004_v59 = vpop.f32.mrf.mxu0 }
 0xa08   :  { %v6712_v17 = vpop.f32.mrf.mxu1  ;;  %v7681_v47 = vadd.f32 %v7575_v26, %v7248_v22  ;;  %v13099_v6 = vadd.f32 %v8004_v59, %v7680_v12 }
 0xa09   :  { %v6817_v16 = vadd.f32 %v6712_v17, %v12765_v33  ;;  %v7368_v33 = vpack.c.bf16 %v7332_v35, %v7331_v20  ;;  %v6901_v35 = vld [vmem:[#allocation3 + $0x3f1] sm:$0xff] }
 0xa0c   :  { %v7144_v4 = vpop.f32.mrf.mxu2 }
 0xa0d   :  { %v7249_v1 = vadd.f32 %v7144_v4, %v6817_v16  ;;  %v6469_v4 = vld [vmem:[#allocation3 + $0x3f0] sm:$0xff] }
 0xa0f   :  { %v7577_v9 = vpop.f32.mrf.mxu3  ;;  %v8007_v12 = vpop.f32.mrf.mxu0 }
 0xa10   :  { %v6715_v42 = vpop.f32.mrf.mxu1  ;;  %v7682_v38 = vadd.f32 %v7577_v9, %v7249_v1  ;;  %v13105_v23 = vadd.f32 %v8007_v12, %v7681_v47  ;;  %v6900_v9 = vld [vmem:[#allocation3 + $0x3e9] sm:$0xff] }
 0xa11   :  { %v6818_v44 = vadd.f32 %v6715_v42, %v12770_v58  ;;  %9707 = vmatmul.msk.bf16.gmra.mxu2 %vm4054_vm2, %v6935_v11  ;;  %v7333_v47 = vld [vmem:[#allocation3 + $0x407] sm:$0xff]  ;;  %v7334_v1 = vld [vmem:[#allocation3 + $0x40f] sm:$0xff] }
 0xa12   :  { %9778 = vmatmul.msk.bf16.gmra.mxu0 %vm4054_vm2, %v6503_v0 }
 0xa13   :  { %9671 = vmatmul.msk.bf16.gmra.mxu1 %vm4054_vm2, %v6503_v0 }
 0xa14   :  { %9743 = vmatmul.msk.bf16.gmra.mxu3 %vm4054_vm2, %v7368_v33  ;;  %v7147_v26 = vpop.f32.mrf.mxu2  ;;  %v14538_v33 = vld [vmem:[#allocation19_spill] sm:$0xff] }
 0xa15   :  { %v7250_v17 = vadd.f32 %v7147_v26, %v6818_v44  ;;  %v6504_v44 = vpack.c.bf16 %v6469_v4, %v6468_v21  ;;  %v6936_v26 = vpack.c.bf16 %v6901_v35, %v6900_v9  ;;  %v6470_v35 = vld [vmem:[#allocation3 + $0x408] sm:$0xff] }
 0xa17   :  { %v7580_v22 = vpop.f32.mrf.mxu3  ;;  %v8009_v27 = vpop.f32.mrf.mxu0 }
 0xa18   :  { %v6717_v16 = vpop.f32.mrf.mxu1  ;;  %v7683_v59 = vadd.f32 %v7580_v22, %v7250_v17  ;;  %v13109_v51 = vadd.f32 %v8009_v27, %v7682_v38 }
 0xa19   :  { %v6819_v58 = vadd.f32 %v6717_v16, %v12773_v15  ;;  %v7369_v15 = vpack.c.bf16 %v7334_v1, %v7333_v47  ;;  %v6471_v47 = vld [vmem:[#allocation3 + $0x410] sm:$0xff] }
 0xa1a   :  { %14537 = vst [vmem:[#allocation25_spill] sm:$0xff] %v13109_v51  ;;  %v6902_v1 = vld [vmem:[#allocation3 + $0x409] sm:$0xff] }
 0xa1c   :  { %v7149_v63 = vpop.f32.mrf.mxu2 }
 0xa1d   :  { %v7251_v42 = vadd.f32 %v7149_v63, %v6819_v58  ;;  %v14540_v63 = vld [vmem:[#allocation22_spill] sm:$0xff] }
 0xa1f   :  { %v7582_v20 = vpop.f32.mrf.mxu3  ;;  %v8012_v38 = vpop.f32.mrf.mxu0 }
 0xa20   :  { %v6720_v11 = vpop.f32.mrf.mxu1  ;;  %v7684_v12 = vadd.f32 %v7582_v20, %v7251_v42  ;;  %v13115_v22 = vadd.f32 %v8012_v38, %v7683_v59  ;;  %v7335_v59 = vld [vmem:[#allocation3 + $0x427] sm:$0xff] }
 0xa21   :  { %v6820_v0 = vadd.f32 %v6720_v11, %v14538_v33  ;;  %9708 = vmatmul.msk.bf16.gmra.mxu2 %vm4054_vm2, %v6936_v26  ;;  %v6903_v33 = vld [vmem:[#allocation3 + $0x411] sm:$0xff] }
 0xa22   :  { %14539 = vst [vmem:[#allocation14_spill] sm:$0xff] %v13115_v22  ;;  %9779 = vmatmul.msk.bf16.gmra.mxu0 %vm4054_vm2, %v6504_v44  ;;  %v7336_v26 = vld [vmem:[#allocation3 + $0x42f] sm:$0xff]  ;;  %v14541_v22 = vld [vmem:[#allocation7_spill] sm:$0xff]  ;;  %v6937_v51 = vpack.c.bf16 %v6903_v33, %v6902_v1 }
 0xa23   :  { %9672 = vmatmul.msk.bf16.gmra.mxu1 %vm4054_vm2, %v6504_v44 }
 0xa24   :  { %9744 = vmatmul.msk.bf16.gmra.mxu3 %vm4054_vm2, %v7369_v15  ;;  %v7152_v17 = vpop.f32.mrf.mxu2 }
 0xa25   :  { %v7252_v58 = vadd.f32 %v7152_v17, %v6820_v0  ;;  %v6505_v0 = vpack.c.bf16 %v6471_v47, %v6470_v35 }
 0xa27   :  { %v7585_v16 = vpop.f32.mrf.mxu3  ;;  %v8014_v9 = vpop.f32.mrf.mxu0 }
 0xa28   :  { %v6722_v27 = vpop.f32.mrf.mxu1  ;;  %v7685_v4 = vadd.f32 %v7585_v16, %v7252_v58  ;;  %v13119_v20 = vadd.f32 %v8014_v9, %v7684_v12 }
 0xa29   :  { %v6821_v21 = vadd.f32 %v6722_v27, %v14540_v63  ;;  %v7370_v27 = vpack.c.bf16 %v7336_v26, %v7335_v59  ;;  %v6905_v26 = vld [vmem:[#allocation3 + $0x431] sm:$0xff] }
 0xa2c   :  { %v7154_v42 = vpop.f32.mrf.mxu2 }
 0xa2d   :  { %v7253_v15 = vadd.f32 %v7154_v42, %v6821_v21  ;;  %v6472_v42 = vld [vmem:[#allocation3 + $0x428] sm:$0xff] }
 0xa2f   :  { %v7587_v11 = vpop.f32.mrf.mxu3  ;;  %v8017_v12 = vpop.f32.mrf.mxu0 }
 0xa30   :  { %v6725_v38 = vpop.f32.mrf.mxu1  ;;  %v7686_v17 = vadd.f32 %v7587_v11, %v7253_v15  ;;  %v13125_v16 = vadd.f32 %v8017_v12, %v7685_v4  ;;  %v6473_v11 = vld [vmem:[#allocation3 + $0x430] sm:$0xff]  ;;  %v7337_v4 = vld [vmem:[#allocation3 + $0x447] sm:$0xff]  ;;  %v14544_v12 = vld [vmem:[#allocation38_spill] sm:$0xff] }
 0xa31   :  { %v6822_v44 = vadd.f32 %v6725_v38, %v14541_v22  ;;  %9709 = vmatmul.msk.bf16.gmra.mxu2 %vm4054_vm2, %v6937_v51  ;;  %v6904_v51 = vld [vmem:[#allocation3 + $0x429] sm:$0xff] }
 0xa32   :  { %14542 = vst [vmem:[#allocation26_spill] sm:$0xff] %v13125_v16  ;;  %9780 = vmatmul.msk.bf16.gmra.mxu0 %vm4054_vm2, %v6505_v0  ;;  %v7338_v15 = vld [vmem:[#allocation3 + $0x44f] sm:$0xff]  ;;  %v6938_v16 = vpack.c.bf16 %v6905_v26, %v6904_v51 }
 0xa33   :  { %9673 = vmatmul.msk.bf16.gmra.mxu1 %vm4054_vm2, %v6505_v0  ;;  %v7340_v26 = vld [vmem:[#allocation3 + $0x46f] sm:$0xff] }
 0xa34   :  { %9745 = vmatmul.msk.bf16.gmra.mxu3 %vm4054_vm2, %v7370_v27  ;;  %v7157_v58 = vpop.f32.mrf.mxu2 }
 0xa35   :  { %v7254_v21 = vadd.f32 %v7157_v58, %v6822_v44  ;;  %v6506_v44 = vpack.c.bf16 %v6473_v11, %v6472_v42 }
 0xa37   :  { %v7590_v63 = vpop.f32.mrf.mxu3  ;;  %v8019_v47 = vpop.f32.mrf.mxu0 }
 0xa38   :  { %v6727_v9 = vpop.f32.mrf.mxu1  ;;  %v7687_v35 = vadd.f32 %v7590_v63, %v7254_v21  ;;  %v13129_v1 = vadd.f32 %v8019_v47, %v7686_v17 }
 0xa39   :  { %v6823_v22 = vadd.f32 %v6727_v9, %v12825_v7  ;;  %v7371_v7 = vpack.c.bf16 %v7338_v15, %v7337_v4  ;;  %v6475_v15 = vld [vmem:[#allocation3 + $0x450] sm:$0xff] }
 0xa3a   :  { %14543 = vst [vmem:[#allocation27_spill] sm:$0xff] %v13129_v1 }
 0xa3c   :  { %v7159_v33 = vpop.f32.mrf.mxu2 }
 0xa3d   :  { %v7255_v38 = vadd.f32 %v7159_v33, %v6823_v22  ;;  %v14546_v33 = vld [vmem:[#allocation10_spill] sm:$0xff] }
 0xa3f   :  { %v7592_v59 = vpop.f32.mrf.mxu3  ;;  %v8022_v17 = vpop.f32.mrf.mxu0 }
 0xa40   :  { %v6730_v27 = vpop.f32.mrf.mxu1  ;;  %v7688_v58 = vadd.f32 %v7592_v59, %v7255_v38  ;;  %v13135_v63 = vadd.f32 %v8022_v17, %v7687_v35  ;;  %v7339_v59 = vld [vmem:[#allocation3 + $0x467] sm:$0xff] }
 0xa41   :  { %v6824_v0 = vadd.f32 %v6730_v27, %v14544_v12  ;;  %9710 = vmatmul.msk.bf16.gmra.mxu2 %vm4054_vm2, %v6938_v16  ;;  %v6474_v16 = vld [vmem:[#allocation3 + $0x448] sm:$0xff]  ;;  %v6907_v12 = vld [vmem:[#allocation3 + $0x451] sm:$0xff] }
 0xa42   :  { %14545 = vst [vmem:[#allocation28_spill] sm:$0xff] %v13135_v63  ;;  %9781 = vmatmul.msk.bf16.gmra.mxu0 %vm4054_vm2, %v6506_v44  ;;  %v6906_v35 = vld [vmem:[#allocation3 + $0x449] sm:$0xff]  ;;  %v7372_v63 = vpack.c.bf16 %v7340_v26, %v7339_v59 }
 0xa43   :  { %9674 = vmatmul.msk.bf16.gmra.mxu1 %vm4054_vm2, %v6506_v44  ;;  %v14547_v44 = vld [vmem:[#allocation8_spill] sm:$0xff] }
 0xa44   :  { %9746 = vmatmul.msk.bf16.gmra.mxu3 %vm4054_vm2, %v7371_v7  ;;  %v7162_v21 = vpop.f32.mrf.mxu2  ;;  %v14549_v59 = vld [vmem:[#allocation12_spill] sm:$0xff] }
 0xa45   :  { %v7256_v22 = vadd.f32 %v7162_v21, %v6824_v0  ;;  %v6507_v21 = vpack.c.bf16 %v6475_v15, %v6474_v16 }
 0xa47   :  { %v7595_v9 = vpop.f32.mrf.mxu3  ;;  %v8024_v51 = vpop.f32.mrf.mxu0 }
 0xa48   :  { %v6732_v47 = vpop.f32.mrf.mxu1  ;;  %v7689_v11 = vadd.f32 %v7595_v9, %v7256_v22  ;;  %v13139_v4 = vadd.f32 %v8024_v51, %v7688_v58 }
 0xa49   :  { %v6825_v42 = vadd.f32 %v6732_v47, %v14546_v33  ;;  %v6939_v47 = vpack.c.bf16 %v6907_v12, %v6906_v35  ;;  %v8142_v35 = vld [vmem:[#allocation3 + $0x51] sm:$0xff] }
 0xa4c   :  { %v7164_v38 = vpop.f32.mrf.mxu2 }
 0xa4d   :  { %v7257_v7 = vadd.f32 %v7164_v38, %v6825_v42 }
 0xa4f   :  { %v7597_v27 = vpop.f32.mrf.mxu3  ;;  %v8027_v58 = vpop.f32.mrf.mxu0 }
 0xa50   :  { %v6735_v17 = vpop.f32.mrf.mxu1  ;;  %v7690_v1 = vadd.f32 %v7597_v27, %v7257_v7  ;;  %v13145_v9 = vadd.f32 %v8027_v58, %v7689_v11  ;;  %v8141_v27 = vld [vmem:[#allocation3 + $0x49] sm:$0xff]  ;;  %v14551_v11 = vld [vmem:[#allocation11_spill] sm:$0xff] }
 0xa51   :  { %v6826_v0 = vadd.f32 %v6735_v17, %v14547_v44  ;;  %9711 = vmatmul.msk.bf16.gmra.mxu2 %vm4054_vm2, %v6939_v47  ;;  %v7771_v47 = vld [vmem:[#allocation3 + $0x468] sm:$0xff]  ;;  %v7772_v58 = vld [vmem:[#allocation3 + $0x470] sm:$0xff] }
 0xa52   :  { %14548 = vst [vmem:[#allocation78_spill] sm:$0xff] %v13145_v9  ;;  %9782 = vmatmul.msk.bf16.gmra.mxu0 %vm4054_vm2, %v6507_v21  ;;  %v8205_v9 = vpack.c.bf16 %v8142_v35, %v8141_v27  ;;  %v8143_v27 = vld [vmem:[#allocation3 + $0x69] sm:$0xff]  ;;  %v8144_v35 = vld [vmem:[#allocation3 + $0x71] sm:$0xff] }
 0xa53   :  { %9675 = vmatmul.msk.bf16.gmra.mxu1 %vm4054_vm2, %v6507_v21 }
 0xa54   :  { %9747 = vmatmul.msk.bf16.gmra.mxu3 %vm4054_vm2, %v7372_v63  ;;  %v7167_v22 = vpop.f32.mrf.mxu2 }
 0xa55   :  { %v7258_v42 = vadd.f32 %v7167_v22, %v6826_v0  ;;  %v7804_v0 = vpack.c.bf16 %v7772_v58, %v7771_v47 }
 0xa57   :  { %v7600_v33 = vpop.f32.mrf.mxu3  ;;  %v8029_v15 = vpop.f32.mrf.mxu0 }
 0xa58   :  { %v6737_v51 = vpop.f32.mrf.mxu1  ;;  %v7691_v16 = vadd.f32 %v7600_v33, %v7258_v42  ;;  %v13149_v38 = vadd.f32 %v8029_v15, %v7690_v1 }
 0xa59   :  { %v6827_v26 = vadd.f32 %v6737_v51, %v14549_v59 }
 0xa5a   :  { %14550 = vst [vmem:[#allocation29_spill] sm:$0xff] %v13149_v38 }
 0xa5c   :  { %v7169_v12 = vpop.f32.mrf.mxu2 }
 0xa5d   :  { %v7259_v63 = vadd.f32 %v7169_v12, %v6827_v26  ;;  %v14553_v26 = vld [vmem:[#allocation40_spill] sm:$0xff] }
 0xa5f   :  { %v7602_v7 = vpop.f32.mrf.mxu3  ;;  %v8032_v22 = vpop.f32.mrf.mxu0 }
 0xa60   :  { %v6740_v17 = vpop.f32.mrf.mxu1  ;;  %v7692_v21 = vadd.f32 %v7602_v7, %v7259_v63  ;;  %v13153_v33 = vadd.f32 %v8032_v22, %v7691_v16  ;;  %v14555_v16 = vld [vmem:[#allocation15_spill] sm:$0xff]  ;;  %v8206_v22 = vpack.c.bf16 %v8144_v35, %v8143_v27 }
 0xa61   :  { %v6828_v44 = vadd.f32 %v6740_v17, %v14551_v11 }
 0xa62   :  { %14552 = vst [vmem:[#allocation30_spill] sm:$0xff] %v13153_v33  ;;  %9783 = vmatmul.msk.bf16.gmra.mxu0 %vm4054_vm2, %v7804_v0 }
 0xa63   :  { %9788 = vmatmul.msk.bf16.vlgmr.msra.gmra.mxu1 %vm4054_vm2, %v8205_v9 }
 0xa64   :  { %v7172_v1 = vpop.f32.mrf.mxu2 }
 0xa65   :  { %v7260_v51 = vadd.f32 %v7172_v1, %v6828_v44 }
 0xa67   :  { %v7605_v42 = vpop.f32.mrf.mxu3  ;;  %v8034_v17 = vpop.f32.mrf.mxu0 }
 0xa68   :  { %v6742_v59 = vpop.f32.mrf.mxu1  ;;  %v7693_v12 = vadd.f32 %v7605_v42, %v7260_v51  ;;  %v13157_v11 = vadd.f32 %v8034_v17, %v7692_v21 }
 0xa69   :  { %v6829_v15 = vadd.f32 %v6742_v59, %v14553_v26  ;;  %v14556_v59 = vld [vmem:[#allocation13_spill] sm:$0xff] }
 0xa6a   :  { %14554 = vst [vmem:[#allocation31_spill] sm:$0xff] %v13157_v11 }
 0xa6c   :  { %v7174_v7 = vpop.f32.mrf.mxu2 }
 0xa6d   :  { %v7261_v63 = vadd.f32 %v7174_v7, %v6829_v15  ;;  %v8145_v15 = vld [vmem:[#allocation3 + $0x89] sm:$0xff]  ;;  %v8146_v7 = vld [vmem:[#allocation3 + $0x91] sm:$0xff] }
 0xa6f   :  { %v7607_v9 = vpop.f32.mrf.mxu3  ;;  %v8037_v44 = vpop.f32.mrf.mxu0 }
 0xa70   :  { %v6745_v47 = vpop.f32.mrf.mxu1  ;;  %v7694_v33 = vadd.f32 %v7607_v9, %v7261_v63  ;;  %v13161_v0 = vadd.f32 %v8037_v44, %v7693_v12  ;;  %v14558_v63 = vld [vmem:[#allocation9_spill] sm:$0xff]  ;;  %v8207_v12 = vpack.c.bf16 %v8146_v7, %v8145_v15  ;;  %v14561_v7 = vld [vmem:[#allocation18_spill] sm:$0xff] }
 0xa71   :  { %v6830_v58 = vadd.f32 %v6745_v47, %v14555_v16 }
 0xa73   :  { %9789 = vmatmul.msk.bf16.gmra.mxu1 %vm4054_vm2, %v8206_v22 }
 0xa74   :  { %v7177_v1 = vpop.f32.mrf.mxu2 }
 0xa75   :  { %v7262_v51 = vadd.f32 %v7177_v1, %v6830_v58 }
 0xa77   :  { %v7610_v42 = vpop.f32.mrf.mxu3  ;;  %v8039_v11 = vpop.f32.mrf.mxu0 }
 0xa78   :  { %v6747_v21 = vpop.f32.mrf.mxu1  ;;  %v7695_v17 = vadd.f32 %v7610_v42, %v7262_v51  ;;  %v13164_v38 = vadd.f32 %v8039_v11, %v7694_v33  ;;  %v14559_v11 = vld [vmem:[#allocation77_spill] sm:$0xff] }
 0xa79   :  { %v6831_v26 = vadd.f32 %v6747_v21, %v14556_v59 }
 0xa7a   :  { %14557 = vst [vmem:[#allocation32_spill] sm:$0xff] %v13164_v38 }
 0xa7c   :  { %v7179_v47 = vpop.f32.mrf.mxu2 }
 0xa7d   :  { %v7263_v35 = vadd.f32 %v7179_v47, %v6831_v26  ;;  %v8147_v47 = vld [vmem:[#allocation3 + $0xa9] sm:$0xff] }
 0xa7f   :  { %v7612_v27 = vpop.f32.mrf.mxu3  ;;  %v8042_v58 = vpop.f32.mrf.mxu0 }
 0xa80   :  { %v6750_v9 = vpop.f32.mrf.mxu1  ;;  %v7696_v22 = vadd.f32 %v7612_v27, %v7263_v35  ;;  %v13168_v44 = vadd.f32 %v8042_v58, %v7695_v17 }
 0xa81   :  { %v6832_v16 = vadd.f32 %v6750_v9, %v14558_v63  ;;  %v8148_v9 = vld [vmem:[#allocation3 + $0xb1] sm:$0xff] }
 0xa82   :  { %v8208_v35 = vpack.c.bf16 %v8148_v9, %v8147_v47  ;;  %v14567_v47 = vld [vmem:[#allocation20_spill] sm:$0xff] }
 0xa83   :  { %9790 = vmatmul.msk.bf16.gmra.mxu1 %vm4054_vm2, %v8207_v12  ;;  %v14563_v12 = vld [vmem:[#allocation16_spill] sm:$0xff] }
 0xa84   :  { %v7182_v1 = vpop.f32.mrf.mxu2 }
 0xa85   :  { %v7264_v42 = vadd.f32 %v7182_v1, %v6832_v16  ;;  %v8149_v1 = vld [vmem:[#allocation3 + $0xc9] sm:$0xff] }
 0xa87   :  { %v7615_v33 = vpop.f32.mrf.mxu3  ;;  %v8044_v38 = vpop.f32.mrf.mxu0 }
 0xa88   :  { %v6752_v51 = vpop.f32.mrf.mxu1  ;;  %v7697_v59 = vadd.f32 %v7615_v33, %v7264_v42  ;;  %v13173_v26 = vadd.f32 %v8044_v38, %v7696_v22  ;;  %v8150_v42 = vld [vmem:[#allocation3 + $0xd1] sm:$0xff] }
 0xa89   :  { %v13171_v21 = vadd.f32 %v6752_v51, %v14559_v11  ;;  %v14565_v22 = vld [vmem:[#allocation21_spill] sm:$0xff]  ;;  %v8209_v33 = vpack.c.bf16 %v8150_v42, %v8149_v1 }
 0xa8a   :  { %v8153_v1 = vld [vmem:[#allocation3 + $0x109] sm:$0xff]  ;;  %v8154_v42 = vld [vmem:[#allocation3 + $0x111] sm:$0xff] }
 0xa8b   :  { %14560 = vst [vmem:[#allocation33_spill] sm:$0xff] %v13171_v21  ;;  %v14625_v21 = vld [vmem:[#allocation30_spill] sm:$0xff] }
 0xa8f   :  { %v8047_v17 = vpop.f32.mrf.mxu0 }
 0xa90   :  { %v6755_v15 = vpop.f32.mrf.mxu1  ;;  %v13179_v63 = vadd.f32 %v8047_v17, %v7697_v59  ;;  %v8152_v59 = vld [vmem:[#allocation3 + $0xf1] sm:$0xff] }
 0xa91   :  { %v13176_v27 = vadd.f32 %v6755_v15, %v14561_v7  ;;  %v8151_v15 = vld [vmem:[#allocation3 + $0xe9] sm:$0xff] }
 0xa93   :  { %14562 = vst [vmem:[#allocation34_spill] sm:$0xff] %v13176_v27  ;;  %9791 = vmatmul.msk.bf16.gmra.mxu1 %vm4054_vm2, %v8208_v35  ;;  %v14569_v35 = vld [vmem:[#allocation79_spill] sm:$0xff]  ;;  %v14623_v27 = vld [vmem:[#allocation29_spill] sm:$0xff] }
 0xa98   :  { %v6757_v16 = vpop.f32.mrf.mxu1 }
 0xa99   :  { %v13182_v58 = vadd.f32 %v6757_v16, %v14563_v12  ;;  %v8210_v16 = vpack.c.bf16 %v8152_v59, %v8151_v15  ;;  %v8155_v15 = vld [vmem:[#allocation3 + $0x129] sm:$0xff]  ;;  %v8156_v59 = vld [vmem:[#allocation3 + $0x131] sm:$0xff] }
 0xa9b   :  { %14564 = vst [vmem:[#allocation35_spill] sm:$0xff] %v13182_v58 }
 0xaa0   :  { %v6760_v38 = vpop.f32.mrf.mxu1 }
 0xaa1   :  { %v13185_v51 = vadd.f32 %v6760_v38, %v14565_v22 }
 0xaa3   :  { %14566 = vst [vmem:[#allocation36_spill] sm:$0xff] %v13185_v51  ;;  %9792 = vmatmul.msk.bf16.gmra.mxu1 %vm4054_vm2, %v8209_v33  ;;  %v14572_v33 = vld [vmem:[#allocation75_spill] sm:$0xff] }
 0xaa8   :  { %v6762_v11 = vpop.f32.mrf.mxu1 }
 0xaa9   :  { %v13189_v9 = vadd.f32 %v6762_v11, %v14567_v47  ;;  %v8211_v11 = vpack.c.bf16 %v8154_v42, %v8153_v1  ;;  %v8157_v1 = vld [vmem:[#allocation3 + $0x149] sm:$0xff]  ;;  %v8158_v42 = vld [vmem:[#allocation3 + $0x151] sm:$0xff] }
 0xaab   :  { %14568 = vst [vmem:[#allocation37_spill] sm:$0xff] %v13189_v9 }
 0xab0   :  { %v6765_v7 = vpop.f32.mrf.mxu1 }
 0xab1   :  { %v13192_v17 = vadd.f32 %v6765_v7, %v14569_v35 }
 0xab3   :  { %14570 = vst [vmem:[#allocation39_spill] sm:$0xff] %v13192_v17  ;;  %9793 = vmatmul.msk.bf16.gmra.mxu1 %vm4054_vm2, %v8210_v16  ;;  %v14575_v16 = vld [vmem:[#allocation23_spill] sm:$0xff] }
 0xab8   :  { %v6767_v12 = vpop.f32.mrf.mxu1 }
 0xab9   :  { %v13196_v38 = vadd.f32 %v6767_v12, %v12895_v30  ;;  %v8212_v30 = vpack.c.bf16 %v8156_v59, %v8155_v15  ;;  %v8159_v15 = vld [vmem:[#allocation3 + $0x169] sm:$0xff]  ;;  %v8160_v59 = vld [vmem:[#allocation3 + $0x171] sm:$0xff] }
 0xabb   :  { %14571 = vst [vmem:[#allocation41_spill] sm:$0xff] %v13196_v38  ;;  %v14616_v38 = vld [vmem:[#allocation27_spill] sm:$0xff] }
 0xac0   :  { %v6770_v22 = vpop.f32.mrf.mxu1 }
 0xac1   :  { %v13199_v51 = vadd.f32 %v6770_v22, %v14572_v33 }
 0xac3   :  { %14573 = vst [vmem:[#allocation42_spill] sm:$0xff] %v13199_v51  ;;  %9794 = vmatmul.msk.bf16.gmra.mxu1 %vm4054_vm2, %v8211_v11 }
 0xac8   :  { %v6772_v47 = vpop.f32.mrf.mxu1 }
 0xac9   :  { %v13203_v7 = vadd.f32 %v6772_v47, %v12903_v32  ;;  %v8213_v32 = vpack.c.bf16 %v8158_v42, %v8157_v1  ;;  %v8161_v1 = vld [vmem:[#allocation3 + $0x189] sm:$0xff]  ;;  %v8162_v42 = vld [vmem:[#allocation3 + $0x191] sm:$0xff] }
 0xacb   :  { %14574 = vst [vmem:[#allocation43_spill] sm:$0xff] %v13203_v7 }
 0xad0   :  { %v6775_v35 = vpop.f32.mrf.mxu1 }
 0xad1   :  { %v13206_v17 = vadd.f32 %v6775_v35, %v14575_v16 }
 0xad3   :  { %14576 = vst [vmem:[#allocation44_spill] sm:$0xff] %v13206_v17  ;;  %9795 = vmatmul.msk.bf16.gmra.mxu1 %vm4054_vm2, %v8212_v30  ;;  %v14613_v17 = vld [vmem:[#allocation25_spill] sm:$0xff] }
 0xad8   :  { %v6777_v12 = vpop.f32.mrf.mxu1 }
 0xad9   :  { %v13210_v22 = vadd.f32 %v6777_v12, %v12913_v55  ;;  %v8214_v55 = vpack.c.bf16 %v8160_v59, %v8159_v15  ;;  %v8163_v15 = vld [vmem:[#allocation3 + $0x1a9] sm:$0xff]  ;;  %v8164_v59 = vld [vmem:[#allocation3 + $0x1b1] sm:$0xff] }
 0xadb   :  { %14577 = vst [vmem:[#allocation45_spill] sm:$0xff] %v13210_v22 }
 0xae0   :  { %v8349_v33 = vpop.f32.mrf.mxu1 }
 0xae1   :  { %v13213_v11 = vadd.f32 %v8349_v33, %v12919_v40 }
 0xae3   :  { %14578 = vst [vmem:[#allocation73_spill] sm:$0xff] %v13213_v11  ;;  %9796 = vmatmul.msk.bf16.gmra.mxu1 %vm4054_vm2, %v8213_v32 }
 0xae8   :  { %v8351_v47 = vpop.f32.mrf.mxu1 }
 0xae9   :  { %v13217_v35 = vadd.f32 %v8351_v47, %v12923_v43  ;;  %v8215_v43 = vpack.c.bf16 %v8162_v42, %v8161_v1  ;;  %v8165_v1 = vld [vmem:[#allocation3 + $0x1c9] sm:$0xff]  ;;  %v8166_v42 = vld [vmem:[#allocation3 + $0x1d1] sm:$0xff] }
 0xaeb   :  { %14579 = vst [vmem:[#allocation17_spill] sm:$0xff] %v13217_v35 }
 0xaf0   :  { %v8354_v16 = vpop.f32.mrf.mxu1 }
 0xaf1   :  { %v13220_v30 = vadd.f32 %v8354_v16, %v12929_v48 }
 0xaf3   :  { %14580 = vst [vmem:[#allocation74_spill] sm:$0xff] %v13220_v30  ;;  %9797 = vmatmul.msk.bf16.gmra.mxu1 %vm4054_vm2, %v8214_v55 }
 0xaf8   :  { %v8356_v12 = vpop.f32.mrf.mxu1 }
 0xaf9   :  { %v13224_v40 = vadd.f32 %v8356_v12, %v12933_v14  ;;  %v8216_v14 = vpack.c.bf16 %v8164_v59, %v8163_v15  ;;  %v8167_v15 = vld [vmem:[#allocation3 + $0x1e9] sm:$0xff]  ;;  %v8168_v59 = vld [vmem:[#allocation3 + $0x1f1] sm:$0xff] }
 0xafb   :  { %14581 = vst [vmem:[#allocation76_spill] sm:$0xff] %v13224_v40 }
 0xb00   :  { %v8359_v33 = vpop.f32.mrf.mxu1 }
 0xb01   :  { %v13227_v32 = vadd.f32 %v8359_v33, %v12939_v19 }
 0xb03   :  { %9798 = vmatmul.msk.bf16.gmra.mxu1 %vm4054_vm2, %v8215_v43 }
 0xb08   :  { %v8361_v47 = vpop.f32.mrf.mxu1 }
 0xb09   :  { %v13231_v48 = vadd.f32 %v8361_v47, %v12943_v45  ;;  %v8217_v45 = vpack.c.bf16 %v8166_v42, %v8165_v1  ;;  %v8169_v1 = vld [vmem:[#allocation3 + $0x209] sm:$0xff]  ;;  %v8170_v42 = vld [vmem:[#allocation3 + $0x211] sm:$0xff] }
 0xb10   :  { %v8364_v16 = vpop.f32.mrf.mxu1 }
 0xb11   :  { %v13234_v55 = vadd.f32 %v8364_v16, %v12949_v31 }
 0xb13   :  { %14582 = vst [vmem:[#allocation46_spill] sm:$0xff] %v13234_v55  ;;  %9799 = vmatmul.msk.bf16.gmra.mxu1 %vm4054_vm2, %v8216_v14  ;;  %v14585_v14 = vld [vmem:[#allocation24_spill] sm:$0xff] }
 0xb18   :  { %v8366_v12 = vpop.f32.mrf.mxu1 }
 0xb19   :  { %v13238_v19 = vadd.f32 %v8366_v12, %v12953_v50  ;;  %v8218_v50 = vpack.c.bf16 %v8168_v59, %v8167_v15  ;;  %v8171_v15 = vld [vmem:[#allocation3 + $0x229] sm:$0xff]  ;;  %v8172_v59 = vld [vmem:[#allocation3 + $0x231] sm:$0xff] }
 0xb1b   :  { %14583 = vst [vmem:[#allocation47_spill] sm:$0xff] %v13238_v19 }
 0xb20   :  { %v8369_v33 = vpop.f32.mrf.mxu1 }
 0xb21   :  { %v13241_v43 = vadd.f32 %v8369_v33, %v12959_v41 }
 0xb23   :  { %9800 = vmatmul.msk.bf16.gmra.mxu1 %vm4054_vm2, %v8217_v45 }
 0xb28   :  { %v8371_v47 = vpop.f32.mrf.mxu1 }
 0xb29   :  { %v13245_v31 = vadd.f32 %v8371_v47, %v12963_v60  ;;  %v8219_v60 = vpack.c.bf16 %v8170_v42, %v8169_v1  ;;  %v8173_v1 = vld [vmem:[#allocation3 + $0x289] sm:$0xff]  ;;  %v8174_v42 = vld [vmem:[#allocation3 + $0x291] sm:$0xff] }
 0xb2b   :  { %14584 = vst [vmem:[#allocation48_spill] sm:$0xff] %v13245_v31 }
 0xb30   :  { %v8374_v16 = vpop.f32.mrf.mxu1 }
 0xb31   :  { %v13248_v22 = vadd.f32 %v8374_v16, %v14585_v14  ;;  %v8220_v14 = vpack.c.bf16 %v8172_v59, %v8171_v15  ;;  %v8176_v59 = vld [vmem:[#allocation3 + $0x2b1] sm:$0xff] }
 0xb33   :  { %14586 = vst [vmem:[#allocation49_spill] sm:$0xff] %v13248_v22  ;;  %9801 = vmatmul.msk.bf16.gmra.mxu1 %vm4054_vm2, %v8218_v50 }
 0xb38   :  { %v8376_v12 = vpop.f32.mrf.mxu1 }
 0xb39   :  { %v13252_v41 = vadd.f32 %v8376_v12, %v12979_v18 }
 0xb3b   :  { %14587 = vst [vmem:[#allocation50_spill] sm:$0xff] %v13252_v41 }
 0xb40   :  { %v8379_v33 = vpop.f32.mrf.mxu1 }
 0xb41   :  { %v13255_v45 = vadd.f32 %v8379_v33, %v12985_v28 }
 0xb43   :  { %14588 = vst [vmem:[#allocation51_spill] sm:$0xff] %v13255_v45  ;;  %9802 = vmatmul.msk.bf16.gmra.mxu1 %vm4054_vm2, %v8219_v60 }
 0xb48   :  { %v8381_v47 = vpop.f32.mrf.mxu1 }
 0xb49   :  { %v13259_v16 = vadd.f32 %v8381_v47, %v12989_v46  ;;  %v8221_v46 = vpack.c.bf16 %v8174_v42, %v8173_v1  ;;  %v8177_v1 = vld [vmem:[#allocation3 + $0x2c9] sm:$0xff]  ;;  %v8178_v42 = vld [vmem:[#allocation3 + $0x2d1] sm:$0xff] }
 0xb4b   :  { %14589 = vst [vmem:[#allocation52_spill] sm:$0xff] %v13259_v16 }
 0xb50   :  { %v8384_v50 = vpop.f32.mrf.mxu1 }
 0xb51   :  { %v13262_v18 = vadd.f32 %v8384_v50, %v12995_v2  ;;  %v8175_v2 = vld [vmem:[#allocation3 + $0x2a9] sm:$0xff] }
 0xb53   :  { %14590 = vst [vmem:[#allocation53_spill] sm:$0xff] %v13262_v18  ;;  %9803 = vmatmul.msk.bf16.gmra.mxu1 %vm4054_vm2, %v8220_v14 }
 0xb58   :  { %v8386_v12 = vpop.f32.mrf.mxu1 }
 0xb59   :  { %v13266_v28 = vadd.f32 %v8386_v12, %v12999_v10  ;;  %v8222_v10 = vpack.c.bf16 %v8176_v59, %v8175_v2  ;;  %v8179_v2 = vld [vmem:[#allocation3 + $0x2e9] sm:$0xff]  ;;  %v8180_v59 = vld [vmem:[#allocation3 + $0x2f1] sm:$0xff] }
 0xb5b   :  { %14591 = vst [vmem:[#allocation54_spill] sm:$0xff] %v13266_v28 }
 0xb60   :  { %v8389_v33 = vpop.f32.mrf.mxu1 }
 0xb61   :  { %v13269_v60 = vadd.f32 %v8389_v33, %v13005_v3 }
 0xb63   :  { %14592 = vst [vmem:[#allocation55_spill] sm:$0xff] %v13269_v60  ;;  %9804 = vmatmul.msk.bf16.gmra.mxu1 %vm4054_vm2, %v8221_v46 }
 0xb68   :  { %v8391_v47 = vpop.f32.mrf.mxu1 }
 0xb69   :  { %v13273_v15 = vadd.f32 %v8391_v47, %v13009_v13  ;;  %v8223_v13 = vpack.c.bf16 %v8178_v42, %v8177_v1  ;;  %v8181_v1 = vld [vmem:[#allocation3 + $0x309] sm:$0xff]  ;;  %v8182_v42 = vld [vmem:[#allocation3 + $0x311] sm:$0xff] }
 0xb6b   :  { %14593 = vst [vmem:[#allocation56_spill] sm:$0xff] %v13273_v15 }
 0xb70   :  { %v8394_v14 = vpop.f32.mrf.mxu1 }
 0xb71   :  { %v13276_v50 = vadd.f32 %v8394_v14, %v13015_v57 }
 0xb73   :  { %14594 = vst [vmem:[#allocation57_spill] sm:$0xff] %v13276_v50  ;;  %9805 = vmatmul.msk.bf16.gmra.mxu1 %vm4054_vm2, %v8222_v10 }
 0xb78   :  { %v8396_v12 = vpop.f32.mrf.mxu1 }
 0xb79   :  { %v13280_v3 = vadd.f32 %v8396_v12, %v13019_v8  ;;  %v8224_v8 = vpack.c.bf16 %v8180_v59, %v8179_v2  ;;  %v8183_v2 = vld [vmem:[#allocation3 + $0x329] sm:$0xff]  ;;  %v8184_v59 = vld [vmem:[#allocation3 + $0x331] sm:$0xff] }
 0xb7b   :  { %14595 = vst [vmem:[#allocation58_spill] sm:$0xff] %v13280_v3 }
 0xb80   :  { %v8399_v33 = vpop.f32.mrf.mxu1 }
 0xb81   :  { %v13283_v46 = vadd.f32 %v8399_v33, %v13025_v37 }
 0xb83   :  { %14596 = vst [vmem:[#allocation59_spill] sm:$0xff] %v13283_v46  ;;  %9806 = vmatmul.msk.bf16.gmra.mxu1 %vm4054_vm2, %v8223_v13 }
 0xb88   :  { %v8401_v47 = vpop.f32.mrf.mxu1 }
 0xb89   :  { %v13287_v57 = vadd.f32 %v8401_v47, %v13029_v52  ;;  %v8225_v52 = vpack.c.bf16 %v8182_v42, %v8181_v1  ;;  %v8185_v1 = vld [vmem:[#allocation3 + $0x349] sm:$0xff]  ;;  %v8186_v42 = vld [vmem:[#allocation3 + $0x351] sm:$0xff] }
 0xb8b   :  { %14597 = vst [vmem:[#allocation60_spill] sm:$0xff] %v13287_v57 }
 0xb90   :  { %v8404_v14 = vpop.f32.mrf.mxu1 }
 0xb91   :  { %v13290_v10 = vadd.f32 %v8404_v14, %v13035_v24 }
 0xb93   :  { %14598 = vst [vmem:[#allocation61_spill] sm:$0xff] %v13290_v10  ;;  %9807 = vmatmul.msk.bf16.gmra.mxu1 %vm4054_vm2, %v8224_v8 }
 0xb98   :  { %v8406_v12 = vpop.f32.mrf.mxu1 }
 0xb99   :  { %v13294_v37 = vadd.f32 %v8406_v12, %v13039_v54  ;;  %v8226_v54 = vpack.c.bf16 %v8184_v59, %v8183_v2  ;;  %v8187_v2 = vld [vmem:[#allocation3 + $0x369] sm:$0xff]  ;;  %v8188_v59 = vld [vmem:[#allocation3 + $0x371] sm:$0xff] }
 0xb9b   :  { %14599 = vst [vmem:[#allocation62_spill] sm:$0xff] %v13294_v37 }
 0xba0   :  { %v8409_v33 = vpop.f32.mrf.mxu1 }
 0xba1   :  { %v13297_v13 = vadd.f32 %v8409_v33, %v13045_v49 }
 0xba3   :  { %14600 = vst [vmem:[#allocation63_spill] sm:$0xff] %v13297_v13  ;;  %9808 = vmatmul.msk.bf16.gmra.mxu1 %vm4054_vm2, %v8225_v52 }
 0xba8   :  { %v8411_v47 = vpop.f32.mrf.mxu1 }
 0xba9   :  { %v13301_v24 = vadd.f32 %v8411_v47, %v13049_v62  ;;  %v8227_v62 = vpack.c.bf16 %v8186_v42, %v8185_v1  ;;  %v8189_v1 = vld [vmem:[#allocation3 + $0x389] sm:$0xff]  ;;  %v8190_v42 = vld [vmem:[#allocation3 + $0x391] sm:$0xff] }
 0xbab   :  { %14601 = vst [vmem:[#allocation64_spill] sm:$0xff] %v13301_v24 }
 0xbb0   :  { %v8414_v14 = vpop.f32.mrf.mxu1 }
 0xbb1   :  { %v13304_v8 = vadd.f32 %v8414_v14, %v13055_v34 }
 0xbb3   :  { %14602 = vst [vmem:[#allocation65_spill] sm:$0xff] %v13304_v8  ;;  %9809 = vmatmul.msk.bf16.gmra.mxu1 %vm4054_vm2, %v8226_v54 }
 0xbb8   :  { %v8416_v12 = vpop.f32.mrf.mxu1 }
 0xbb9   :  { %v13308_v49 = vadd.f32 %v8416_v12, %v13059_v61  ;;  %v8228_v61 = vpack.c.bf16 %v8188_v59, %v8187_v2  ;;  %v8191_v2 = vld [vmem:[#allocation3 + $0x3a9] sm:$0xff]  ;;  %v8192_v59 = vld [vmem:[#allocation3 + $0x3b1] sm:$0xff] }
 0xbbb   :  { %14603 = vst [vmem:[#allocation66_spill] sm:$0xff] %v13308_v49 }
 0xbc0   :  { %v8419_v33 = vpop.f32.mrf.mxu1 }
 0xbc1   :  { %v13311_v52 = vadd.f32 %v8419_v33, %v13065_v36 }
 0xbc3   :  { %14604 = vst [vmem:[#allocation67_spill] sm:$0xff] %v13311_v52  ;;  %9810 = vmatmul.msk.bf16.gmra.mxu1 %vm4054_vm2, %v8227_v62 }
 0xbc8   :  { %v8421_v47 = vpop.f32.mrf.mxu1 }
 0xbc9   :  { %v13315_v34 = vadd.f32 %v8421_v47, %v13069_v39  ;;  %v8229_v39 = vpack.c.bf16 %v8190_v42, %v8189_v1  ;;  %v8193_v1 = vld [vmem:[#allocation3 + $0x3c9] sm:$0xff]  ;;  %v8194_v42 = vld [vmem:[#allocation3 + $0x3d1] sm:$0xff] }
 0xbcb   :  { %14605 = vst [vmem:[#allocation68_spill] sm:$0xff] %v13315_v34 }
 0xbd0   :  { %v8424_v14 = vpop.f32.mrf.mxu1 }
 0xbd1   :  { %v13318_v54 = vadd.f32 %v8424_v14, %v13075_v5 }
 0xbd3   :  { %14606 = vst [vmem:[#allocation69_spill] sm:$0xff] %v13318_v54  ;;  %9811 = vmatmul.msk.bf16.gmra.mxu1 %vm4054_vm2, %v8228_v61 }
 0xbd8   :  { %v8426_v12 = vpop.f32.mrf.mxu1 }
 0xbd9   :  { %v13322_v36 = vadd.f32 %v8426_v12, %v13079_v29  ;;  %v8230_v29 = vpack.c.bf16 %v8192_v59, %v8191_v2  ;;  %v8195_v2 = vld [vmem:[#allocation3 + $0x3e9] sm:$0xff]  ;;  %v8196_v59 = vld [vmem:[#allocation3 + $0x3f1] sm:$0xff] }
 0xbdb   :  { %14607 = vst [vmem:[#allocation70_spill] sm:$0xff] %v13322_v36 }
 0xbe0   :  { %v8429_v33 = vpop.f32.mrf.mxu1 }
 0xbe1   :  { %v13325_v62 = vadd.f32 %v8429_v33, %v13085_v25 }
 0xbe3   :  { %14608 = vst [vmem:[#allocation71_spill] sm:$0xff] %v13325_v62  ;;  %9812 = vmatmul.msk.bf16.gmra.mxu1 %vm4054_vm2, %v8229_v39 }
 0xbe8   :  { %v8431_v47 = vpop.f32.mrf.mxu1 }
 0xbe9   :  { %v13329_v5 = vadd.f32 %v8431_v47, %v13089_v53  ;;  %v8231_v53 = vpack.c.bf16 %v8194_v42, %v8193_v1  ;;  %v8197_v1 = vld [vmem:[#allocation3 + $0x409] sm:$0xff]  ;;  %v8198_v42 = vld [vmem:[#allocation3 + $0x411] sm:$0xff] }
 0xbeb   :  { %14609 = vst [vmem:[#allocation72_spill] sm:$0xff] %v13329_v5 }
 0xbf0   :  { %v8434_v14 = vpop.f32.mrf.mxu1 }
 0xbf1   :  { %v13332_v61 = vadd.f32 %v8434_v14, %v13095_v56 }
 0xbf3   :  { %14610 = vst [vmem:[#allocation19_spill] sm:$0xff] %v13332_v61  ;;  %9813 = vmatmul.msk.bf16.gmra.mxu1 %vm4054_vm2, %v8230_v29  ;;  %v14614_v29 = vld [vmem:[#allocation14_spill] sm:$0xff] }
 0xbf8   :  { %v8436_v12 = vpop.f32.mrf.mxu1 }
 0xbf9   :  { %v13336_v25 = vadd.f32 %v8436_v12, %v13099_v6  ;;  %v8232_v6 = vpack.c.bf16 %v8196_v59, %v8195_v2  ;;  %v8199_v2 = vld [vmem:[#allocation3 + $0x429] sm:$0xff]  ;;  %v8200_v59 = vld [vmem:[#allocation3 + $0x431] sm:$0xff] }
 0xbfb   :  { %14611 = vst [vmem:[#allocation22_spill] sm:$0xff] %v13336_v25 }
 0xc00   :  { %v8439_v33 = vpop.f32.mrf.mxu1 }
 0xc01   :  { %v13339_v39 = vadd.f32 %v8439_v33, %v13105_v23 }
 0xc03   :  { %14612 = vst [vmem:[#allocation7_spill] sm:$0xff] %v13339_v39  ;;  %9814 = vmatmul.msk.bf16.gmra.mxu1 %vm4054_vm2, %v8231_v53  ;;  %v14615_v53 = vld [vmem:[#allocation26_spill] sm:$0xff] }
 0xc08   :  { %v8441_v47 = vpop.f32.mrf.mxu1 }
 0xc09   :  { %v13343_v56 = vadd.f32 %v8441_v47, %v14613_v17  ;;  %v8233_v17 = vpack.c.bf16 %v8198_v42, %v8197_v1  ;;  %v8201_v1 = vld [vmem:[#allocation3 + $0x449] sm:$0xff]  ;;  %v8202_v42 = vld [vmem:[#allocation3 + $0x451] sm:$0xff] }
 0xc10   :  { %v8444_v14 = vpop.f32.mrf.mxu1 }
 0xc11   :  { %v13346_v7 = vadd.f32 %v8444_v14, %v14614_v29 }
 0xc13   :  { %9815 = vmatmul.msk.bf16.gmra.mxu1 %vm4054_vm2, %v8232_v6  ;;  %v14618_v6 = vld [vmem:[#allocation28_spill] sm:$0xff] }
 0xc18   :  { %v8446_v12 = vpop.f32.mrf.mxu1 }
 0xc19   :  { %v13350_v23 = vadd.f32 %v8446_v12, %v13119_v20  ;;  %v8234_v20 = vpack.c.bf16 %v8200_v59, %v8199_v2  ;;  %v8203_v2 = vld [vmem:[#allocation3 + $0x469] sm:$0xff]  ;;  %v8204_v59 = vld [vmem:[#allocation3 + $0x471] sm:$0xff] }
 0xc20   :  { %v8449_v33 = vpop.f32.mrf.mxu1 }
 0xc21   :  { %v13353_v51 = vadd.f32 %v8449_v33, %v14615_v53 }
 0xc23   :  { %9816 = vmatmul.msk.bf16.gmra.mxu1 %vm4054_vm2, %v8233_v17  ;;  %v14621_v17 = vld [vmem:[#allocation78_spill] sm:$0xff] }
 0xc28   :  { %v8451_v47 = vpop.f32.mrf.mxu1 }
 0xc29   :  { %v13357_v14 = vadd.f32 %v8451_v47, %v14616_v38  ;;  %v8235_v38 = vpack.c.bf16 %v8202_v42, %v8201_v1  ;;  %v8708_v1 = vmul.f32 %v13217_v35, %v13217_v35  ;;  %v8574_v42 = vsel %vm4054_vm2, %v13217_v35, 0.0 }
 0xc2a   :  { %v8711_v35 = vmul.f32 %v13227_v32, %v13227_v32 }
 0xc2b   :  { %14617 = vst [vmem:[#allocation38_spill] sm:$0xff] %v13357_v14 }
 0xc30   :  { %v8454_v29 = vpop.f32.mrf.mxu1 }
 0xc31   :  { %v13360_v9 = vadd.f32 %v8454_v29, %v14618_v6  ;;  %v8236_v6 = vpack.c.bf16 %v8204_v59, %v8203_v2 }
 0xc33   :  { %14619 = vst [vmem:[#allocation10_spill] sm:$0xff] %v13360_v9  ;;  %9817 = vmatmul.msk.bf16.gmra.mxu1 %vm4054_vm2, %v8234_v20 }
 0xc38   :  { %v8456_v12 = vpop.f32.mrf.mxu1 }
 0xc39   :  { %v13364_v33 = vadd.f32 %v8456_v12, %v13139_v4 }
 0xc3b   :  { %14620 = vst [vmem:[#allocation8_spill] sm:$0xff] %v13364_v33  ;;  %v14627_v33 = vld [vmem:[#allocation31_spill] sm:$0xff] }
 0xc40   :  { %v8459_v53 = vpop.f32.mrf.mxu1 }
 0xc41   :  { %v13367_v58 = vadd.f32 %v8459_v53, %v14621_v17  ;;  %v8709_v17 = vmul.f32 %v13220_v30, %v13220_v30 }
 0xc43   :  { %14622 = vst [vmem:[#allocation12_spill] sm:$0xff] %v13367_v58  ;;  %9818 = vmatmul.msk.bf16.gmra.mxu1 %vm4054_vm2, %v8235_v38  ;;  %v8772_v38 = vsel %vm4054_vm2, %v8708_v1, 0.0 }
 0xc48   :  { %v8461_v47 = vpop.f32.mrf.mxu1 }
 0xc49   :  { %v13371_v29 = vadd.f32 %v8461_v47, %v14623_v27  ;;  %v8707_v27 = vmul.f32 %v13213_v11, %v13213_v11  ;;  %v8710_v47 = vmul.f32 %v13224_v40, %v13224_v40 }
 0xc4b   :  { %14624 = vst [vmem:[#allocation11_spill] sm:$0xff] %v13371_v29  ;;  %v8771_v2 = vsel %vm4054_vm2, %v8707_v27, 0.0  ;;  %v8580_v27 = vsel %vm4054_vm2, %v13227_v32, 0.0 }
 0xc50   :  { %v8464_v20 = vpop.f32.mrf.mxu1 }
 0xc51   :  { %v13374_v4 = vadd.f32 %v8464_v20, %v14625_v21  ;;  %v8573_v21 = vsel %vm4054_vm2, %v13213_v11, 0.0  ;;  %v8774_v20 = vsel %vm4054_vm2, %v8709_v17, 0.0  ;;  %v8773_v11 = vadd.f32 %v8772_v38, %v8771_v2 }
 0xc52   :  { %v8575_v59 = vadd.f32 %v8574_v42, %v8573_v21  ;;  %v8712_v42 = vmul.f32 %v13231_v48, %v13231_v48  ;;  %v8584_v2 = vsel %vm4054_vm2, %v13234_v55, 0.0 }
 0xc53   :  { %14626 = vst [vmem:[#allocation40_spill] sm:$0xff] %v13374_v4  ;;  %9819 = vmatmul.msk.bf16.gmra.mxu1 %vm4054_vm2, %v8236_v6  ;;  %v8775_v17 = vadd.f32 %v8774_v20, %v8773_v11  ;;  %v8582_v4 = vsel %vm4054_vm2, %v13231_v48, 0.0 }
 0xc58   :  { %v8466_v12 = vpop.f32.mrf.mxu1 }
 0xc59   :  { %v13378_v53 = vadd.f32 %v8466_v12, %v14627_v33  ;;  %v8576_v33 = vsel %vm4054_vm2, %v13220_v30, 0.0  ;;  %v8578_v12 = vsel %vm4054_vm2, %v13224_v40, 0.0  ;;  %v8778_v40 = vsel %vm4054_vm2, %v8711_v35, 0.0  ;;  %v13419_v35 = vpop.f32.mrf.mxu2 }
 0xc5a   :  { %v8577_v30 = vadd.f32 %v8576_v33, %v8575_v59  ;;  %v8714_v59 = vmul.f32 %v13238_v19, %v13238_v19 }
 0xc5b   :  { %14628 = vst [vmem:[#allocation15_spill] sm:$0xff] %v13378_v53  ;;  %v8776_v53 = vsel %vm4054_vm2, %v8710_v47, 0.0  ;;  %v8780_v47 = vsel %vm4054_vm2, %v8712_v42, 0.0 }
 0xc5c   :  { %v8579_v21 = vadd.f32 %v8578_v12, %v8577_v30  ;;  %v8777_v38 = vadd.f32 %v8776_v53, %v8775_v17  ;;  %v8586_v12 = vsel %vm4054_vm2, %v13238_v19, 0.0  ;;  %v8715_v53 = vmul.f32 %v13241_v43, %v13241_v43 }
 0xc5d   :  { %v8590_v19 = vsel %vm4054_vm2, %v13245_v31, 0.0 }
 0xc5e   :  { %v8581_v33 = vadd.f32 %v8580_v27, %v8579_v21  ;;  %v8779_v11 = vadd.f32 %v8778_v40, %v8777_v38  ;;  %v14629_v27 = vld [vmem:[#allocation32_spill] sm:$0xff]  ;;  %v8588_v40 = vsel %vm4054_vm2, %v13241_v43, 0.0 }
 0xc60   :  { %v8469_v6 = vpop.f32.mrf.mxu1  ;;  %v8583_v30 = vadd.f32 %v8582_v4, %v8581_v33  ;;  %v8781_v17 = vadd.f32 %v8780_v47, %v8779_v11  ;;  %v8716_v4 = vmul.f32 %v13245_v31, %v13245_v31  ;;  %v8786_v33 = vsel %vm4054_vm2, %v8715_v53, 0.0  ;;  %v13439_v11 = vpop.f32.mrf.mxu3 }
 0xc61   :  { %v13402_v1 = vadd.f32 %v8469_v6, %v13161_v0  ;;  %v8713_v0 = vmul.f32 %v13234_v55, %v13234_v55  ;;  %v8784_v55 = vsel %vm4054_vm2, %v8714_v59, 0.0 }
 0xc62   :  { %v8585_v21 = vadd.f32 %v8584_v2, %v8583_v30  ;;  %v8788_v59 = vsel %vm4054_vm2, %v8716_v4, 0.0  ;;  %v8592_v30 = vsel %vm4054_vm2, %v13248_v22, 0.0 }
 0xc63   :  { %v8782_v20 = vsel %vm4054_vm2, %v8713_v0, 0.0 }
 0xc64   :  { %v8783_v0 = vadd.f32 %v8782_v20, %v8781_v17  ;;  %v8587_v38 = vadd.f32 %v8586_v12, %v8585_v21  ;;  %v8718_v20 = vmul.f32 %v13252_v41, %v13252_v41  ;;  %v13446_v12 = vpop.f32.mrf.mxu0 }
 0xc66   :  { %v8785_v47 = vadd.f32 %v8784_v55, %v8783_v0  ;;  %v8589_v2 = vadd.f32 %v8588_v40, %v8587_v38  ;;  %v8594_v55 = vsel %vm4054_vm2, %v13252_v41, 0.0  ;;  %v8719_v40 = vmul.f32 %v13255_v45, %v13255_v45 }
 0xc67   :  { %v8792_v31 = vsel %vm4054_vm2, %v8718_v20, 0.0 }
 0xc68   :  { %v8471_v6 = vpop.f32.mrf.mxu1  ;;  %v8787_v53 = vadd.f32 %v8786_v33, %v8785_v47  ;;  %v8720_v33 = vmul.f32 %v13259_v16, %v13259_v16 }
 0xc69   :  { %v13427_v42 = vadd.f32 %v8471_v6, %v14629_v27  ;;  %v8717_v6 = vmul.f32 %v13248_v22, %v13248_v22  ;;  %v8591_v27 = vadd.f32 %v8590_v19, %v8589_v2  ;;  %v13456_v22 = vpop.f32.mrf.mxu2  ;;  %v8596_v19 = vsel %vm4054_vm2, %v13255_v45, 0.0 }
 0xc6a   :  { %v8789_v0 = vadd.f32 %v8788_v59, %v8787_v53  ;;  %v8794_v2 = vsel %vm4054_vm2, %v8719_v40, 0.0  ;;  %v8721_v59 = vmul.f32 %v13262_v18, %v13262_v18  ;;  %v8796_v20 = vsel %vm4054_vm2, %v8720_v33, 0.0  ;;  %v13473_v40 = vpop.f32.mrf.mxu3 }
 0xc6b   :  { %v8790_v21 = vsel %vm4054_vm2, %v8717_v6, 0.0  ;;  %v8593_v38 = vadd.f32 %v8592_v30, %v8591_v27  ;;  %v8600_v27 = vsel %vm4054_vm2, %v13262_v18, 0.0 }
 0xc6c   :  { %v8791_v6 = vadd.f32 %v8790_v21, %v8789_v0  ;;  %v13483_v33 = vpop.f32.mrf.mxu0 }
 0xc6d   :  { %v8595_v47 = vadd.f32 %v8594_v55, %v8593_v38  ;;  %v8798_v38 = vsel %vm4054_vm2, %v8721_v59, 0.0  ;;  %v8724_v59 = vmul.f32 %v13273_v15, %v13273_v15 }
 0xc6e   :  { %v8793_v30 = vadd.f32 %v8792_v31, %v8791_v6  ;;  %v8723_v31 = vmul.f32 %v13269_v60, %v13269_v60 }
 0xc6f   :  { %v8597_v53 = vadd.f32 %v8596_v19, %v8595_v47 }
 0xc70   :  { %v8474_v17 = vpop.f32.mrf.mxu1  ;;  %v8795_v21 = vadd.f32 %v8794_v2, %v8793_v30  ;;  %v8802_v18 = vsel %vm4054_vm2, %v8723_v31, 0.0 }
 0xc71   :  { %v13454_v4 = vadd.f32 %v8474_v17, %v13168_v44  ;;  %v8598_v44 = vsel %vm4054_vm2, %v13259_v16, 0.0  ;;  %v8722_v17 = vmul.f32 %v13266_v28, %v13266_v28  ;;  %v8602_v16 = vsel %vm4054_vm2, %v13266_v28, 0.0  ;;  %v13490_v28 = vpop.f32.mrf.mxu2 }
 0xc72   :  { %v8599_v55 = vadd.f32 %v8598_v44, %v8597_v53  ;;  %v8797_v6 = vadd.f32 %v8796_v20, %v8795_v21  ;;  %v8604_v44 = vsel %vm4054_vm2, %v13269_v60, 0.0  ;;  %v8725_v20 = vmul.f32 %v13276_v50, %v13276_v50 }
 0xc73   :  { %v8800_v2 = vsel %vm4054_vm2, %v8722_v17, 0.0  ;;  %v8804_v21 = vsel %vm4054_vm2, %v8724_v59, 0.0 }
 0xc74   :  { %v8601_v47 = vadd.f32 %v8600_v27, %v8599_v55  ;;  %v8799_v30 = vadd.f32 %v8798_v38, %v8797_v6  ;;  %v8608_v55 = vsel %vm4054_vm2, %v13276_v50, 0.0  ;;  %v8806_v31 = vsel %vm4054_vm2, %v8725_v20, 0.0  ;;  %v13517_v20 = vpop.f32.mrf.mxu0 }
 0xc76   :  { %v8603_v53 = vadd.f32 %v8602_v16, %v8601_v47  ;;  %v8801_v27 = vadd.f32 %v8800_v2, %v8799_v30  ;;  %v8726_v16 = vmul.f32 %v13280_v3, %v13280_v3  ;;  %v8610_v47 = vsel %vm4054_vm2, %v13280_v3, 0.0 }
 0xc77   :  { %v8727_v2 = vmul.f32 %v13283_v46, %v13283_v46 }
 0xc78   :  { %v8476_v0 = vpop.f32.mrf.mxu1  ;;  %v8605_v17 = vadd.f32 %v8604_v44, %v8603_v53  ;;  %v13510_v53 = vpop.f32.mrf.mxu3  ;;  %v8808_v50 = vsel %vm4054_vm2, %v8726_v16, 0.0 }
 0xc79   :  { %v13481_v19 = vadd.f32 %v8476_v0, %v13173_v26  ;;  %v8606_v26 = vsel %vm4054_vm2, %v13273_v15, 0.0  ;;  %v8803_v0 = vadd.f32 %v8802_v18, %v8801_v27  ;;  %v8612_v18 = vsel %vm4054_vm2, %v13283_v46, 0.0  ;;  %v14630_v15 = vld [vmem:[#allocation8_spill] sm:$0xff] }
 0xc7a   :  { %v8607_v38 = vadd.f32 %v8606_v26, %v8605_v17  ;;  %v8728_v26 = vmul.f32 %v13287_v57, %v13287_v57  ;;  %v8810_v3 = vsel %vm4054_vm2, %v8727_v2, 0.0  ;;  %v8656_v46 = vsel %vm4054_vm2, %v13360_v9, 0.0 }
 0xc7b   :  { %v8805_v59 = vadd.f32 %v8804_v21, %v8803_v0  ;;  %v8729_v21 = vmul.f32 %v13290_v10, %v13290_v10  ;;  %v13524_v0 = vpop.f32.mrf.mxu2 }
 0xc7c   :  { %v8609_v30 = vadd.f32 %v8608_v55, %v8607_v38  ;;  %v8812_v38 = vsel %vm4054_vm2, %v8728_v26, 0.0 }
 0xc7d   :  { %v8807_v27 = vadd.f32 %v8806_v31, %v8805_v59  ;;  %v8730_v31 = vmul.f32 %v13294_v37, %v13294_v37 }
 0xc7e   :  { %v8611_v17 = vadd.f32 %v8610_v47, %v8609_v30  ;;  %v8814_v30 = vsel %vm4054_vm2, %v8729_v21, 0.0 }
 0xc7f   :  { %v8809_v55 = vadd.f32 %v8808_v50, %v8807_v27  ;;  %v8618_v50 = vsel %vm4054_vm2, %v13294_v37, 0.0  ;;  %v8622_v37 = vsel %vm4054_vm2, %v13301_v24, 0.0 }
 0xc80   :  { %v8479_v6 = vpop.f32.mrf.mxu1  ;;  %v8613_v16 = vadd.f32 %v8612_v18, %v8611_v17  ;;  %v8731_v18 = vmul.f32 %v13297_v13, %v13297_v13  ;;  %v8816_v17 = vsel %vm4054_vm2, %v8730_v31, 0.0 }
 0xc81   :  { %v13508_v44 = vadd.f32 %v8479_v6, %v13179_v63  ;;  %v8614_v63 = vsel %vm4054_vm2, %v13287_v57, 0.0  ;;  %v8616_v6 = vsel %vm4054_vm2, %v13290_v10, 0.0  ;;  %v8811_v47 = vadd.f32 %v8810_v3, %v8809_v55 }
 0xc82   :  { %v8615_v2 = vadd.f32 %v8614_v63, %v8613_v16  ;;  %v8620_v10 = vsel %vm4054_vm2, %v13297_v13, 0.0  ;;  %v8732_v3 = vmul.f32 %v13301_v24, %v13301_v24  ;;  %v13543_v16 = vpop.f32.mrf.mxu3  ;;  %v8818_v21 = vsel %vm4054_vm2, %v8731_v18, 0.0 }
 0xc83   :  { %v8813_v27 = vadd.f32 %v8812_v38, %v8811_v47  ;;  %v8733_v38 = vmul.f32 %v13304_v8, %v13304_v8  ;;  %v13559_v24 = vpop.f32.mrf.mxu2 }
 0xc84   :  { %v8617_v26 = vadd.f32 %v8616_v6, %v8615_v2  ;;  %v13550_v6 = vpop.f32.mrf.mxu0  ;;  %v8820_v2 = vsel %vm4054_vm2, %v8732_v3, 0.0 }
 0xc85   :  { %v8815_v63 = vadd.f32 %v8814_v30, %v8813_v27  ;;  %v8624_v30 = vsel %vm4054_vm2, %v13304_v8, 0.0  ;;  %v8822_v13 = vsel %vm4054_vm2, %v8733_v38, 0.0  ;;  %v8737_v8 = vmul.f32 %v13318_v54, %v13318_v54 }
 0xc86   :  { %v8619_v55 = vadd.f32 %v8618_v50, %v8617_v26  ;;  %v8734_v50 = vmul.f32 %v13308_v49, %v13308_v49 }
 0xc87   :  { %v8817_v31 = vadd.f32 %v8816_v17, %v8815_v63  ;;  %v8626_v17 = vsel %vm4054_vm2, %v13308_v49, 0.0  ;;  %v8630_v49 = vsel %vm4054_vm2, %v13315_v34, 0.0 }
 0xc88   :  { %v13531_v59 = vpop.f32.mrf.mxu1  ;;  %v8621_v47 = vadd.f32 %v8620_v10, %v8619_v55  ;;  %v8735_v10 = vmul.f32 %v13311_v52, %v13311_v52  ;;  %v8824_v55 = vsel %vm4054_vm2, %v8734_v50, 0.0 }
 0xc89   :  { %v8819_v27 = vadd.f32 %v8818_v21, %v8817_v31  ;;  %v8628_v21 = vsel %vm4054_vm2, %v13311_v52, 0.0 }
 0xc8a   :  { %v8623_v18 = vadd.f32 %v8622_v37, %v8621_v47  ;;  %v8736_v37 = vmul.f32 %v13315_v34, %v13315_v34  ;;  %v8826_v38 = vsel %vm4054_vm2, %v8735_v10, 0.0  ;;  %v8830_v34 = vsel %vm4054_vm2, %v8737_v8, 0.0 }
 0xc8b   :  { %v8821_v3 = vadd.f32 %v8820_v2, %v8819_v27  ;;  %v13576_v27 = vpop.f32.mrf.mxu3 }
 0xc8c   :  { %v8625_v63 = vadd.f32 %v8624_v30, %v8623_v18  ;;  %v8828_v50 = vsel %vm4054_vm2, %v8736_v37, 0.0  ;;  %v8632_v18 = vsel %vm4054_vm2, %v13318_v54, 0.0 }
 0xc8d   :  { %v8823_v31 = vadd.f32 %v8822_v13, %v8821_v3  ;;  %v8738_v13 = vmul.f32 %v13322_v36, %v13322_v36 }
 0xc8e   :  { %v8627_v47 = vadd.f32 %v8626_v17, %v8625_v63  ;;  %v13583_v17 = vpop.f32.mrf.mxu0 }
 0xc8f   :  { %v8825_v2 = vadd.f32 %v8824_v55, %v8823_v31  ;;  %v8634_v55 = vsel %vm4054_vm2, %v13322_v36, 0.0  ;;  %v8832_v54 = vsel %vm4054_vm2, %v8738_v13, 0.0  ;;  %v8638_v36 = vsel %vm4054_vm2, %v13329_v5, 0.0 }
 0xc90   :  { %v13557_v26 = vpop.f32.mrf.mxu1  ;;  %v8629_v30 = vadd.f32 %v8628_v21, %v8627_v47  ;;  %v8739_v21 = vmul.f32 %v13325_v62, %v13325_v62  ;;  %v13592_v47 = vpop.f32.mrf.mxu2 }
 0xc91   :  { %v8827_v10 = vadd.f32 %v8826_v38, %v8825_v2  ;;  %v8636_v38 = vsel %vm4054_vm2, %v13325_v62, 0.0  ;;  %v8742_v62 = vmul.f32 %v13336_v25, %v13336_v25 }
 0xc92   :  { %v8631_v3 = vadd.f32 %v8630_v49, %v8629_v30  ;;  %v8740_v49 = vmul.f32 %v13329_v5, %v13329_v5  ;;  %v8834_v30 = vsel %vm4054_vm2, %v8739_v21, 0.0  ;;  %v8646_v5 = vsel %vm4054_vm2, %v13343_v56, 0.0 }
 0xc93   :  { %v8829_v37 = vadd.f32 %v8828_v50, %v8827_v10  ;;  %v8741_v50 = vmul.f32 %v13332_v61, %v13332_v61  ;;  %v13611_v21 = vpop.f32.mrf.mxu3 }
 0xc94   :  { %v8633_v31 = vadd.f32 %v8632_v18, %v8631_v3  ;;  %v8836_v13 = vsel %vm4054_vm2, %v8740_v49, 0.0  ;;  %v8640_v3 = vsel %vm4054_vm2, %v13332_v61, 0.0  ;;  %v8840_v61 = vsel %vm4054_vm2, %v8742_v62, 0.0 }
 0xc95   :  { %v8831_v2 = vadd.f32 %v8830_v34, %v8829_v37 }
 0xc96   :  { %v8635_v8 = vadd.f32 %v8634_v55, %v8633_v31  ;;  %v8838_v31 = vsel %vm4054_vm2, %v8741_v50, 0.0  ;;  %v13618_v49 = vpop.f32.mrf.mxu0 }
 0xc97   :  { %v8833_v18 = vadd.f32 %v8832_v54, %v8831_v2  ;;  %v8642_v54 = vsel %vm4054_vm2, %v13336_v25, 0.0 }
 0xc98   :  { %v13585_v63 = vpop.f32.mrf.mxu1  ;;  %v8637_v10 = vadd.f32 %v8636_v38, %v8635_v8  ;;  %v8743_v38 = vmul.f32 %v13339_v39, %v13339_v39 }
 0xc99   :  { %v8835_v34 = vadd.f32 %v8834_v30, %v8833_v18  ;;  %v8744_v30 = vmul.f32 %v13343_v56, %v13343_v56 }
 0xc9a   :  { %v8639_v55 = vadd.f32 %v8638_v36, %v8637_v10  ;;  %v8644_v36 = vsel %vm4054_vm2, %v13339_v39, 0.0  ;;  %v13625_v10 = vpop.f32.mrf.mxu2  ;;  %v8842_v25 = vsel %vm4054_vm2, %v8743_v38, 0.0  ;;  %v8650_v39 = vsel %vm4054_vm2, %v13350_v23, 0.0 }
 0xc9b   :  { %v8837_v2 = vadd.f32 %v8836_v13, %v8835_v34  ;;  %v8745_v13 = vmul.f32 %v13346_v7, %v13346_v7  ;;  %v8844_v34 = vsel %vm4054_vm2, %v8744_v30, 0.0 }
 0xc9c   :  { %v8641_v8 = vadd.f32 %v8640_v3, %v8639_v55  ;;  %v8648_v55 = vsel %vm4054_vm2, %v13346_v7, 0.0 }
 0xc9d   :  { %v8839_v18 = vadd.f32 %v8838_v31, %v8837_v2  ;;  %v8746_v31 = vmul.f32 %v13350_v23, %v13350_v23  ;;  %v8846_v38 = vsel %vm4054_vm2, %v8745_v13, 0.0 }
 0xc9e   :  { %v8643_v50 = vadd.f32 %v8642_v54, %v8641_v8 }
 0xc9f   :  { %v8841_v3 = vadd.f32 %v8840_v61, %v8839_v18  ;;  %v8747_v61 = vmul.f32 %v13353_v51, %v13353_v51  ;;  %v13644_v18 = vpop.f32.mrf.mxu3 }
 0xca0   :  { %v13609_v37 = vpop.f32.mrf.mxu1  ;;  %v8645_v62 = vadd.f32 %v8644_v36, %v8643_v50  ;;  %v8848_v50 = vsel %vm4054_vm2, %v8746_v31, 0.0 }
 0xca1   :  { %v8843_v54 = vadd.f32 %v8842_v25, %v8841_v3  ;;  %v8652_v25 = vsel %vm4054_vm2, %v13353_v51, 0.0  ;;  %v13651_v3 = vpop.f32.mrf.mxu0  ;;  %v8850_v52 = vsel %vm4054_vm2, %v8747_v61, 0.0 }
 0xca2   :  { %v8647_v2 = vadd.f32 %v8646_v5, %v8645_v62  ;;  %v8748_v5 = vmul.f32 %v13357_v14, %v13357_v14 }
 0xca3   :  { %v8845_v36 = vadd.f32 %v8844_v34, %v8843_v54  ;;  %v8654_v34 = vsel %vm4054_vm2, %v13357_v14, 0.0 }
 0xca4   :  { %v8649_v30 = vadd.f32 %v8648_v55, %v8647_v2  ;;  %v8749_v55 = vmul.f32 %v13360_v9, %v13360_v9  ;;  %v13658_v2 = vpop.f32.mrf.mxu2  ;;  %v8852_v57 = vsel %vm4054_vm2, %v8748_v5, 0.0 }
 0xca5   :  { %v8847_v13 = vadd.f32 %v8846_v38, %v8845_v36 }
 0xca6   :  { %v8651_v62 = vadd.f32 %v8650_v39, %v8649_v30  ;;  %v8750_v39 = vmul.f32 %v14630_v15, %v14630_v15  ;;  %v8854_v30 = vsel %vm4054_vm2, %v8749_v55, 0.0  ;;  %v14632_v55 = vld [vmem:[#allocation34_spill] sm:$0xff] }
 0xca7   :  { %v8849_v54 = vadd.f32 %v8848_v50, %v8847_v13  ;;  %v8658_v50 = vsel %vm4054_vm2, %v14630_v15, 0.0  ;;  %v13681_v15 = vpop.f32.mrf.mxu3 }
 0xca8   :  { %v13637_v8 = vpop.f32.mrf.mxu1  ;;  %v8653_v31 = vadd.f32 %v8652_v25, %v8651_v62  ;;  %v8751_v25 = vmul.f32 %v13367_v58, %v13367_v58  ;;  %v14631_v62 = vld [vmem:[#allocation33_spill] sm:$0xff]  ;;  %v8856_v45 = vsel %vm4054_vm2, %v8750_v39, 0.0 }
 0xca9   :  { %v8851_v38 = vadd.f32 %v8850_v52, %v8849_v54  ;;  %v7265_v60 = vadd.f32 %v13419_v35, %v14631_v62  ;;  %v8660_v52 = vsel %vm4054_vm2, %v13367_v58, 0.0  ;;  %v7266_v54 = vadd.f32 %v13456_v22, %v14632_v55  ;;  %v14633_v35 = vld [vmem:[#allocation40_spill] sm:$0xff]  ;;  %v13690_v62 = vpop.f32.mrf.mxu0 }
 0xcaa   :  { %v8655_v61 = vadd.f32 %v8654_v34, %v8653_v31  ;;  %v8752_v34 = vmul.f32 %v13371_v29, %v13371_v29  ;;  %v8753_v39 = vmul.f32 %v14633_v35, %v14633_v35  ;;  %v14636_v55 = vld [vmem:[#allocation36_spill] sm:$0xff] }
 0xcab   :  { %v8853_v13 = vadd.f32 %v8852_v57, %v8851_v38  ;;  %v8662_v57 = vsel %vm4054_vm2, %v13371_v29, 0.0  ;;  %v14634_v38 = vld [vmem:[#allocation35_spill] sm:$0xff]  ;;  %v7698_v22 = vadd.f32 %v13439_v11, %v7265_v60  ;;  %v7268_v29 = vadd.f32 %v13524_v0, %v14636_v55 }
 0xcac   :  { %v8657_v5 = vadd.f32 %v8656_v46, %v8655_v61  ;;  %v8858_v46 = vsel %vm4054_vm2, %v8751_v25, 0.0  ;;  %v7267_v61 = vadd.f32 %v13490_v28, %v14634_v38  ;;  %v14635_v25 = vld [vmem:[#allocation15_spill] sm:$0xff]  ;;  %v8862_v60 = vsel %vm4054_vm2, %v8753_v39, 0.0 }
 0xcad   :  { %v8855_v31 = vadd.f32 %v8854_v30, %v8853_v13  ;;  %v8860_v30 = vsel %vm4054_vm2, %v8752_v34, 0.0  ;;  %v8754_v13 = vmul.f32 %v14635_v25, %v14635_v25  ;;  %v8666_v11 = vsel %vm4054_vm2, %v14635_v25, 0.0  ;;  %v14637_v34 = vld [vmem:[#allocation37_spill] sm:$0xff]  ;;  %v14638_v39 = vld [vmem:[#allocation39_spill] sm:$0xff] }
 0xcae   :  { %v8659_v41 = vadd.f32 %v8658_v50, %v8657_v5  ;;  %v8664_v50 = vsel %vm4054_vm2, %v14633_v35, 0.0  ;;  %v7699_v5 = vadd.f32 %v13473_v40, %v7266_v54  ;;  %v7700_v40 = vadd.f32 %v13510_v53, %v7267_v61 }
 0xcaf   :  { %v8857_v58 = vadd.f32 %v8856_v45, %v8855_v31  ;;  %v7204_v45 = vpop.f32.mrf.mxu2  ;;  %v7269_v0 = vadd.f32 %v13559_v24, %v14637_v34  ;;  %v8668_v31 = vsel %vm4054_vm2, %v13402_v1, 0.0  ;;  %v7270_v53 = vadd.f32 %v13592_v47, %v14638_v39  ;;  %v7637_v55 = vpop.f32.mrf.mxu3 }
 0xcb0   :  { %v13665_v36 = vpop.f32.mrf.mxu1  ;;  %v8661_v9 = vadd.f32 %v8660_v52, %v8659_v41  ;;  %v8130_v41 = vadd.f32 %v13446_v12, %v7698_v22  ;;  %v8755_v52 = vmul.f32 %v13402_v1, %v13402_v1  ;;  %v8131_v54 = vadd.f32 %v13483_v33, %v7699_v5 }
 0xcb1   :  { %v8859_v28 = vadd.f32 %v8858_v46, %v8857_v58  ;;  %v8864_v12 = vsel %vm4054_vm2, %v8754_v13, 0.0  ;;  %v8756_v46 = vmul.f32 %v13427_v42, %v13427_v42  ;;  %v8132_v24 = vadd.f32 %v13517_v20, %v7700_v40 }
 0xcb2   :  { %v8663_v38 = vadd.f32 %v8662_v57, %v8661_v9  ;;  %v7701_v57 = vadd.f32 %v13543_v16, %v7268_v29  ;;  %v8670_v33 = vsel %vm4054_vm2, %v13427_v42, 0.0  ;;  %v7702_v13 = vadd.f32 %v13576_v27, %v7269_v0 }
 0xcb3   :  { %v8861_v58 = vadd.f32 %v8860_v30, %v8859_v28  ;;  %v8866_v30 = vsel %vm4054_vm2, %v8755_v52, 0.0  ;;  %v8868_v47 = vsel %vm4054_vm2, %v8756_v46, 0.0  ;;  %v8672_v20 = vsel %vm4054_vm2, %v13454_v4, 0.0 }
 0xcb4   :  { %v8665_v9 = vadd.f32 %v8664_v50, %v8663_v38  ;;  %v8757_v50 = vmul.f32 %v13454_v4, %v13454_v4  ;;  %v8133_v5 = vadd.f32 %v13550_v6, %v7701_v57  ;;  %v8758_v28 = vmul.f32 %v13481_v19, %v13481_v19  ;;  %v8069_v6 = vpop.f32.mrf.mxu0 }
 0xcb5   :  { %v8863_v61 = vadd.f32 %v8862_v60, %v8861_v58  ;;  %v13735_v38 = vadd.f32 %v13531_v59, %v8130_v41  ;;  %v7703_v60 = vadd.f32 %v13611_v21, %v7270_v53  ;;  %v8674_v58 = vsel %vm4054_vm2, %v13481_v19, 0.0  ;;  %v14640_v41 = vld [vmem:[#allocation42_spill] sm:$0xff] }
 0xcb6   :  { %v8667_v22 = vadd.f32 %v8666_v11, %v8665_v9  ;;  %v14639_v11 = vld [vmem:[#allocation41_spill] sm:$0xff]  ;;  %v8870_v0 = vsel %vm4054_vm2, %v8757_v50, 0.0  ;;  %v8759_v9 = vmul.f32 %v13508_v44, %v13508_v44  ;;  %v13746_v59 = vadd.f32 %v13557_v26, %v8131_v54 }
 0xcb7   :  { %v8865_v29 = vadd.f32 %v8864_v12, %v8863_v61  ;;  %v7271_v27 = vadd.f32 %v13625_v10, %v14639_v11  ;;  %v8134_v21 = vadd.f32 %v13583_v17, %v7702_v13  ;;  %v7272_v10 = vadd.f32 %v13658_v2, %v14640_v41  ;;  %v7207_v46 = vpop.f32.mrf.mxu2 }
 0xcb8   :  { %v13701_v14 = vpop.f32.mrf.mxu1  ;;  %v8669_v16 = vadd.f32 %v8668_v31, %v8667_v22  ;;  %v8872_v57 = vsel %vm4054_vm2, %v8758_v28, 0.0  ;;  %v8676_v39 = vsel %vm4054_vm2, %v13508_v44, 0.0  ;;  %v8760_v53 = vmul.f32 %v13735_v38, %v13735_v38 }
 0xcb9   :  { %v8867_v52 = vadd.f32 %v8866_v30, %v8865_v29  ;;  %v13757_v61 = vadd.f32 %v13585_v63, %v8132_v24  ;;  %v7704_v26 = vadd.f32 %v13644_v18, %v7271_v27  ;;  %v8135_v17 = vadd.f32 %v13618_v49, %v7703_v60  ;;  %v14641_v24 = vld [vmem:[#allocation43_spill] sm:$0xff] }
 0xcba   :  { %v8671_v40 = vadd.f32 %v8670_v33, %v8669_v16  ;;  %v8874_v22 = vsel %vm4054_vm2, %v8759_v9, 0.0  ;;  %v8678_v30 = vsel %vm4054_vm2, %v13735_v38, 0.0  ;;  %v8761_v33 = vmul.f32 %v13746_v59, %v13746_v59 }
 0xcbb   :  { %v8869_v12 = vadd.f32 %v8868_v47, %v8867_v52  ;;  %v13767_v50 = vadd.f32 %v13609_v37, %v8133_v5  ;;  %v7705_v63 = vadd.f32 %v13681_v15, %v7272_v10  ;;  %v7273_v13 = vadd.f32 %v7204_v45, %v14641_v24  ;;  %v14642_v5 = vld [vmem:[#allocation44_spill] sm:$0xff]  ;;  %v7640_v15 = vpop.f32.mrf.mxu3 }
 0xcbc   :  { %v8673_v31 = vadd.f32 %v8672_v20, %v8671_v40  ;;  %v8876_v49 = vsel %vm4054_vm2, %v8760_v53, 0.0  ;;  %v8680_v16 = vsel %vm4054_vm2, %v13746_v59, 0.0  ;;  %v8762_v47 = vmul.f32 %v13757_v61, %v13757_v61 }
 0xcbd   :  { %v8871_v54 = vadd.f32 %v8870_v0, %v8869_v12  ;;  %v13777_v20 = vadd.f32 %v13637_v8, %v8134_v21  ;;  %v8136_v37 = vadd.f32 %v13651_v3, %v7704_v26  ;;  %v7274_v28 = vadd.f32 %v7207_v46, %v14642_v5 }
 0xcbe   :  { %v8675_v2 = vadd.f32 %v8674_v58, %v8673_v31  ;;  %v8878_v27 = vsel %vm4054_vm2, %v8761_v33, 0.0  ;;  %v8682_v52 = vsel %vm4054_vm2, %v13757_v61, 0.0  ;;  %v8763_v40 = vmul.f32 %v13767_v50, %v13767_v50  ;;  %v8072_v58 = vpop.f32.mrf.mxu0 }
 0xcbf   :  { %v8873_v18 = vadd.f32 %v8872_v57, %v8871_v54  ;;  %v13787_v0 = vadd.f32 %v13665_v36, %v8135_v17  ;;  %v7706_v8 = vadd.f32 %v7637_v55, %v7273_v13  ;;  %v8137_v3 = vadd.f32 %v13690_v62, %v7705_v63  ;;  %v14643_v63 = vld [vmem:[#allocation45_spill] sm:$0xff] }
 0xcc0   :  { %v8499_v34 = vpop.f32.mrf.mxu1  ;;  %v8677_v29 = vadd.f32 %v8676_v39, %v8675_v2  ;;  %v8880_v41 = vsel %vm4054_vm2, %v8762_v47, 0.0  ;;  %v8684_v10 = vsel %vm4054_vm2, %v13767_v50, 0.0  ;;  %v8764_v12 = vmul.f32 %v13777_v20, %v13777_v20  ;;  %v7209_v39 = vpop.f32.mrf.mxu2 }
 0xcc1   :  { %v8875_v60 = vadd.f32 %v8874_v22, %v8873_v18  ;;  %v13796_v31 = vadd.f32 %v13701_v14, %v8136_v37  ;;  %v7707_v46 = vadd.f32 %v7640_v15, %v7274_v28  ;;  %v8138_v36 = vadd.f32 %v8069_v6, %v7706_v8 }
 0xcc2   :  { %v8679_v45 = vadd.f32 %v8678_v30, %v8677_v29  ;;  %v8882_v62 = vsel %vm4054_vm2, %v8763_v40, 0.0  ;;  %v8686_v53 = vsel %vm4054_vm2, %v13777_v20, 0.0  ;;  %v8765_v26 = vmul.f32 %v13787_v0, %v13787_v0 }
 0xcc3   :  { %v8877_v9 = vadd.f32 %v8876_v49, %v8875_v60  ;;  %v13803_v17 = vadd.f32 %v8499_v34, %v8137_v3  ;;  %v8139_v54 = vadd.f32 %v8072_v58, %v7707_v46  ;;  %v8884_v14 = vsel %vm4054_vm2, %v8764_v12, 0.0  ;;  %v7642_v37 = vpop.f32.mrf.mxu3 }
 0xcc4   :  { %v8681_v21 = vadd.f32 %v8680_v16, %v8679_v45  ;;  %v8688_v6 = vsel %vm4054_vm2, %v13787_v0, 0.0  ;;  %v8766_v30 = vmul.f32 %v13796_v31, %v13796_v31  ;;  %v7275_v24 = vadd.f32 %v7209_v39, %v14643_v63 }
 0xcc5   :  { %v8879_v57 = vadd.f32 %v8878_v27, %v8877_v9  ;;  %v8886_v34 = vsel %vm4054_vm2, %v8765_v26, 0.0  ;;  %v8690_v49 = vsel %vm4054_vm2, %v13796_v31, 0.0  ;;  %v8767_v16 = vmul.f32 %v13803_v17, %v13803_v17 }
 0xcc6   :  { %v8683_v55 = vadd.f32 %v8682_v52, %v8681_v21  ;;  %v8888_v15 = vsel %vm4054_vm2, %v8766_v30, 0.0  ;;  %v8692_v60 = vsel %vm4054_vm2, %v13803_v17, 0.0  ;;  %v7708_v40 = vadd.f32 %v7642_v37, %v7275_v24 }
 0xcc7   :  { %v8881_v2 = vadd.f32 %v8880_v41, %v8879_v57  ;;  %v8890_v8 = vsel %vm4054_vm2, %v8767_v16, 0.0 }
 0xcc8   :  { %v8501_v11 = vpop.f32.mrf.mxu1  ;;  %v8685_v22 = vadd.f32 %v8684_v10, %v8683_v55 }
 0xcc9   :  { %v13810_v33 = vadd.f32 %v8501_v11, %v8138_v36  ;;  %v8883_v13 = vadd.f32 %v8882_v62, %v8881_v2  ;;  %v8074_v11 = vpop.f32.mrf.mxu0 }
 0xcca   :  { %v8687_v18 = vadd.f32 %v8686_v53, %v8685_v22  ;;  %v8140_v41 = vadd.f32 %v8074_v11, %v7708_v40 }
 0xccb   :  { %v8885_v5 = vadd.f32 %v8884_v14, %v8883_v13  ;;  %v8768_v45 = vmul.f32 %v13810_v33, %v13810_v33  ;;  %v8694_v3 = vsel %vm4054_vm2, %v13810_v33, 0.0 }
 0xccc   :  { %v8689_v28 = vadd.f32 %v8688_v6, %v8687_v18 }
 0xccd   :  { %v8887_v27 = vadd.f32 %v8886_v34, %v8885_v5  ;;  %v8892_v10 = vsel %vm4054_vm2, %v8768_v45, 0.0 }
 0xcce   :  { %v8691_v52 = vadd.f32 %v8690_v49, %v8689_v28 }
 0xccf   :  { %v8889_v9 = vadd.f32 %v8888_v15, %v8887_v27 }
 0xcd0   :  { %v8504_v29 = vpop.f32.mrf.mxu1  ;;  %v8693_v21 = vadd.f32 %v8692_v60, %v8691_v52 }
 0xcd1   :  { %v13818_v47 = vadd.f32 %v8504_v29, %v8139_v54  ;;  %v8891_v46 = vadd.f32 %v8890_v8, %v8889_v9 }
 0xcd2   :  { %v8695_v36 = vadd.f32 %v8694_v3, %v8693_v21  ;;  %v8908_v21 = vld [vmem:[%s14196_s5] sm:$0x1]  ;;  %s9857_s5 = smov [#allocation4]  }
 0xcd3   :  { %v8769_v58 = vmul.f32 %v13818_v47, %v13818_v47  ;;  %v8696_v12 = vsel %vm4054_vm2, %v13818_v47, 0.0  ;;  %v8893_v62 = vadd.f32 %v8892_v10, %v8891_v46  ;;  %v8921_v46 = vld [vmem:[%s14197_s6] sm:$0x1]  ;;  %s9190_s6 = sshll.u32 %s9857_s5, 4  ;;  %s9191_s6 = int_to_ptr.vmem [resolvable:$true] %s9190_s6 }
 0xcd4   :  { %v8697_v53 = vadd.f32 %v8696_v12, %v8695_v36 }
 0xcd5   :  { %v8894_v55 = vsel %vm4054_vm2, %v8769_v58, 0.0 }
 0xcd6   :  { %v8895_v2 = vadd.f32 %v8894_v55, %v8893_v62 }
 0xcd8   :  { %v8506_v57 = vpop.f32.mrf.mxu1 }
 0xcd9   :  { %v8572_v39 = vadd.f32 %v8506_v57, %v8140_v41 }
 0xcdb   :  { %v8698_v26 = vsel %vm4054_vm2, %v8572_v39, 0.0  ;;  %v8770_v54 = vmul.f32 %v8572_v39, %v8572_v39 }
 0xcdc   :  { %v8699_v22 = vadd.f32 %v8698_v26, %v8697_v53 }
 0xcdd   :  { %v8896_v14 = vsel %vm4054_vm2, %v8770_v54, 0.0 }
 0xcde   :  { %v8700_v6 = vrot.slane %v8699_v22, 4  ;;  %v8897_v30 = vadd.f32 %v8896_v14, %v8895_v2  ;;  %v14644_v2 = vld [vmem:[#allocation73_spill] sm:$0xff] }
 0xcdf   :  { %v14645_v14 = vld [vmem:[#allocation17_spill] sm:$0xff] }
 0xce0   :  { %v8701_v63 = vadd.f32 %v8700_v6, %v8699_v22  ;;  %v8898_v24 = vrot.slane %v8897_v30, 4 }
 0xce2   :  { %v8702_v13 = vrot.slane %v8701_v63, 2  ;;  %v8899_v18 = vadd.f32 %v8898_v24, %v8897_v30  ;;  %v14646_v30 = vld [vmem:[#allocation74_spill] sm:$0xff]  ;;  %v14647_v24 = vld [vmem:[#allocation76_spill] sm:$0xff] }
 0xce4   :  { %v8703_v29 = vadd.f32 %v8702_v13, %v8701_v63  ;;  %v8900_v34 = vrot.slane %v8899_v18, 2 }
 0xce6   :  { %v8704_v49 = vrot.slane %v8703_v29, 1  ;;  %v8901_v16 = vadd.f32 %v8900_v34, %v8899_v18 }
 0xce8   :  { %v8705_v37 = vadd.f32 %v8704_v49, %v8703_v29  ;;  %v8902_v5 = vrot.slane %v8901_v16, 1  ;;  %v14648_v29 = vld [vmem:[#allocation46_spill] sm:$0xff]  ;;  %v14649_v49 = vld [vmem:[#allocation47_spill] sm:$0xff] }
 0xcea   :  { %v8706_v28 = vmul.f32 0.001953125, %v8705_v37  ;;  %v8903_v15 = vadd.f32 %v8902_v5, %v8901_v16  ;;  %v14650_v5 = vld [vmem:[#allocation48_spill] sm:$0xff] }
 0xcec   :  { %v8904_v60 = vmul.f32 0.001953125, %v8903_v15  ;;  %v8905_v45 = vmul.f32 %v8706_v28, %v8706_v28 }
 0xcee   :  { %v8906_v11 = vsub.f32 %v8904_v60, %v8905_v45  ;;  %v14651_v45 = vld [vmem:[#allocation38_spill] sm:$0xff] }
 0xcf0   :  { %v8907_v27 = vmax.f32 %v8906_v11, 0.0  ;;  %v14652_v11 = vld [vmem:[#allocation10_spill] sm:$0xff] }
 0xcf2   :  { %v8909_v52 = vadd.f32 1e-05, %v8907_v27 }
 0xcf4   :  { %9828 = vrsqrt.f32 %v8909_v52  ;;  %vm8916_vm7 = vweird.f32 %v8909_v52 }
 0xcfa   :  { %v9829_v40 = vpop.eup %9828 }
 0xcfb   :  { %v8911_v8 = vmul.f32 %v9829_v40, %v8909_v52  ;;  %vm8917_vm6 = vweird.f32 %v9829_v40  ;;  %v14653_v52 = vld [vmem:[#allocation8_spill] sm:$0xff] }
 0xcfc   :  { %vm8918_vm8 = vmor %vm8916_vm7, %vm8917_vm6 }
 0xcfd   :  { %v8912_v3 = vmul.f32 %v9829_v40, %v8911_v8  ;;  %v14654_v8 = vld [vmem:[#allocation12_spill] sm:$0xff] }
 0xcff   :  { %v8913_v58 = vmul.f32 0.5, %v8912_v3  ;;  %v14655_v3 = vld [vmem:[#allocation11_spill] sm:$0xff] }
 0xd01   :  { %v8914_v9 = vsub.f32 1.5, %v8913_v58 }
 0xd03   :  { %v8915_v41 = vmul.f32 %v9829_v40, %v8914_v9 }
 0xd05   :  { %v8919_v10 = vsel %vm8918_vm8, %v9829_v40, %v8915_v41 }
 0xd06   :  { %v8920_v12 = vmul.f32 %v8919_v10, %v8908_v21 }
 0xd08   :  { %v8922_v36 = vmul.f32 %v8920_v12, %v8706_v28  ;;  %v13842_v57 = vperm.slane %v8920_v12, 0 }
 0xd0a   :  { %v8923_v55 = vsub.f32 %v8921_v46, %v8922_v36  ;;  %v8990_v62 = vmul.f32 %v13842_v57, %v8572_v39  ;;  %v8927_v22 = vmul.f32 %v13842_v57, %v14644_v2  ;;  %v8928_v6 = vmul.f32 %v13842_v57, %v14645_v14 }
 0xd0b   :  { %v8929_v63 = vmul.f32 %v13842_v57, %v14646_v30  ;;  %v8930_v13 = vmul.f32 %v13842_v57, %v14647_v24  ;;  %v8931_v39 = vmul.f32 %v13842_v57, %v13227_v32  ;;  %v8932_v18 = vmul.f32 %v13842_v57, %v13231_v48 }
 0xd0c   :  { %v13845_v53 = vperm.slane %v8923_v55, 0  ;;  %v8933_v34 = vmul.f32 %v13842_v57, %v14648_v29  ;;  %v13865_v16 = vmul.f32 %v13842_v57, %v14649_v49  ;;  %v13869_v37 = vmul.f32 %v13842_v57, %v13241_v43 }
 0xd0d   :  { %v13873_v28 = vmul.f32 %v13842_v57, %v14650_v5  ;;  %v8964_v32 = vmul.f32 %v13842_v57, %v13343_v56  ;;  %v8965_v48 = vmul.f32 %v13842_v57, %v13346_v7  ;;  %v8966_v15 = vmul.f32 %v13842_v57, %v13350_v23 }
 0xd0e   :  { %v9057_v26 = vadd.f32 %v13845_v53, %v8990_v62  ;;  %v8967_v60 = vmul.f32 %v13842_v57, %v13353_v51  ;;  %v8968_v43 = vmul.f32 %v13842_v57, %v14651_v45  ;;  %v8969_v27 = vmul.f32 %v13842_v57, %v14652_v11 }
 0xd0f   :  { %v8970_v40 = vmul.f32 %v13842_v57, %v14653_v52  ;;  %v8971_v56 = vmul.f32 %v13842_v57, %v14654_v8  ;;  %v8972_v7 = vmul.f32 %v13842_v57, %v14655_v3  ;;  %v8973_v23 = vmul.f32 %v13842_v57, %v14633_v35  ;;  %v14656_v8 = vld [vmem:[#allocation49_spill] sm:$0xff] }
 0xd10   :  { %v9121_v54 = vmax.f32 %v9057_v26, 0.0  ;;  %v8974_v51 = vmul.f32 %v13842_v57, %v14635_v25  ;;  %v8975_v58 = vmul.f32 %v13842_v57, %v13402_v1  ;;  %v8976_v9 = vmul.f32 %v13842_v57, %v13427_v42 }
 0xd11   :  { %v8977_v21 = vmul.f32 %v13842_v57, %v13454_v4  ;;  %v8978_v41 = vmul.f32 %v13842_v57, %v13481_v19  ;;  %v8979_v10 = vmul.f32 %v13842_v57, %v13508_v44  ;;  %v8980_v35 = vmul.f32 %v13842_v57, %v13735_v38 }
 0xd12   :  { %9185 = vst.msk [vmem:[#allocation4 + $0x1f8] sm:$0xff] %vm4054_vm2, %v9121_v54  ;;  %v8981_v25 = vmul.f32 %v13842_v57, %v13746_v59  ;;  %v8982_v1 = vmul.f32 %v13842_v57, %v13757_v61  ;;  %v8983_v42 = vmul.f32 %v13842_v57, %v13767_v50  ;;  %v8984_v4 = vmul.f32 %v13842_v57, %v13777_v20 }
 0xd13   :  { %v8985_v19 = vmul.f32 %v13842_v57, %v13787_v0  ;;  %v8986_v44 = vmul.f32 %v13842_v57, %v13796_v31  ;;  %v8987_v38 = vmul.f32 %v13842_v57, %v13803_v17  ;;  %v8988_v59 = vmul.f32 %v13842_v57, %v13810_v33 }
 0xd14   :  { %v8989_v61 = vmul.f32 %v13842_v57, %v13818_v47  ;;  %v8994_v50 = vadd.f32 %v13845_v53, %v8927_v22  ;;  %v8995_v12 = vadd.f32 %v13845_v53, %v8928_v6  ;;  %v8996_v20 = vadd.f32 %v13845_v53, %v8929_v63 }
 0xd15   :  { %v8997_v0 = vadd.f32 %v13845_v53, %v8930_v13  ;;  %v8998_v46 = vadd.f32 %v13845_v53, %v8931_v39  ;;  %v8999_v31 = vadd.f32 %v13845_v53, %v8932_v18  ;;  %v9000_v17 = vadd.f32 %v13845_v53, %v8933_v34 }
 0xd16   :  { %v13935_v36 = vadd.f32 %v13845_v53, %v8964_v32  ;;  %v13938_v33 = vadd.f32 %v13845_v53, %v8965_v48  ;;  %v13941_v47 = vadd.f32 %v13845_v53, %v8966_v15  ;;  %v13944_v55 = vadd.f32 %v13845_v53, %v8967_v60 }
 0xd17   :  { %v13947_v62 = vadd.f32 %v13845_v53, %v8968_v43  ;;  %v13950_v26 = vadd.f32 %v13845_v53, %v8969_v27  ;;  %v13953_v54 = vadd.f32 %v13845_v53, %v8970_v40  ;;  %v13956_v2 = vadd.f32 %v13845_v53, %v8971_v56 }
 0xd18   :  { %v13959_v22 = vadd.f32 %v13845_v53, %v8972_v7  ;;  %v13962_v14 = vadd.f32 %v13845_v53, %v8973_v23  ;;  %v13965_v6 = vadd.f32 %v13845_v53, %v8974_v51  ;;  %v13968_v30 = vadd.f32 %v13845_v53, %v8975_v58  ;;  %v14657_v23 = vld [vmem:[#allocation50_spill] sm:$0xff] }
 0xd19   :  { %v13971_v63 = vadd.f32 %v13845_v53, %v8976_v9  ;;  %v13974_v24 = vadd.f32 %v13845_v53, %v8977_v21  ;;  %v13977_v13 = vadd.f32 %v13845_v53, %v8978_v41  ;;  %v13980_v39 = vadd.f32 %v13845_v53, %v8979_v10 }
 0xd1a   :  { %v13983_v18 = vadd.f32 %v13845_v53, %v8980_v35  ;;  %v13986_v29 = vadd.f32 %v13845_v53, %v8981_v25  ;;  %v13989_v34 = vadd.f32 %v13845_v53, %v8982_v1  ;;  %v13992_v49 = vadd.f32 %v13845_v53, %v8983_v42 }
 0xd1b   :  { %v13995_v5 = vadd.f32 %v13845_v53, %v8984_v4  ;;  %v13998_v32 = vadd.f32 %v13845_v53, %v8985_v19  ;;  %v14001_v48 = vadd.f32 %v13845_v53, %v8986_v44  ;;  %v14004_v15 = vadd.f32 %v13845_v53, %v8987_v38  ;;  %v14661_v44 = vld [vmem:[#allocation54_spill] sm:$0xff] }
 0xd1c   :  { %v14007_v60 = vadd.f32 %v13845_v53, %v8988_v59  ;;  %v14010_v45 = vadd.f32 %v13845_v53, %v8989_v61  ;;  %v9058_v43 = vmax.f32 %v8994_v50, 0.0  ;;  %v9001_v11 = vadd.f32 %v13845_v53, %v13865_v16  ;;  %v14658_v16 = vld [vmem:[#allocation51_spill] sm:$0xff] }
 0xd1d   :  { %v9059_v27 = vmax.f32 %v8995_v12, 0.0  ;;  %v9060_v52 = vmax.f32 %v8996_v20, 0.0  ;;  %v9061_v40 = vmax.f32 %v8997_v0, 0.0  ;;  %v8937_v56 = vmul.f32 %v13842_v57, %v14656_v8  ;;  %v14662_v50 = vld [vmem:[#allocation55_spill] sm:$0xff]  ;;  %v14665_v8 = vld [vmem:[#allocation58_spill] sm:$0xff] }
 0xd1e   :  { %v9002_v3 = vadd.f32 %v13845_v53, %v13869_v37  ;;  %v9062_v7 = vmax.f32 %v8998_v46, 0.0  ;;  %9122 = vst.msk [vmem:[#allocation4] sm:$0xff] %vm4054_vm2, %v9058_v43  ;;  %v8938_v51 = vmul.f32 %v13842_v57, %v14657_v23  ;;  %v9003_v58 = vadd.f32 %v13845_v53, %v13873_v28  ;;  %v14659_v37 = vld [vmem:[#allocation52_spill] sm:$0xff]  ;;  %v14660_v28 = vld [vmem:[#allocation53_spill] sm:$0xff]  ;;  %v14666_v23 = vld [vmem:[#allocation59_spill] sm:$0xff] }
 0xd1f   :  { %v9063_v9 = vmax.f32 %v8999_v31, 0.0  ;;  %9123 = vst.msk [vmem:[#allocation4 + $0x8] sm:$0xff] %vm4054_vm2, %v9059_v27  ;;  %v8939_v21 = vmul.f32 %v13842_v57, %v14658_v16  ;;  %v9004_v41 = vadd.f32 %v13845_v53, %v8937_v56  ;;  %v9064_v10 = vmax.f32 %v9000_v17, 0.0  ;;  %v14663_v46 = vld [vmem:[#allocation56_spill] sm:$0xff] }
 0xd20   :  { %9124 = vst.msk [vmem:[#allocation4 + $0x10] sm:$0xff] %vm4054_vm2, %v9060_v52  ;;  %v8940_v35 = vmul.f32 %v13842_v57, %v14659_v37  ;;  %v9005_v25 = vadd.f32 %v13845_v53, %v8938_v51  ;;  %v9065_v1 = vmax.f32 %v9001_v11, 0.0  ;;  %v8941_v42 = vmul.f32 %v13842_v57, %v14660_v28  ;;  %v14664_v11 = vld [vmem:[#allocation57_spill] sm:$0xff]  ;;  %v14667_v16 = vld [vmem:[#allocation60_spill] sm:$0xff]  ;;  %v14669_v28 = vld [vmem:[#allocation62_spill] sm:$0xff] }
 0xd21   :  { %9125 = vst.msk [vmem:[#allocation4 + $0x18] sm:$0xff] %vm4054_vm2, %v9061_v40  ;;  %v9006_v4 = vadd.f32 %v13845_v53, %v8939_v21  ;;  %v9066_v19 = vmax.f32 %v9002_v3, 0.0  ;;  %v8942_v38 = vmul.f32 %v13842_v57, %v14661_v44  ;;  %v9067_v61 = vmax.f32 %v9003_v58, 0.0  ;;  %v14668_v37 = vld [vmem:[#allocation61_spill] sm:$0xff]  ;;  %v14670_v44 = vld [vmem:[#allocation63_spill] sm:$0xff] }
 0xd22   :  { %9126 = vst.msk [vmem:[#allocation4 + $0x20] sm:$0xff] %vm4054_vm2, %v9062_v7  ;;  %v9007_v59 = vadd.f32 %v13845_v53, %v8940_v35  ;;  %v8943_v12 = vmul.f32 %v13842_v57, %v14662_v50  ;;  %v9008_v20 = vadd.f32 %v13845_v53, %v8941_v42  ;;  %v9068_v0 = vmax.f32 %v9004_v41, 0.0  ;;  %v14671_v50 = vld [vmem:[#allocation64_spill] sm:$0xff] }
 0xd23   :  { %9127 = vst.msk [vmem:[#allocation4 + $0x28] sm:$0xff] %vm4054_vm2, %v9063_v9  ;;  %v8944_v31 = vmul.f32 %v13842_v57, %v14663_v46  ;;  %v9009_v17 = vadd.f32 %v13845_v53, %v8942_v38  ;;  %v9069_v43 = vmax.f32 %v9005_v25, 0.0  ;;  %v8945_v27 = vmul.f32 %v13842_v57, %v14664_v11  ;;  %v14672_v46 = vld [vmem:[#allocation65_spill] sm:$0xff]  ;;  %v14673_v11 = vld [vmem:[#allocation66_spill] sm:$0xff] }
 0xd24   :  { %9128 = vst.msk [vmem:[#allocation4 + $0x30] sm:$0xff] %vm4054_vm2, %v9064_v10  ;;  %v9010_v52 = vadd.f32 %v13845_v53, %v8943_v12  ;;  %v9070_v40 = vmax.f32 %v9006_v4, 0.0  ;;  %v8946_v56 = vmul.f32 %v13842_v57, %v14665_v8  ;;  %v9071_v7 = vmax.f32 %v9007_v59, 0.0  ;;  %v14674_v8 = vld [vmem:[#allocation67_spill] sm:$0xff] }
 0xd25   :  { %9129 = vst.msk [vmem:[#allocation4 + $0x38] sm:$0xff] %vm4054_vm2, %v9065_v1  ;;  %v9011_v3 = vadd.f32 %v13845_v53, %v8944_v31  ;;  %v8947_v51 = vmul.f32 %v13842_v57, %v14666_v23  ;;  %v9012_v58 = vadd.f32 %v13845_v53, %v8945_v27  ;;  %v9072_v9 = vmax.f32 %v9008_v20, 0.0  ;;  %v14675_v23 = vld [vmem:[#allocation68_spill] sm:$0xff] }
 0xd26   :  { %9130 = vst.msk [vmem:[#allocation4 + $0x40] sm:$0xff] %vm4054_vm2, %v9066_v19  ;;  %v8948_v21 = vmul.f32 %v13842_v57, %v14667_v16  ;;  %v9013_v41 = vadd.f32 %v13845_v53, %v8946_v56  ;;  %v9073_v10 = vmax.f32 %v9009_v17, 0.0  ;;  %v8949_v35 = vmul.f32 %v13842_v57, %v14668_v37  ;;  %v14676_v16 = vld [vmem:[#allocation69_spill] sm:$0xff]  ;;  %v14677_v37 = vld [vmem:[#allocation70_spill] sm:$0xff] }
 0xd27   :  { %9131 = vst.msk [vmem:[#allocation4 + $0x48] sm:$0xff] %vm4054_vm2, %v9067_v61  ;;  %v9014_v25 = vadd.f32 %v13845_v53, %v8947_v51  ;;  %v9074_v1 = vmax.f32 %v9010_v52, 0.0  ;;  %v8950_v42 = vmul.f32 %v13842_v57, %v14669_v28  ;;  %v9075_v19 = vmax.f32 %v9011_v3, 0.0  ;;  %v14678_v28 = vld [vmem:[#allocation71_spill] sm:$0xff] }
 0xd28   :  { %9132 = vst.msk [vmem:[#allocation4 + $0x50] sm:$0xff] %vm4054_vm2, %v9068_v0  ;;  %v9015_v4 = vadd.f32 %v13845_v53, %v8948_v21  ;;  %v8951_v38 = vmul.f32 %v13842_v57, %v14670_v44  ;;  %v9016_v59 = vadd.f32 %v13845_v53, %v8949_v35  ;;  %v9076_v61 = vmax.f32 %v9012_v58, 0.0  ;;  %v14679_v44 = vld [vmem:[#allocation72_spill] sm:$0xff] }
 0xd29   :  { %9133 = vst.msk [vmem:[#allocation4 + $0x58] sm:$0xff] %vm4054_vm2, %v9069_v43  ;;  %v8952_v12 = vmul.f32 %v13842_v57, %v14671_v50  ;;  %v9017_v20 = vadd.f32 %v13845_v53, %v8950_v42  ;;  %v9077_v0 = vmax.f32 %v9013_v41, 0.0  ;;  %v8953_v31 = vmul.f32 %v13842_v57, %v14672_v46  ;;  %v14680_v50 = vld [vmem:[#allocation19_spill] sm:$0xff]  ;;  %v14681_v46 = vld [vmem:[#allocation22_spill] sm:$0xff] }
 0xd2a   :  { %9134 = vst.msk [vmem:[#allocation4 + $0x60] sm:$0xff] %vm4054_vm2, %v9070_v40  ;;  %v9018_v17 = vadd.f32 %v13845_v53, %v8951_v38  ;;  %v9078_v43 = vmax.f32 %v9014_v25, 0.0  ;;  %v8954_v27 = vmul.f32 %v13842_v57, %v14673_v11  ;;  %v9079_v40 = vmax.f32 %v9015_v4, 0.0  ;;  %v14682_v11 = vld [vmem:[#allocation7_spill] sm:$0xff] }
 0xd2b   :  { %9135 = vst.msk [vmem:[#allocation4 + $0x68] sm:$0xff] %vm4054_vm2, %v9071_v7  ;;  %v9019_v52 = vadd.f32 %v13845_v53, %v8952_v12  ;;  %v8955_v56 = vmul.f32 %v13842_v57, %v14674_v8  ;;  %v9020_v3 = vadd.f32 %v13845_v53, %v8953_v31  ;;  %v9080_v7 = vmax.f32 %v9016_v59, 0.0 }
 0xd2c   :  { %9136 = vst.msk [vmem:[#allocation4 + $0x70] sm:$0xff] %vm4054_vm2, %v9072_v9  ;;  %v8956_v51 = vmul.f32 %v13842_v57, %v14675_v23  ;;  %v9021_v58 = vadd.f32 %v13845_v53, %v8954_v27  ;;  %v9081_v9 = vmax.f32 %v9017_v20, 0.0  ;;  %v8957_v21 = vmul.f32 %v13842_v57, %v14676_v16 }
 0xd2d   :  { %9137 = vst.msk [vmem:[#allocation4 + $0x78] sm:$0xff] %vm4054_vm2, %v9073_v10  ;;  %v9022_v41 = vadd.f32 %v13845_v53, %v8955_v56  ;;  %v9082_v10 = vmax.f32 %v9018_v17, 0.0  ;;  %v8958_v35 = vmul.f32 %v13842_v57, %v14677_v37  ;;  %v8959_v42 = vmul.f32 %v13842_v57, %v14678_v28 }
 0xd2e   :  { %9138 = vst.msk [vmem:[#allocation4 + $0x80] sm:$0xff] %vm4054_vm2, %v9074_v1  ;;  %v9023_v25 = vadd.f32 %v13845_v53, %v8956_v51  ;;  %v9083_v1 = vmax.f32 %v9019_v52, 0.0  ;;  %v9024_v4 = vadd.f32 %v13845_v53, %v8957_v21  ;;  %v8960_v38 = vmul.f32 %v13842_v57, %v14679_v44 }
 0xd2f   :  { %9139 = vst.msk [vmem:[#allocation4 + $0x88] sm:$0xff] %vm4054_vm2, %v9075_v19  ;;  %v9084_v19 = vmax.f32 %v9020_v3, 0.0  ;;  %v9025_v59 = vadd.f32 %v13845_v53, %v8958_v35  ;;  %v8961_v12 = vmul.f32 %v13842_v57, %v14680_v50  ;;  %v9026_v20 = vadd.f32 %v13845_v53, %v8959_v42 }
 0xd30   :  { %9140 = vst.msk [vmem:[#allocation4 + $0x90] sm:$0xff] %vm4054_vm2, %v9076_v61  ;;  %v9085_v61 = vmax.f32 %v9021_v58, 0.0  ;;  %v8962_v31 = vmul.f32 %v13842_v57, %v14681_v46  ;;  %v9027_v17 = vadd.f32 %v13845_v53, %v8960_v38  ;;  %v8963_v27 = vmul.f32 %v13842_v57, %v14682_v11 }
 0xd31   :  { %9141 = vst.msk [vmem:[#allocation4 + $0x98] sm:$0xff] %vm4054_vm2, %v9077_v0  ;;  %v9086_v0 = vmax.f32 %v9022_v41, 0.0  ;;  %v9028_v52 = vadd.f32 %v13845_v53, %v8961_v12  ;;  %v9089_v56 = vmax.f32 %v9025_v59, 0.0  ;;  %v9097_v16 = vmax.f32 %v13941_v47, 0.0 }
 0xd32   :  { %9142 = vst.msk [vmem:[#allocation4 + $0xa0] sm:$0xff] %vm4054_vm2, %v9078_v43  ;;  %v9087_v43 = vmax.f32 %v9023_v25, 0.0  ;;  %v9029_v8 = vadd.f32 %v13845_v53, %v8962_v31  ;;  %v9030_v3 = vadd.f32 %v13845_v53, %v8963_v27  ;;  %v9091_v23 = vmax.f32 %v9027_v17, 0.0 }
 0xd33   :  { %9143 = vst.msk [vmem:[#allocation4 + $0xa8] sm:$0xff] %vm4054_vm2, %v9079_v40  ;;  %v9088_v40 = vmax.f32 %v9024_v4, 0.0  ;;  %v9092_v51 = vmax.f32 %v9028_v52, 0.0  ;;  %v9096_v53 = vmax.f32 %v13938_v33, 0.0  ;;  %v9098_v21 = vmax.f32 %v13944_v55, 0.0 }
 0xd34   :  { %9144 = vst.msk [vmem:[#allocation4 + $0xb0] sm:$0xff] %vm4054_vm2, %v9080_v7  ;;  %v9090_v7 = vmax.f32 %v9026_v20, 0.0  ;;  %v9093_v57 = vmax.f32 %v9029_v8, 0.0  ;;  %v9094_v58 = vmax.f32 %v9030_v3, 0.0  ;;  %v9099_v41 = vmax.f32 %v13947_v62, 0.0 }
 0xd35   :  { %9145 = vst.msk [vmem:[#allocation4 + $0xb8] sm:$0xff] %vm4054_vm2, %v9081_v9  ;;  %v9095_v9 = vmax.f32 %v13935_v36, 0.0  ;;  %v9100_v36 = vmax.f32 %v13950_v26, 0.0  ;;  %v9101_v33 = vmax.f32 %v13953_v54, 0.0  ;;  %v9102_v47 = vmax.f32 %v13956_v2, 0.0 }
 0xd36   :  { %9146 = vst.msk [vmem:[#allocation4 + $0xc0] sm:$0xff] %vm4054_vm2, %v9082_v10  ;;  %v9103_v55 = vmax.f32 %v13959_v22, 0.0  ;;  %v9104_v62 = vmax.f32 %v13962_v14, 0.0  ;;  %v9105_v26 = vmax.f32 %v13965_v6, 0.0  ;;  %v9106_v54 = vmax.f32 %v13968_v30, 0.0 }
 0xd37   :  { %9147 = vst.msk [vmem:[#allocation4 + $0xc8] sm:$0xff] %vm4054_vm2, %v9083_v1  ;;  %v9107_v2 = vmax.f32 %v13971_v63, 0.0  ;;  %v9108_v22 = vmax.f32 %v13974_v24, 0.0  ;;  %v9109_v14 = vmax.f32 %v13977_v13, 0.0  ;;  %v9110_v6 = vmax.f32 %v13980_v39, 0.0 }
 0xd38   :  { %9148 = vst.msk [vmem:[#allocation4 + $0xd0] sm:$0xff] %vm4054_vm2, %v9084_v19  ;;  %v9111_v30 = vmax.f32 %v13983_v18, 0.0  ;;  %v9112_v63 = vmax.f32 %v13986_v29, 0.0  ;;  %v9113_v24 = vmax.f32 %v13989_v34, 0.0  ;;  %v9114_v13 = vmax.f32 %v13992_v49, 0.0 }
 0xd39   :  { %9149 = vst.msk [vmem:[#allocation4 + $0xd8] sm:$0xff] %vm4054_vm2, %v9085_v61  ;;  %v9115_v39 = vmax.f32 %v13995_v5, 0.0  ;;  %v9116_v18 = vmax.f32 %v13998_v32, 0.0  ;;  %v9117_v29 = vmax.f32 %v14001_v48, 0.0  ;;  %v9118_v34 = vmax.f32 %v14004_v15, 0.0 }
 0xd3a   :  { %9150 = vst.msk [vmem:[#allocation4 + $0xe0] sm:$0xff] %vm4054_vm2, %v9086_v0  ;;  %v9119_v49 = vmax.f32 %v14007_v60, 0.0  ;;  %v9120_v5 = vmax.f32 %v14010_v45, 0.0 }
 0xd3b   :  { %9151 = vst.msk [vmem:[#allocation4 + $0xe8] sm:$0xff] %vm4054_vm2, %v9087_v43 }
 0xd3c   :  { %9152 = vst.msk [vmem:[#allocation4 + $0xf0] sm:$0xff] %vm4054_vm2, %v9088_v40 }
 0xd3d   :  { %9153 = vst.msk [vmem:[#allocation4 + $0xf8] sm:$0xff] %vm4054_vm2, %v9089_v56 }
 0xd3e   :  { %9154 = vst.msk [vmem:[#allocation4 + $0x100] sm:$0xff] %vm4054_vm2, %v9090_v7 }
 0xd3f   :  { %9155 = vst.msk [vmem:[#allocation4 + $0x108] sm:$0xff] %vm4054_vm2, %v9091_v23 }
 0xd40   :  { %9156 = vst.msk [vmem:[#allocation4 + $0x110] sm:$0xff] %vm4054_vm2, %v9092_v51 }
 0xd41   :  { %9157 = vst.msk [vmem:[#allocation4 + $0x118] sm:$0xff] %vm4054_vm2, %v9093_v57 }
 0xd42   :  { %9158 = vst.msk [vmem:[#allocation4 + $0x120] sm:$0xff] %vm4054_vm2, %v9094_v58 }
 0xd43   :  { %9159 = vst.msk [vmem:[#allocation4 + $0x128] sm:$0xff] %vm4054_vm2, %v9095_v9 }
 0xd44   :  { %9160 = vst.msk [vmem:[#allocation4 + $0x130] sm:$0xff] %vm4054_vm2, %v9096_v53 }
 0xd45   :  { %9161 = vst.msk [vmem:[#allocation4 + $0x138] sm:$0xff] %vm4054_vm2, %v9097_v16 }
 0xd46   :  { %9162 = vst.msk [vmem:[#allocation4 + $0x140] sm:$0xff] %vm4054_vm2, %v9098_v21 }
 0xd47   :  { %9163 = vst.msk [vmem:[#allocation4 + $0x148] sm:$0xff] %vm4054_vm2, %v9099_v41 }
 0xd48   :  { %9164 = vst.msk [vmem:[#allocation4 + $0x150] sm:$0xff] %vm4054_vm2, %v9100_v36 }
 0xd49   :  { %9165 = vst.msk [vmem:[#allocation4 + $0x158] sm:$0xff] %vm4054_vm2, %v9101_v33 }
 0xd4a   :  { %9166 = vst.msk [vmem:[#allocation4 + $0x160] sm:$0xff] %vm4054_vm2, %v9102_v47 }
 0xd4b   :  { %9167 = vst.msk [vmem:[#allocation4 + $0x168] sm:$0xff] %vm4054_vm2, %v9103_v55 }
 0xd4c   :  { %9168 = vst.msk [vmem:[#allocation4 + $0x170] sm:$0xff] %vm4054_vm2, %v9104_v62 }
 0xd4d   :  { %9169 = vst.msk [vmem:[#allocation4 + $0x178] sm:$0xff] %vm4054_vm2, %v9105_v26 }
 0xd4e   :  { %9170 = vst.msk [vmem:[#allocation4 + $0x180] sm:$0xff] %vm4054_vm2, %v9106_v54 }
 0xd4f   :  { %9171 = vst.msk [vmem:[#allocation4 + $0x188] sm:$0xff] %vm4054_vm2, %v9107_v2 }
 0xd50   :  { %9172 = vst.msk [vmem:[#allocation4 + $0x190] sm:$0xff] %vm4054_vm2, %v9108_v22 }
 0xd51   :  { %9173 = vst.msk [vmem:[#allocation4 + $0x198] sm:$0xff] %vm4054_vm2, %v9109_v14 }
 0xd52   :  { %9174 = vst.msk [vmem:[#allocation4 + $0x1a0] sm:$0xff] %vm4054_vm2, %v9110_v6 }
 0xd53   :  { %9175 = vst.msk [vmem:[#allocation4 + $0x1a8] sm:$0xff] %vm4054_vm2, %v9111_v30 }
 0xd54   :  { %9176 = vst.msk [vmem:[#allocation4 + $0x1b0] sm:$0xff] %vm4054_vm2, %v9112_v63 }
 0xd55   :  { %9177 = vst.msk [vmem:[#allocation4 + $0x1b8] sm:$0xff] %vm4054_vm2, %v9113_v24 }
 0xd56   :  { %9178 = vst.msk [vmem:[#allocation4 + $0x1c0] sm:$0xff] %vm4054_vm2, %v9114_v13 }
 0xd57   :  { %9179 = vst.msk [vmem:[#allocation4 + $0x1c8] sm:$0xff] %vm4054_vm2, %v9115_v39 }
 0xd58   :  { %9180 = vst.msk [vmem:[#allocation4 + $0x1d0] sm:$0xff] %vm4054_vm2, %v9116_v18 }
 0xd59   :  { %9181 = vst.msk [vmem:[#allocation4 + $0x1d8] sm:$0xff] %vm4054_vm2, %v9117_v29 }
 0xd5a   :  { %9182 = vst.msk [vmem:[#allocation4 + $0x1e0] sm:$0xff] %vm4054_vm2, %v9118_v34 }
 0xd5b   :  { %9183 = vst.msk [vmem:[#allocation4 + $0x1e8] sm:$0xff] %vm4054_vm2, %v9119_v49 }
 0xd5c   :  { %9184 = vst.msk [vmem:[#allocation4 + $0x1f0] sm:$0xff] %vm4054_vm2, %v9120_v5 }
 0xd5d   :  { %9198 = dma.vmem_to_hbm [thread:$0]  %s9191_s6, 8192, %s9193_s0, [#allocation5], %s9858_s8, %s9858_s8, %s9859_s7  }
 0xd5e   :  { %9854 = dma.done.wait [#allocation5], 8192  }
 0xd5f   :  { %9855 = vsyncadd [#allocation5], 4294959104 }
 0xd60   :  { %9203 = vsyncpa [#allocation5], 1 }

</bundles_post_ra>
